<compile_context>
chip_gen: v7x
topology: tpu7x:2x2x1
jax: 0.10.0
libtpu: 0.0.40
codegen_flags: <defaults>
</compile_context>

<pallas_src>
import numpy as np
import jax
import jax.numpy as jnp
from jax.experimental import pallas as pl
from jax.experimental.pallas import tpu as pltpu

# logical sizes (from the PyTorch module)
IM_SZ = 784          # im_sz
ENC_FC1 = 400        # enc_fc1_sz
DEC_FC1 = 400        # dec_fc1_sz
Z_SZ = 4             # z_sz
Z_HALF = Z_SZ // 2   # latent dim actually used by the decoder

# lane-padded sizes (multiples of 128) for dense vregs / unmasked stores
IM_P = 896           # 7 * 128
ENC_P = 512          # 4 * 128
DEC_P = 512          # 4 * 128
Z_P = 128            # enc_fc2 output emitted as one 128-lane tile

BATCH_TILE = 256     # multiple of 128: fills the MXU on v5e/v6e/v7x


# ---------------------------------------------------------------------------
# Pallas kernel: whole VAE forward (encode -> reparam -> decode) per batch tile
# ---------------------------------------------------------------------------
def vae_fwd_kernel(x_ref, eps_ref,
                   w1_ref, w2_ref, w3_ref, w4_ref, b_ref,
                   out_ref):
    x = x_ref[...]                                             # [Bt, 896] bf16

    # packed biases: row 0 = b1, 1 = b2, 2 = b3, 3 = b4 (zero padded), f32
    b1 = b_ref[0:1, 0:ENC_P]                                   # [1, 512]
    b2 = b_ref[1:2, 0:Z_P]                                     # [1, 128]
    b3 = b_ref[2:3, 0:DEC_P]                                   # [1, 512]
    b4 = b_ref[3:4, 0:IM_P]                                    # [1, 896]

    # ----- encoder -----
    h1 = jnp.dot(x, w1_ref[...],
                 preferred_element_type=jnp.float32) + b1      # [Bt, 512] f32
    h1 = jnp.maximum(h1, 0.2 * h1)                             # leaky_relu(0.2)
    h = jnp.dot(h1.astype(jnp.bfloat16), w2_ref[...],
                preferred_element_type=jnp.float32) + b2       # [Bt, 128] f32

    mu = h[:, 0:Z_HALF]                                        # [Bt, 2]
    logvar = h[:, Z_HALF:Z_SZ]                                 # [Bt, 2]

    # ----- reparameterization: z = mu + eps * exp(logvar / 2) -----
    z = mu + eps_ref[...] * jnp.exp(logvar * 0.5)              # [Bt, 2] f32

    # ----- decoder -----
    # K=2 contraction done as explicit broadcast MACs on the VPU (f32);
    # avoids a degenerate 2-wide MXU matmul.
    d1 = (z[:, 0:1] * w3_ref[0:1, :]
          + z[:, 1:2] * w3_ref[1:2, :]) + b3                   # [Bt, 512]
    d1 = jnp.maximum(d1, 0.0)                                  # relu
    d2 = jnp.dot(d1.astype(jnp.bfloat16), w4_ref[...],
                 preferred_element_type=jnp.float32) + b4      # [Bt, 896]

    out_ref[...] = jax.nn.sigmoid(d2)
    # Stash [mu | logvar] in the recon tile's padded lanes (sliced out in the
    # wrapper) -> no second output stream.
    out_ref[:, IM_SZ:IM_SZ + Z_SZ] = h[:, 0:Z_SZ]


# ---------------------------------------------------------------------------
# Parameter packing: zero-pad to lane multiples, bf16-cast the MXU matrices
# (w1, w2, w4), pack the four biases into a single (4, 896) f32 array.
# ---------------------------------------------------------------------------
def pack_params(params):
    w1, b1, w2, b2, w3, b3, w4, b4 = params
    w1p = (jnp.zeros((IM_P, ENC_P), jnp.float32)
           .at[:IM_SZ, :ENC_FC1].set(w1).astype(jnp.bfloat16))
    w2p = (jnp.zeros((ENC_P, Z_P), jnp.float32)
           .at[:ENC_FC1, :Z_SZ].set(w2).astype(jnp.bfloat16))
    w3p = jnp.zeros((Z_HALF, DEC_P), jnp.float32).at[:, :DEC_FC1].set(w3)
    w4p = (jnp.zeros((DEC_P, IM_P), jnp.float32)
           .at[:DEC_FC1, :IM_SZ].set(w4).astype(jnp.bfloat16))
    bias = jnp.zeros((4, IM_P), jnp.float32)
    bias = bias.at[0, :ENC_FC1].set(b1.reshape(-1))
    bias = bias.at[1, :Z_SZ].set(b2.reshape(-1))
    bias = bias.at[2, :DEC_FC1].set(b3.reshape(-1))
    bias = bias.at[3, :IM_SZ].set(b4.reshape(-1))
    return w1p, w2p, w3p, w4p, bias


# ---------------------------------------------------------------------------
# Wrapper
# ---------------------------------------------------------------------------
def vae_forward(x, eps, packed, *, batch_tile=BATCH_TILE):
    w1p, w2p, w3p, w4p, bias = packed
    B = x.shape[0]
    # don't over-pad tiny batches; keep the tile a multiple of 8 sublanes
    bt = min(batch_tile, ((B + 7) // 8) * 8)
    Bp = ((B + bt - 1) // bt) * bt

    # x: zero-pad batch/lanes and pre-cast to bf16 (MXU operand only)
    xp = jnp.zeros((Bp, IM_P), jnp.bfloat16).at[:B, :IM_SZ].set(
        x.astype(jnp.bfloat16))
    # eps stays f32 (tiny 2-lane stream; <0.5% of x bytes at bt=256)
    epsp = jnp.zeros((Bp, Z_HALF), jnp.float32).at[:B].set(eps)

    flops = 2 * Bp * (IM_SZ * ENC_FC1 + ENC_FC1 * Z_SZ
                      + Z_HALF * DEC_FC1 + DEC_FC1 * IM_SZ)
    in_bytes = sum(int(np.prod(a.shape)) * a.dtype.itemsize
                   for a in (xp, epsp, w1p, w2p, w3p, w4p, bias))
    bytes_accessed = in_bytes + Bp * IM_P * 4
    cost = pl.CostEstimate(flops=flops,
                           transcendentals=Bp * (Z_HALF + IM_SZ),
                           bytes_accessed=bytes_accessed)

    res = pl.pallas_call(
        vae_fwd_kernel,
        out_shape=jax.ShapeDtypeStruct((Bp, IM_P), jnp.float32),
        grid=(Bp // bt,),
        in_specs=[
            pl.BlockSpec((bt, IM_P), lambda i: (i, 0)),        # x   (streamed, bf16)
            pl.BlockSpec((bt, Z_HALF), lambda i: (i, 0)),      # eps (streamed, f32)
            pl.BlockSpec((IM_P, ENC_P), lambda i: (0, 0)),     # w1  (resident)
            pl.BlockSpec((ENC_P, Z_P), lambda i: (0, 0)),      # w2  (resident)
            pl.BlockSpec((Z_HALF, DEC_P), lambda i: (0, 0)),   # w3  (resident)
            pl.BlockSpec((DEC_P, IM_P), lambda i: (0, 0)),     # w4  (resident)
            pl.BlockSpec((4, IM_P), lambda i: (0, 0)),         # packed biases
        ],
        out_specs=pl.BlockSpec((bt, IM_P), lambda i: (i, 0)),  # recon + [mu|logvar]
        compiler_params=pltpu.CompilerParams(
            dimension_semantics=("parallel",)),
        cost_estimate=cost,
    )(xp, epsp, w1p, w2p, w3p, w4p, bias)

    out = res[:B, :IM_SZ]
    mu = res[:B, IM_SZ:IM_SZ + Z_HALF]
    logvar = res[:B, IM_SZ + Z_HALF:IM_SZ + Z_SZ]
    return out, mu, logvar


# ---------------------------------------------------------------------------
# Deterministic parameter init (PyTorch nn.Linear-style uniform fan-in init);
# weights stored as [in_features, out_features] so every layer is y = x @ W + b.
# ---------------------------------------------------------------------------
def _init_linear(key, fan_in, fan_out):
    kw, kb = jax.random.split(key)
    bound = 1.0 / np.sqrt(fan_in)
    w = jax.random.uniform(kw, (fan_in, fan_out), jnp.float32, -bound, bound)
    b = jax.random.uniform(kb, (1, fan_out), jnp.float32, -bound, bound)
    return w, b


def init_params(key):
    k1, k2, k3, k4 = jax.random.split(key, 4)
    w1, b1 = _init_linear(k1, IM_SZ, ENC_FC1)       # enc_fc1
    w2, b2 = _init_linear(k2, ENC_FC1, Z_SZ)        # enc_fc2
    w3, b3 = _init_linear(k3, Z_HALF, DEC_FC1)      # dec_fc1
    w4, b4 = _init_linear(k4, DEC_FC1, IM_SZ)       # dec_fc2
    return (w1, b1, w2, b2, w3, b3, w4, b4)


# Pure-JAX reference with the same bf16-operand / f32-accumulate numerics.
def ref_forward(x, eps, params):
    w1, b1, w2, b2, w3, b3, w4, b4 = params
    xb = x.astype(jnp.bfloat16)
    h1 = jnp.dot(xb, w1.astype(jnp.bfloat16),
                 preferred_element_type=jnp.float32) + b1
    h1 = jnp.maximum(h1, 0.2 * h1)
    h = jnp.dot(h1.astype(jnp.bfloat16), w2.astype(jnp.bfloat16),
                preferred_element_type=jnp.float32) + b2
    mu, logvar = h[:, :Z_HALF], h[:, Z_HALF:]
    z = mu + eps * jnp.exp(logvar / 2.0)
    d1 = jnp.maximum(z @ w3 + b3, 0.0)
    out = jax.nn.sigmoid(
        jnp.dot(d1.astype(jnp.bfloat16), w4.astype(jnp.bfloat16),
                preferred_element_type=jnp.float32) + b4)
    return out, mu, logvar


if __name__ == "__main__":
    key = jax.random.PRNGKey(0)
    k_x, k_eps, k_p = jax.random.split(key, 3)

    # B=500 pads to 512 -> grid of 2 tiles of 256 (even length: both v7x TCs
    # get work) and exercises the batch-padding / slicing path.
    B = 500
    x = jax.random.uniform(k_x, (B, IM_SZ), jnp.float32)        # "image" batch
    # eps of torch.randn(...) from reperam(), drawn deterministically here
    eps = jax.random.normal(k_eps, (B, Z_HALF), jnp.float32)
    params = init_params(k_p)
    packed = pack_params(params)

    out, mu, logvar = vae_forward(x, eps, packed)
    jax.block_until_ready((out, mu, logvar))

    out_r, mu_r, logvar_r = ref_forward(x, eps, params)
    np.testing.assert_allclose(np.asarray(out), np.asarray(out_r),
                               atol=2e-4, rtol=2e-4)
    np.testing.assert_allclose(np.asarray(mu), np.asarray(mu_r),
                               atol=2e-4, rtol=2e-4)
    np.testing.assert_allclose(np.asarray(logvar), np.asarray(logvar_r),
                               atol=2e-4, rtol=2e-4)

    print("KERNEL_OK")
</pallas_src>

<mosaic_0001>
module attributes {stable_mosaic.version = 11 : i64} {
  func.func @vae_fwd_kernel(%arg0: i32, %arg1: memref<256x896xbf16, #tpu.memory_space<vmem>>, %arg2: memref<256x2xf32, #tpu.memory_space<vmem>>, %arg3: memref<896x512xbf16, #tpu.memory_space<vmem>>, %arg4: memref<512x128xbf16, #tpu.memory_space<vmem>>, %arg5: memref<2x512xf32, #tpu.memory_space<vmem>>, %arg6: memref<512x896xbf16, #tpu.memory_space<vmem>>, %arg7: memref<4x896xf32, #tpu.memory_space<vmem>>, %arg8: memref<256x896xf32, #tpu.memory_space<vmem>>) attributes {dimension_semantics = [#tpu.dimension_semantics<parallel>], iteration_bounds = array<i64: 2>, scalar_prefetch = 0 : i64, scratch_operands = 0 : i64, tpu.core_type = #tpu.core_type<tc>, window_params = [{transform_indices = @transform_0, window_bounds = array<i64: 256, 896>}, {transform_indices = @transform_1, window_bounds = array<i64: 256, 2>}, {pipeline_mode = #tpu.pipeline_mode<synchronous>, transform_indices = @transform_2, window_bounds = array<i64: 896, 512>}, {pipeline_mode = #tpu.pipeline_mode<synchronous>, transform_indices = @transform_3, window_bounds = array<i64: 512, 128>}, {pipeline_mode = #tpu.pipeline_mode<synchronous>, transform_indices = @transform_4, window_bounds = array<i64: 2, 512>}, {pipeline_mode = #tpu.pipeline_mode<synchronous>, transform_indices = @transform_5, window_bounds = array<i64: 512, 896>}, {pipeline_mode = #tpu.pipeline_mode<synchronous>, transform_indices = @transform_6, window_bounds = array<i64: 4, 896>}, {transform_indices = @transform_7, window_bounds = array<i64: 256, 896>}]} {
    %c0 = arith.constant 0 : index
    %c0_0 = arith.constant 0 : index
    %0 = vector.load %arg1[%c0, %c0_0] : memref<256x896xbf16, #tpu.memory_space<vmem>>, vector<256x896xbf16>
    %c0_1 = arith.constant 0 : index
    %c0_2 = arith.constant 0 : index
    %1 = vector.load %arg7[%c0_1, %c0_2] : memref<4x896xf32, #tpu.memory_space<vmem>>, vector<1x512xf32>
    %c1 = arith.constant 1 : index
    %c0_3 = arith.constant 0 : index
    %2 = vector.load %arg7[%c1, %c0_3] : memref<4x896xf32, #tpu.memory_space<vmem>>, vector<1x128xf32>
    %c2 = arith.constant 2 : index
    %c0_4 = arith.constant 0 : index
    %3 = vector.load %arg7[%c2, %c0_4] : memref<4x896xf32, #tpu.memory_space<vmem>>, vector<1x512xf32>
    %c3 = arith.constant 3 : index
    %c0_5 = arith.constant 0 : index
    %4 = vector.load %arg7[%c3, %c0_5] : memref<4x896xf32, #tpu.memory_space<vmem>>, vector<1x896xf32>
    %c0_6 = arith.constant 0 : index
    %c0_7 = arith.constant 0 : index
    %5 = vector.load %arg3[%c0_6, %c0_7] : memref<896x512xbf16, #tpu.memory_space<vmem>>, vector<896x512xbf16>
    %cst = arith.constant dense<0.000000e+00> : vector<256x512xf32>
    %6 = tpu.matmul %0, %5, %cst {dimension_numbers = #tpu.dot_dimension_numbers<[1], [0], [0], [1], [0, 0, 1, 1], [], []>} : vector<256x896xbf16>, vector<896x512xbf16>, vector<256x512xf32> -> vector<256x512xf32>
    %7 = vector.broadcast %1 : vector<1x512xf32> to vector<256x512xf32>
    %8 = arith.addf %6, %7 : vector<256x512xf32>
    %cst_8 = arith.constant 2.000000e-01 : f32
    %9 = vector.broadcast %cst_8 : f32 to vector<256x512xf32>
    %10 = arith.mulf %9, %8 : vector<256x512xf32>
    %11 = arith.maximumf %8, %10 : vector<256x512xf32>
    %12 = arith.truncf %11 : vector<256x512xf32> to vector<256x512xbf16>
    %c0_9 = arith.constant 0 : index
    %c0_10 = arith.constant 0 : index
    %13 = vector.load %arg4[%c0_9, %c0_10] : memref<512x128xbf16, #tpu.memory_space<vmem>>, vector<512x128xbf16>
    %cst_11 = arith.constant dense<0.000000e+00> : vector<256x128xf32>
    %14 = tpu.matmul %12, %13, %cst_11 {dimension_numbers = #tpu.dot_dimension_numbers<[1], [0], [0], [1], [0, 0, 1, 1], [], []>} : vector<256x512xbf16>, vector<512x128xbf16>, vector<256x128xf32> -> vector<256x128xf32>
    %15 = vector.broadcast %2 : vector<1x128xf32> to vector<256x128xf32>
    %16 = arith.addf %14, %15 : vector<256x128xf32>
    %17 = vector.extract_strided_slice %16 {offsets = [0, 0], sizes = [256, 2], strides = [1, 1]} : vector<256x128xf32> to vector<256x2xf32>
    %18 = vector.extract_strided_slice %16 {offsets = [0, 2], sizes = [256, 2], strides = [1, 1]} : vector<256x128xf32> to vector<256x2xf32>
    %c0_12 = arith.constant 0 : index
    %c0_13 = arith.constant 0 : index
    %19 = vector.load %arg2[%c0_12, %c0_13] : memref<256x2xf32, #tpu.memory_space<vmem>>, vector<256x2xf32>
    %cst_14 = arith.constant 5.000000e-01 : f32
    %20 = vector.broadcast %cst_14 : f32 to vector<256x2xf32>
    %21 = arith.mulf %18, %20 : vector<256x2xf32>
    %22 = math.exp %21 : vector<256x2xf32>
    %23 = arith.mulf %19, %22 : vector<256x2xf32>
    %24 = arith.addf %17, %23 : vector<256x2xf32>
    %25 = vector.extract_strided_slice %24 {offsets = [0, 0], sizes = [256, 1], strides = [1, 1]} : vector<256x2xf32> to vector<256x1xf32>
    %c0_15 = arith.constant 0 : index
    %c0_16 = arith.constant 0 : index
    %26 = vector.load %arg5[%c0_15, %c0_16] : memref<2x512xf32, #tpu.memory_space<vmem>>, vector<1x512xf32>
    %27 = vector.broadcast %25 : vector<256x1xf32> to vector<256x512xf32>
    %28 = vector.broadcast %26 : vector<1x512xf32> to vector<256x512xf32>
    %29 = arith.mulf %27, %28 : vector<256x512xf32>
    %30 = vector.extract_strided_slice %24 {offsets = [0, 1], sizes = [256, 1], strides = [1, 1]} : vector<256x2xf32> to vector<256x1xf32>
    %c1_17 = arith.constant 1 : index
    %c0_18 = arith.constant 0 : index
    %31 = vector.load %arg5[%c1_17, %c0_18] : memref<2x512xf32, #tpu.memory_space<vmem>>, vector<1x512xf32>
    %32 = vector.broadcast %30 : vector<256x1xf32> to vector<256x512xf32>
    %33 = vector.broadcast %31 : vector<1x512xf32> to vector<256x512xf32>
    %34 = arith.mulf %32, %33 : vector<256x512xf32>
    %35 = arith.addf %29, %34 : vector<256x512xf32>
    %36 = vector.broadcast %3 : vector<1x512xf32> to vector<256x512xf32>
    %37 = arith.addf %35, %36 : vector<256x512xf32>
    %cst_19 = arith.constant 0.000000e+00 : f32
    %38 = vector.broadcast %cst_19 : f32 to vector<256x512xf32>
    %39 = arith.maximumf %37, %38 : vector<256x512xf32>
    %40 = arith.truncf %39 : vector<256x512xf32> to vector<256x512xbf16>
    %c0_20 = arith.constant 0 : index
    %c0_21 = arith.constant 0 : index
    %41 = vector.load %arg6[%c0_20, %c0_21] : memref<512x896xbf16, #tpu.memory_space<vmem>>, vector<512x896xbf16>
    %cst_22 = arith.constant dense<0.000000e+00> : vector<256x896xf32>
    %42 = tpu.matmul %40, %41, %cst_22 {dimension_numbers = #tpu.dot_dimension_numbers<[1], [0], [0], [1], [0, 0, 1, 1], [], []>} : vector<256x512xbf16>, vector<512x896xbf16>, vector<256x896xf32> -> vector<256x896xf32>
    %43 = vector.broadcast %4 : vector<1x896xf32> to vector<256x896xf32>
    %44 = arith.addf %42, %43 : vector<256x896xf32>
    %45 = arith.negf %44 : vector<256x896xf32>
    %46 = math.exp %45 : vector<256x896xf32>
    %cst_23 = arith.constant 1.000000e+00 : f32
    %47 = vector.broadcast %cst_23 : f32 to vector<256x896xf32>
    %48 = arith.addf %47, %46 : vector<256x896xf32>
    %49 = arith.divf %47, %48 : vector<256x896xf32>
    %c0_24 = arith.constant 0 : index
    %c0_25 = arith.constant 0 : index
    %50 = vector.load %arg8[%c0_24, %c0_25] : memref<256x896xf32, #tpu.memory_space<vmem>>, vector<256x896xf32>
    tpu.vector_store %arg8[%c0_24, %c0_25], %49 {strides = array<i32>} : memref<256x896xf32, #tpu.memory_space<vmem>>, vector<256x896xf32>,
    %51 = vector.extract_strided_slice %16 {offsets = [0, 0], sizes = [256, 4], strides = [1, 1]} : vector<256x128xf32> to vector<256x4xf32>
    %c0_26 = arith.constant 0 : index
    %c784 = arith.constant 784 : index
    %52 = vector.load %arg8[%c0_26, %c784] : memref<256x896xf32, #tpu.memory_space<vmem>>, vector<256x4xf32>
    tpu.vector_store %arg8[%c0_26, %c784], %51 {strides = array<i32>} : memref<256x896xf32, #tpu.memory_space<vmem>>, vector<256x4xf32>,
    return
  }
  func.func @transform_0(%arg0: i32) -> (i32, i32) {
    %c0_i32 = arith.constant 0 : i32
    %c0_i32_0 = arith.constant 0 : i32
    return %arg0, %c0_i32 : i32, i32
  }
  func.func @transform_1(%arg0: i32) -> (i32, i32) {
    %c0_i32 = arith.constant 0 : i32
    %c0_i32_0 = arith.constant 0 : i32
    return %arg0, %c0_i32 : i32, i32
  }
  func.func @transform_2(%arg0: i32) -> (i32, i32) {
    %c0_i32 = arith.constant 0 : i32
    %c0_i32_0 = arith.constant 0 : i32
    %c0_i32_1 = arith.constant 0 : i32
    return %c0_i32, %c0_i32_0 : i32, i32
  }
  func.func @transform_3(%arg0: i32) -> (i32, i32) {
    %c0_i32 = arith.constant 0 : i32
    %c0_i32_0 = arith.constant 0 : i32
    %c0_i32_1 = arith.constant 0 : i32
    return %c0_i32, %c0_i32_0 : i32, i32
  }
  func.func @transform_4(%arg0: i32) -> (i32, i32) {
    %c0_i32 = arith.constant 0 : i32
    %c0_i32_0 = arith.constant 0 : i32
    %c0_i32_1 = arith.constant 0 : i32
    return %c0_i32, %c0_i32_0 : i32, i32
  }
  func.func @transform_5(%arg0: i32) -> (i32, i32) {
    %c0_i32 = arith.constant 0 : i32
    %c0_i32_0 = arith.constant 0 : i32
    %c0_i32_1 = arith.constant 0 : i32
    return %c0_i32, %c0_i32_0 : i32, i32
  }
  func.func @transform_6(%arg0: i32) -> (i32, i32) {
    %c0_i32 = arith.constant 0 : i32
    %c0_i32_0 = arith.constant 0 : i32
    %c0_i32_1 = arith.constant 0 : i32
    return %c0_i32, %c0_i32_0 : i32, i32
  }
  func.func @transform_7(%arg0: i32) -> (i32, i32) {
    %c0_i32 = arith.constant 0 : i32
    %c0_i32_0 = arith.constant 0 : i32
    return %arg0, %c0_i32 : i32, i32
  }
}

</mosaic_0001>

<bundles_post_ra>
// kernel: tpu_custom_call.1
= control target key start
LH: loop header
LB: loop body
LE: loop exit
PB: predicated region body
PF: predicated region fallthrough
CT: control target
= control target key end

     0   :  { %s18904_s0 = inlined_call_operand.hbm [shape: bf16[512,896], index: 0, kind: input, shape index: {}]   ;;  %s18905_s1 = inlined_call_operand.vmem [shape: f32[512,2], index: 1, kind: input, shape index: {}]   ;;  %s18906_s2 = inlined_call_operand.hbm [shape: bf16[896,512], index: 2, kind: input, shape index: {}]   ;;  %s18907_s3 = inlined_call_operand.hbm [shape: bf16[512,128], index: 3, kind: input, shape index: {}]   ;;  %s18908_s4 = inlined_call_operand.hbm [shape: f32[2,512], index: 4, kind: input, shape index: {}]   ;;  %s18909_s5 = inlined_call_operand.hbm [shape: bf16[512,896], index: 5, kind: input, shape index: {}]   ;;  %s18910_s6 = inlined_call_operand.hbm [shape: f32[4,896], index: 6, kind: input, shape index: {}]   ;;  %s18911_s7 = inlined_call_operand.hbm [shape: f32[512,896], index: 7, kind: output, shape index: {}]  }
   0x1   :  { %19033 = sst [smem:[#allocation79_spill]] %s18906_s2 }
   0x2   :  { %12 = vsyncpa [#allocation3], 0 }
   0x3   :  { %14 = vsyncpa [#allocation3 + $0x1], 0 }
   0x4   :  { %15 = vsyncpa [#allocation6], 0 }
   0x5   :  { %16 = vsyncpa [#allocation9], 0 }
   0x6   :  { %17 = vsyncpa [#allocation12], 0 }
   0x7   :  { %18 = vsyncpa [#allocation4], 0 }
   0x8   :  { %20 = vsyncpa [#allocation4 + $0x1], 0  ;;  %s15558_s24 = smov 0   ;;  %s15560_s25 = smov 0  }
   0x9   :  { %s15562_s26 = smov 0   ;;  %s15564_s27 = smov 0  }
   0xa LB: > { %s15499_s28 = smov [#allocation5]   ;;  %s15579_s30 = sadd.s32 4294967295, %s15497_s27   ;;  %s15497_s27 = sphi %s15564_s27, %s19295_s27   ;;  %s15493_s26 = sphi %s15562_s26, %s19294_s26   ;;  %s15489_s25 = sphi %s15560_s25, %s19293_s25   ;;  %s15485_s24 = sphi %s15558_s24, %s19292_s24  }
   0xb   : > { %s226_s29 = sshll.u32 %s15499_s28, 4  ;;  %p11093_p0 = scmp.ge.s32.totalorder %s15497_s27, 1  ;;  %s15584_s29 = int_to_ptr.vmem [resolvable:$true] %s226_s29 }
   0xc   : > { %p18912_p1 = scmp.eq.s32.totalorder %s15579_s30, 0  ;;  %p214_p2 = scmp.lt.s32.totalorder %s15497_s27, 3 }
   0xd   : > { %s15500_s9 = smov [#allocation8]   ;;  %s15501_s12 = smov [#allocation7]  }
   0xe   : > { %p15586_p3 = pnand %p11093_p0, %p214_p2  ;;  %s253_s10 = sshll.u32 %s15500_s9, 4  ;;  %s15599_s10 = int_to_ptr.vmem [resolvable:$true] %s253_s10 }
   0xf   : > { %s239_s13 = sshll.u32 %s15501_s12, 4  ;;  %s19036_s2 = sld [smem:[#allocation79_spill]]  ;;  %s15601_s13 = int_to_ptr.vmem [resolvable:$true] %s239_s13 }
  0x10   : > { %s19034_s8 = scalar_select %p15586_p3, 1, 0 }
  0x11   : > { %p13306_p5 = pneg %p15586_p3 }
  0x13   : > { %p15595_p6 = pnand %p13306_p5, %p18912_p1 }
  0x15   : > { %s15249_s16 = scalar_lea.hbm %s19036_s2, 28672  ;;  %p15611_p8 = pneg %p15595_p6 }
  0x16   : > { %p15250_p7 = scmp.ne.s32.totalorder %s19036_s2, %s15249_s16  ;;  %p15256_p11 = scmp.lt.u32.totalorder %s15249_s16, %s19036_s2 }
  0x18   : > { %p15252_p9 = pnand %p15611_p8, %p15250_p7 }
  0x1a   : > { %p15253_p10 = pneg %p15252_p9 }
  0x1c   : > { %p15258_p12 = pnand %p15256_p11, %p15253_p10 }
  0x1e   : > { %15261 = shalt.err (!%p15258_p12)
}
  0x1f   : > { %s15262_s22 = scalar_lea.vmem %s15584_s29, 28672  ;;  %p15270_p5 = scmp.lt.s32.totalorder %s15584_s29, %s15584_s29 }
  0x20   : > { %p15263_p13 = scmp.ne.s32.totalorder %s15584_s29, %s15262_s22  ;;  %p15271_p4 = scmp.lt.s32.totalorder %s15262_s22, %s15262_s22 }
  0x22   : > { %p15265_p0 = pnand %p15263_p13, %p15611_p8  ;;  %p15272_p7 = por %p15271_p4, %p15270_p5 }
  0x24   : > { %p15266_p2 = pneg %p15265_p0 }
  0x26   : > { %p15273_p9 = pnand %p15272_p7, %p15266_p2 }
  0x28   : > { %15276 = shalt.err (!%p15273_p9)
}
  0x29   : > { %s15502_s23 = smov 256   ;;  %s15503_s28 = smov 16  }
  0x2a   : > { %13309 = dma.hbm_to_vmem [thread:$0]  (!%p15595_p6), %s19036_s2, 28672, %s15584_s29, [#allocation6], %s15502_s23, %s15502_s23, %s15503_s28  }
  0x2b   : > { %s15277_s16 = scalar_lea.hbm %s18908_s4, 128 }
  0x2c   : > { %p15278_p4 = scmp.ne.s32.totalorder %s18908_s4, %s15277_s16  ;;  %p15284_p12 = scmp.lt.u32.totalorder %s15277_s16, %s18908_s4 }
  0x2e   : > { %p15280_p10 = pnand %p15278_p4, %p15611_p8 }
  0x30   : > { %p15281_p11 = pneg %p15280_p10 }
  0x32   : > { %p15286_p13 = pnand %p15284_p12, %p15281_p11 }
  0x34   : > { %15289 = shalt.err (!%p15286_p13)
}
  0x35   : > { %s15290_s29 = scalar_lea.vmem %s15599_s10, 128  ;;  %p15298_p7 = scmp.lt.s32.totalorder %s15599_s10, %s15599_s10 }
  0x36   : > { %p15291_p0 = scmp.ne.s32.totalorder %s15599_s10, %s15290_s29  ;;  %p15299_p9 = scmp.lt.s32.totalorder %s15290_s29, %s15290_s29 }
  0x38   : > { %p15293_p2 = pnand %p15291_p0, %p15611_p8  ;;  %p15300_p4 = por %p15299_p9, %p15298_p7 }
  0x3a   : > { %p15294_p5 = pneg %p15293_p2 }
  0x3c   : > { %p15301_p10 = pnand %p15300_p4, %p15294_p5 }
  0x3e   : > { %15304 = shalt.err (!%p15301_p10)
}
  0x3f   : > { %13315 = dma.hbm_to_vmem [thread:$0]  (!%p15595_p6), %s18908_s4, 128, %s15599_s10, [#allocation9]  }
  0x40   : > { %s15305_s12 = scalar_lea.hbm %s18907_s3, 4096 }
  0x41   : > { %p15306_p11 = scmp.ne.s32.totalorder %s18907_s3, %s15305_s12  ;;  %p15312_p0 = scmp.lt.u32.totalorder %s15305_s12, %s18907_s3 }
  0x43   : > { %p15308_p12 = pnand %p15306_p11, %p15611_p8 }
  0x45   : > { %p15309_p13 = pneg %p15308_p12 }
  0x47   : > { %p15314_p2 = pnand %p15312_p0, %p15309_p13 }
  0x49   : > { %15317 = shalt.err (!%p15314_p2)
}
  0x4a   : > { %s15318_s10 = scalar_lea.vmem %s15601_s13, 4096  ;;  %p15326_p4 = scmp.lt.s32.totalorder %s15601_s13, %s15601_s13 }
  0x4b   : > { %p15319_p5 = scmp.ne.s32.totalorder %s15601_s13, %s15318_s10  ;;  %p15327_p10 = scmp.lt.s32.totalorder %s15318_s10, %s15318_s10 }
  0x4d   : > { %p15321_p7 = pnand %p15319_p5, %p15611_p8  ;;  %p15328_p11 = por %p15327_p10, %p15326_p4 }
  0x4f   : > { %p15322_p9 = pneg %p15321_p7 }
  0x51   : > { %p15329_p12 = pnand %p15328_p11, %p15322_p9 }
  0x53   : > { %15332 = shalt.err (!%p15329_p12)
}
  0x54   : > { %s15504_s18 = smov 64   ;;  %s15505_s20 = smov 4  }
  0x55   : > { %13312 = dma.hbm_to_vmem [thread:$0]  (!%p15595_p6), %s18907_s3, 4096, %s15601_s13, [#allocation6], %s15504_s18, %s15504_s18, %s15505_s20  }
  0x56   : > { %s15506_s22 = smov [#allocation10]   ;;  %s15333_s12 = scalar_lea.hbm %s18909_s5, 28672 }
  0x57   : > { %s263_s23 = sshll.u32 %s15506_s22, 4  ;;  %p15334_p13 = scmp.ne.s32.totalorder %s18909_s5, %s15333_s12  ;;  %s264_s23 = int_to_ptr.vmem [resolvable:$true] %s263_s23 }
  0x58   : > { %p15340_p5 = scmp.lt.u32.totalorder %s15333_s12, %s18909_s5 }
  0x59   : > { %p15336_p0 = pnand %p15334_p13, %p15611_p8 }
  0x5b   : > { %p15337_p2 = pneg %p15336_p0 }
  0x5d   : > { %p15342_p7 = pnand %p15340_p5, %p15337_p2 }
  0x5f   : > { %15345 = shalt.err (!%p15342_p7)
}
  0x60   : > { %s15346_s13 = scalar_lea.vmem %s264_s23, 28672  ;;  %p15354_p11 = scmp.lt.s32.totalorder %s264_s23, %s264_s23 }
  0x61   : > { %p15347_p9 = scmp.ne.s32.totalorder %s264_s23, %s15346_s13  ;;  %p15355_p12 = scmp.lt.s32.totalorder %s15346_s13, %s15346_s13 }
  0x63   : > { %p15349_p4 = pnand %p15347_p9, %p15611_p8  ;;  %p15356_p1 = por %p15355_p12, %p15354_p11 }
  0x65   : > { %p15350_p10 = pneg %p15349_p4 }
  0x67   : > { %p15357_p3 = pnand %p15356_p1, %p15350_p10 }
  0x69   : > { %15360 = shalt.err (!%p15357_p3)
}
  0x6a   : > { %s18914_s10 = smov 448   ;;  %s18915_s18 = smov 28  }
  0x6b   : > { %13318 = dma.hbm_to_vmem [thread:$0]  (!%p15595_p6), %s18909_s5, 28672, %s264_s23, [#allocation9], %s18914_s10, %s18914_s10, %s18915_s18  }
  0x6c   : > { %s15509_s29 = smov [#allocation11]   ;;  %s15361_s12 = scalar_lea.hbm %s18910_s6, 448 }
  0x6d   : > { %s277_s22 = sshll.u32 %s15509_s29, 4  ;;  %p15362_p1 = scmp.ne.s32.totalorder %s18910_s6, %s15361_s12  ;;  %s278_s22 = int_to_ptr.vmem [resolvable:$true] %s277_s22 }
  0x6e   : > { %p15368_p0 = scmp.lt.u32.totalorder %s15361_s12, %s18910_s6 }
  0x6f   : > { %p15364_p3 = pnand %p15362_p1, %p15611_p8 }
  0x71   : > { %p15365_p13 = pneg %p15364_p3 }
  0x73   : > { %p15370_p2 = pnand %p15368_p0, %p15365_p13 }
  0x75   : > { %15373 = shalt.err (!%p15370_p2)
}
  0x76   : > { %s15374_s23 = scalar_lea.vmem %s278_s22, 448  ;;  %p15382_p4 = scmp.lt.s32.totalorder %s278_s22, %s278_s22 }
  0x77   : > { %p15375_p5 = scmp.ne.s32.totalorder %s278_s22, %s15374_s23  ;;  %p15383_p10 = scmp.lt.s32.totalorder %s15374_s23, %s15374_s23 }
  0x79   : > { %p15377_p7 = pnand %p15375_p5, %p15611_p8  ;;  %p15384_p11 = por %p15383_p10, %p15382_p4 }
  0x7b   : > { %p15378_p9 = pneg %p15377_p7 }
  0x7d   : > { %p15385_p12 = pnand %p15384_p11, %p15378_p9 }
  0x7f   : > { %15388 = shalt.err (!%p15385_p12)
}
  0x80   : > { %13321 = dma.hbm_to_vmem [thread:$0]  (!%p15595_p6), %s18910_s6, 448, %s278_s22, [#allocation12]  }
  0x81   : > { %s11092_s19 = sadd.s32 4294967294, %s15497_s27   ;;  %s15719_s11 = sadd.s32 1, %s15497_s27  }
  0x82   : > { %s33_s21 = sadd.s32 1, %s15493_s26  ;;  %s30_s29 = ssub.s32 %s15497_s27, %s15719_s11 }
  0x83   : > { %p40_p8 = scmp.ne.s32.totalorder %s15493_s26, %s15489_s25  ;;  %p31_p1 = scmp.eq.s32.totalorder %s30_s29, 0 }
  0x84   : > { %p41_p3 = scmp.eq.s32.totalorder %s15497_s27, 0  ;;  %p46_p13 = scmp.ne.s32.totalorder %s15489_s25, %s15485_s24 }
  0x85   : > { %p201_p0 = scmp.eq.s32.totalorder %s15579_s30, 1  ;;  %p19038_p5 = scmp.eq.s32.totalorder %s15579_s30, 0 }
  0x86   : > { %s15731_s28 = scalar_select %p31_p1, %s15493_s26, %s33_s21  }
  0x87   : > { %p42_p2 = por %p41_p3, %p40_p8  ;;  %p15735_p7 = por %p19038_p5, %p46_p13 }
  0x88   : > { %p15739_p6 = por %p201_p0, %p40_p8  ;;  %p207_p9 = scmp.eq.s32.totalorder %s11092_s19, 1 }
  0x89   : > { %p13335_p4 = scmp.lt.s32.totalorder %s15497_s27, 2  ;;  %s288_s12 = sand.u32 1, %s15493_s26  }
  0x8a   : > { %s19040_s22 = scalar_select %p15739_p6, 1, 0 }
  0x8b   : > { %p15745_p10 = por %p207_p9, %p46_p13  ;;  %s13277_s15 = smul.u32 896, %s288_s12 }
  0x8c   : > { %p15749_p11 = pnand %p13335_p4, %p42_p2  ;;  %s13278_s17 = smul.u32 14336, %s15497_s27 }
  0x8d   : > { %s19041_s14 = scalar_select %p15745_p10, 1, 0 }
  0x8e   : > { %s15757_s20 = scalar_lea.hbm %s18904_s0, %s13278_s17  ;;  %s292_s19 = scalar_lea.vmem [#allocation2], %s13277_s15 }
  0x8f   : > { %s300_s21 = sshll.u32 %s292_s19, 4  ;;  %s15761_s29 = scalar_lea.sflag [#allocation3], %s288_s12  ;;  %s15759_s21 = int_to_ptr.vmem [resolvable:$true] %s300_s21 }
  0x90   : > { %s15389_s10 = scalar_lea.hbm %s15757_s20, 14336  ;;  %p15391_p8 = pneg %p15749_p11 }
  0x91   : > { %p15390_p12 = scmp.ne.s32.totalorder %s15757_s20, %s15389_s10  ;;  %s15394_s13 = scalar_lea.hbm %s18904_s0, 28672 }
  0x92   : > { %p15395_p13 = scmp.lt.u32.totalorder %s15757_s20, %s18904_s0  ;;  %p15396_p0 = scmp.lt.u32.totalorder %s15394_s13, %s15389_s10 }
  0x93   : > { %p15392_p1 = pnand %p15391_p8, %p15390_p12  ;;  %p15398_p5 = scmp.lt.u32.totalorder %s15389_s10, %s15757_s20 }
  0x94   : > { %p15397_p2 = por %p15396_p0, %p15395_p13 }
  0x95   : > { %p15393_p3 = pneg %p15392_p1 }
  0x96   : > { %p15399_p9 = por %p15398_p5, %p15397_p2 }
  0x98   : > { %p15400_p4 = pnand %p15399_p9, %p15393_p3 }
  0x9a   : > { %15403 = shalt.err (!%p15400_p4)
}
  0x9b   : > { %s15404_s12 = scalar_lea.vmem %s15759_s21, 14336  ;;  %s15510_s15 = smov [#allocation2]  }
  0x9c   : > { %p15405_p12 = scmp.ne.s32.totalorder %s15759_s21, %s15404_s12  ;;  %s15409_s19 = sshll.u32 %s15510_s15, 4  ;;  %s15410_s19 = int_to_ptr.vmem [resolvable:$false] %s15409_s19 }
  0x9d   : > { %s15411_s2 = scalar_lea.vmem %s15410_s19, 28672  ;;  %p15412_p6 = scmp.lt.s32.totalorder %s15759_s21, %s15410_s19 }
  0x9e   : > { %p15407_p1 = pnand %p15405_p12, %p15391_p8  ;;  %p15413_p13 = scmp.lt.s32.totalorder %s15411_s2, %s15404_s12 }
  0xa0   : > { %p15408_p10 = pneg %p15407_p1  ;;  %p15414_p0 = por %p15413_p13, %p15412_p6 }
  0xa2   : > { %p15415_p2 = pnand %p15414_p0, %p15408_p10 }
  0xa4   : > { %15418 = shalt.err (!%p15415_p2)
}
  0xa5   : > { %s19043_s10 = smov 28   ;;  %s19044_s18 = smov 448  }
  0xa6   : > { %13325 = dma.hbm_to_vmem [thread:$0]  (!%p15749_p11), %s15757_s20, 14336, %s15759_s21, %s15761_s29, %s19044_s18, %s19044_s18, %s19043_s10  }
  0xa7   : > { %p19045_p8 = scmp.ne.s32.totalorder %s19034_s8, 0 }
  0xa9   : > { %321 = sbr.rel (%p19045_p8) target bundleno = 2256 (0x8d0), region = 48 }
  0xb0   : > { %s15795_s17 = sand.u32 1, %s15489_s25  }
  0xb1   : > { %s13279_s23 = smul.u32 896, %s15795_s17  ;;  %s324_s13 = scalar_lea.sflag [#allocation3], %s15795_s17 }
  0xb3   : > { %s15799_s12 = scalar_lea.vmem [#allocation2], %s13279_s23 }
  0xb4   : > { %15464 = dma.done.wait (%p15735_p7), %s324_s13, 14336  }
  0xb5   : > { %15466 = vsyncadd (%p15735_p7), %s324_s13, 4294952960  ;;  %p19046_p6 = scmp.eq.s32.totalorder %s15579_s30, 0 }
  0xb7   : > { %15468 = dma.done.wait (%p19046_p6), [#allocation6], 32768   ;;  %p19047_p10 = pmov %p19046_p6 }
  0xb8   : > { %p19048_p11 = pmov %p19046_p6 }
  0xb9   : > { %15470 = vsyncadd (%p19047_p10), [#allocation6], 4294934528 }
  0xba   : > { %15472 = dma.done.wait (%p19048_p11), [#allocation9], 28800   ;;  %p19049_p3 = pmov %p19046_p6 }
  0xbc   : > { %15474 = vsyncadd (%p19049_p3), [#allocation9], 4294938496  ;;  %p19050_p5 = pmov %p19049_p3 }
  0xbd   : > { %p19051_p9 = pmov %p19049_p3 }
  0xbe   : > { %15476 = dma.done.wait (%p19050_p5), [#allocation12], 448  }
  0xbf   : > { %15478 = vsyncadd (%p19051_p9), [#allocation12], 4294966848  ;;  %v13440_v0 = vld [vmem:[#allocation5 + $0x4] ss:$16 sps:$4 sm:$0xff]   ;;  %v13442_v1 = vld [vmem:[#allocation5 + $0xc] ss:$16 sps:$4 sm:$0xff]  }
  0xc0   : > { %2467 = vmatprep.subr.bf16.mxu0 %v13440_v0  ;;  %v13444_v2 = vld [vmem:[#allocation5] ss:$16 sps:$4 sm:$0xff]   ;;  %v13445_v3 = vld [vmem:[#allocation5 + $0x8] ss:$16 sps:$4 sm:$0xff]   ;;  %3239 = vmatprep.subr.bf16.mxu1 %v13442_v1  ;;  %v13446_v4 = vld [vmem:[#allocation5 + $0x24] ss:$16 sps:$4 sm:$0xff]  }
  0xc1   : > { %2468 = vmatpush1.bf16.msra.mxu0 %v13444_v2  ;;  %3240 = vmatpush1.bf16.msra.mxu1 %v13445_v3  ;;  %v13448_v5 = vld [vmem:[#allocation5 + $0x2c] ss:$16 sps:$4 sm:$0xff]   ;;  %v13450_v6 = vld [vmem:[#allocation5 + $0x20] ss:$16 sps:$4 sm:$0xff]   ;;  %v13451_v7 = vld [vmem:[#allocation5 + $0x28] ss:$16 sps:$4 sm:$0xff]  }
  0xc2   : > { %2469 = vmatprep.subr.bf16.mxu0 %v13446_v4  ;;  %3241 = vmatprep.subr.bf16.mxu1 %v13448_v5  ;;  %v13452_v8 = vld [vmem:[#allocation5 + $0x44] ss:$16 sps:$4 sm:$0xff]   ;;  %v13454_v9 = vld [vmem:[#allocation5 + $0x4c] ss:$16 sps:$4 sm:$0xff]   ;;  %v13456_v10 = vld [vmem:[#allocation5 + $0x40] ss:$16 sps:$4 sm:$0xff]  }
  0xc3   : > { %v13457_v11 = vld [vmem:[#allocation5 + $0x48] ss:$16 sps:$4 sm:$0xff]   ;;  %v13458_v12 = vld [vmem:[#allocation5 + $0x64] ss:$16 sps:$4 sm:$0xff]   ;;  %v13460_v13 = vld [vmem:[#allocation5 + $0x6c] ss:$16 sps:$4 sm:$0xff]  }
  0xc4   : > { %v13462_v14 = vld [vmem:[#allocation5 + $0x60] ss:$16 sps:$4 sm:$0xff]   ;;  %v13463_v15 = vld [vmem:[#allocation5 + $0x68] ss:$16 sps:$4 sm:$0xff]   ;;  %v13464_v16 = vld [vmem:[#allocation5 + $0x84] ss:$16 sps:$4 sm:$0xff]  }
  0xc5   : > { %2470 = vmatpush1.bf16.msra.mxu0 %v13450_v6  ;;  %3242 = vmatpush1.bf16.msra.mxu1 %v13451_v7  ;;  %v13466_v17 = vld [vmem:[#allocation5 + $0x8c] ss:$16 sps:$4 sm:$0xff]   ;;  %v13468_v18 = vld [vmem:[#allocation5 + $0x80] ss:$16 sps:$4 sm:$0xff]   ;;  %v13469_v19 = vld [vmem:[#allocation5 + $0x88] ss:$16 sps:$4 sm:$0xff]  }
  0xc6   : > { %2471 = vmatprep.subr.bf16.mxu0 %v13452_v8  ;;  %3243 = vmatprep.subr.bf16.mxu1 %v13454_v9  ;;  %v13470_v20 = vld [vmem:[#allocation5 + $0xa4] ss:$16 sps:$4 sm:$0xff]   ;;  %v13472_v21 = vld [vmem:[#allocation5 + $0xac] ss:$16 sps:$4 sm:$0xff]   ;;  %v13474_v22 = vld [vmem:[#allocation5 + $0xa0] ss:$16 sps:$4 sm:$0xff]  }
  0xc7   : > { %v13475_v23 = vld [vmem:[#allocation5 + $0xa8] ss:$16 sps:$4 sm:$0xff]   ;;  %v13476_v24 = vld [vmem:[#allocation5 + $0xc4] ss:$16 sps:$4 sm:$0xff]   ;;  %v13478_v25 = vld [vmem:[#allocation5 + $0xcc] ss:$16 sps:$4 sm:$0xff]  }
  0xc8   : > { %v13480_v26 = vld [vmem:[#allocation5 + $0xc0] ss:$16 sps:$4 sm:$0xff]   ;;  %v13481_v27 = vld [vmem:[#allocation5 + $0xc8] ss:$16 sps:$4 sm:$0xff]   ;;  %v13482_v28 = vld [vmem:[#allocation5 + $0xe4] ss:$16 sps:$4 sm:$0xff]  }
  0xc9   : > { %2472 = vmatpush1.bf16.msra.mxu0 %v13456_v10  ;;  %3244 = vmatpush1.bf16.msra.mxu1 %v13457_v11  ;;  %v13484_v29 = vld [vmem:[#allocation5 + $0xec] ss:$16 sps:$4 sm:$0xff]   ;;  %v13486_v30 = vld [vmem:[#allocation5 + $0xe0] ss:$16 sps:$4 sm:$0xff]   ;;  %v13487_v31 = vld [vmem:[#allocation5 + $0xe8] ss:$16 sps:$4 sm:$0xff]  }
  0xca   : > { %2473 = vmatprep.subr.bf16.mxu0 %v13458_v12  ;;  %3245 = vmatprep.subr.bf16.mxu1 %v13460_v13  ;;  %v13488_v32 = vld [vmem:[#allocation5 + $0x104] ss:$16 sps:$4 sm:$0xff]   ;;  %v13490_v33 = vld [vmem:[#allocation5 + $0x10c] ss:$16 sps:$4 sm:$0xff]   ;;  %v13492_v34 = vld [vmem:[#allocation5 + $0x100] ss:$16 sps:$4 sm:$0xff]  }
  0xcb   : > { %v13493_v35 = vld [vmem:[#allocation5 + $0x108] ss:$16 sps:$4 sm:$0xff]   ;;  %v13494_v36 = vld [vmem:[#allocation5 + $0x124] ss:$16 sps:$4 sm:$0xff]   ;;  %v13496_v37 = vld [vmem:[#allocation5 + $0x12c] ss:$16 sps:$4 sm:$0xff]  }
  0xcc   : > { %v13498_v38 = vld [vmem:[#allocation5 + $0x120] ss:$16 sps:$4 sm:$0xff]   ;;  %v13499_v39 = vld [vmem:[#allocation5 + $0x128] ss:$16 sps:$4 sm:$0xff]   ;;  %v13500_v40 = vld [vmem:[#allocation5 + $0x144] ss:$16 sps:$4 sm:$0xff]  }
  0xcd   : > { %2474 = vmatpush1.bf16.msra.mxu0 %v13462_v14  ;;  %3246 = vmatpush1.bf16.msra.mxu1 %v13463_v15  ;;  %v13502_v41 = vld [vmem:[#allocation5 + $0x14c] ss:$16 sps:$4 sm:$0xff]   ;;  %v13504_v42 = vld [vmem:[#allocation5 + $0x140] ss:$16 sps:$4 sm:$0xff]   ;;  %v13505_v43 = vld [vmem:[#allocation5 + $0x148] ss:$16 sps:$4 sm:$0xff]  }
  0xce   : > { %2475 = vmatprep.subr.bf16.mxu0 %v13464_v16  ;;  %3247 = vmatprep.subr.bf16.mxu1 %v13466_v17  ;;  %v13506_v44 = vld [vmem:[#allocation5 + $0x164] ss:$16 sps:$4 sm:$0xff]   ;;  %v13508_v45 = vld [vmem:[#allocation5 + $0x16c] ss:$16 sps:$4 sm:$0xff]   ;;  %v13510_v46 = vld [vmem:[#allocation5 + $0x160] ss:$16 sps:$4 sm:$0xff]  }
  0xcf   : > { %v13511_v47 = vld [vmem:[#allocation5 + $0x168] ss:$16 sps:$4 sm:$0xff]   ;;  %v13538_v48 = vld [vmem:[%s15799_s12 + $0x4] ss:$28 sps:$4 sm:$0xff]   ;;  %v13514_v50 = vld [vmem:[#allocation5 + $0x18c] ss:$16 sps:$4 sm:$0xff]  }
  0xd0   : > { %v13512_v49 = vld [vmem:[#allocation5 + $0x184] ss:$16 sps:$4 sm:$0xff]   ;;  %2499 = vmatprep.mubr.bf16.mxu0 %v13538_v48  ;;  %3271 = vmatprep.mubr.bf16.mxu1 %v13538_v48  ;;  %v13516_v51 = vld [vmem:[#allocation5 + $0x180] ss:$16 sps:$4 sm:$0xff]   ;;  %v13517_v52 = vld [vmem:[#allocation5 + $0x188] ss:$16 sps:$4 sm:$0xff]  }
  0xd1   : > { %2476 = vmatpush1.bf16.msra.mxu0 %v13468_v18  ;;  %3248 = vmatpush1.bf16.msra.mxu1 %v13469_v19  ;;  %v13518_v53 = vld [vmem:[#allocation5 + $0x1a4] ss:$16 sps:$4 sm:$0xff]   ;;  %v13520_v54 = vld [vmem:[#allocation5 + $0x1ac] ss:$16 sps:$4 sm:$0xff]   ;;  %v13522_v55 = vld [vmem:[#allocation5 + $0x1a0] ss:$16 sps:$4 sm:$0xff]  }
  0xd2   : > { %2477 = vmatprep.subr.bf16.mxu0 %v13470_v20  ;;  %3249 = vmatprep.subr.bf16.mxu1 %v13472_v21  ;;  %v13523_v56 = vld [vmem:[#allocation5 + $0x1a8] ss:$16 sps:$4 sm:$0xff]   ;;  %v13524_v57 = vld [vmem:[#allocation5 + $0x1c4] ss:$16 sps:$4 sm:$0xff]   ;;  %v13526_v58 = vld [vmem:[#allocation5 + $0x1cc] ss:$16 sps:$4 sm:$0xff]  }
  0xd3   : > { %v13528_v59 = vld [vmem:[#allocation5 + $0x1c0] ss:$16 sps:$4 sm:$0xff]   ;;  %v13529_v60 = vld [vmem:[#allocation5 + $0x1c8] ss:$16 sps:$4 sm:$0xff]   ;;  %v13530_v61 = vld [vmem:[#allocation5 + $0x1e4] ss:$16 sps:$4 sm:$0xff]  }
  0xd4   : > { %v13532_v62 = vld [vmem:[#allocation5 + $0x1ec] ss:$16 sps:$4 sm:$0xff]   ;;  %v13534_v63 = vld [vmem:[#allocation5 + $0x1e0] ss:$16 sps:$4 sm:$0xff]   ;;  %v13535_v0 = vld [vmem:[#allocation5 + $0x1e8] ss:$16 sps:$4 sm:$0xff]  }
  0xd5   : > { %2478 = vmatpush1.bf16.msra.mxu0 %v13474_v22  ;;  %3250 = vmatpush1.bf16.msra.mxu1 %v13475_v23  ;;  %v13541_v1 = vld [vmem:[#allocation5 + $0x204] ss:$16 sps:$4 sm:$0xff]   ;;  %v13544_v2 = vld [vmem:[#allocation5 + $0x20c] ss:$16 sps:$4 sm:$0xff]   ;;  %v13539_v4 = vld [vmem:[#allocation5 + $0x200] ss:$16 sps:$4 sm:$0xff]  }
  0xd6   : > { %2479 = vmatprep.subr.bf16.mxu0 %v13476_v24  ;;  %3251 = vmatprep.subr.bf16.mxu1 %v13478_v25  ;;  %v13536_v3 = vld [vmem:[%s15799_s12] ss:$28 sps:$4 sm:$0xff]   ;;  %v13542_v5 = vld [vmem:[#allocation5 + $0x208] ss:$16 sps:$4 sm:$0xff]   ;;  %v13550_v7 = vld [vmem:[#allocation5 + $0x224] ss:$16 sps:$4 sm:$0xff]  }
  0xd7   : > { %v13545_v6 = vld [vmem:[%s15799_s12 + $0x3c] ss:$28 sps:$4 sm:$0xff]   ;;  %v13548_v9 = vld [vmem:[#allocation5 + $0x220] ss:$16 sps:$4 sm:$0xff]   ;;  %v13559_v11 = vld [vmem:[#allocation5 + $0x244] ss:$16 sps:$4 sm:$0xff]  }
  0xd8   : > { %v13553_v8 = vld [vmem:[#allocation5 + $0x22c] ss:$16 sps:$4 sm:$0xff]   ;;  %v13551_v10 = vld [vmem:[#allocation5 + $0x228] ss:$16 sps:$4 sm:$0xff]   ;;  %v13554_v14 = vld [vmem:[%s15799_s12 + $0x74] ss:$28 sps:$4 sm:$0xff]  }
  0xd9   : > { %2480 = vmatpush1.bf16.msra.mxu0 %v13480_v26  ;;  %3252 = vmatpush1.bf16.msra.mxu1 %v13481_v27  ;;  %v13562_v12 = vld [vmem:[#allocation5 + $0x24c] ss:$16 sps:$4 sm:$0xff]   ;;  %v13547_v13 = vld [vmem:[%s15799_s12 + $0x38] ss:$28 sps:$4 sm:$0xff]   ;;  %v13557_v15 = vld [vmem:[#allocation5 + $0x240] ss:$16 sps:$4 sm:$0xff]  }
  0xda   : > { %2481 = vmatprep.subr.bf16.mxu0 %v13482_v28  ;;  %3253 = vmatprep.subr.bf16.mxu1 %v13484_v29  ;;  %v13560_v16 = vld [vmem:[#allocation5 + $0x248] ss:$16 sps:$4 sm:$0xff]   ;;  %v13568_v17 = vld [vmem:[#allocation5 + $0x264] ss:$16 sps:$4 sm:$0xff]   ;;  %v13571_v18 = vld [vmem:[#allocation5 + $0x26c] ss:$16 sps:$4 sm:$0xff]  }
  0xdb   : > { %v13566_v19 = vld [vmem:[#allocation5 + $0x260] ss:$16 sps:$4 sm:$0xff]   ;;  %v13569_v20 = vld [vmem:[#allocation5 + $0x268] ss:$16 sps:$4 sm:$0xff]   ;;  %v13577_v21 = vld [vmem:[#allocation5 + $0x284] ss:$16 sps:$4 sm:$0xff]  }
  0xdc   : > { %v13580_v22 = vld [vmem:[#allocation5 + $0x28c] ss:$16 sps:$4 sm:$0xff]   ;;  %v13575_v25 = vld [vmem:[#allocation5 + $0x280] ss:$16 sps:$4 sm:$0xff]   ;;  %v13578_v26 = vld [vmem:[#allocation5 + $0x288] ss:$16 sps:$4 sm:$0xff]  }
  0xdd   : > { %2482 = vmatpush1.bf16.msra.mxu0 %v13486_v30  ;;  %3254 = vmatpush1.bf16.msra.mxu1 %v13487_v31  ;;  %v13556_v23 = vld [vmem:[%s15799_s12 + $0x70] ss:$28 sps:$4 sm:$0xff]   ;;  %v13586_v27 = vld [vmem:[#allocation5 + $0x2a4] ss:$16 sps:$4 sm:$0xff]   ;;  %v13587_v30 = vld [vmem:[#allocation5 + $0x2a8] ss:$16 sps:$4 sm:$0xff]  }
  0xde   : > { %2483 = vmatprep.subr.bf16.mxu0 %v13488_v32  ;;  %3255 = vmatprep.subr.bf16.mxu1 %v13490_v33  ;;  %v13563_v24 = vld [vmem:[%s15799_s12 + $0xac] ss:$28 sps:$4 sm:$0xff]   ;;  %v13584_v29 = vld [vmem:[#allocation5 + $0x2a0] ss:$16 sps:$4 sm:$0xff]   ;;  %v13595_v31 = vld [vmem:[#allocation5 + $0x2c4] ss:$16 sps:$4 sm:$0xff]  }
  0xdf   : > { %v13589_v28 = vld [vmem:[#allocation5 + $0x2ac] ss:$16 sps:$4 sm:$0xff]   ;;  %v13565_v33 = vld [vmem:[%s15799_s12 + $0xa8] ss:$28 sps:$4 sm:$0xff]   ;;  %s15513_s8 = smov 126   ;;  %s11109_s9 = sshll.u32 %s15579_s30, 5 }
  0xe0   : > { %v13598_v32 = vld [vmem:[#allocation5 + $0x2cc] ss:$16 sps:$4 sm:$0xff]   ;;  %p16266_p7 = scmp.lt.s32.totalorder %s11109_s9, 63  ;;  %s15514_s19 = smov 16   ;;  %vm10911_vm0 = vcmask 162944  }
  0xe1   : > { %2484 = vmatpush1.bf16.msra.mxu0 %v13492_v34  ;;  %3256 = vmatpush1.bf16.msra.mxu1 %v13493_v35  ;;  %v13572_v34 = vld [vmem:[%s15799_s12 + $0xe4] ss:$28 sps:$4 sm:$0xff]   ;;  %v13625_v48 = vld [vmem:[#allocation5 + $0x32c] ss:$16 sps:$4 sm:$0xff]   ;;  %s13280_s2 = smul.u32 1792, %s15795_s17  ;;  %p19289_p12 = scmp.ne.s32.totalorder %s19040_s22, 0 }
  0xe2   : > { %2485 = vmatprep.subr.bf16.mxu0 %v13494_v36  ;;  %3257 = vmatprep.subr.bf16.mxu1 %v13496_v37  ;;  %v13593_v35 = vld [vmem:[#allocation5 + $0x2c0] ss:$16 sps:$4 sm:$0xff]   ;;  %v13596_v36 = vld [vmem:[#allocation5 + $0x2c8] ss:$16 sps:$4 sm:$0xff]   ;;  %v13604_v37 = vld [vmem:[#allocation5 + $0x2e4] ss:$16 sps:$4 sm:$0xff]  }
  0xe3   : > { %s19297_s9 = smov (!%p16266_p7, %s11109_s9), 63  ;;  %s17669_s10 = scalar_lea.vmem [#allocation13], %s13280_s2 }
  0xe4   : > { %s11110_s20 = sshll.u32 %s19297_s9, 3  ;;  %s13281_s18 = smul.u32 28672, %s15579_s30 }
  0xe5   : > { %2486 = vmatpush1.bf16.msra.mxu0 %v13498_v38  ;;  %3258 = vmatpush1.bf16.msra.mxu1 %v13499_v39  ;;  %v13607_v38 = vld [vmem:[#allocation5 + $0x2ec] ss:$16 sps:$4 sm:$0xff]   ;;  %v13602_v39 = vld [vmem:[#allocation5 + $0x2e0] ss:$16 sps:$4 sm:$0xff]   ;;  %s16291_s15 = scalar_lea.vmem %s18905_s1, %s11110_s20  ;;  %s10959_s23 = sshll.u32 %s17669_s10, 4  ;;  %s18857_s23 = int_to_ptr.vmem [resolvable:$true] %s10959_s23 }
  0xe6   : > { %2487 = vmatprep.subr.bf16.mxu0 %v13500_v40  ;;  %3259 = vmatprep.subr.bf16.mxu1 %v13502_v41  ;;  %v13605_v40 = vld [vmem:[#allocation5 + $0x2e8] ss:$16 sps:$4 sm:$0xff]   ;;  %v13613_v41 = vld [vmem:[#allocation5 + $0x304] ss:$16 sps:$4 sm:$0xff]   ;;  %s10945_s30 = scalar_lea.sflag [#allocation4], %s15795_s17  ;;  %s15419_s9 = scalar_lea.vmem %s18857_s23, 28672 }
  0xe7   : > { %p15420_p4 = scmp.ne.s32.totalorder %s18857_s23, %s15419_s9  ;;  %s15515_s16 = smov [#allocation13]  }
  0xe8   : > { %s15423_s20 = sshll.u32 %s15515_s16, 4  ;;  %s15424_s20 = int_to_ptr.vmem [resolvable:$false] %s15423_s20 }
  0xe9   : > { %2488 = vmatpush1.bf16.msra.mxu0 %v13504_v42  ;;  %3260 = vmatpush1.bf16.msra.mxu1 %v13505_v43  ;;  %v13616_v42 = vld [vmem:[#allocation5 + $0x30c] ss:$16 sps:$4 sm:$0xff]   ;;  %p15421_p1 = pnand %p15420_p4, %p19289_p12  ;;  %s15425_s21 = scalar_lea.vmem %s15424_s20, 57344 }
  0xea   : > { %2489 = vmatprep.subr.bf16.mxu0 %v13506_v44  ;;  %3261 = vmatprep.subr.bf16.mxu1 %v13508_v45  ;;  %v13574_v43 = vld [vmem:[%s15799_s12 + $0xe0] ss:$28 sps:$4 sm:$0xff]   ;;  %p15426_p0 = scmp.lt.s32.totalorder %s18857_s23, %s15424_s20  ;;  %p15427_p2 = scmp.lt.s32.totalorder %s15425_s21, %s15419_s9 }
  0xeb   : > { %v13581_v44 = vld [vmem:[%s15799_s12 + $0x11c] ss:$28 sps:$4 sm:$0xff]   ;;  %v13611_v45 = vld [vmem:[#allocation5 + $0x300] ss:$16 sps:$4 sm:$0xff]   ;;  %p15422_p13 = pneg %p15421_p1 }
  0xec   : > { %p15428_p8 = por %p15427_p2, %p15426_p0 }
  0xed   : > { %2490 = vmatpush1.bf16.msra.mxu0 %v13510_v46  ;;  %3262 = vmatpush1.bf16.msra.mxu1 %v13511_v47  ;;  %v13614_v46 = vld [vmem:[#allocation5 + $0x308] ss:$16 sps:$4 sm:$0xff]   ;;  %v13622_v47 = vld [vmem:[#allocation5 + $0x324] ss:$16 sps:$4 sm:$0xff]  }
  0xee   : > { %2491 = vmatprep.subr.bf16.mxu0 %v13512_v49  ;;  %3263 = vmatprep.subr.bf16.mxu1 %v13514_v50  ;;  %v13620_v49 = vld [vmem:[#allocation5 + $0x320] ss:$16 sps:$4 sm:$0xff]   ;;  %v13623_v50 = vld [vmem:[#allocation5 + $0x328] ss:$16 sps:$4 sm:$0xff]   ;;  %p15429_p6 = pnand %p15428_p8, %p15422_p13 }
  0xf1   : > { %2492 = vmatpush1.bf16.msra.mxu0 %v13516_v51  ;;  %3264 = vmatpush1.bf16.msra.mxu1 %v13517_v52  ;;  %v13631_v51 = vld [vmem:[#allocation5 + $0x344] ss:$16 sps:$4 sm:$0xff]   ;;  %v13634_v52 = vld [vmem:[#allocation5 + $0x34c] ss:$16 sps:$4 sm:$0xff]  }
  0xf2   : > { %2493 = vmatprep.subr.bf16.mxu0 %v13518_v53  ;;  %3265 = vmatprep.subr.bf16.mxu1 %v13520_v54  ;;  %v13583_v53 = vld [vmem:[%s15799_s12 + $0x118] ss:$28 sps:$4 sm:$0xff]  }
  0xf3   : > { %v13590_v54 = vld [vmem:[%s15799_s12 + $0x154] ss:$28 sps:$4 sm:$0xff]  }
  0xf5   : > { %2494 = vmatpush1.bf16.msra.mxu0 %v13522_v55  ;;  %3266 = vmatpush1.bf16.msra.mxu1 %v13523_v56  ;;  %v13629_v55 = vld [vmem:[#allocation5 + $0x340] ss:$16 sps:$4 sm:$0xff]   ;;  %v13632_v56 = vld [vmem:[#allocation5 + $0x348] ss:$16 sps:$4 sm:$0xff]  }
  0xf6   : > { %2495 = vmatprep.subr.bf16.mxu0 %v13524_v57  ;;  %3267 = vmatprep.subr.bf16.mxu1 %v13526_v58  ;;  %v13640_v57 = vld [vmem:[#allocation5 + $0x364] ss:$16 sps:$4 sm:$0xff]   ;;  %v13643_v58 = vld [vmem:[#allocation5 + $0x36c] ss:$16 sps:$4 sm:$0xff]  }
  0xf9   : > { %2496 = vmatpush1.bf16.msra.mxu0 %v13528_v59  ;;  %3268 = vmatpush1.bf16.msra.mxu1 %v13529_v60  ;;  %v13638_v59 = vld [vmem:[#allocation5 + $0x360] ss:$16 sps:$4 sm:$0xff]   ;;  %v13641_v60 = vld [vmem:[#allocation5 + $0x368] ss:$16 sps:$4 sm:$0xff]  }
  0xfa   : > { %2497 = vmatprep.subr.bf16.mxu0 %v13530_v61  ;;  %3269 = vmatprep.subr.bf16.mxu1 %v13532_v62  ;;  %v13649_v61 = vld [vmem:[#allocation5 + $0x384] ss:$16 sps:$4 sm:$0xff]   ;;  %v13652_v62 = vld [vmem:[#allocation5 + $0x38c] ss:$16 sps:$4 sm:$0xff]  }
  0xfd   : > { %2498 = vmatpush1.bf16.msra.mxu0 %v13534_v63  ;;  %3270 = vmatpush1.bf16.msra.mxu1 %v13535_v0  ;;  %v13592_v63 = vld [vmem:[%s15799_s12 + $0x150] ss:$28 sps:$4 sm:$0xff]  }
  0xfe   : > { %2660 = vmatprep.subr.bf16.mxu0 %v13541_v1  ;;  %3432 = vmatprep.subr.bf16.mxu1 %v13544_v2  ;;  %v13599_v0 = vld [vmem:[%s15799_s12 + $0x18c] ss:$28 sps:$4 sm:$0xff]   ;;  %v13647_v1 = vld [vmem:[#allocation5 + $0x380] ss:$16 sps:$4 sm:$0xff]  }
  0xff   : > { %v13650_v2 = vld [vmem:[#allocation5 + $0x388] ss:$16 sps:$4 sm:$0xff]  }
 0x100   : > { %2500 = vmatmul.mubr.bf16.vlgmr.msra.gmra.mrb[0].mxu0 %v13536_v3  ;;  %3272 = vmatmul.mubr.bf16.vlgmr.msra.gmra.mrb[0].mxu1 %v13536_v3  ;;  %v13658_v3 = vld [vmem:[#allocation5 + $0x3a4] ss:$16 sps:$4 sm:$0xff]  }
 0x101   : > { %2661 = vmatpush1.bf16.msra.mxu0 %v13539_v4  ;;  %3433 = vmatpush1.bf16.msra.mxu1 %v13542_v5  ;;  %v13661_v4 = vld [vmem:[#allocation5 + $0x3ac] ss:$16 sps:$4 sm:$0xff]   ;;  %v13656_v5 = vld [vmem:[#allocation5 + $0x3a0] ss:$16 sps:$4 sm:$0xff]  }
 0x102   : > { %2509 = vmatprep.mubr.bf16.mxu0 %v13545_v6  ;;  %3281 = vmatprep.mubr.bf16.mxu1 %v13545_v6  ;;  %v13659_v6 = vld [vmem:[#allocation5 + $0x3a8] ss:$16 sps:$4 sm:$0xff]  }
 0x103   : > { %2662 = vmatprep.subr.bf16.mxu0 %v13550_v7  ;;  %3434 = vmatprep.subr.bf16.mxu1 %v13553_v8  ;;  %v13667_v7 = vld [vmem:[#allocation5 + $0x3c4] ss:$16 sps:$4 sm:$0xff]   ;;  %v13670_v8 = vld [vmem:[#allocation5 + $0x3cc] ss:$16 sps:$4 sm:$0xff]  }
 0x105   : > { %2663 = vmatpush1.bf16.msra.mxu0 %v13548_v9  ;;  %3435 = vmatpush1.bf16.msra.mxu1 %v13551_v10  ;;  %v13601_v9 = vld [vmem:[%s15799_s12 + $0x188] ss:$28 sps:$4 sm:$0xff]  }
 0x106   : > { %2664 = vmatprep.subr.bf16.mxu0 %v13559_v11  ;;  %3436 = vmatprep.subr.bf16.mxu1 %v13562_v12  ;;  %v13608_v10 = vld [vmem:[%s15799_s12 + $0x1c4] ss:$28 sps:$4 sm:$0xff]   ;;  %v13668_v12 = vld [vmem:[#allocation5 + $0x3c8] ss:$16 sps:$4 sm:$0xff]  }
 0x107   : > { %v13665_v11 = vld [vmem:[#allocation5 + $0x3c0] ss:$16 sps:$4 sm:$0xff]  }
 0x108   : > { %2510 = vmatmul.mubr.bf16.gmra.mrb[4].mxu0 %v13547_v13  ;;  %3282 = vmatmul.mubr.bf16.gmra.mrb[4].mxu1 %v13547_v13  ;;  %v13676_v13 = vld [vmem:[#allocation5 + $0x3e4] ss:$16 sps:$4 sm:$0xff]  }
 0x109   : > { %2519 = vmatprep.mubr.bf16.mxu0 %v13554_v14  ;;  %3291 = vmatprep.mubr.bf16.mxu1 %v13554_v14  ;;  %v13679_v14 = vld [vmem:[#allocation5 + $0x3ec] ss:$16 sps:$4 sm:$0xff]  }
 0x10a   : > { %2665 = vmatpush1.bf16.msra.mxu0 %v13557_v15  ;;  %3437 = vmatpush1.bf16.msra.mxu1 %v13560_v16  ;;  %v13674_v15 = vld [vmem:[#allocation5 + $0x3e0] ss:$16 sps:$4 sm:$0xff]   ;;  %v13677_v16 = vld [vmem:[#allocation5 + $0x3e8] ss:$16 sps:$4 sm:$0xff]  }
 0x10b   : > { %2666 = vmatprep.subr.bf16.mxu0 %v13568_v17  ;;  %3438 = vmatprep.subr.bf16.mxu1 %v13571_v18  ;;  %v13685_v17 = vld [vmem:[#allocation5 + $0x404] ss:$16 sps:$4 sm:$0xff]   ;;  %v13688_v18 = vld [vmem:[#allocation5 + $0x40c] ss:$16 sps:$4 sm:$0xff]  }
 0x10e   : > { %2667 = vmatpush1.bf16.msra.mxu0 %v13566_v19  ;;  %3439 = vmatpush1.bf16.msra.mxu1 %v13569_v20  ;;  %v13610_v19 = vld [vmem:[%s15799_s12 + $0x1c0] ss:$28 sps:$4 sm:$0xff]  }
 0x10f   : > { %2668 = vmatprep.subr.bf16.mxu0 %v13577_v21  ;;  %3440 = vmatprep.subr.bf16.mxu1 %v13580_v22  ;;  %v13617_v20 = vld [vmem:[%s15799_s12 + $0x1fc] ss:$28 sps:$4 sm:$0xff]   ;;  %v13626_v22 = vld [vmem:[%s15799_s12 + $0x234] ss:$28 sps:$4 sm:$0xff]  }
 0x110   : > { %2520 = vmatmul.mubr.bf16.gmra.mrb[8].mxu0 %v13556_v23  ;;  %3292 = vmatmul.mubr.bf16.gmra.mrb[8].mxu1 %v13556_v23  ;;  %v13619_v21 = vld [vmem:[%s15799_s12 + $0x1f8] ss:$28 sps:$4 sm:$0xff]   ;;  %v13628_v23 = vld [vmem:[%s15799_s12 + $0x230] ss:$28 sps:$4 sm:$0xff]  }
 0x111   : > { %2529 = vmatprep.mubr.bf16.mxu0 %v13563_v24  ;;  %3301 = vmatprep.mubr.bf16.mxu1 %v13563_v24  ;;  %v13635_v24 = vld [vmem:[%s15799_s12 + $0x26c] ss:$28 sps:$4 sm:$0xff]  }
 0x112   : > { %2669 = vmatpush1.bf16.msra.mxu0 %v13575_v25  ;;  %3441 = vmatpush1.bf16.msra.mxu1 %v13578_v26  ;;  %v13637_v25 = vld [vmem:[%s15799_s12 + $0x268] ss:$28 sps:$4 sm:$0xff]  }
 0x113   : > { %2670 = vmatprep.subr.bf16.mxu0 %v13586_v27  ;;  %3442 = vmatprep.subr.bf16.mxu1 %v13589_v28  ;;  %v13644_v26 = vld [vmem:[%s15799_s12 + $0x2a4] ss:$28 sps:$4 sm:$0xff]   ;;  %v13653_v28 = vld [vmem:[%s15799_s12 + $0x2dc] ss:$28 sps:$4 sm:$0xff]  }
 0x114   : > { %v13646_v27 = vld [vmem:[%s15799_s12 + $0x2a0] ss:$28 sps:$4 sm:$0xff]  }
 0x116   : > { %2671 = vmatpush1.bf16.msra.mxu0 %v13584_v29  ;;  %3443 = vmatpush1.bf16.msra.mxu1 %v13587_v30  ;;  %v13655_v29 = vld [vmem:[%s15799_s12 + $0x2d8] ss:$28 sps:$4 sm:$0xff]  }
 0x117   : > { %2672 = vmatprep.subr.bf16.mxu0 %v13595_v31  ;;  %3444 = vmatprep.subr.bf16.mxu1 %v13598_v32  ;;  %v13662_v30 = vld [vmem:[%s15799_s12 + $0x314] ss:$28 sps:$4 sm:$0xff]   ;;  %v13671_v32 = vld [vmem:[%s15799_s12 + $0x34c] ss:$28 sps:$4 sm:$0xff]  }
 0x118   : > { %2530 = vmatmul.mubr.bf16.gmra.mrb[12].mxu0 %v13565_v33  ;;  %3302 = vmatmul.mubr.bf16.gmra.mrb[12].mxu1 %v13565_v33  ;;  %v13664_v31 = vld [vmem:[%s15799_s12 + $0x310] ss:$28 sps:$4 sm:$0xff]   ;;  %v13673_v33 = vld [vmem:[%s15799_s12 + $0x348] ss:$28 sps:$4 sm:$0xff]  }
 0x119   : > { %2539 = vmatprep.mubr.bf16.mxu0 %v13572_v34  ;;  %3311 = vmatprep.mubr.bf16.mxu1 %v13572_v34  ;;  %v13682_v34 = vld [vmem:[%s15799_s12 + $0xc] ss:$28 sps:$4 sm:$0xff]  }
 0x11a   : > { %2673 = vmatpush1.bf16.msra.mxu0 %v13593_v35  ;;  %3445 = vmatpush1.bf16.msra.mxu1 %v13596_v36  ;;  %v13680_v35 = vld [vmem:[%s15799_s12 + $0x8] ss:$28 sps:$4 sm:$0xff]   ;;  %v13683_v36 = vld [vmem:[#allocation5 + $0x400] ss:$16 sps:$4 sm:$0xff]  }
 0x11b   : > { %2674 = vmatprep.subr.bf16.mxu0 %v13604_v37  ;;  %3446 = vmatprep.subr.bf16.mxu1 %v13607_v38  ;;  %v13686_v37 = vld [vmem:[#allocation5 + $0x408] ss:$16 sps:$4 sm:$0xff]   ;;  %v13689_v38 = vld [vmem:[%s15799_s12 + $0x44] ss:$28 sps:$4 sm:$0xff]  }
 0x11e   : > { %2675 = vmatpush1.bf16.msra.mxu0 %v13602_v39  ;;  %3447 = vmatpush1.bf16.msra.mxu1 %v13605_v40  ;;  %v13694_v39 = vld [vmem:[#allocation5 + $0x424] ss:$16 sps:$4 sm:$0xff]   ;;  %v13697_v40 = vld [vmem:[#allocation5 + $0x42c] ss:$16 sps:$4 sm:$0xff]  }
 0x11f   : > { %2676 = vmatprep.subr.bf16.mxu0 %v13613_v41  ;;  %3448 = vmatprep.subr.bf16.mxu1 %v13616_v42  ;;  %v13692_v41 = vld [vmem:[#allocation5 + $0x420] ss:$16 sps:$4 sm:$0xff]   ;;  %v13695_v42 = vld [vmem:[#allocation5 + $0x428] ss:$16 sps:$4 sm:$0xff]  }
 0x120   : > { %2540 = vmatmul.mubr.bf16.gmra.mrb[16].mxu0 %v13574_v43  ;;  %3312 = vmatmul.mubr.bf16.gmra.mrb[16].mxu1 %v13574_v43  ;;  %v13703_v43 = vld [vmem:[#allocation5 + $0x444] ss:$16 sps:$4 sm:$0xff]  }
 0x121   : > { %2549 = vmatprep.mubr.bf16.mxu0 %v13581_v44  ;;  %3321 = vmatprep.mubr.bf16.mxu1 %v13581_v44  ;;  %v13691_v44 = vld [vmem:[%s15799_s12 + $0x40] ss:$28 sps:$4 sm:$0xff]  }
 0x122   : > { %2677 = vmatpush1.bf16.msra.mxu0 %v13611_v45  ;;  %3449 = vmatpush1.bf16.msra.mxu1 %v13614_v46  ;;  %v13706_v45 = vld [vmem:[#allocation5 + $0x44c] ss:$16 sps:$4 sm:$0xff]  }
 0x123   : > { %2678 = vmatprep.subr.bf16.mxu0 %v13622_v47  ;;  %3450 = vmatprep.subr.bf16.mxu1 %v13625_v48  ;;  %v13698_v46 = vld [vmem:[%s15799_s12 + $0x7c] ss:$28 sps:$4 sm:$0xff]   ;;  %v13701_v47 = vld [vmem:[#allocation5 + $0x440] ss:$16 sps:$4 sm:$0xff]  }
 0x124   : > { %v13704_v48 = vld [vmem:[#allocation5 + $0x448] ss:$16 sps:$4 sm:$0xff]  }
 0x126   : > { %2679 = vmatpush1.bf16.msra.mxu0 %v13620_v49  ;;  %3451 = vmatpush1.bf16.msra.mxu1 %v13623_v50  ;;  %v13712_v49 = vld [vmem:[#allocation5 + $0x464] ss:$16 sps:$4 sm:$0xff]   ;;  %v13715_v50 = vld [vmem:[#allocation5 + $0x46c] ss:$16 sps:$4 sm:$0xff]  }
 0x127   : > { %2680 = vmatprep.subr.bf16.mxu0 %v13631_v51  ;;  %3452 = vmatprep.subr.bf16.mxu1 %v13634_v52  ;;  %v13710_v51 = vld [vmem:[#allocation5 + $0x460] ss:$16 sps:$4 sm:$0xff]   ;;  %v13713_v52 = vld [vmem:[#allocation5 + $0x468] ss:$16 sps:$4 sm:$0xff]  }
 0x128   : > { %2550 = vmatmul.mubr.bf16.gmra.mrb[20].mxu0 %v13583_v53  ;;  %3322 = vmatmul.mubr.bf16.gmra.mrb[20].mxu1 %v13583_v53  ;;  %v13721_v53 = vld [vmem:[#allocation5 + $0x484] ss:$16 sps:$4 sm:$0xff]  }
 0x129   : > { %2559 = vmatprep.mubr.bf16.mxu0 %v13590_v54  ;;  %3331 = vmatprep.mubr.bf16.mxu1 %v13590_v54  ;;  %v13724_v54 = vld [vmem:[#allocation5 + $0x48c] ss:$16 sps:$4 sm:$0xff]  }
 0x12a   : > { %2681 = vmatpush1.bf16.msra.mxu0 %v13629_v55  ;;  %3453 = vmatpush1.bf16.msra.mxu1 %v13632_v56  ;;  %v13700_v55 = vld [vmem:[%s15799_s12 + $0x78] ss:$28 sps:$4 sm:$0xff]  }
 0x12b   : > { %2682 = vmatprep.subr.bf16.mxu0 %v13640_v57  ;;  %3454 = vmatprep.subr.bf16.mxu1 %v13643_v58  ;;  %v13707_v56 = vld [vmem:[%s15799_s12 + $0xb4] ss:$28 sps:$4 sm:$0xff]   ;;  %v13722_v58 = vld [vmem:[#allocation5 + $0x488] ss:$16 sps:$4 sm:$0xff]  }
 0x12c   : > { %v13719_v57 = vld [vmem:[#allocation5 + $0x480] ss:$16 sps:$4 sm:$0xff]  }
 0x12e   : > { %2683 = vmatpush1.bf16.msra.mxu0 %v13638_v59  ;;  %3455 = vmatpush1.bf16.msra.mxu1 %v13641_v60  ;;  %v13730_v59 = vld [vmem:[#allocation5 + $0x4a4] ss:$16 sps:$4 sm:$0xff]   ;;  %v13733_v60 = vld [vmem:[#allocation5 + $0x4ac] ss:$16 sps:$4 sm:$0xff]  }
 0x12f   : > { %2684 = vmatprep.subr.bf16.mxu0 %v13649_v61  ;;  %3456 = vmatprep.subr.bf16.mxu1 %v13652_v62  ;;  %v13728_v61 = vld [vmem:[#allocation5 + $0x4a0] ss:$16 sps:$4 sm:$0xff]   ;;  %v13731_v62 = vld [vmem:[#allocation5 + $0x4a8] ss:$16 sps:$4 sm:$0xff]  }
 0x130   : > { %2560 = vmatmul.mubr.bf16.gmra.mrb[24].mxu0 %v13592_v63  ;;  %3332 = vmatmul.mubr.bf16.gmra.mrb[24].mxu1 %v13592_v63  ;;  %v13739_v63 = vld [vmem:[#allocation5 + $0x4c4] ss:$16 sps:$4 sm:$0xff]  }
 0x131   : > { %2569 = vmatprep.mubr.bf16.mxu0 %v13599_v0  ;;  %3341 = vmatprep.mubr.bf16.mxu1 %v13599_v0  ;;  %v13742_v0 = vld [vmem:[#allocation5 + $0x4cc] ss:$16 sps:$4 sm:$0xff]  }
 0x132   : > { %2685 = vmatpush1.bf16.msra.mxu0 %v13647_v1  ;;  %3457 = vmatpush1.bf16.msra.mxu1 %v13650_v2  ;;  %v13709_v1 = vld [vmem:[%s15799_s12 + $0xb0] ss:$28 sps:$4 sm:$0xff]  }
 0x133   : > { %2686 = vmatprep.subr.bf16.mxu0 %v13658_v3  ;;  %3458 = vmatprep.subr.bf16.mxu1 %v13661_v4  ;;  %v13716_v2 = vld [vmem:[%s15799_s12 + $0xec] ss:$28 sps:$4 sm:$0xff]   ;;  %v13737_v3 = vld [vmem:[#allocation5 + $0x4c0] ss:$16 sps:$4 sm:$0xff]  }
 0x134   : > { %v13740_v4 = vld [vmem:[#allocation5 + $0x4c8] ss:$16 sps:$4 sm:$0xff]  }
 0x136   : > { %2687 = vmatpush1.bf16.msra.mxu0 %v13656_v5  ;;  %3459 = vmatpush1.bf16.msra.mxu1 %v13659_v6  ;;  %v13748_v5 = vld [vmem:[#allocation5 + $0x4e4] ss:$16 sps:$4 sm:$0xff]   ;;  %v13751_v6 = vld [vmem:[#allocation5 + $0x4ec] ss:$16 sps:$4 sm:$0xff]  }
 0x137   : > { %2688 = vmatprep.subr.bf16.mxu0 %v13667_v7  ;;  %3460 = vmatprep.subr.bf16.mxu1 %v13670_v8  ;;  %v13746_v7 = vld [vmem:[#allocation5 + $0x4e0] ss:$16 sps:$4 sm:$0xff]   ;;  %v13749_v8 = vld [vmem:[#allocation5 + $0x4e8] ss:$16 sps:$4 sm:$0xff]  }
 0x138   : > { %2570 = vmatmul.mubr.bf16.gmra.mrb[28].mxu0 %v13601_v9  ;;  %3342 = vmatmul.mubr.bf16.gmra.mrb[28].mxu1 %v13601_v9  ;;  %v13757_v9 = vld [vmem:[#allocation5 + $0x504] ss:$16 sps:$4 sm:$0xff]  }
 0x139   : > { %2579 = vmatprep.mubr.bf16.mxu0 %v13608_v10  ;;  %3351 = vmatprep.mubr.bf16.mxu1 %v13608_v10  ;;  %v13760_v10 = vld [vmem:[#allocation5 + $0x50c] ss:$16 sps:$4 sm:$0xff]  }
 0x13a   : > { %2689 = vmatpush1.bf16.msra.mxu0 %v13665_v11  ;;  %3461 = vmatpush1.bf16.msra.mxu1 %v13668_v12  ;;  %v13718_v11 = vld [vmem:[%s15799_s12 + $0xe8] ss:$28 sps:$4 sm:$0xff]  }
 0x13b   : > { %2690 = vmatprep.subr.bf16.mxu0 %v13676_v13  ;;  %3462 = vmatprep.subr.bf16.mxu1 %v13679_v14  ;;  %v13725_v12 = vld [vmem:[%s15799_s12 + $0x124] ss:$28 sps:$4 sm:$0xff]   ;;  %v13758_v14 = vld [vmem:[#allocation5 + $0x508] ss:$16 sps:$4 sm:$0xff]  }
 0x13c   : > { %v13755_v13 = vld [vmem:[#allocation5 + $0x500] ss:$16 sps:$4 sm:$0xff]  }
 0x13e   : > { %2691 = vmatpush1.bf16.msra.mxu0 %v13674_v15  ;;  %3463 = vmatpush1.bf16.msra.mxu1 %v13677_v16  ;;  %v13766_v15 = vld [vmem:[#allocation5 + $0x524] ss:$16 sps:$4 sm:$0xff]   ;;  %v13769_v16 = vld [vmem:[#allocation5 + $0x52c] ss:$16 sps:$4 sm:$0xff]  }
 0x13f   : > { %2853 = vmatprep.subr.bf16.mxu0 %v13685_v17  ;;  %3625 = vmatprep.subr.bf16.mxu1 %v13688_v18  ;;  %v13764_v17 = vld [vmem:[#allocation5 + $0x520] ss:$16 sps:$4 sm:$0xff]   ;;  %v13767_v18 = vld [vmem:[#allocation5 + $0x528] ss:$16 sps:$4 sm:$0xff]  }
 0x140   : > { %2580 = vmatmul.mubr.bf16.gmra.mrb[32].mxu0 %v13610_v19  ;;  %3352 = vmatmul.mubr.bf16.gmra.mrb[32].mxu1 %v13610_v19  ;;  %v13775_v19 = vld [vmem:[#allocation5 + $0x544] ss:$16 sps:$4 sm:$0xff]  }
 0x141   : > { %2589 = vmatprep.mubr.bf16.mxu0 %v13617_v20  ;;  %3361 = vmatprep.mubr.bf16.mxu1 %v13617_v20  ;;  %v13778_v20 = vld [vmem:[#allocation5 + $0x54c] ss:$16 sps:$4 sm:$0xff]  }
 0x148   : > { %2590 = vmatmul.mubr.bf16.gmra.mrb[36].mxu0 %v13619_v21  ;;  %3362 = vmatmul.mubr.bf16.gmra.mrb[36].mxu1 %v13619_v21  ;;  %v13727_v21 = vld [vmem:[%s15799_s12 + $0x120] ss:$28 sps:$4 sm:$0xff]  }
 0x149   : > { %2599 = vmatprep.mubr.bf16.mxu0 %v13626_v22  ;;  %3371 = vmatprep.mubr.bf16.mxu1 %v13626_v22  ;;  %v13734_v22 = vld [vmem:[%s15799_s12 + $0x15c] ss:$28 sps:$4 sm:$0xff]  }
 0x150   : > { %2600 = vmatmul.mubr.bf16.gmra.mrb[40].mxu0 %v13628_v23  ;;  %3372 = vmatmul.mubr.bf16.gmra.mrb[40].mxu1 %v13628_v23  ;;  %v13773_v23 = vld [vmem:[#allocation5 + $0x540] ss:$16 sps:$4 sm:$0xff]  }
 0x151   : > { %2609 = vmatprep.mubr.bf16.mxu0 %v13635_v24  ;;  %3381 = vmatprep.mubr.bf16.mxu1 %v13635_v24  ;;  %v13776_v24 = vld [vmem:[#allocation5 + $0x548] ss:$16 sps:$4 sm:$0xff]  }
 0x158   : > { %2610 = vmatmul.mubr.bf16.gmra.mrb[44].mxu0 %v13637_v25  ;;  %3382 = vmatmul.mubr.bf16.gmra.mrb[44].mxu1 %v13637_v25  ;;  %v13784_v25 = vld [vmem:[#allocation5 + $0x564] ss:$16 sps:$4 sm:$0xff]  }
 0x159   : > { %2619 = vmatprep.mubr.bf16.mxu0 %v13644_v26  ;;  %3391 = vmatprep.mubr.bf16.mxu1 %v13644_v26  ;;  %v13787_v26 = vld [vmem:[#allocation5 + $0x56c] ss:$16 sps:$4 sm:$0xff]  }
 0x160   : > { %2620 = vmatmul.mubr.bf16.gmra.mrb[48].mxu0 %v13646_v27  ;;  %3392 = vmatmul.mubr.bf16.gmra.mrb[48].mxu1 %v13646_v27  ;;  %v13782_v27 = vld [vmem:[#allocation5 + $0x560] ss:$16 sps:$4 sm:$0xff]  }
 0x161   : > { %2629 = vmatprep.mubr.bf16.mxu0 %v13653_v28  ;;  %3401 = vmatprep.mubr.bf16.mxu1 %v13653_v28  ;;  %v13785_v28 = vld [vmem:[#allocation5 + $0x568] ss:$16 sps:$4 sm:$0xff]  }
 0x168   : > { %2630 = vmatmul.mubr.bf16.gmra.mrb[52].mxu0 %v13655_v29  ;;  %3402 = vmatmul.mubr.bf16.gmra.mrb[52].mxu1 %v13655_v29  ;;  %v13793_v29 = vld [vmem:[#allocation5 + $0x584] ss:$16 sps:$4 sm:$0xff]  }
 0x169   : > { %2639 = vmatprep.mubr.bf16.mxu0 %v13662_v30  ;;  %3411 = vmatprep.mubr.bf16.mxu1 %v13662_v30  ;;  %v13796_v30 = vld [vmem:[#allocation5 + $0x58c] ss:$16 sps:$4 sm:$0xff]  }
 0x170   : > { %2640 = vmatmul.mubr.bf16.gmra.mrb[56].mxu0 %v13664_v31  ;;  %3412 = vmatmul.mubr.bf16.gmra.mrb[56].mxu1 %v13664_v31  ;;  %v13736_v31 = vld [vmem:[%s15799_s12 + $0x158] ss:$28 sps:$4 sm:$0xff]  }
 0x171   : > { %2649 = vmatprep.mubr.bf16.mxu0 %v13671_v32  ;;  %3421 = vmatprep.mubr.bf16.mxu1 %v13671_v32  ;;  %v13743_v32 = vld [vmem:[%s15799_s12 + $0x194] ss:$28 sps:$4 sm:$0xff]  }
 0x178   : > { %2650 = vmatmul.mubr.bf16.gmra.mrb[60].mxu0 %v13673_v33  ;;  %3422 = vmatmul.mubr.bf16.gmra.mrb[60].mxu1 %v13673_v33  ;;  %v13791_v33 = vld [vmem:[#allocation5 + $0x580] ss:$16 sps:$4 sm:$0xff]  }
 0x179   : > { %2692 = vmatprep.mubr.bf16.mxu0 %v13682_v34  ;;  %3464 = vmatprep.mubr.bf16.mxu1 %v13682_v34  ;;  %v13794_v34 = vld [vmem:[#allocation5 + $0x588] ss:$16 sps:$4 sm:$0xff]  }
 0x180   : > { %2693 = vmatmul.mubr.bf16.vlgmr.msra.gmra.mrb[0].mxu0 %v13680_v35  ;;  %3465 = vmatmul.mubr.bf16.vlgmr.msra.gmra.mrb[0].mxu1 %v13680_v35  ;;  %v13802_v35 = vld [vmem:[#allocation5 + $0x5a4] ss:$16 sps:$4 sm:$0xff]  }
 0x181   : > { %2854 = vmatpush1.bf16.msra.mxu0 %v13683_v36  ;;  %3626 = vmatpush1.bf16.msra.mxu1 %v13686_v37  ;;  %v13805_v36 = vld [vmem:[#allocation5 + $0x5ac] ss:$16 sps:$4 sm:$0xff]   ;;  %v13800_v37 = vld [vmem:[#allocation5 + $0x5a0] ss:$16 sps:$4 sm:$0xff]  }
 0x182   : > { %2702 = vmatprep.mubr.bf16.mxu0 %v13689_v38  ;;  %3474 = vmatprep.mubr.bf16.mxu1 %v13689_v38  ;;  %v13803_v38 = vld [vmem:[#allocation5 + $0x5a8] ss:$16 sps:$4 sm:$0xff]  }
 0x183   : > { %2855 = vmatprep.subr.bf16.mxu0 %v13694_v39  ;;  %3627 = vmatprep.subr.bf16.mxu1 %v13697_v40  ;;  %v13811_v39 = vld [vmem:[#allocation5 + $0x5c4] ss:$16 sps:$4 sm:$0xff]   ;;  %v13814_v40 = vld [vmem:[#allocation5 + $0x5cc] ss:$16 sps:$4 sm:$0xff]  }
 0x185   : > { %2856 = vmatpush1.bf16.msra.mxu0 %v13692_v41  ;;  %3628 = vmatpush1.bf16.msra.mxu1 %v13695_v42  ;;  %v13745_v41 = vld [vmem:[%s15799_s12 + $0x190] ss:$28 sps:$4 sm:$0xff]  }
 0x186   : > { %2857 = vmatprep.subr.bf16.mxu0 %v13703_v43  ;;  %3629 = vmatprep.subr.bf16.mxu1 %v13706_v45  ;;  %v13752_v42 = vld [vmem:[%s15799_s12 + $0x1cc] ss:$28 sps:$4 sm:$0xff]   ;;  %v13809_v43 = vld [vmem:[#allocation5 + $0x5c0] ss:$16 sps:$4 sm:$0xff]   ;;  %v13820_v45 = vld [vmem:[#allocation5 + $0x5e4] ss:$16 sps:$4 sm:$0xff]  }
 0x188   : > { %2703 = vmatmul.mubr.bf16.gmra.mrb[4].mxu0 %v13691_v44  ;;  %3475 = vmatmul.mubr.bf16.gmra.mrb[4].mxu1 %v13691_v44  ;;  %v13812_v44 = vld [vmem:[#allocation5 + $0x5c8] ss:$16 sps:$4 sm:$0xff]  }
 0x189   : > { %2712 = vmatprep.mubr.bf16.mxu0 %v13698_v46  ;;  %3484 = vmatprep.mubr.bf16.mxu1 %v13698_v46  ;;  %v13823_v46 = vld [vmem:[#allocation5 + $0x5ec] ss:$16 sps:$4 sm:$0xff]  }
 0x18a   : > { %2858 = vmatpush1.bf16.msra.mxu0 %v13701_v47  ;;  %3630 = vmatpush1.bf16.msra.mxu1 %v13704_v48  ;;  %v13818_v47 = vld [vmem:[#allocation5 + $0x5e0] ss:$16 sps:$4 sm:$0xff]   ;;  %v13821_v48 = vld [vmem:[#allocation5 + $0x5e8] ss:$16 sps:$4 sm:$0xff]  }
 0x18b   : > { %2859 = vmatprep.subr.bf16.mxu0 %v13712_v49  ;;  %3631 = vmatprep.subr.bf16.mxu1 %v13715_v50  ;;  %v13829_v49 = vld [vmem:[#allocation5 + $0x604] ss:$16 sps:$4 sm:$0xff]   ;;  %v13832_v50 = vld [vmem:[#allocation5 + $0x60c] ss:$16 sps:$4 sm:$0xff]  }
 0x18e   : > { %2860 = vmatpush1.bf16.msra.mxu0 %v13710_v51  ;;  %3632 = vmatpush1.bf16.msra.mxu1 %v13713_v52  ;;  %v13754_v51 = vld [vmem:[%s15799_s12 + $0x1c8] ss:$28 sps:$4 sm:$0xff]  }
 0x18f   : > { %2861 = vmatprep.subr.bf16.mxu0 %v13721_v53  ;;  %3633 = vmatprep.subr.bf16.mxu1 %v13724_v54  ;;  %v13761_v52 = vld [vmem:[%s15799_s12 + $0x204] ss:$28 sps:$4 sm:$0xff]   ;;  %v13770_v54 = vld [vmem:[%s15799_s12 + $0x23c] ss:$28 sps:$4 sm:$0xff]  }
 0x190   : > { %2713 = vmatmul.mubr.bf16.gmra.mrb[8].mxu0 %v13700_v55  ;;  %3485 = vmatmul.mubr.bf16.gmra.mrb[8].mxu1 %v13700_v55  ;;  %v13763_v53 = vld [vmem:[%s15799_s12 + $0x200] ss:$28 sps:$4 sm:$0xff]   ;;  %v13772_v55 = vld [vmem:[%s15799_s12 + $0x238] ss:$28 sps:$4 sm:$0xff]  }
 0x191   : > { %2722 = vmatprep.mubr.bf16.mxu0 %v13707_v56  ;;  %3494 = vmatprep.mubr.bf16.mxu1 %v13707_v56  ;;  %v13779_v56 = vld [vmem:[%s15799_s12 + $0x274] ss:$28 sps:$4 sm:$0xff]  }
 0x192   : > { %2862 = vmatpush1.bf16.msra.mxu0 %v13719_v57  ;;  %3634 = vmatpush1.bf16.msra.mxu1 %v13722_v58  ;;  %v13781_v57 = vld [vmem:[%s15799_s12 + $0x270] ss:$28 sps:$4 sm:$0xff]  }
 0x193   : > { %2863 = vmatprep.subr.bf16.mxu0 %v13730_v59  ;;  %3635 = vmatprep.subr.bf16.mxu1 %v13733_v60  ;;  %v13788_v58 = vld [vmem:[%s15799_s12 + $0x2ac] ss:$28 sps:$4 sm:$0xff]   ;;  %v13797_v60 = vld [vmem:[%s15799_s12 + $0x2e4] ss:$28 sps:$4 sm:$0xff]  }
 0x194   : > { %v13790_v59 = vld [vmem:[%s15799_s12 + $0x2a8] ss:$28 sps:$4 sm:$0xff]  }
 0x196   : > { %2864 = vmatpush1.bf16.msra.mxu0 %v13728_v61  ;;  %3636 = vmatpush1.bf16.msra.mxu1 %v13731_v62  ;;  %v13799_v61 = vld [vmem:[%s15799_s12 + $0x2e0] ss:$28 sps:$4 sm:$0xff]  }
 0x197   : > { %2865 = vmatprep.subr.bf16.mxu0 %v13739_v63  ;;  %3637 = vmatprep.subr.bf16.mxu1 %v13742_v0  ;;  %v13806_v62 = vld [vmem:[%s15799_s12 + $0x31c] ss:$28 sps:$4 sm:$0xff]   ;;  %v13815_v0 = vld [vmem:[%s15799_s12 + $0x354] ss:$28 sps:$4 sm:$0xff]  }
 0x198   : > { %2723 = vmatmul.mubr.bf16.gmra.mrb[12].mxu0 %v13709_v1  ;;  %3495 = vmatmul.mubr.bf16.gmra.mrb[12].mxu1 %v13709_v1  ;;  %v13808_v63 = vld [vmem:[%s15799_s12 + $0x318] ss:$28 sps:$4 sm:$0xff]   ;;  %v13817_v1 = vld [vmem:[%s15799_s12 + $0x350] ss:$28 sps:$4 sm:$0xff]  }
 0x199   : > { %2732 = vmatprep.mubr.bf16.mxu0 %v13716_v2  ;;  %3504 = vmatprep.mubr.bf16.mxu1 %v13716_v2  ;;  %v13826_v2 = vld [vmem:[%s15799_s12 + $0x14] ss:$28 sps:$4 sm:$0xff]  }
 0x19a   : > { %2866 = vmatpush1.bf16.msra.mxu0 %v13737_v3  ;;  %3638 = vmatpush1.bf16.msra.mxu1 %v13740_v4  ;;  %v13824_v3 = vld [vmem:[%s15799_s12 + $0x10] ss:$28 sps:$4 sm:$0xff]   ;;  %v18919_v4 = vmov 0  }
 0x19b   : > { %2867 = vmatprep.subr.bf16.mxu0 %v13748_v5  ;;  %3639 = vmatprep.subr.bf16.mxu1 %v13751_v6  ;;  %v13827_v5 = vld [vmem:[#allocation5 + $0x600] ss:$16 sps:$4 sm:$0xff]   ;;  %v13830_v6 = vld [vmem:[#allocation5 + $0x608] ss:$16 sps:$4 sm:$0xff]  }
 0x19c   : > { %13391 = vset.pattern.permute.xlu0 %v18919_v4 }
 0x19e   : > { %2868 = vmatpush1.bf16.msra.mxu0 %v13746_v7  ;;  %3640 = vmatpush1.bf16.msra.mxu1 %v13749_v8  ;;  %v13833_v7 = vld [vmem:[%s15799_s12 + $0x4c] ss:$28 sps:$4 sm:$0xff]   ;;  %v13841_v8 = vld [vmem:[#allocation5 + $0x624] ss:$16 sps:$4 sm:$0xff]  }
 0x19f   : > { %2869 = vmatprep.subr.bf16.mxu0 %v13757_v9  ;;  %3641 = vmatprep.subr.bf16.mxu1 %v13760_v10  ;;  %v13844_v9 = vld [vmem:[#allocation5 + $0x62c] ss:$16 sps:$4 sm:$0xff]   ;;  %v13839_v10 = vld [vmem:[#allocation5 + $0x620] ss:$16 sps:$4 sm:$0xff]  }
 0x1a0   : > { %2733 = vmatmul.mubr.bf16.gmra.mrb[16].mxu0 %v13718_v11  ;;  %3505 = vmatmul.mubr.bf16.gmra.mrb[16].mxu1 %v13718_v11  ;;  %v13842_v11 = vld [vmem:[#allocation5 + $0x628] ss:$16 sps:$4 sm:$0xff]  }
 0x1a1   : > { %2742 = vmatprep.mubr.bf16.mxu0 %v13725_v12  ;;  %3514 = vmatprep.mubr.bf16.mxu1 %v13725_v12  ;;  %v13853_v12 = vld [vmem:[#allocation5 + $0x644] ss:$16 sps:$4 sm:$0xff]  }
 0x1a2   : > { %2870 = vmatpush1.bf16.msra.mxu0 %v13755_v13  ;;  %3642 = vmatpush1.bf16.msra.mxu1 %v13758_v14  ;;  %v13856_v13 = vld [vmem:[#allocation5 + $0x64c] ss:$16 sps:$4 sm:$0xff]   ;;  %v13835_v14 = vld [vmem:[%s15799_s12 + $0x48] ss:$28 sps:$4 sm:$0xff]  }
 0x1a3   : > { %2871 = vmatprep.subr.bf16.mxu0 %v13766_v15  ;;  %3643 = vmatprep.subr.bf16.mxu1 %v13769_v16  ;;  %v13836_v15 = vld [vmem:[%s15799_s12 + $0x84] ss:$28 sps:$4 sm:$0xff]  }
 0x1a4   : > { %v13851_v16 = vld [vmem:[#allocation5 + $0x640] ss:$16 sps:$4 sm:$0xff]  }
 0x1a6   : > { %2872 = vmatpush1.bf16.msra.mxu0 %v13764_v17  ;;  %3644 = vmatpush1.bf16.msra.mxu1 %v13767_v18  ;;  %v13854_v17 = vld [vmem:[#allocation5 + $0x648] ss:$16 sps:$4 sm:$0xff]   ;;  %v13865_v18 = vld [vmem:[#allocation5 + $0x664] ss:$16 sps:$4 sm:$0xff]  }
 0x1a7   : > { %2873 = vmatprep.subr.bf16.mxu0 %v13775_v19  ;;  %3645 = vmatprep.subr.bf16.mxu1 %v13778_v20  ;;  %v13868_v19 = vld [vmem:[#allocation5 + $0x66c] ss:$16 sps:$4 sm:$0xff]   ;;  %v13863_v20 = vld [vmem:[#allocation5 + $0x660] ss:$16 sps:$4 sm:$0xff]  }
 0x1a8   : > { %2743 = vmatmul.mubr.bf16.gmra.mrb[20].mxu0 %v13727_v21  ;;  %3515 = vmatmul.mubr.bf16.gmra.mrb[20].mxu1 %v13727_v21  ;;  %v13866_v21 = vld [vmem:[#allocation5 + $0x668] ss:$16 sps:$4 sm:$0xff]  }
 0x1a9   : > { %2752 = vmatprep.mubr.bf16.mxu0 %v13734_v22  ;;  %3524 = vmatprep.mubr.bf16.mxu1 %v13734_v22  ;;  %v13877_v22 = vld [vmem:[#allocation5 + $0x684] ss:$16 sps:$4 sm:$0xff]  }
 0x1aa   : > { %2874 = vmatpush1.bf16.msra.mxu0 %v13773_v23  ;;  %3646 = vmatpush1.bf16.msra.mxu1 %v13776_v24  ;;  %v13880_v23 = vld [vmem:[#allocation5 + $0x68c] ss:$16 sps:$4 sm:$0xff]  }
 0x1ab   : > { %2875 = vmatprep.subr.bf16.mxu0 %v13784_v25  ;;  %3647 = vmatprep.subr.bf16.mxu1 %v13787_v26  ;;  %v13838_v24 = vld [vmem:[%s15799_s12 + $0x80] ss:$28 sps:$4 sm:$0xff]  }
 0x1ac   : > { %v13845_v25 = vld [vmem:[%s15799_s12 + $0xbc] ss:$28 sps:$4 sm:$0xff]   ;;  %v13875_v26 = vld [vmem:[#allocation5 + $0x680] ss:$16 sps:$4 sm:$0xff]  }
 0x1ae   : > { %2876 = vmatpush1.bf16.msra.mxu0 %v13782_v27  ;;  %3648 = vmatpush1.bf16.msra.mxu1 %v13785_v28  ;;  %v13878_v27 = vld [vmem:[#allocation5 + $0x688] ss:$16 sps:$4 sm:$0xff]   ;;  %v13889_v28 = vld [vmem:[#allocation5 + $0x6a4] ss:$16 sps:$4 sm:$0xff]  }
 0x1af   : > { %2877 = vmatprep.subr.bf16.mxu0 %v13793_v29  ;;  %3649 = vmatprep.subr.bf16.mxu1 %v13796_v30  ;;  %v13892_v29 = vld [vmem:[#allocation5 + $0x6ac] ss:$16 sps:$4 sm:$0xff]   ;;  %v13887_v30 = vld [vmem:[#allocation5 + $0x6a0] ss:$16 sps:$4 sm:$0xff]  }
 0x1b0   : > { %2753 = vmatmul.mubr.bf16.gmra.mrb[24].mxu0 %v13736_v31  ;;  %3525 = vmatmul.mubr.bf16.gmra.mrb[24].mxu1 %v13736_v31  ;;  %v13890_v31 = vld [vmem:[#allocation5 + $0x6a8] ss:$16 sps:$4 sm:$0xff]  }
 0x1b1   : > { %2762 = vmatprep.mubr.bf16.mxu0 %v13743_v32  ;;  %3534 = vmatprep.mubr.bf16.mxu1 %v13743_v32  ;;  %v13901_v32 = vld [vmem:[#allocation5 + $0x6c4] ss:$16 sps:$4 sm:$0xff]  }
 0x1b2   : > { %2878 = vmatpush1.bf16.msra.mxu0 %v13791_v33  ;;  %3650 = vmatpush1.bf16.msra.mxu1 %v13794_v34  ;;  %v13904_v33 = vld [vmem:[#allocation5 + $0x6cc] ss:$16 sps:$4 sm:$0xff]   ;;  %v13847_v34 = vld [vmem:[%s15799_s12 + $0xb8] ss:$28 sps:$4 sm:$0xff]  }
 0x1b3   : > { %2879 = vmatprep.subr.bf16.mxu0 %v13802_v35  ;;  %3651 = vmatprep.subr.bf16.mxu1 %v13805_v36  ;;  %v13848_v35 = vld [vmem:[%s15799_s12 + $0xf4] ss:$28 sps:$4 sm:$0xff]  }
 0x1b4   : > { %v13899_v36 = vld [vmem:[#allocation5 + $0x6c0] ss:$16 sps:$4 sm:$0xff]  }
 0x1b6   : > { %2880 = vmatpush1.bf16.msra.mxu0 %v13800_v37  ;;  %3652 = vmatpush1.bf16.msra.mxu1 %v13803_v38  ;;  %v13902_v37 = vld [vmem:[#allocation5 + $0x6c8] ss:$16 sps:$4 sm:$0xff]   ;;  %v13913_v38 = vld [vmem:[#allocation5 + $0x6e4] ss:$16 sps:$4 sm:$0xff]  }
 0x1b7   : > { %2881 = vmatprep.subr.bf16.mxu0 %v13811_v39  ;;  %3653 = vmatprep.subr.bf16.mxu1 %v13814_v40  ;;  %v13916_v39 = vld [vmem:[#allocation5 + $0x6ec] ss:$16 sps:$4 sm:$0xff]   ;;  %v13911_v40 = vld [vmem:[#allocation5 + $0x6e0] ss:$16 sps:$4 sm:$0xff]  }
 0x1b8   : > { %2763 = vmatmul.mubr.bf16.gmra.mrb[28].mxu0 %v13745_v41  ;;  %3535 = vmatmul.mubr.bf16.gmra.mrb[28].mxu1 %v13745_v41  ;;  %v13914_v41 = vld [vmem:[#allocation5 + $0x6e8] ss:$16 sps:$4 sm:$0xff]  }
 0x1b9   : > { %2772 = vmatprep.mubr.bf16.mxu0 %v13752_v42  ;;  %3544 = vmatprep.mubr.bf16.mxu1 %v13752_v42  ;;  %v13850_v42 = vld [vmem:[%s15799_s12 + $0xf0] ss:$28 sps:$4 sm:$0xff]  }
 0x1ba   : > { %2882 = vmatpush1.bf16.msra.mxu0 %v13809_v43  ;;  %3654 = vmatpush1.bf16.msra.mxu1 %v13812_v44  ;;  %v13857_v43 = vld [vmem:[%s15799_s12 + $0x12c] ss:$28 sps:$4 sm:$0xff]  }
 0x1bb   : > { %2883 = vmatprep.subr.bf16.mxu0 %v13820_v45  ;;  %3655 = vmatprep.subr.bf16.mxu1 %v13823_v46  ;;  %v13859_v44 = vld [vmem:[%s15799_s12 + $0x128] ss:$28 sps:$4 sm:$0xff]   ;;  %v13862_v46 = vld [vmem:[%s15799_s12 + $0x160] ss:$28 sps:$4 sm:$0xff]  }
 0x1bc   : > { %v13860_v45 = vld [vmem:[%s15799_s12 + $0x164] ss:$28 sps:$4 sm:$0xff]  }
 0x1be   : > { %2884 = vmatpush1.bf16.msra.mxu0 %v13818_v47  ;;  %3656 = vmatpush1.bf16.msra.mxu1 %v13821_v48  ;;  %v13869_v47 = vld [vmem:[%s15799_s12 + $0x19c] ss:$28 sps:$4 sm:$0xff]  }
 0x1bf   : > { %3046 = vmatprep.subr.bf16.mxu0 %v13829_v49  ;;  %3818 = vmatprep.subr.bf16.mxu1 %v13832_v50  ;;  %v13871_v48 = vld [vmem:[%s15799_s12 + $0x198] ss:$28 sps:$4 sm:$0xff]   ;;  %v13874_v50 = vld [vmem:[%s15799_s12 + $0x1d0] ss:$28 sps:$4 sm:$0xff]  }
 0x1c0   : > { %2773 = vmatmul.mubr.bf16.gmra.mrb[32].mxu0 %v13754_v51  ;;  %3545 = vmatmul.mubr.bf16.gmra.mrb[32].mxu1 %v13754_v51  ;;  %v13872_v49 = vld [vmem:[%s15799_s12 + $0x1d4] ss:$28 sps:$4 sm:$0xff]   ;;  %v13881_v51 = vld [vmem:[%s15799_s12 + $0x20c] ss:$28 sps:$4 sm:$0xff]  }
 0x1c1   : > { %2782 = vmatprep.mubr.bf16.mxu0 %v13761_v52  ;;  %3554 = vmatprep.mubr.bf16.mxu1 %v13761_v52  ;;  %v13883_v52 = vld [vmem:[%s15799_s12 + $0x208] ss:$28 sps:$4 sm:$0xff]  }
 0x1c8   : > { %2783 = vmatmul.mubr.bf16.gmra.mrb[36].mxu0 %v13763_v53  ;;  %3555 = vmatmul.mubr.bf16.gmra.mrb[36].mxu1 %v13763_v53  ;;  %v13884_v53 = vld [vmem:[%s15799_s12 + $0x244] ss:$28 sps:$4 sm:$0xff]  }
 0x1c9   : > { %2792 = vmatprep.mubr.bf16.mxu0 %v13770_v54  ;;  %3564 = vmatprep.mubr.bf16.mxu1 %v13770_v54  ;;  %v13886_v54 = vld [vmem:[%s15799_s12 + $0x240] ss:$28 sps:$4 sm:$0xff]  }
 0x1d0   : > { %2793 = vmatmul.mubr.bf16.gmra.mrb[40].mxu0 %v13772_v55  ;;  %3565 = vmatmul.mubr.bf16.gmra.mrb[40].mxu1 %v13772_v55  ;;  %v13893_v55 = vld [vmem:[%s15799_s12 + $0x27c] ss:$28 sps:$4 sm:$0xff]  }
 0x1d1   : > { %2802 = vmatprep.mubr.bf16.mxu0 %v13779_v56  ;;  %3574 = vmatprep.mubr.bf16.mxu1 %v13779_v56  ;;  %v13895_v56 = vld [vmem:[%s15799_s12 + $0x278] ss:$28 sps:$4 sm:$0xff]  }
 0x1d8   : > { %2803 = vmatmul.mubr.bf16.gmra.mrb[44].mxu0 %v13781_v57  ;;  %3575 = vmatmul.mubr.bf16.gmra.mrb[44].mxu1 %v13781_v57  ;;  %v13896_v57 = vld [vmem:[%s15799_s12 + $0x2b4] ss:$28 sps:$4 sm:$0xff]  }
 0x1d9   : > { %2812 = vmatprep.mubr.bf16.mxu0 %v13788_v58  ;;  %3584 = vmatprep.mubr.bf16.mxu1 %v13788_v58  ;;  %v13898_v58 = vld [vmem:[%s15799_s12 + $0x2b0] ss:$28 sps:$4 sm:$0xff]  }
 0x1e0   : > { %2813 = vmatmul.mubr.bf16.gmra.mrb[48].mxu0 %v13790_v59  ;;  %3585 = vmatmul.mubr.bf16.gmra.mrb[48].mxu1 %v13790_v59  ;;  %v13905_v59 = vld [vmem:[%s15799_s12 + $0x2ec] ss:$28 sps:$4 sm:$0xff]  }
 0x1e1   : > { %2822 = vmatprep.mubr.bf16.mxu0 %v13797_v60  ;;  %3594 = vmatprep.mubr.bf16.mxu1 %v13797_v60  ;;  %v13933_v60 = vld [vmem:[#allocation7 + $0x40] sm:$0xff]  }
 0x1e8   : > { %2823 = vmatmul.mubr.bf16.gmra.mrb[52].mxu0 %v13799_v61  ;;  %3595 = vmatmul.mubr.bf16.gmra.mrb[52].mxu1 %v13799_v61  ;;  %v13935_v61 = vld [vmem:[#allocation7 + $0xc0] sm:$0xff]  }
 0x1e9   : > { %2832 = vmatprep.mubr.bf16.mxu0 %v13806_v62  ;;  %3604 = vmatprep.mubr.bf16.mxu1 %v13806_v62  ;;  %v13907_v62 = vld [vmem:[%s15799_s12 + $0x2e8] ss:$28 sps:$4 sm:$0xff]  }
 0x1f0   : > { %2833 = vmatmul.mubr.bf16.gmra.mrb[56].mxu0 %v13808_v63  ;;  %3605 = vmatmul.mubr.bf16.gmra.mrb[56].mxu1 %v13808_v63  ;;  %v13908_v63 = vld [vmem:[%s15799_s12 + $0x324] ss:$28 sps:$4 sm:$0xff]  }
 0x1f1   : > { %2842 = vmatprep.mubr.bf16.mxu0 %v13815_v0  ;;  %3614 = vmatprep.mubr.bf16.mxu1 %v13815_v0  ;;  %v13910_v0 = vld [vmem:[%s15799_s12 + $0x320] ss:$28 sps:$4 sm:$0xff]  }
 0x1f8   : > { %2843 = vmatmul.mubr.bf16.gmra.mrb[60].mxu0 %v13817_v1  ;;  %3615 = vmatmul.mubr.bf16.gmra.mrb[60].mxu1 %v13817_v1  ;;  %v13917_v1 = vld [vmem:[%s15799_s12 + $0x35c] ss:$28 sps:$4 sm:$0xff]  }
 0x1f9   : > { %2885 = vmatprep.mubr.bf16.mxu0 %v13826_v2  ;;  %3657 = vmatprep.mubr.bf16.mxu1 %v13826_v2  ;;  %v13919_v2 = vld [vmem:[%s15799_s12 + $0x358] ss:$28 sps:$4 sm:$0xff]  }
 0x200   : > { %2886 = vmatmul.mubr.bf16.vlgmr.msra.gmra.mrb[0].mxu0 %v13824_v3  ;;  %3658 = vmatmul.mubr.bf16.vlgmr.msra.gmra.mrb[0].mxu1 %v13824_v3  ;;  %v13920_v3 = vld [vmem:[%s15799_s12 + $0x18] ss:$28 sps:$4 sm:$0xff]  }
 0x201   : > { %3047 = vmatpush1.bf16.msra.mxu0 %v13827_v5  ;;  %3819 = vmatpush1.bf16.msra.mxu1 %v13830_v6  ;;  %v13934_v5 = vld [vmem:[#allocation7] sm:$0xff]  }
 0x202   : > { %2895 = vmatprep.mubr.bf16.mxu0 %v13833_v7  ;;  %3667 = vmatprep.mubr.bf16.mxu1 %v13833_v7  ;;  %v13936_v6 = vld [vmem:[#allocation7 + $0x80] sm:$0xff]   ;;  %v13939_v7 = vld [vmem:[#allocation7 + $0x48] sm:$0xff]  }
 0x203   : > { %3048 = vmatprep.subr.bf16.mxu0 %v13841_v8  ;;  %3820 = vmatprep.subr.bf16.mxu1 %v13844_v9  ;;  %v13941_v8 = vld [vmem:[#allocation7 + $0xc8] sm:$0xff]  }
 0x204   : > { %v13940_v9 = vld [vmem:[#allocation7 + $0x8] sm:$0xff]  }
 0x205   : > { %3049 = vmatpush1.bf16.msra.mxu0 %v13839_v10  ;;  %3821 = vmatpush1.bf16.msra.mxu1 %v13842_v11  ;;  %v13942_v10 = vld [vmem:[#allocation7 + $0x88] sm:$0xff]   ;;  %v13944_v11 = vld [vmem:[#allocation7 + $0x50] sm:$0xff]  }
 0x206   : > { %3050 = vmatprep.subr.bf16.mxu0 %v13853_v12  ;;  %3822 = vmatprep.subr.bf16.mxu1 %v13856_v13  ;;  %v13946_v12 = vld [vmem:[#allocation7 + $0xd0] sm:$0xff]  }
 0x207   : > { %v13921_v13 = vld [vmem:[%s15799_s12 + $0x50] ss:$28 sps:$4 sm:$0xff]  }
 0x208   : > { %2896 = vmatmul.mubr.bf16.gmra.mrb[4].mxu0 %v13835_v14  ;;  %3668 = vmatmul.mubr.bf16.gmra.mrb[4].mxu1 %v13835_v14  ;;  %v13945_v14 = vld [vmem:[#allocation7 + $0x10] sm:$0xff]  }
 0x209   : > { %2905 = vmatprep.mubr.bf16.mxu0 %v13836_v15  ;;  %3677 = vmatprep.mubr.bf16.mxu1 %v13836_v15  ;;  %v13947_v15 = vld [vmem:[#allocation7 + $0x90] sm:$0xff]  }
 0x20a   : > { %3051 = vmatpush1.bf16.msra.mxu0 %v13851_v16  ;;  %3823 = vmatpush1.bf16.msra.mxu1 %v13854_v17  ;;  %v13948_v16 = vld [vmem:[#allocation7 + $0x58] sm:$0xff]  }
 0x20b   : > { %3052 = vmatprep.subr.bf16.mxu0 %v13865_v18  ;;  %3824 = vmatprep.subr.bf16.mxu1 %v13868_v19  ;;  %v13950_v17 = vld [vmem:[#allocation7 + $0xd8] sm:$0xff]  }
 0x20c   : > { %v13949_v18 = vld [vmem:[#allocation7 + $0x18] sm:$0xff]  }
 0x20d   : > { %v13951_v19 = vld [vmem:[#allocation7 + $0x98] sm:$0xff]  }
 0x20e   : > { %3053 = vmatpush1.bf16.msra.mxu0 %v13863_v20  ;;  %3825 = vmatpush1.bf16.msra.mxu1 %v13866_v21  ;;  %v13952_v20 = vld [vmem:[#allocation7 + $0x60] sm:$0xff]  }
 0x20f   : > { %3054 = vmatprep.subr.bf16.mxu0 %v13877_v22  ;;  %3826 = vmatprep.subr.bf16.mxu1 %v13880_v23  ;;  %v13954_v21 = vld [vmem:[#allocation7 + $0xe0] sm:$0xff]  }
 0x210   : > { %2906 = vmatmul.mubr.bf16.gmra.mrb[8].mxu0 %v13838_v24  ;;  %3678 = vmatmul.mubr.bf16.gmra.mrb[8].mxu1 %v13838_v24  ;;  %v13922_v22 = vld [vmem:[%s15799_s12 + $0x88] ss:$28 sps:$4 sm:$0xff]  }
 0x211   : > { %2915 = vmatprep.mubr.bf16.mxu0 %v13845_v25  ;;  %3687 = vmatprep.mubr.bf16.mxu1 %v13845_v25  ;;  %v13953_v23 = vld [vmem:[#allocation7 + $0x20] sm:$0xff]   ;;  %v13956_v25 = vld [vmem:[#allocation7 + $0x68] sm:$0xff]  }
 0x212   : > { %3055 = vmatpush1.bf16.msra.mxu0 %v13875_v26  ;;  %3827 = vmatpush1.bf16.msra.mxu1 %v13878_v27  ;;  %v13955_v24 = vld [vmem:[#allocation7 + $0xa0] sm:$0xff]   ;;  %v13958_v26 = vld [vmem:[#allocation7 + $0xe8] sm:$0xff]  }
 0x213   : > { %3056 = vmatprep.subr.bf16.mxu0 %v13889_v28  ;;  %3828 = vmatprep.subr.bf16.mxu1 %v13892_v29  ;;  %v13957_v27 = vld [vmem:[#allocation7 + $0x28] sm:$0xff]   ;;  %v13960_v29 = vld [vmem:[#allocation7 + $0x70] sm:$0xff]  }
 0x214   : > { %v13959_v28 = vld [vmem:[#allocation7 + $0xa8] sm:$0xff]  }
 0x216   : > { %3057 = vmatpush1.bf16.msra.mxu0 %v13887_v30  ;;  %3829 = vmatpush1.bf16.msra.mxu1 %v13890_v31  ;;  %v13962_v30 = vld [vmem:[#allocation7 + $0xf0] sm:$0xff]   ;;  %v13923_v31 = vld [vmem:[%s15799_s12 + $0xc0] ss:$28 sps:$4 sm:$0xff]  }
 0x217   : > { %3058 = vmatprep.subr.bf16.mxu0 %v13901_v32  ;;  %3830 = vmatprep.subr.bf16.mxu1 %v13904_v33  ;;  %v13961_v32 = vld [vmem:[#allocation7 + $0x30] sm:$0xff]  }
 0x218   : > { %2916 = vmatmul.mubr.bf16.gmra.mrb[12].mxu0 %v13847_v34  ;;  %3688 = vmatmul.mubr.bf16.gmra.mrb[12].mxu1 %v13847_v34  ;;  %v13963_v33 = vld [vmem:[#allocation7 + $0xb0] sm:$0xff]   ;;  %v13964_v34 = vld [vmem:[#allocation7 + $0x78] sm:$0xff]  }
 0x219   : > { %2925 = vmatprep.mubr.bf16.mxu0 %v13848_v35  ;;  %3697 = vmatprep.mubr.bf16.mxu1 %v13848_v35  ;;  %v13966_v35 = vld [vmem:[#allocation7 + $0xf8] sm:$0xff]  }
 0x21a   : > { %3059 = vmatpush1.bf16.msra.mxu0 %v13899_v36  ;;  %3831 = vmatpush1.bf16.msra.mxu1 %v13902_v37  ;;  %v13965_v36 = vld [vmem:[#allocation7 + $0x38] sm:$0xff]  }
 0x21b   : > { %3060 = vmatprep.subr.bf16.mxu0 %v13913_v38  ;;  %3832 = vmatprep.subr.bf16.mxu1 %v13916_v39  ;;  %v13924_v37 = vld [vmem:[%s15799_s12 + $0xf8] ss:$28 sps:$4 sm:$0xff]   ;;  %v13925_v38 = vld [vmem:[%s15799_s12 + $0x130] ss:$28 sps:$4 sm:$0xff]   ;;  %v13926_v39 = vld [vmem:[%s15799_s12 + $0x168] ss:$28 sps:$4 sm:$0xff]  }
 0x21e   : > { %3061 = vmatpush1.bf16.msra.mxu0 %v13911_v40  ;;  %3833 = vmatpush1.bf16.msra.mxu1 %v13914_v41  ;;  %v13927_v40 = vld [vmem:[%s15799_s12 + $0x1a0] ss:$28 sps:$4 sm:$0xff]   ;;  %v13928_v41 = vld [vmem:[%s15799_s12 + $0x1d8] ss:$28 sps:$4 sm:$0xff]  }
 0x21f   : > { %11933 = vmatprep.subr.bf16.mxu0 %v13933_v60  ;;  %12045 = vmatprep.subr.bf16.mxu1 %v13935_v61 }
 0x220   : > { %2926 = vmatmul.mubr.bf16.gmra.mrb[16].mxu0 %v13850_v42  ;;  %3698 = vmatmul.mubr.bf16.gmra.mrb[16].mxu1 %v13850_v42  ;;  %v13929_v42 = vld [vmem:[%s15799_s12 + $0x210] ss:$28 sps:$4 sm:$0xff]  }
 0x221   : > { %2935 = vmatprep.mubr.bf16.mxu0 %v13857_v43  ;;  %3707 = vmatprep.mubr.bf16.mxu1 %v13857_v43  ;;  %v13930_v43 = vld [vmem:[%s15799_s12 + $0x248] ss:$28 sps:$4 sm:$0xff]  }
 0x228   : > { %2936 = vmatmul.mubr.bf16.gmra.mrb[20].mxu0 %v13859_v44  ;;  %3708 = vmatmul.mubr.bf16.gmra.mrb[20].mxu1 %v13859_v44  ;;  %v13931_v44 = vld [vmem:[%s15799_s12 + $0x280] ss:$28 sps:$4 sm:$0xff]  }
 0x229   : > { %2945 = vmatprep.mubr.bf16.mxu0 %v13860_v45  ;;  %3717 = vmatprep.mubr.bf16.mxu1 %v13860_v45  ;;  %v13967_v45 = vld [vmem:[#allocation7 + $0xb8] sm:$0xff]  }
 0x230   : > { %2946 = vmatmul.mubr.bf16.gmra.mrb[24].mxu0 %v13862_v46  ;;  %3718 = vmatmul.mubr.bf16.gmra.mrb[24].mxu1 %v13862_v46  ;;  %v13932_v46 = vld [vmem:[%s15799_s12 + $0x2b8] ss:$28 sps:$4 sm:$0xff]  }
 0x231   : > { %2955 = vmatprep.mubr.bf16.mxu0 %v13869_v47  ;;  %3727 = vmatprep.mubr.bf16.mxu1 %v13869_v47  ;;  %v13937_v47 = vld [vmem:[%s15799_s12 + $0x2f0] ss:$28 sps:$4 sm:$0xff]  }
 0x238   : > { %2956 = vmatmul.mubr.bf16.gmra.mrb[28].mxu0 %v13871_v48  ;;  %3728 = vmatmul.mubr.bf16.gmra.mrb[28].mxu1 %v13871_v48  ;;  %v13938_v48 = vld [vmem:[%s15799_s12 + $0x328] ss:$28 sps:$4 sm:$0xff]  }
 0x239   : > { %2965 = vmatprep.mubr.bf16.mxu0 %v13872_v49  ;;  %3737 = vmatprep.mubr.bf16.mxu1 %v13872_v49  ;;  %v13943_v49 = vld [vmem:[%s15799_s12 + $0x360] ss:$28 sps:$4 sm:$0xff]  }
 0x240   : > { %2966 = vmatmul.mubr.bf16.gmra.mrb[32].mxu0 %v13874_v50  ;;  %3738 = vmatmul.mubr.bf16.gmra.mrb[32].mxu1 %v13874_v50  ;;  %v751_v50 = vlaneseq }
 0x241   : > { %2975 = vmatprep.mubr.bf16.mxu0 %v13881_v51  ;;  %3747 = vmatprep.mubr.bf16.mxu1 %v13881_v51 }
 0x242   : > { %v15962_v51 = vshrl.u32 %v751_v50, 7 }
 0x244   : > { %19052 = vst [vmem:[#allocation19_spill] sm:$0xff] %v15962_v51 }
 0x248   : > { %2976 = vmatmul.mubr.bf16.gmra.mrb[36].mxu0 %v13883_v52  ;;  %3748 = vmatmul.mubr.bf16.gmra.mrb[36].mxu1 %v13883_v52  ;;  %v15965_v52 = vsub.s32 0, %v15962_v51 }
 0x249   : > { %2985 = vmatprep.mubr.bf16.mxu0 %v13884_v53  ;;  %3757 = vmatprep.mubr.bf16.mxu1 %v13884_v53  ;;  %v15968_v53 = vsub.s32 2, %v15962_v51 }
 0x24a   : > { %19053 = vst [vmem:[#allocation20_spill] sm:$0xff] %v15965_v52 }
 0x24b   : > { %19054 = vst [vmem:[#allocation21_spill] sm:$0xff] %v15968_v53 }
 0x250   : > { %2986 = vmatmul.mubr.bf16.gmra.mrb[40].mxu0 %v13886_v54  ;;  %3758 = vmatmul.mubr.bf16.gmra.mrb[40].mxu1 %v13886_v54  ;;  %v520_v54 = vld [vmem:[#allocation11] ss:$4 sm:$0xf] }
 0x251   : > { %2995 = vmatprep.mubr.bf16.mxu0 %v13893_v55  ;;  %3767 = vmatprep.mubr.bf16.mxu1 %v13893_v55  ;;  %v15971_v55 = vsub.s32 1, %v15962_v51 }
 0x253   : > { %19055 = vst [vmem:[#allocation22_spill] sm:$0xff] %v15971_v55 }
 0x258   : > { %2996 = vmatmul.mubr.bf16.gmra.mrb[44].mxu0 %v13895_v56  ;;  %3768 = vmatmul.mubr.bf16.gmra.mrb[44].mxu1 %v13895_v56  ;;  %v15974_v56 = vsub.s32 3, %v15962_v51 }
 0x259   : > { %3005 = vmatprep.mubr.bf16.mxu0 %v13896_v57  ;;  %3777 = vmatprep.mubr.bf16.mxu1 %v13896_v57  ;;  %v15977_v57 = vrot.slane %v520_v54, %v15965_v52 }
 0x25a   : > { %19056 = vst [vmem:[#allocation23_spill] sm:$0xff] %v15974_v56  ;;  %v15986_v60 = vrot.slane %v520_v54, %v15974_v56 }
 0x260   : > { %3006 = vmatmul.mubr.bf16.gmra.mrb[48].mxu0 %v13898_v58  ;;  %3778 = vmatmul.mubr.bf16.gmra.mrb[48].mxu1 %v13898_v58  ;;  %v15980_v58 = vrot.slane %v520_v54, %v15968_v53 }
 0x261   : > { %3015 = vmatprep.mubr.bf16.mxu0 %v13905_v59  ;;  %3787 = vmatprep.mubr.bf16.mxu1 %v13905_v59  ;;  %v15983_v59 = vrot.slane %v520_v54, %v15971_v55 }
 0x268   : > { %3016 = vmatmul.mubr.bf16.gmra.mrb[52].mxu0 %v13907_v62  ;;  %3788 = vmatmul.mubr.bf16.gmra.mrb[52].mxu1 %v13907_v62 }
 0x269   : > { %3025 = vmatprep.mubr.bf16.mxu0 %v13908_v63  ;;  %3797 = vmatprep.mubr.bf16.mxu1 %v13908_v63 }
 0x270   : > { %3026 = vmatmul.mubr.bf16.gmra.mrb[56].mxu0 %v13910_v0  ;;  %3798 = vmatmul.mubr.bf16.gmra.mrb[56].mxu1 %v13910_v0 }
 0x271   : > { %3035 = vmatprep.mubr.bf16.mxu0 %v13917_v1  ;;  %3807 = vmatprep.mubr.bf16.mxu1 %v13917_v1 }
 0x278   : > { %3036 = vmatmul.mubr.bf16.gmra.mrb[60].mxu0 %v13919_v2  ;;  %3808 = vmatmul.mubr.bf16.gmra.mrb[60].mxu1 %v13919_v2 }
 0x279   : > { %3078 = vmatprep.mubr.bf16.mxu0 %v18919_v4  ;;  %3850 = vmatprep.mubr.bf16.mxu1 %v18919_v4 }
 0x280   : > { %3079 = vmatmul.mubr.bf16.vlgmr.msra.gmra.mrb[0].mxu0 %v13920_v3  ;;  %3851 = vmatmul.mubr.bf16.vlgmr.msra.gmra.mrb[0].mxu1 %v13920_v3 }
 0x281   : > { %3088 = vmatprep.mubr.bf16.mxu0 %v18919_v4  ;;  %3860 = vmatprep.mubr.bf16.mxu1 %v18919_v4 }
 0x282   : > { %11934 = vmatpush3.bf16.msra.mxu0 %v13934_v5  ;;  %12046 = vmatpush3.bf16.msra.mxu1 %v13936_v6 }
 0x283   : > { %11935 = vmatprep.subr.bf16.mxu0 %v13939_v7  ;;  %12047 = vmatprep.subr.bf16.mxu1 %v13941_v8 }
 0x286   : > { %11936 = vmatpush3.bf16.msra.mxu0 %v13940_v9  ;;  %12048 = vmatpush3.bf16.msra.mxu1 %v13942_v10 }
 0x287   : > { %11937 = vmatprep.subr.bf16.mxu0 %v13944_v11  ;;  %12049 = vmatprep.subr.bf16.mxu1 %v13946_v12 }
 0x288   : > { %3089 = vmatmul.mubr.bf16.gmra.mrb[4].mxu0 %v13921_v13  ;;  %3861 = vmatmul.mubr.bf16.gmra.mrb[4].mxu1 %v13921_v13 }
 0x289   : > { %3098 = vmatprep.mubr.bf16.mxu0 %v18919_v4  ;;  %3870 = vmatprep.mubr.bf16.mxu1 %v18919_v4 }
 0x28a   : > { %11938 = vmatpush3.bf16.msra.mxu0 %v13945_v14  ;;  %12050 = vmatpush3.bf16.msra.mxu1 %v13947_v15 }
 0x28b   : > { %11939 = vmatprep.subr.bf16.mxu0 %v13948_v16  ;;  %12051 = vmatprep.subr.bf16.mxu1 %v13950_v17 }
 0x28e   : > { %11940 = vmatpush3.bf16.msra.mxu0 %v13949_v18  ;;  %12052 = vmatpush3.bf16.msra.mxu1 %v13951_v19 }
 0x28f   : > { %11941 = vmatprep.subr.bf16.mxu0 %v13952_v20  ;;  %12053 = vmatprep.subr.bf16.mxu1 %v13954_v21 }
 0x290   : > { %3099 = vmatmul.mubr.bf16.gmra.mrb[8].mxu0 %v13922_v22  ;;  %3871 = vmatmul.mubr.bf16.gmra.mrb[8].mxu1 %v13922_v22 }
 0x291   : > { %3108 = vmatprep.mubr.bf16.mxu0 %v18919_v4  ;;  %3880 = vmatprep.mubr.bf16.mxu1 %v18919_v4 }
 0x292   : > { %11942 = vmatpush3.bf16.msra.mxu0 %v13953_v23  ;;  %12054 = vmatpush3.bf16.msra.mxu1 %v13955_v24 }
 0x293   : > { %11943 = vmatprep.subr.bf16.mxu0 %v13956_v25  ;;  %12055 = vmatprep.subr.bf16.mxu1 %v13958_v26 }
 0x296   : > { %11944 = vmatpush3.bf16.msra.mxu0 %v13957_v27  ;;  %12056 = vmatpush3.bf16.msra.mxu1 %v13959_v28 }
 0x297   : > { %11945 = vmatprep.subr.bf16.mxu0 %v13960_v29  ;;  %12057 = vmatprep.subr.bf16.mxu1 %v13962_v30 }
 0x298   : > { %3109 = vmatmul.mubr.bf16.gmra.mrb[12].mxu0 %v13923_v31  ;;  %3881 = vmatmul.mubr.bf16.gmra.mrb[12].mxu1 %v13923_v31 }
 0x299   : > { %3118 = vmatprep.mubr.bf16.mxu0 %v18919_v4  ;;  %3890 = vmatprep.mubr.bf16.mxu1 %v18919_v4 }
 0x29a   : > { %11946 = vmatpush3.bf16.msra.mxu0 %v13961_v32  ;;  %12058 = vmatpush3.bf16.msra.mxu1 %v13963_v33 }
 0x29b   : > { %11947 = vmatprep.subr.bf16.mxu0 %v13964_v34  ;;  %12059 = vmatprep.subr.bf16.mxu1 %v13966_v35 }
 0x29e   : > { %11948 = vmatpush3.bf16.msra.mxu0 %v13965_v36  ;;  %12060 = vmatpush3.bf16.msra.mxu1 %v13967_v45 }
 0x2a0   : > { %3119 = vmatmul.mubr.bf16.gmra.mrb[16].mxu0 %v13924_v37  ;;  %3891 = vmatmul.mubr.bf16.gmra.mrb[16].mxu1 %v13924_v37 }
 0x2a1   : > { %3128 = vmatprep.mubr.bf16.mxu0 %v18919_v4  ;;  %3900 = vmatprep.mubr.bf16.mxu1 %v18919_v4 }
 0x2a8   : > { %3129 = vmatmul.mubr.bf16.gmra.mrb[20].mxu0 %v13925_v38  ;;  %3901 = vmatmul.mubr.bf16.gmra.mrb[20].mxu1 %v13925_v38 }
 0x2a9   : > { %3138 = vmatprep.mubr.bf16.mxu0 %v18919_v4  ;;  %3910 = vmatprep.mubr.bf16.mxu1 %v18919_v4 }
 0x2b0   : > { %3139 = vmatmul.mubr.bf16.gmra.mrb[24].mxu0 %v13926_v39  ;;  %3911 = vmatmul.mubr.bf16.gmra.mrb[24].mxu1 %v13926_v39 }
 0x2b1   : > { %3148 = vmatprep.mubr.bf16.mxu0 %v18919_v4  ;;  %3920 = vmatprep.mubr.bf16.mxu1 %v18919_v4 }
 0x2b8   : > { %3149 = vmatmul.mubr.bf16.gmra.mrb[28].mxu0 %v13927_v40  ;;  %3921 = vmatmul.mubr.bf16.gmra.mrb[28].mxu1 %v13927_v40 }
 0x2b9   : > { %3158 = vmatprep.mubr.bf16.mxu0 %v18919_v4  ;;  %3930 = vmatprep.mubr.bf16.mxu1 %v18919_v4 }
 0x2c0   : > { %3159 = vmatmul.mubr.bf16.gmra.mrb[32].mxu0 %v13928_v41  ;;  %3931 = vmatmul.mubr.bf16.gmra.mrb[32].mxu1 %v13928_v41 }
 0x2c1   : > { %3168 = vmatprep.mubr.bf16.mxu0 %v18919_v4  ;;  %3940 = vmatprep.mubr.bf16.mxu1 %v18919_v4 }
 0x2c8   : > { %3169 = vmatmul.mubr.bf16.gmra.mrb[36].mxu0 %v13929_v42  ;;  %3941 = vmatmul.mubr.bf16.gmra.mrb[36].mxu1 %v13929_v42 }
 0x2c9   : > { %3178 = vmatprep.mubr.bf16.mxu0 %v18919_v4  ;;  %3950 = vmatprep.mubr.bf16.mxu1 %v18919_v4 }
 0x2d0   : > { %3179 = vmatmul.mubr.bf16.gmra.mrb[40].mxu0 %v13930_v43  ;;  %3951 = vmatmul.mubr.bf16.gmra.mrb[40].mxu1 %v13930_v43 }
 0x2d1   : > { %3188 = vmatprep.mubr.bf16.mxu0 %v18919_v4  ;;  %3960 = vmatprep.mubr.bf16.mxu1 %v18919_v4 }
 0x2d8   : > { %3189 = vmatmul.mubr.bf16.gmra.mrb[44].mxu0 %v13931_v44  ;;  %3961 = vmatmul.mubr.bf16.gmra.mrb[44].mxu1 %v13931_v44 }
 0x2d9   : > { %3198 = vmatprep.mubr.bf16.mxu0 %v18919_v4  ;;  %3970 = vmatprep.mubr.bf16.mxu1 %v18919_v4 }
 0x2e0   : > { %3199 = vmatmul.mubr.bf16.gmra.mrb[48].mxu0 %v13932_v46  ;;  %3971 = vmatmul.mubr.bf16.gmra.mrb[48].mxu1 %v13932_v46 }
 0x2e1   : > { %3208 = vmatprep.mubr.bf16.mxu0 %v18919_v4  ;;  %3980 = vmatprep.mubr.bf16.mxu1 %v18919_v4 }
 0x2e8   : > { %3209 = vmatmul.mubr.bf16.gmra.mrb[52].mxu0 %v13937_v47  ;;  %3981 = vmatmul.mubr.bf16.gmra.mrb[52].mxu1 %v13937_v47 }
 0x2e9   : > { %3218 = vmatprep.mubr.bf16.mxu0 %v18919_v4  ;;  %3990 = vmatprep.mubr.bf16.mxu1 %v18919_v4 }
 0x2f0   : > { %3219 = vmatmul.mubr.bf16.gmra.mrb[56].mxu0 %v13938_v48  ;;  %3991 = vmatmul.mubr.bf16.gmra.mrb[56].mxu1 %v13938_v48 }
 0x2f1   : > { %3228 = vmatprep.mubr.bf16.mxu0 %v18919_v4  ;;  %4000 = vmatprep.mubr.bf16.mxu1 %v18919_v4 }
 0x2f8   : > { %3229 = vmatmul.mubr.bf16.gmra.mrb[60].mxu0 %v13943_v49  ;;  %4001 = vmatmul.mubr.bf16.gmra.mrb[60].mxu1 %v13943_v49 }
 0x353   : > { %v3080_v61 = vpop.f32.mrb[0].mxu0  ;;  %v3852_v62 = vpop.f32.mrb[0].mxu1 }
 0x354   : > { %v12381_v63 = vadd.f32 %v3080_v61, %v15977_v57  ;;  %v12445_v0 = vadd.f32 %v3852_v62, %v15980_v58  ;;  %v3082_v1 = vpop.f32.mrb[1].mxu0  ;;  %v3854_v2 = vpop.f32.mrb[1].mxu1 }
 0x355   : > { %v12382_v3 = vadd.f32 %v3082_v1, %v15983_v59  ;;  %v12446_v5 = vadd.f32 %v3854_v2, %v15986_v60  ;;  %v3084_v6 = vpop.f32.mrb[2].mxu0  ;;  %v3856_v7 = vpop.f32.mrb[2].mxu1 }
 0x356   : > { %v4011_v8 = vmul.f32 0.2, %v12381_v63  ;;  %v4013_v9 = vmul.f32 0.2, %v12445_v0  ;;  %v12383_v10 = vadd.f32 %v3084_v6, %v15977_v57  ;;  %v12447_v11 = vadd.f32 %v3856_v7, %v15980_v58  ;;  %v3086_v12 = vpop.f32.mrb[3].mxu0  ;;  %v3858_v13 = vpop.f32.mrb[3].mxu1 }
 0x357   : > { %v4012_v14 = vmul.f32 0.2, %v12382_v3  ;;  %v4014_v15 = vmul.f32 0.2, %v12446_v5  ;;  %v12384_v16 = vadd.f32 %v3086_v12, %v15983_v59  ;;  %v12448_v17 = vadd.f32 %v3858_v13, %v15986_v60 }
 0x358   : > { %v4015_v18 = vmul.f32 0.2, %v12383_v10  ;;  %v4017_v19 = vmul.f32 0.2, %v12447_v11  ;;  %v4139_v22 = vmax.f32 %v12381_v63, %v4011_v8  ;;  %v4141_v23 = vmax.f32 %v12445_v0, %v4013_v9 }
 0x359   : > { %v4016_v20 = vmul.f32 0.2, %v12384_v16  ;;  %v4018_v21 = vmul.f32 0.2, %v12448_v17  ;;  %v4140_v26 = vmax.f32 %v12382_v3, %v4012_v14  ;;  %v4142_v27 = vmax.f32 %v12446_v5, %v4014_v15 }
 0x35a   : > { %v4143_v24 = vmax.f32 %v12383_v10, %v4015_v18  ;;  %v4145_v25 = vmax.f32 %v12447_v11, %v4017_v19 }
 0x35b   : > { %v4144_v28 = vmax.f32 %v12384_v16, %v4016_v20  ;;  %v4146_v29 = vmax.f32 %v12448_v17, %v4018_v21  ;;  %v3090_v30 = vpop.f32.mrb[4].mxu0  ;;  %v3862_v31 = vpop.f32.mrb[4].mxu1 }
 0x35c   : > { %v4267_v32 = vpack.c.bf16 %v4143_v24, %v4139_v22  ;;  %v4269_v33 = vpack.c.bf16 %v4145_v25, %v4141_v23  ;;  %v12385_v34 = vadd.f32 %v3090_v30, %v15977_v57  ;;  %v12449_v35 = vadd.f32 %v3862_v31, %v15980_v58  ;;  %v3092_v36 = vpop.f32.mrb[5].mxu0  ;;  %v3864_v37 = vpop.f32.mrb[5].mxu1 }
 0x35d   : > { %v12386_v38 = vadd.f32 %v3092_v36, %v15983_v59  ;;  %v12450_v39 = vadd.f32 %v3864_v37, %v15986_v60  ;;  %v3094_v40 = vpop.f32.mrb[6].mxu0  ;;  %v3866_v41 = vpop.f32.mrb[6].mxu1  ;;  %v4268_v42 = vpack.c.bf16 %v4144_v28, %v4140_v26  ;;  %v4270_v43 = vpack.c.bf16 %v4146_v29, %v4142_v27 }
 0x35e   : > { %v4019_v44 = vmul.f32 0.2, %v12385_v34  ;;  %v4021_v45 = vmul.f32 0.2, %v12449_v35  ;;  %v12387_v46 = vadd.f32 %v3094_v40, %v15977_v57  ;;  %v12451_v47 = vadd.f32 %v3866_v41, %v15980_v58  ;;  %v3096_v48 = vpop.f32.mrb[7].mxu0  ;;  %v3868_v49 = vpop.f32.mrb[7].mxu1 }
 0x35f   : > { %v4020_v50 = vmul.f32 0.2, %v12386_v38  ;;  %v4022_v54 = vmul.f32 0.2, %v12450_v39  ;;  %v12388_v61 = vadd.f32 %v3096_v48, %v15983_v59  ;;  %v12452_v62 = vadd.f32 %v3868_v49, %v15986_v60  ;;  %4623 = vmatprep.mubr.bf16.mxu0 %v4268_v42  ;;  %4784 = vmatprep.mubr.bf16.mxu1 %v4270_v43 }
 0x360   : > { %v4023_v63 = vmul.f32 0.2, %v12387_v46  ;;  %v4025_v0 = vmul.f32 0.2, %v12451_v47  ;;  %4624 = vmatmul.mubr.bf16.vlgmr.msra.gmra.mrb[64].mxu0 %v4267_v32  ;;  %4785 = vmatmul.mubr.bf16.vlgmr.msra.gmra.mrb[64].mxu1 %v4269_v33  ;;  %v4147_v3 = vmax.f32 %v12385_v34, %v4019_v44  ;;  %v4149_v5 = vmax.f32 %v12449_v35, %v4021_v45 }
 0x361   : > { %v4024_v1 = vmul.f32 0.2, %v12388_v61  ;;  %v4026_v2 = vmul.f32 0.2, %v12452_v62  ;;  %v4148_v8 = vmax.f32 %v12386_v38, %v4020_v50  ;;  %v4150_v9 = vmax.f32 %v12450_v39, %v4022_v54 }
 0x362   : > { %v4151_v6 = vmax.f32 %v12387_v46, %v4023_v63  ;;  %v4153_v7 = vmax.f32 %v12451_v47, %v4025_v0 }
 0x363   : > { %v4152_v10 = vmax.f32 %v12388_v61, %v4024_v1  ;;  %v4154_v11 = vmax.f32 %v12452_v62, %v4026_v2  ;;  %v3100_v12 = vpop.f32.mrb[8].mxu0  ;;  %v3872_v13 = vpop.f32.mrb[8].mxu1 }
 0x364   : > { %v12389_v14 = vadd.f32 %v3100_v12, %v15977_v57  ;;  %v12453_v15 = vadd.f32 %v3872_v13, %v15980_v58  ;;  %v3102_v16 = vpop.f32.mrb[9].mxu0  ;;  %v3874_v17 = vpop.f32.mrb[9].mxu1  ;;  %v4271_v18 = vpack.c.bf16 %v4151_v6, %v4147_v3  ;;  %v4273_v19 = vpack.c.bf16 %v4153_v7, %v4149_v5 }
 0x365   : > { %v12390_v20 = vadd.f32 %v3102_v16, %v15983_v59  ;;  %v12454_v21 = vadd.f32 %v3874_v17, %v15986_v60  ;;  %v3104_v22 = vpop.f32.mrb[10].mxu0  ;;  %v3876_v23 = vpop.f32.mrb[10].mxu1  ;;  %v4272_v24 = vpack.c.bf16 %v4152_v10, %v4148_v8  ;;  %v4274_v25 = vpack.c.bf16 %v4154_v11, %v4150_v9 }
 0x366   : > { %v4027_v26 = vmul.f32 0.2, %v12389_v14  ;;  %v4029_v27 = vmul.f32 0.2, %v12453_v15  ;;  %v12391_v28 = vadd.f32 %v3104_v22, %v15977_v57  ;;  %v12455_v29 = vadd.f32 %v3876_v23, %v15980_v58  ;;  %v3106_v30 = vpop.f32.mrb[11].mxu0  ;;  %v3878_v31 = vpop.f32.mrb[11].mxu1 }
 0x367   : > { %v4028_v32 = vmul.f32 0.2, %v12390_v20  ;;  %v4030_v33 = vmul.f32 0.2, %v12454_v21  ;;  %v12392_v34 = vadd.f32 %v3106_v30, %v15983_v59  ;;  %v12456_v35 = vadd.f32 %v3878_v31, %v15986_v60  ;;  %4631 = vmatprep.mubr.bf16.mxu0 %v4272_v24  ;;  %4792 = vmatprep.mubr.bf16.mxu1 %v4274_v25 }
 0x368   : > { %v4031_v36 = vmul.f32 0.2, %v12391_v28  ;;  %v4033_v37 = vmul.f32 0.2, %v12455_v29  ;;  %4632 = vmatmul.mubr.bf16.gmra.mrb[68].mxu0 %v4271_v18  ;;  %4793 = vmatmul.mubr.bf16.gmra.mrb[68].mxu1 %v4273_v19  ;;  %v4155_v40 = vmax.f32 %v12389_v14, %v4027_v26  ;;  %v4157_v41 = vmax.f32 %v12453_v15, %v4029_v27 }
 0x369   : > { %v4032_v38 = vmul.f32 0.2, %v12392_v34  ;;  %v4034_v39 = vmul.f32 0.2, %v12456_v35  ;;  %v4156_v44 = vmax.f32 %v12390_v20, %v4028_v32  ;;  %v4158_v45 = vmax.f32 %v12454_v21, %v4030_v33 }
 0x36a   : > { %v4159_v42 = vmax.f32 %v12391_v28, %v4031_v36  ;;  %v4161_v43 = vmax.f32 %v12455_v29, %v4033_v37 }
 0x36b   : > { %v4160_v46 = vmax.f32 %v12392_v34, %v4032_v38  ;;  %v4162_v47 = vmax.f32 %v12456_v35, %v4034_v39  ;;  %v3110_v48 = vpop.f32.mrb[12].mxu0  ;;  %v3882_v49 = vpop.f32.mrb[12].mxu1 }
 0x36c   : > { %v12393_v50 = vadd.f32 %v3110_v48, %v15977_v57  ;;  %v12457_v54 = vadd.f32 %v3882_v49, %v15980_v58  ;;  %v3112_v61 = vpop.f32.mrb[13].mxu0  ;;  %v3884_v62 = vpop.f32.mrb[13].mxu1  ;;  %v4275_v63 = vpack.c.bf16 %v4159_v42, %v4155_v40  ;;  %v4277_v0 = vpack.c.bf16 %v4161_v43, %v4157_v41 }
 0x36d   : > { %v12394_v1 = vadd.f32 %v3112_v61, %v15983_v59  ;;  %v12458_v2 = vadd.f32 %v3884_v62, %v15986_v60  ;;  %v3114_v3 = vpop.f32.mrb[14].mxu0  ;;  %v3886_v5 = vpop.f32.mrb[14].mxu1  ;;  %v4276_v6 = vpack.c.bf16 %v4160_v46, %v4156_v44  ;;  %v4278_v7 = vpack.c.bf16 %v4162_v47, %v4158_v45 }
 0x36e   : > { %v4035_v8 = vmul.f32 0.2, %v12393_v50  ;;  %v4037_v9 = vmul.f32 0.2, %v12457_v54  ;;  %v12395_v10 = vadd.f32 %v3114_v3, %v15977_v57  ;;  %v12459_v11 = vadd.f32 %v3886_v5, %v15980_v58  ;;  %v3116_v12 = vpop.f32.mrb[15].mxu0  ;;  %v3888_v13 = vpop.f32.mrb[15].mxu1 }
 0x36f   : > { %v4036_v14 = vmul.f32 0.2, %v12394_v1  ;;  %v4038_v15 = vmul.f32 0.2, %v12458_v2  ;;  %v12396_v16 = vadd.f32 %v3116_v12, %v15983_v59  ;;  %v12460_v17 = vadd.f32 %v3888_v13, %v15986_v60  ;;  %4639 = vmatprep.mubr.bf16.mxu0 %v4276_v6  ;;  %4800 = vmatprep.mubr.bf16.mxu1 %v4278_v7 }
 0x370   : > { %v4039_v18 = vmul.f32 0.2, %v12395_v10  ;;  %v4041_v19 = vmul.f32 0.2, %v12459_v11  ;;  %4640 = vmatmul.mubr.bf16.gmra.mrb[72].mxu0 %v4275_v63  ;;  %4801 = vmatmul.mubr.bf16.gmra.mrb[72].mxu1 %v4277_v0  ;;  %v4163_v22 = vmax.f32 %v12393_v50, %v4035_v8  ;;  %v4165_v23 = vmax.f32 %v12457_v54, %v4037_v9 }
 0x371   : > { %v4040_v20 = vmul.f32 0.2, %v12396_v16  ;;  %v4042_v21 = vmul.f32 0.2, %v12460_v17  ;;  %v4164_v26 = vmax.f32 %v12394_v1, %v4036_v14  ;;  %v4166_v27 = vmax.f32 %v12458_v2, %v4038_v15 }
 0x372   : > { %v4167_v24 = vmax.f32 %v12395_v10, %v4039_v18  ;;  %v4169_v25 = vmax.f32 %v12459_v11, %v4041_v19 }
 0x373   : > { %v4168_v28 = vmax.f32 %v12396_v16, %v4040_v20  ;;  %v4170_v29 = vmax.f32 %v12460_v17, %v4042_v21  ;;  %v3120_v30 = vpop.f32.mrb[16].mxu0  ;;  %v3892_v31 = vpop.f32.mrb[16].mxu1 }
 0x374   : > { %v12397_v32 = vadd.f32 %v3120_v30, %v15977_v57  ;;  %v12461_v33 = vadd.f32 %v3892_v31, %v15980_v58  ;;  %v3122_v34 = vpop.f32.mrb[17].mxu0  ;;  %v3894_v35 = vpop.f32.mrb[17].mxu1  ;;  %v4279_v36 = vpack.c.bf16 %v4167_v24, %v4163_v22  ;;  %v4281_v37 = vpack.c.bf16 %v4169_v25, %v4165_v23 }
 0x375   : > { %v12398_v38 = vadd.f32 %v3122_v34, %v15983_v59  ;;  %v12462_v39 = vadd.f32 %v3894_v35, %v15986_v60  ;;  %v3124_v40 = vpop.f32.mrb[18].mxu0  ;;  %v3896_v41 = vpop.f32.mrb[18].mxu1  ;;  %v4280_v42 = vpack.c.bf16 %v4168_v28, %v4164_v26  ;;  %v4282_v43 = vpack.c.bf16 %v4170_v29, %v4166_v27 }
 0x376   : > { %v4043_v44 = vmul.f32 0.2, %v12397_v32  ;;  %v4045_v45 = vmul.f32 0.2, %v12461_v33  ;;  %v12399_v46 = vadd.f32 %v3124_v40, %v15977_v57  ;;  %v12463_v47 = vadd.f32 %v3896_v41, %v15980_v58  ;;  %v3126_v48 = vpop.f32.mrb[19].mxu0  ;;  %v3898_v49 = vpop.f32.mrb[19].mxu1 }
 0x377   : > { %v4044_v50 = vmul.f32 0.2, %v12398_v38  ;;  %v4046_v54 = vmul.f32 0.2, %v12462_v39  ;;  %v12400_v61 = vadd.f32 %v3126_v48, %v15983_v59  ;;  %v12464_v62 = vadd.f32 %v3898_v49, %v15986_v60  ;;  %4647 = vmatprep.mubr.bf16.mxu0 %v4280_v42  ;;  %4808 = vmatprep.mubr.bf16.mxu1 %v4282_v43 }
 0x378   : > { %v4047_v63 = vmul.f32 0.2, %v12399_v46  ;;  %v4049_v0 = vmul.f32 0.2, %v12463_v47  ;;  %4648 = vmatmul.mubr.bf16.gmra.mrb[76].mxu0 %v4279_v36  ;;  %4809 = vmatmul.mubr.bf16.gmra.mrb[76].mxu1 %v4281_v37  ;;  %v4171_v3 = vmax.f32 %v12397_v32, %v4043_v44  ;;  %v4173_v5 = vmax.f32 %v12461_v33, %v4045_v45 }
 0x379   : > { %v4048_v1 = vmul.f32 0.2, %v12400_v61  ;;  %v4050_v2 = vmul.f32 0.2, %v12464_v62  ;;  %v4172_v8 = vmax.f32 %v12398_v38, %v4044_v50  ;;  %v4174_v9 = vmax.f32 %v12462_v39, %v4046_v54 }
 0x37a   : > { %v4175_v6 = vmax.f32 %v12399_v46, %v4047_v63  ;;  %v4177_v7 = vmax.f32 %v12463_v47, %v4049_v0 }
 0x37b   : > { %v4176_v10 = vmax.f32 %v12400_v61, %v4048_v1  ;;  %v4178_v11 = vmax.f32 %v12464_v62, %v4050_v2  ;;  %v3130_v12 = vpop.f32.mrb[20].mxu0  ;;  %v3902_v13 = vpop.f32.mrb[20].mxu1 }
 0x37c   : > { %v12401_v14 = vadd.f32 %v3130_v12, %v15977_v57  ;;  %v12465_v15 = vadd.f32 %v3902_v13, %v15980_v58  ;;  %v3132_v16 = vpop.f32.mrb[21].mxu0  ;;  %v3904_v17 = vpop.f32.mrb[21].mxu1  ;;  %v4283_v18 = vpack.c.bf16 %v4175_v6, %v4171_v3  ;;  %v4285_v19 = vpack.c.bf16 %v4177_v7, %v4173_v5 }
 0x37d   : > { %v12402_v20 = vadd.f32 %v3132_v16, %v15983_v59  ;;  %v12466_v21 = vadd.f32 %v3904_v17, %v15986_v60  ;;  %v3134_v22 = vpop.f32.mrb[22].mxu0  ;;  %v3906_v23 = vpop.f32.mrb[22].mxu1  ;;  %v4284_v24 = vpack.c.bf16 %v4176_v10, %v4172_v8  ;;  %v4286_v25 = vpack.c.bf16 %v4178_v11, %v4174_v9 }
 0x37e   : > { %v4051_v26 = vmul.f32 0.2, %v12401_v14  ;;  %v4053_v27 = vmul.f32 0.2, %v12465_v15  ;;  %v12403_v28 = vadd.f32 %v3134_v22, %v15977_v57  ;;  %v12467_v29 = vadd.f32 %v3906_v23, %v15980_v58  ;;  %v3136_v30 = vpop.f32.mrb[23].mxu0  ;;  %v3908_v31 = vpop.f32.mrb[23].mxu1 }
 0x37f   : > { %v4052_v32 = vmul.f32 0.2, %v12402_v20  ;;  %v4054_v33 = vmul.f32 0.2, %v12466_v21  ;;  %v12404_v34 = vadd.f32 %v3136_v30, %v15983_v59  ;;  %v12468_v35 = vadd.f32 %v3908_v31, %v15986_v60  ;;  %4655 = vmatprep.mubr.bf16.mxu0 %v4284_v24  ;;  %4816 = vmatprep.mubr.bf16.mxu1 %v4286_v25 }
 0x380   : > { %v4055_v36 = vmul.f32 0.2, %v12403_v28  ;;  %v4057_v37 = vmul.f32 0.2, %v12467_v29  ;;  %4656 = vmatmul.mubr.bf16.gmra.mrb[80].mxu0 %v4283_v18  ;;  %4817 = vmatmul.mubr.bf16.gmra.mrb[80].mxu1 %v4285_v19  ;;  %v4179_v40 = vmax.f32 %v12401_v14, %v4051_v26  ;;  %v4181_v41 = vmax.f32 %v12465_v15, %v4053_v27 }
 0x381   : > { %v4056_v38 = vmul.f32 0.2, %v12404_v34  ;;  %v4058_v39 = vmul.f32 0.2, %v12468_v35  ;;  %v4180_v44 = vmax.f32 %v12402_v20, %v4052_v32  ;;  %v4182_v45 = vmax.f32 %v12466_v21, %v4054_v33 }
 0x382   : > { %v4183_v42 = vmax.f32 %v12403_v28, %v4055_v36  ;;  %v4185_v43 = vmax.f32 %v12467_v29, %v4057_v37 }
 0x383   : > { %v4184_v46 = vmax.f32 %v12404_v34, %v4056_v38  ;;  %v4186_v47 = vmax.f32 %v12468_v35, %v4058_v39  ;;  %v3140_v48 = vpop.f32.mrb[24].mxu0  ;;  %v3912_v49 = vpop.f32.mrb[24].mxu1 }
 0x384   : > { %v12405_v50 = vadd.f32 %v3140_v48, %v15977_v57  ;;  %v12469_v54 = vadd.f32 %v3912_v49, %v15980_v58  ;;  %v3142_v61 = vpop.f32.mrb[25].mxu0  ;;  %v3914_v62 = vpop.f32.mrb[25].mxu1  ;;  %v4287_v63 = vpack.c.bf16 %v4183_v42, %v4179_v40  ;;  %v4289_v0 = vpack.c.bf16 %v4185_v43, %v4181_v41 }
 0x385   : > { %v12406_v1 = vadd.f32 %v3142_v61, %v15983_v59  ;;  %v12470_v2 = vadd.f32 %v3914_v62, %v15986_v60  ;;  %v3144_v3 = vpop.f32.mrb[26].mxu0  ;;  %v3916_v5 = vpop.f32.mrb[26].mxu1  ;;  %v4288_v6 = vpack.c.bf16 %v4184_v46, %v4180_v44  ;;  %v4290_v7 = vpack.c.bf16 %v4186_v47, %v4182_v45 }
 0x386   : > { %v4059_v8 = vmul.f32 0.2, %v12405_v50  ;;  %v4061_v9 = vmul.f32 0.2, %v12469_v54  ;;  %v12407_v10 = vadd.f32 %v3144_v3, %v15977_v57  ;;  %v12471_v11 = vadd.f32 %v3916_v5, %v15980_v58  ;;  %v3146_v12 = vpop.f32.mrb[27].mxu0  ;;  %v3918_v13 = vpop.f32.mrb[27].mxu1 }
 0x387   : > { %v4060_v14 = vmul.f32 0.2, %v12406_v1  ;;  %v4062_v15 = vmul.f32 0.2, %v12470_v2  ;;  %v12408_v16 = vadd.f32 %v3146_v12, %v15983_v59  ;;  %v12472_v17 = vadd.f32 %v3918_v13, %v15986_v60  ;;  %4663 = vmatprep.mubr.bf16.mxu0 %v4288_v6  ;;  %4824 = vmatprep.mubr.bf16.mxu1 %v4290_v7 }
 0x388   : > { %v4063_v18 = vmul.f32 0.2, %v12407_v10  ;;  %v4065_v19 = vmul.f32 0.2, %v12471_v11  ;;  %4664 = vmatmul.mubr.bf16.gmra.mrb[84].mxu0 %v4287_v63  ;;  %4825 = vmatmul.mubr.bf16.gmra.mrb[84].mxu1 %v4289_v0  ;;  %v4187_v22 = vmax.f32 %v12405_v50, %v4059_v8  ;;  %v4189_v23 = vmax.f32 %v12469_v54, %v4061_v9 }
 0x389   : > { %v4064_v20 = vmul.f32 0.2, %v12408_v16  ;;  %v4066_v21 = vmul.f32 0.2, %v12472_v17  ;;  %v4188_v26 = vmax.f32 %v12406_v1, %v4060_v14  ;;  %v4190_v27 = vmax.f32 %v12470_v2, %v4062_v15 }
 0x38a   : > { %v4191_v24 = vmax.f32 %v12407_v10, %v4063_v18  ;;  %v4193_v25 = vmax.f32 %v12471_v11, %v4065_v19 }
 0x38b   : > { %v4192_v28 = vmax.f32 %v12408_v16, %v4064_v20  ;;  %v4194_v29 = vmax.f32 %v12472_v17, %v4066_v21  ;;  %v3150_v30 = vpop.f32.mrb[28].mxu0  ;;  %v3922_v31 = vpop.f32.mrb[28].mxu1 }
 0x38c   : > { %v12409_v32 = vadd.f32 %v3150_v30, %v15977_v57  ;;  %v12473_v33 = vadd.f32 %v3922_v31, %v15980_v58  ;;  %v3152_v34 = vpop.f32.mrb[29].mxu0  ;;  %v3924_v35 = vpop.f32.mrb[29].mxu1  ;;  %v4291_v36 = vpack.c.bf16 %v4191_v24, %v4187_v22  ;;  %v4293_v37 = vpack.c.bf16 %v4193_v25, %v4189_v23 }
 0x38d   : > { %v12410_v38 = vadd.f32 %v3152_v34, %v15983_v59  ;;  %v12474_v39 = vadd.f32 %v3924_v35, %v15986_v60  ;;  %v3154_v40 = vpop.f32.mrb[30].mxu0  ;;  %v3926_v41 = vpop.f32.mrb[30].mxu1  ;;  %v4292_v42 = vpack.c.bf16 %v4192_v28, %v4188_v26  ;;  %v4294_v43 = vpack.c.bf16 %v4194_v29, %v4190_v27 }
 0x38e   : > { %v4067_v44 = vmul.f32 0.2, %v12409_v32  ;;  %v4069_v45 = vmul.f32 0.2, %v12473_v33  ;;  %v12411_v46 = vadd.f32 %v3154_v40, %v15977_v57  ;;  %v12475_v47 = vadd.f32 %v3926_v41, %v15980_v58  ;;  %v3156_v48 = vpop.f32.mrb[31].mxu0  ;;  %v3928_v49 = vpop.f32.mrb[31].mxu1 }
 0x38f   : > { %v4068_v50 = vmul.f32 0.2, %v12410_v38  ;;  %v4070_v54 = vmul.f32 0.2, %v12474_v39  ;;  %v12412_v61 = vadd.f32 %v3156_v48, %v15983_v59  ;;  %v12476_v62 = vadd.f32 %v3928_v49, %v15986_v60  ;;  %4671 = vmatprep.mubr.bf16.mxu0 %v4292_v42  ;;  %4832 = vmatprep.mubr.bf16.mxu1 %v4294_v43 }
 0x390   : > { %v4071_v63 = vmul.f32 0.2, %v12411_v46  ;;  %v4073_v0 = vmul.f32 0.2, %v12475_v47  ;;  %4672 = vmatmul.mubr.bf16.gmra.mrb[88].mxu0 %v4291_v36  ;;  %4833 = vmatmul.mubr.bf16.gmra.mrb[88].mxu1 %v4293_v37  ;;  %v4195_v3 = vmax.f32 %v12409_v32, %v4067_v44  ;;  %v4197_v5 = vmax.f32 %v12473_v33, %v4069_v45 }
 0x391   : > { %v4072_v1 = vmul.f32 0.2, %v12412_v61  ;;  %v4074_v2 = vmul.f32 0.2, %v12476_v62  ;;  %v4196_v8 = vmax.f32 %v12410_v38, %v4068_v50  ;;  %v4198_v9 = vmax.f32 %v12474_v39, %v4070_v54 }
 0x392   : > { %v4199_v6 = vmax.f32 %v12411_v46, %v4071_v63  ;;  %v4201_v7 = vmax.f32 %v12475_v47, %v4073_v0 }
 0x393   : > { %v4200_v10 = vmax.f32 %v12412_v61, %v4072_v1  ;;  %v4202_v11 = vmax.f32 %v12476_v62, %v4074_v2  ;;  %v3160_v12 = vpop.f32.mrb[32].mxu0  ;;  %v3932_v13 = vpop.f32.mrb[32].mxu1 }
 0x394   : > { %v12413_v14 = vadd.f32 %v3160_v12, %v15977_v57  ;;  %v12477_v15 = vadd.f32 %v3932_v13, %v15980_v58  ;;  %v3162_v16 = vpop.f32.mrb[33].mxu0  ;;  %v3934_v17 = vpop.f32.mrb[33].mxu1  ;;  %v4295_v18 = vpack.c.bf16 %v4199_v6, %v4195_v3  ;;  %v4297_v19 = vpack.c.bf16 %v4201_v7, %v4197_v5 }
 0x395   : > { %v12414_v20 = vadd.f32 %v3162_v16, %v15983_v59  ;;  %v12478_v21 = vadd.f32 %v3934_v17, %v15986_v60  ;;  %v3164_v22 = vpop.f32.mrb[34].mxu0  ;;  %v3936_v23 = vpop.f32.mrb[34].mxu1  ;;  %v4296_v24 = vpack.c.bf16 %v4200_v10, %v4196_v8  ;;  %v4298_v25 = vpack.c.bf16 %v4202_v11, %v4198_v9 }
 0x396   : > { %v4075_v26 = vmul.f32 0.2, %v12413_v14  ;;  %v4077_v27 = vmul.f32 0.2, %v12477_v15  ;;  %v12415_v28 = vadd.f32 %v3164_v22, %v15977_v57  ;;  %v12479_v29 = vadd.f32 %v3936_v23, %v15980_v58  ;;  %v3166_v30 = vpop.f32.mrb[35].mxu0  ;;  %v3938_v31 = vpop.f32.mrb[35].mxu1 }
 0x397   : > { %v4076_v32 = vmul.f32 0.2, %v12414_v20  ;;  %v4078_v33 = vmul.f32 0.2, %v12478_v21  ;;  %v12416_v34 = vadd.f32 %v3166_v30, %v15983_v59  ;;  %v12480_v35 = vadd.f32 %v3938_v31, %v15986_v60  ;;  %4679 = vmatprep.mubr.bf16.mxu0 %v4296_v24  ;;  %4840 = vmatprep.mubr.bf16.mxu1 %v4298_v25 }
 0x398   : > { %v4079_v36 = vmul.f32 0.2, %v12415_v28  ;;  %v4081_v37 = vmul.f32 0.2, %v12479_v29  ;;  %4680 = vmatmul.mubr.bf16.gmra.mrb[92].mxu0 %v4295_v18  ;;  %4841 = vmatmul.mubr.bf16.gmra.mrb[92].mxu1 %v4297_v19  ;;  %v4203_v40 = vmax.f32 %v12413_v14, %v4075_v26  ;;  %v4205_v41 = vmax.f32 %v12477_v15, %v4077_v27 }
 0x399   : > { %v4080_v38 = vmul.f32 0.2, %v12416_v34  ;;  %v4082_v39 = vmul.f32 0.2, %v12480_v35  ;;  %v4204_v44 = vmax.f32 %v12414_v20, %v4076_v32  ;;  %v4206_v45 = vmax.f32 %v12478_v21, %v4078_v33 }
 0x39a   : > { %v4207_v42 = vmax.f32 %v12415_v28, %v4079_v36  ;;  %v4209_v43 = vmax.f32 %v12479_v29, %v4081_v37 }
 0x39b   : > { %v4208_v46 = vmax.f32 %v12416_v34, %v4080_v38  ;;  %v4210_v47 = vmax.f32 %v12480_v35, %v4082_v39  ;;  %v3170_v48 = vpop.f32.mrb[36].mxu0  ;;  %v3942_v49 = vpop.f32.mrb[36].mxu1 }
 0x39c   : > { %v12417_v50 = vadd.f32 %v3170_v48, %v15977_v57  ;;  %v12481_v54 = vadd.f32 %v3942_v49, %v15980_v58  ;;  %v3172_v61 = vpop.f32.mrb[37].mxu0  ;;  %v3944_v62 = vpop.f32.mrb[37].mxu1  ;;  %v4299_v63 = vpack.c.bf16 %v4207_v42, %v4203_v40  ;;  %v4301_v0 = vpack.c.bf16 %v4209_v43, %v4205_v41 }
 0x39d   : > { %v12418_v1 = vadd.f32 %v3172_v61, %v15983_v59  ;;  %v12482_v2 = vadd.f32 %v3944_v62, %v15986_v60  ;;  %v3174_v3 = vpop.f32.mrb[38].mxu0  ;;  %v3946_v5 = vpop.f32.mrb[38].mxu1  ;;  %v4300_v6 = vpack.c.bf16 %v4208_v46, %v4204_v44  ;;  %v4302_v7 = vpack.c.bf16 %v4210_v47, %v4206_v45 }
 0x39e   : > { %v4083_v8 = vmul.f32 0.2, %v12417_v50  ;;  %v4085_v9 = vmul.f32 0.2, %v12481_v54  ;;  %v12419_v10 = vadd.f32 %v3174_v3, %v15977_v57  ;;  %v12483_v11 = vadd.f32 %v3946_v5, %v15980_v58  ;;  %v3176_v12 = vpop.f32.mrb[39].mxu0  ;;  %v3948_v13 = vpop.f32.mrb[39].mxu1 }
 0x39f   : > { %v4084_v14 = vmul.f32 0.2, %v12418_v1  ;;  %v4086_v15 = vmul.f32 0.2, %v12482_v2  ;;  %v12420_v16 = vadd.f32 %v3176_v12, %v15983_v59  ;;  %v12484_v17 = vadd.f32 %v3948_v13, %v15986_v60  ;;  %4687 = vmatprep.mubr.bf16.mxu0 %v4300_v6  ;;  %4848 = vmatprep.mubr.bf16.mxu1 %v4302_v7 }
 0x3a0   : > { %v4087_v18 = vmul.f32 0.2, %v12419_v10  ;;  %v4089_v19 = vmul.f32 0.2, %v12483_v11  ;;  %4688 = vmatmul.mubr.bf16.gmra.mrb[96].mxu0 %v4299_v63  ;;  %4849 = vmatmul.mubr.bf16.gmra.mrb[96].mxu1 %v4301_v0  ;;  %v4211_v22 = vmax.f32 %v12417_v50, %v4083_v8  ;;  %v4213_v23 = vmax.f32 %v12481_v54, %v4085_v9 }
 0x3a1   : > { %v4088_v20 = vmul.f32 0.2, %v12420_v16  ;;  %v4090_v21 = vmul.f32 0.2, %v12484_v17  ;;  %v4212_v26 = vmax.f32 %v12418_v1, %v4084_v14  ;;  %v4214_v27 = vmax.f32 %v12482_v2, %v4086_v15 }
 0x3a2   : > { %v4215_v24 = vmax.f32 %v12419_v10, %v4087_v18  ;;  %v4217_v25 = vmax.f32 %v12483_v11, %v4089_v19 }
 0x3a3   : > { %v4216_v28 = vmax.f32 %v12420_v16, %v4088_v20  ;;  %v4218_v29 = vmax.f32 %v12484_v17, %v4090_v21  ;;  %v3180_v30 = vpop.f32.mrb[40].mxu0  ;;  %v3952_v31 = vpop.f32.mrb[40].mxu1 }
 0x3a4   : > { %v12421_v32 = vadd.f32 %v3180_v30, %v15977_v57  ;;  %v12485_v33 = vadd.f32 %v3952_v31, %v15980_v58  ;;  %v3182_v34 = vpop.f32.mrb[41].mxu0  ;;  %v3954_v35 = vpop.f32.mrb[41].mxu1  ;;  %v4303_v36 = vpack.c.bf16 %v4215_v24, %v4211_v22  ;;  %v4305_v37 = vpack.c.bf16 %v4217_v25, %v4213_v23 }
 0x3a5   : > { %v12422_v38 = vadd.f32 %v3182_v34, %v15983_v59  ;;  %v12486_v39 = vadd.f32 %v3954_v35, %v15986_v60  ;;  %v3184_v40 = vpop.f32.mrb[42].mxu0  ;;  %v3956_v41 = vpop.f32.mrb[42].mxu1  ;;  %v4304_v42 = vpack.c.bf16 %v4216_v28, %v4212_v26  ;;  %v4306_v43 = vpack.c.bf16 %v4218_v29, %v4214_v27 }
 0x3a6   : > { %v4091_v44 = vmul.f32 0.2, %v12421_v32  ;;  %v4093_v45 = vmul.f32 0.2, %v12485_v33  ;;  %v12423_v46 = vadd.f32 %v3184_v40, %v15977_v57  ;;  %v12487_v47 = vadd.f32 %v3956_v41, %v15980_v58  ;;  %v3186_v48 = vpop.f32.mrb[43].mxu0  ;;  %v3958_v49 = vpop.f32.mrb[43].mxu1 }
 0x3a7   : > { %v4092_v50 = vmul.f32 0.2, %v12422_v38  ;;  %v4094_v54 = vmul.f32 0.2, %v12486_v39  ;;  %v12424_v61 = vadd.f32 %v3186_v48, %v15983_v59  ;;  %v12488_v62 = vadd.f32 %v3958_v49, %v15986_v60  ;;  %4695 = vmatprep.mubr.bf16.mxu0 %v4304_v42  ;;  %4856 = vmatprep.mubr.bf16.mxu1 %v4306_v43 }
 0x3a8   : > { %v4095_v63 = vmul.f32 0.2, %v12423_v46  ;;  %v4097_v0 = vmul.f32 0.2, %v12487_v47  ;;  %4696 = vmatmul.mubr.bf16.gmra.mrb[100].mxu0 %v4303_v36  ;;  %4857 = vmatmul.mubr.bf16.gmra.mrb[100].mxu1 %v4305_v37  ;;  %v4219_v3 = vmax.f32 %v12421_v32, %v4091_v44  ;;  %v4221_v5 = vmax.f32 %v12485_v33, %v4093_v45 }
 0x3a9   : > { %v4096_v1 = vmul.f32 0.2, %v12424_v61  ;;  %v4098_v2 = vmul.f32 0.2, %v12488_v62  ;;  %v4220_v8 = vmax.f32 %v12422_v38, %v4092_v50  ;;  %v4222_v9 = vmax.f32 %v12486_v39, %v4094_v54 }
 0x3aa   : > { %v4223_v6 = vmax.f32 %v12423_v46, %v4095_v63  ;;  %v4225_v7 = vmax.f32 %v12487_v47, %v4097_v0 }
 0x3ab   : > { %v4224_v10 = vmax.f32 %v12424_v61, %v4096_v1  ;;  %v4226_v11 = vmax.f32 %v12488_v62, %v4098_v2  ;;  %v3190_v12 = vpop.f32.mrb[44].mxu0  ;;  %v3962_v13 = vpop.f32.mrb[44].mxu1 }
 0x3ac   : > { %v12425_v14 = vadd.f32 %v3190_v12, %v15977_v57  ;;  %v12489_v15 = vadd.f32 %v3962_v13, %v15980_v58  ;;  %v3192_v16 = vpop.f32.mrb[45].mxu0  ;;  %v3964_v17 = vpop.f32.mrb[45].mxu1  ;;  %v4307_v18 = vpack.c.bf16 %v4223_v6, %v4219_v3  ;;  %v4309_v19 = vpack.c.bf16 %v4225_v7, %v4221_v5 }
 0x3ad   : > { %v12426_v20 = vadd.f32 %v3192_v16, %v15983_v59  ;;  %v12490_v21 = vadd.f32 %v3964_v17, %v15986_v60  ;;  %v3194_v22 = vpop.f32.mrb[46].mxu0  ;;  %v3966_v23 = vpop.f32.mrb[46].mxu1  ;;  %v4308_v24 = vpack.c.bf16 %v4224_v10, %v4220_v8  ;;  %v4310_v25 = vpack.c.bf16 %v4226_v11, %v4222_v9 }
 0x3ae   : > { %v4099_v26 = vmul.f32 0.2, %v12425_v14  ;;  %v4101_v27 = vmul.f32 0.2, %v12489_v15  ;;  %v12427_v28 = vadd.f32 %v3194_v22, %v15977_v57  ;;  %v12491_v29 = vadd.f32 %v3966_v23, %v15980_v58  ;;  %v3196_v30 = vpop.f32.mrb[47].mxu0  ;;  %v3968_v31 = vpop.f32.mrb[47].mxu1 }
 0x3af   : > { %v4100_v32 = vmul.f32 0.2, %v12426_v20  ;;  %v4102_v33 = vmul.f32 0.2, %v12490_v21  ;;  %v12428_v34 = vadd.f32 %v3196_v30, %v15983_v59  ;;  %v12492_v35 = vadd.f32 %v3968_v31, %v15986_v60  ;;  %4703 = vmatprep.mubr.bf16.mxu0 %v4308_v24  ;;  %4864 = vmatprep.mubr.bf16.mxu1 %v4310_v25 }
 0x3b0   : > { %v4103_v36 = vmul.f32 0.2, %v12427_v28  ;;  %v4105_v37 = vmul.f32 0.2, %v12491_v29  ;;  %4704 = vmatmul.mubr.bf16.gmra.mrb[104].mxu0 %v4307_v18  ;;  %4865 = vmatmul.mubr.bf16.gmra.mrb[104].mxu1 %v4309_v19  ;;  %v4227_v40 = vmax.f32 %v12425_v14, %v4099_v26  ;;  %v4229_v41 = vmax.f32 %v12489_v15, %v4101_v27 }
 0x3b1   : > { %v4104_v38 = vmul.f32 0.2, %v12428_v34  ;;  %v4106_v39 = vmul.f32 0.2, %v12492_v35  ;;  %v4228_v44 = vmax.f32 %v12426_v20, %v4100_v32  ;;  %v4230_v45 = vmax.f32 %v12490_v21, %v4102_v33 }
 0x3b2   : > { %v4231_v42 = vmax.f32 %v12427_v28, %v4103_v36  ;;  %v4233_v43 = vmax.f32 %v12491_v29, %v4105_v37 }
 0x3b3   : > { %v4232_v46 = vmax.f32 %v12428_v34, %v4104_v38  ;;  %v4234_v47 = vmax.f32 %v12492_v35, %v4106_v39  ;;  %v3200_v48 = vpop.f32.mrb[48].mxu0  ;;  %v3972_v49 = vpop.f32.mrb[48].mxu1 }
 0x3b4   : > { %v12429_v50 = vadd.f32 %v3200_v48, %v15977_v57  ;;  %v12493_v54 = vadd.f32 %v3972_v49, %v15980_v58  ;;  %v3202_v61 = vpop.f32.mrb[49].mxu0  ;;  %v3974_v62 = vpop.f32.mrb[49].mxu1  ;;  %v4311_v63 = vpack.c.bf16 %v4231_v42, %v4227_v40  ;;  %v4313_v0 = vpack.c.bf16 %v4233_v43, %v4229_v41 }
 0x3b5   : > { %v12430_v1 = vadd.f32 %v3202_v61, %v15983_v59  ;;  %v12494_v2 = vadd.f32 %v3974_v62, %v15986_v60  ;;  %v3204_v3 = vpop.f32.mrb[50].mxu0  ;;  %v3976_v5 = vpop.f32.mrb[50].mxu1  ;;  %v4312_v6 = vpack.c.bf16 %v4232_v46, %v4228_v44  ;;  %v4314_v7 = vpack.c.bf16 %v4234_v47, %v4230_v45 }
 0x3b6   : > { %v4107_v8 = vmul.f32 0.2, %v12429_v50  ;;  %v4109_v9 = vmul.f32 0.2, %v12493_v54  ;;  %v12431_v10 = vadd.f32 %v3204_v3, %v15977_v57  ;;  %v12495_v11 = vadd.f32 %v3976_v5, %v15980_v58  ;;  %v3206_v12 = vpop.f32.mrb[51].mxu0  ;;  %v3978_v13 = vpop.f32.mrb[51].mxu1 }
 0x3b7   : > { %v4108_v14 = vmul.f32 0.2, %v12430_v1  ;;  %v4110_v15 = vmul.f32 0.2, %v12494_v2  ;;  %v12432_v16 = vadd.f32 %v3206_v12, %v15983_v59  ;;  %v12496_v17 = vadd.f32 %v3978_v13, %v15986_v60  ;;  %4711 = vmatprep.mubr.bf16.mxu0 %v4312_v6  ;;  %4872 = vmatprep.mubr.bf16.mxu1 %v4314_v7 }
 0x3b8   : > { %v4111_v18 = vmul.f32 0.2, %v12431_v10  ;;  %v4113_v19 = vmul.f32 0.2, %v12495_v11  ;;  %4712 = vmatmul.mubr.bf16.gmra.mrb[108].mxu0 %v4311_v63  ;;  %4873 = vmatmul.mubr.bf16.gmra.mrb[108].mxu1 %v4313_v0  ;;  %v4235_v22 = vmax.f32 %v12429_v50, %v4107_v8  ;;  %v4237_v23 = vmax.f32 %v12493_v54, %v4109_v9 }
 0x3b9   : > { %v4112_v20 = vmul.f32 0.2, %v12432_v16  ;;  %v4114_v21 = vmul.f32 0.2, %v12496_v17  ;;  %v4236_v26 = vmax.f32 %v12430_v1, %v4108_v14  ;;  %v4238_v27 = vmax.f32 %v12494_v2, %v4110_v15 }
 0x3ba   : > { %v4239_v24 = vmax.f32 %v12431_v10, %v4111_v18  ;;  %v4241_v25 = vmax.f32 %v12495_v11, %v4113_v19 }
 0x3bb   : > { %v4240_v28 = vmax.f32 %v12432_v16, %v4112_v20  ;;  %v4242_v29 = vmax.f32 %v12496_v17, %v4114_v21  ;;  %v3210_v30 = vpop.f32.mrb[52].mxu0  ;;  %v3982_v31 = vpop.f32.mrb[52].mxu1 }
 0x3bc   : > { %v12433_v32 = vadd.f32 %v3210_v30, %v15977_v57  ;;  %v12497_v33 = vadd.f32 %v3982_v31, %v15980_v58  ;;  %v3212_v34 = vpop.f32.mrb[53].mxu0  ;;  %v3984_v35 = vpop.f32.mrb[53].mxu1  ;;  %v4315_v36 = vpack.c.bf16 %v4239_v24, %v4235_v22  ;;  %v4317_v37 = vpack.c.bf16 %v4241_v25, %v4237_v23 }
 0x3bd   : > { %v12434_v38 = vadd.f32 %v3212_v34, %v15983_v59  ;;  %v12498_v39 = vadd.f32 %v3984_v35, %v15986_v60  ;;  %v3214_v40 = vpop.f32.mrb[54].mxu0  ;;  %v3986_v41 = vpop.f32.mrb[54].mxu1  ;;  %v4316_v42 = vpack.c.bf16 %v4240_v28, %v4236_v26  ;;  %v4318_v43 = vpack.c.bf16 %v4242_v29, %v4238_v27 }
 0x3be   : > { %v4115_v44 = vmul.f32 0.2, %v12433_v32  ;;  %v4117_v45 = vmul.f32 0.2, %v12497_v33  ;;  %v12435_v46 = vadd.f32 %v3214_v40, %v15977_v57  ;;  %v12499_v47 = vadd.f32 %v3986_v41, %v15980_v58  ;;  %v3216_v48 = vpop.f32.mrb[55].mxu0  ;;  %v3988_v49 = vpop.f32.mrb[55].mxu1 }
 0x3bf   : > { %v4116_v50 = vmul.f32 0.2, %v12434_v38  ;;  %v4118_v54 = vmul.f32 0.2, %v12498_v39  ;;  %v12436_v61 = vadd.f32 %v3216_v48, %v15983_v59  ;;  %v12500_v62 = vadd.f32 %v3988_v49, %v15986_v60  ;;  %4719 = vmatprep.mubr.bf16.mxu0 %v4316_v42  ;;  %4880 = vmatprep.mubr.bf16.mxu1 %v4318_v43 }
 0x3c0   : > { %v4119_v63 = vmul.f32 0.2, %v12435_v46  ;;  %v4121_v0 = vmul.f32 0.2, %v12499_v47  ;;  %4720 = vmatmul.mubr.bf16.gmra.mrb[112].mxu0 %v4315_v36  ;;  %4881 = vmatmul.mubr.bf16.gmra.mrb[112].mxu1 %v4317_v37  ;;  %v4243_v3 = vmax.f32 %v12433_v32, %v4115_v44  ;;  %v4245_v5 = vmax.f32 %v12497_v33, %v4117_v45 }
 0x3c1   : > { %v4120_v1 = vmul.f32 0.2, %v12436_v61  ;;  %v4122_v2 = vmul.f32 0.2, %v12500_v62  ;;  %v4244_v8 = vmax.f32 %v12434_v38, %v4116_v50  ;;  %v4246_v9 = vmax.f32 %v12498_v39, %v4118_v54 }
 0x3c2   : > { %v4247_v6 = vmax.f32 %v12435_v46, %v4119_v63  ;;  %v4249_v7 = vmax.f32 %v12499_v47, %v4121_v0 }
 0x3c3   : > { %v4248_v10 = vmax.f32 %v12436_v61, %v4120_v1  ;;  %v4250_v11 = vmax.f32 %v12500_v62, %v4122_v2  ;;  %v3220_v12 = vpop.f32.mrb[56].mxu0  ;;  %v3992_v13 = vpop.f32.mrb[56].mxu1 }
 0x3c4   : > { %v12437_v14 = vadd.f32 %v3220_v12, %v15977_v57  ;;  %v12501_v15 = vadd.f32 %v3992_v13, %v15980_v58  ;;  %v3222_v16 = vpop.f32.mrb[57].mxu0  ;;  %v3994_v17 = vpop.f32.mrb[57].mxu1  ;;  %v4319_v18 = vpack.c.bf16 %v4247_v6, %v4243_v3  ;;  %v4321_v19 = vpack.c.bf16 %v4249_v7, %v4245_v5 }
 0x3c5   : > { %v12438_v20 = vadd.f32 %v3222_v16, %v15983_v59  ;;  %v12502_v21 = vadd.f32 %v3994_v17, %v15986_v60  ;;  %v3224_v22 = vpop.f32.mrb[58].mxu0  ;;  %v3996_v23 = vpop.f32.mrb[58].mxu1  ;;  %v4320_v24 = vpack.c.bf16 %v4248_v10, %v4244_v8  ;;  %v4322_v25 = vpack.c.bf16 %v4250_v11, %v4246_v9 }
 0x3c6   : > { %v4123_v26 = vmul.f32 0.2, %v12437_v14  ;;  %v4125_v27 = vmul.f32 0.2, %v12501_v15  ;;  %v12439_v28 = vadd.f32 %v3224_v22, %v15977_v57  ;;  %v12503_v29 = vadd.f32 %v3996_v23, %v15980_v58  ;;  %v3226_v30 = vpop.f32.mrb[59].mxu0  ;;  %v3998_v31 = vpop.f32.mrb[59].mxu1 }
 0x3c7   : > { %v4124_v32 = vmul.f32 0.2, %v12438_v20  ;;  %v4126_v33 = vmul.f32 0.2, %v12502_v21  ;;  %v12440_v34 = vadd.f32 %v3226_v30, %v15983_v59  ;;  %v12504_v35 = vadd.f32 %v3998_v31, %v15986_v60  ;;  %4727 = vmatprep.mubr.bf16.mxu0 %v4320_v24  ;;  %4888 = vmatprep.mubr.bf16.mxu1 %v4322_v25 }
 0x3c8   : > { %v4127_v36 = vmul.f32 0.2, %v12439_v28  ;;  %v4129_v37 = vmul.f32 0.2, %v12503_v29  ;;  %4728 = vmatmul.mubr.bf16.gmra.mrb[116].mxu0 %v4319_v18  ;;  %4889 = vmatmul.mubr.bf16.gmra.mrb[116].mxu1 %v4321_v19  ;;  %v4251_v40 = vmax.f32 %v12437_v14, %v4123_v26  ;;  %v4253_v41 = vmax.f32 %v12501_v15, %v4125_v27 }
 0x3c9   : > { %v4128_v38 = vmul.f32 0.2, %v12440_v34  ;;  %v4130_v39 = vmul.f32 0.2, %v12504_v35  ;;  %v4252_v44 = vmax.f32 %v12438_v20, %v4124_v32  ;;  %v4254_v45 = vmax.f32 %v12502_v21, %v4126_v33  ;;  %v16116_v32 = vld [vmem:[#allocation11 + $0x1] ss:$0 sm:$0xff] }
 0x3ca   : > { %v4255_v42 = vmax.f32 %v12439_v28, %v4127_v36  ;;  %v4257_v43 = vmax.f32 %v12503_v29, %v4129_v37 }
 0x3cb   : > { %v4256_v46 = vmax.f32 %v12440_v34, %v4128_v38  ;;  %v4258_v47 = vmax.f32 %v12504_v35, %v4130_v39  ;;  %v3230_v48 = vpop.f32.mrb[60].mxu0  ;;  %v4002_v49 = vpop.f32.mrb[60].mxu1 }
 0x3cc   : > { %v12441_v50 = vadd.f32 %v3230_v48, %v15977_v57  ;;  %v12505_v54 = vadd.f32 %v4002_v49, %v15980_v58  ;;  %v3232_v61 = vpop.f32.mrb[61].mxu0  ;;  %v4004_v62 = vpop.f32.mrb[61].mxu1  ;;  %v4323_v63 = vpack.c.bf16 %v4255_v42, %v4251_v40  ;;  %v4325_v0 = vpack.c.bf16 %v4257_v43, %v4253_v41 }
 0x3cd   : > { %v12442_v1 = vadd.f32 %v3232_v61, %v15983_v59  ;;  %v12506_v2 = vadd.f32 %v4004_v62, %v15986_v60  ;;  %v3234_v3 = vpop.f32.mrb[62].mxu0  ;;  %v4006_v5 = vpop.f32.mrb[62].mxu1  ;;  %v4324_v6 = vpack.c.bf16 %v4256_v46, %v4252_v44  ;;  %v4326_v7 = vpack.c.bf16 %v4258_v47, %v4254_v45 }
 0x3ce   : > { %v4131_v8 = vmul.f32 0.2, %v12441_v50  ;;  %v4133_v9 = vmul.f32 0.2, %v12505_v54  ;;  %v12443_v10 = vadd.f32 %v3234_v3, %v15977_v57  ;;  %v12507_v11 = vadd.f32 %v4006_v5, %v15980_v58  ;;  %v3236_v12 = vpop.f32.mrb[63].mxu0  ;;  %v4008_v13 = vpop.f32.mrb[63].mxu1 }
 0x3cf   : > { %v4132_v14 = vmul.f32 0.2, %v12442_v1  ;;  %v4134_v15 = vmul.f32 0.2, %v12506_v2  ;;  %v12444_v16 = vadd.f32 %v3236_v12, %v15983_v59  ;;  %v12508_v17 = vadd.f32 %v4008_v13, %v15986_v60  ;;  %4735 = vmatprep.mubr.bf16.mxu0 %v4324_v6  ;;  %4896 = vmatprep.mubr.bf16.mxu1 %v4326_v7 }
 0x3d0   : > { %v4135_v18 = vmul.f32 0.2, %v12443_v10  ;;  %v4137_v19 = vmul.f32 0.2, %v12507_v11  ;;  %4736 = vmatmul.mubr.bf16.gmra.mrb[120].mxu0 %v4323_v63  ;;  %4897 = vmatmul.mubr.bf16.gmra.mrb[120].mxu1 %v4325_v0  ;;  %v4259_v22 = vmax.f32 %v12441_v50, %v4131_v8  ;;  %v4261_v57 = vmax.f32 %v12505_v54, %v4133_v9 }
 0x3d1   : > { %v4136_v20 = vmul.f32 0.2, %v12444_v16  ;;  %v4138_v21 = vmul.f32 0.2, %v12508_v17  ;;  %v4260_v24 = vmax.f32 %v12442_v1, %v4132_v14  ;;  %v4262_v25 = vmax.f32 %v12506_v2, %v4134_v15 }
 0x3d2   : > { %v4263_v23 = vmax.f32 %v12443_v10, %v4135_v18  ;;  %v4265_v58 = vmax.f32 %v12507_v11, %v4137_v19  ;;  %v18917_v12 = vmov 1  }
 0x3d3   : > { %v4264_v26 = vmax.f32 %v12444_v16, %v4136_v20  ;;  %v4266_v27 = vmax.f32 %v12508_v17, %v4138_v21  ;;  %13392 = vset.pattern.permute.xlu1 %v18917_v12 }
 0x3d4   : > { %v4327_v28 = vpack.c.bf16 %v4263_v23, %v4259_v22  ;;  %v4329_v59 = vpack.c.bf16 %v4265_v58, %v4261_v57 }
 0x3d5   : > { %v4328_v29 = vpack.c.bf16 %v4264_v26, %v4260_v24  ;;  %v4330_v60 = vpack.c.bf16 %v4266_v27, %v4262_v25 }
 0x3d7   : > { %4743 = vmatprep.mubr.bf16.mxu0 %v4328_v29  ;;  %4904 = vmatprep.mubr.bf16.mxu1 %v4330_v60 }
 0x3d8   : > { %4744 = vmatmul.mubr.bf16.gmra.mrb[124].mxu0 %v4327_v28  ;;  %4905 = vmatmul.mubr.bf16.gmra.mrb[124].mxu1 %v4329_v59 }
 0x433   : > { %v11949_v30 = vpop.f32.mrb[64].mxu0  ;;  %v12061_v31 = vpop.f32.mrb[64].mxu1 }
 0x434   : > { %v11950_v33 = vpop.f32.mrb[65].mxu0  ;;  %v12062_v34 = vpop.f32.mrb[65].mxu1 }
 0x435   : > { %v11951_v35 = vadd.f32 %v11950_v33, %v11949_v30  ;;  %v12063_v36 = vadd.f32 %v12062_v34, %v12061_v31  ;;  %v11952_v37 = vpop.f32.mrb[66].mxu0  ;;  %v12064_v38 = vpop.f32.mrb[66].mxu1 }
 0x436   : > { %v11953_v39 = vpop.f32.mrb[67].mxu0  ;;  %v12065_v40 = vpop.f32.mrb[67].mxu1 }
 0x437   : > { %v4626_v41 = vadd.f32 %v11951_v35, %v16116_v32  ;;  %v11954_v42 = vadd.f32 %v11953_v39, %v11952_v37  ;;  %v12066_v43 = vadd.f32 %v12065_v40, %v12064_v38 }
 0x439   : > { %v16119_v44 = vadd.f32 %v12063_v36, %v4626_v41  ;;  %v4629_v45 = vadd.f32 %v11954_v42, %v16116_v32 }
 0x43b   : > { %v4945_v46 = vmul.f32 0.5, %v16119_v44  ;;  %v16123_v47 = vadd.f32 %v12066_v43, %v4629_v45  ;;  %v11955_v48 = vpop.f32.mrb[68].mxu0  ;;  %v12067_v49 = vpop.f32.mrb[68].mxu1 }
 0x43c   : > { %v11956_v50 = vpop.f32.mrb[69].mxu0  ;;  %v12068_v54 = vpop.f32.mrb[69].mxu1 }
 0x43d   : > { %v4977_v61 = vmul.f32 1.442695, %v4945_v46  ;;  %v4946_v62 = vmul.f32 0.5, %v16123_v47  ;;  %v11957_v63 = vadd.f32 %v11956_v50, %v11955_v48  ;;  %v12069_v0 = vadd.f32 %v12068_v54, %v12067_v49  ;;  %v11958_v1 = vpop.f32.mrb[70].mxu0  ;;  %v12070_v2 = vpop.f32.mrb[70].mxu1 }
 0x43e   : > { %v11959_v3 = vpop.f32.mrb[71].mxu0  ;;  %v12071_v5 = vpop.f32.mrb[71].mxu1 }
 0x43f   : > { %14288 = vpow2.f32 %v4977_v61  ;;  %v4979_v6 = vmul.f32 1.442695, %v4946_v62  ;;  %v4634_v7 = vadd.f32 %v11957_v63, %v16116_v32  ;;  %v11960_v8 = vadd.f32 %v11959_v3, %v11958_v1 }
 0x440   : > { %v12072_v9 = vadd.f32 %v12071_v5, %v12070_v2 }
 0x441   : > { %v16127_v10 = vadd.f32 %v12069_v0, %v4634_v7  ;;  %v4637_v11 = vadd.f32 %v11960_v8, %v16116_v32  ;;  %14290 = vpow2.f32 %v4979_v6 }
 0x443   : > { %v4947_v13 = vmul.f32 0.5, %v16127_v10  ;;  %v16132_v14 = vadd.f32 %v12072_v9, %v4637_v11  ;;  %v11961_v15 = vpop.f32.mrb[72].mxu0  ;;  %v12073_v16 = vpop.f32.mrb[72].mxu1 }
 0x444   : > { %v11962_v17 = vpop.f32.mrb[73].mxu0  ;;  %v12074_v18 = vpop.f32.mrb[73].mxu1 }
 0x445   : > { %v4981_v19 = vmul.f32 1.442695, %v4947_v13  ;;  %v4948_v20 = vmul.f32 0.5, %v16132_v14  ;;  %v11963_v21 = vadd.f32 %v11962_v17, %v11961_v15  ;;  %v12075_v22 = vadd.f32 %v12074_v18, %v12073_v16  ;;  %v11964_v57 = vpop.f32.mrb[74].mxu0  ;;  %v12076_v23 = vpop.f32.mrb[74].mxu1 }
 0x446   : > { %v11965_v58 = vpop.f32.mrb[75].mxu0  ;;  %v12077_v24 = vpop.f32.mrb[75].mxu1 }
 0x447   : > { %14292 = vpow2.f32 %v4981_v19  ;;  %v4983_v25 = vmul.f32 1.442695, %v4948_v20  ;;  %v4642_v26 = vadd.f32 %v11963_v21, %v16116_v32  ;;  %v11966_v27 = vadd.f32 %v11965_v58, %v11964_v57 }
 0x448   : > { %v12078_v28 = vadd.f32 %v12077_v24, %v12076_v23 }
 0x449   : > { %v14289_v59 = vpop.eup %14288  ;;  %v16136_v29 = vadd.f32 %v12075_v22, %v4642_v26  ;;  %v4645_v60 = vadd.f32 %v11966_v27, %v16116_v32  ;;  %14294 = vpow2.f32 %v4983_v25 }
 0x44a   : > { %5073 = vrot.lane.b32.xlu0 %v14289_v59, %s15513_s8 }
 0x44b   : > { %v4949_v30 = vmul.f32 0.5, %v16136_v29  ;;  %v16141_v31 = vadd.f32 %v12078_v28, %v4645_v60  ;;  %v11967_v33 = vpop.f32.mrb[76].mxu0  ;;  %v12079_v34 = vpop.f32.mrb[76].mxu1 }
 0x44c   : > { %v11968_v35 = vpop.f32.mrb[77].mxu0  ;;  %v12080_v36 = vpop.f32.mrb[77].mxu1 }
 0x44d   : > { %v14291_v37 = vpop.eup %14290  ;;  %v4985_v38 = vmul.f32 1.442695, %v4949_v30  ;;  %v4950_v39 = vmul.f32 0.5, %v16141_v31  ;;  %v11969_v40 = vadd.f32 %v11968_v35, %v11967_v33  ;;  %v12081_v41 = vadd.f32 %v12080_v36, %v12079_v34  ;;  %v11970_v42 = vpop.f32.mrb[78].mxu0 }
 0x44e   : > { %v12082_v43 = vpop.f32.mrb[78].mxu1  ;;  %v11971_v45 = vpop.f32.mrb[79].mxu0  ;;  %5075 = vrot.lane.b32.xlu0 %v14291_v37, %s15513_s8 }
 0x44f   : > { %v12083_v46 = vpop.f32.mrb[79].mxu1  ;;  %14296 = vpow2.f32 %v4985_v38  ;;  %v4987_v48 = vmul.f32 1.442695, %v4950_v39  ;;  %v4650_v49 = vadd.f32 %v11969_v40, %v16116_v32  ;;  %v11972_v50 = vadd.f32 %v11971_v45, %v11970_v42 }
 0x450   : > { %v12084_v54 = vadd.f32 %v12083_v46, %v12082_v43 }
 0x451   : > { %v14293_v61 = vpop.eup %14292  ;;  %14298 = vpow2.f32 %v4987_v48  ;;  %v16146_v62 = vadd.f32 %v12081_v41, %v4650_v49  ;;  %v4653_v63 = vadd.f32 %v11972_v50, %v16116_v32 }
 0x452   : > { %5077 = vrot.lane.b32.xlu1 %v14293_v61, %s15513_s8 }
 0x453   : > { %v4951_v0 = vmul.f32 0.5, %v16146_v62  ;;  %v16151_v1 = vadd.f32 %v12084_v54, %v4653_v63  ;;  %v11973_v2 = vpop.f32.mrb[80].mxu0  ;;  %v12085_v3 = vpop.f32.mrb[80].mxu1 }
 0x454   : > { %v11974_v5 = vpop.f32.mrb[81].mxu0  ;;  %v12086_v6 = vpop.f32.mrb[81].mxu1 }
 0x455   : > { %19057 = vst [vmem:[#allocation24_spill] sm:$0xff] %v16151_v1  ;;  %v14295_v7 = vpop.eup %14294  ;;  %v4989_v8 = vmul.f32 1.442695, %v4951_v0  ;;  %v4952_v9 = vmul.f32 0.5, %v16151_v1  ;;  %v11975_v11 = vadd.f32 %v11974_v5, %v11973_v2  ;;  %v12087_v13 = vadd.f32 %v12086_v6, %v12085_v3  ;;  %v11976_v15 = vpop.f32.mrb[82].mxu0 }
 0x456   : > { %v12088_v16 = vpop.f32.mrb[82].mxu1  ;;  %v11977_v17 = vpop.f32.mrb[83].mxu0  ;;  %5079 = vrot.lane.b32.xlu1 %v14295_v7, %s15513_s8 }
 0x457   : > { %v12089_v18 = vpop.f32.mrb[83].mxu1  ;;  %14300 = vpow2.f32 %v4989_v8  ;;  %v4991_v19 = vmul.f32 1.442695, %v4952_v9  ;;  %v4658_v20 = vadd.f32 %v11975_v11, %v16116_v32  ;;  %v11978_v21 = vadd.f32 %v11977_v17, %v11976_v15 }
 0x458   : > { %v12090_v22 = vadd.f32 %v12089_v18, %v12088_v16 }
 0x459   : > { %v14297_v57 = vpop.eup %14296  ;;  %14302 = vpow2.f32 %v4991_v19  ;;  %v16156_v23 = vadd.f32 %v12087_v13, %v4658_v20  ;;  %v4661_v58 = vadd.f32 %v11978_v21, %v16116_v32 }
 0x45a   : > { %5081 = vrot.lane.b32.xlu0 %v14297_v57, %s15513_s8 }
 0x45b   : > { %v14299_v24 = vpop.eup %14298  ;;  %v4953_v25 = vmul.f32 0.5, %v16156_v23  ;;  %v16161_v26 = vadd.f32 %v12090_v22, %v4661_v58  ;;  %v11979_v27 = vpop.f32.mrb[84].mxu0 }
 0x45c   : > { %v12091_v28 = vpop.f32.mrb[84].mxu1  ;;  %v11980_v59 = vpop.f32.mrb[85].mxu0  ;;  %5083 = vrot.lane.b32.xlu1 %v14299_v24, %s15513_s8 }
 0x45d   : > { %19058 = vst [vmem:[#allocation25_spill] sm:$0xff] %v16161_v26  ;;  %v12092_v60 = vpop.f32.mrb[85].mxu1  ;;  %v4993_v30 = vmul.f32 1.442695, %v4953_v25  ;;  %v4954_v33 = vmul.f32 0.5, %v16161_v26  ;;  %v11981_v34 = vadd.f32 %v11980_v59, %v11979_v27  ;;  %v11982_v36 = vpop.f32.mrb[86].mxu0 }
 0x45e   : > { %v12093_v35 = vadd.f32 %v12092_v60, %v12091_v28  ;;  %v12094_v37 = vpop.f32.mrb[86].mxu1  ;;  %v11983_v38 = vpop.f32.mrb[87].mxu0 }
 0x45f   : > { %v12095_v39 = vpop.f32.mrb[87].mxu1  ;;  %14304 = vpow2.f32 %v4993_v30  ;;  %v4995_v40 = vmul.f32 1.442695, %v4954_v33  ;;  %v4666_v41 = vadd.f32 %v11981_v34, %v16116_v32  ;;  %v11984_v42 = vadd.f32 %v11983_v38, %v11982_v36 }
 0x460   : > { %v12096_v43 = vadd.f32 %v12095_v39, %v12094_v37 }
 0x461   : > { %v14301_v45 = vpop.eup %14300  ;;  %14306 = vpow2.f32 %v4995_v40  ;;  %v16166_v46 = vadd.f32 %v12093_v35, %v4666_v41  ;;  %v4669_v48 = vadd.f32 %v11984_v42, %v16116_v32 }
 0x462   : > { %5085 = vrot.lane.b32.xlu0 %v14301_v45, %s15513_s8 }
 0x463   : > { %v14303_v49 = vpop.eup %14302  ;;  %v4955_v50 = vmul.f32 0.5, %v16166_v46  ;;  %v16171_v54 = vadd.f32 %v12096_v43, %v4669_v48  ;;  %v11985_v61 = vpop.f32.mrb[88].mxu0 }
 0x464   : > { %v12097_v63 = vpop.f32.mrb[88].mxu1  ;;  %v11986_v0 = vpop.f32.mrb[89].mxu0  ;;  %5087 = vrot.lane.b32.xlu1 %v14303_v49, %s15513_s8 }
 0x465   : > { %19059 = vst [vmem:[#allocation26_spill] sm:$0xff] %v16171_v54  ;;  %v12098_v2 = vpop.f32.mrb[89].mxu1  ;;  %v4997_v3 = vmul.f32 1.442695, %v4955_v50  ;;  %v4956_v5 = vmul.f32 0.5, %v16171_v54  ;;  %v11987_v6 = vadd.f32 %v11986_v0, %v11985_v61  ;;  %v11988_v8 = vpop.f32.mrb[90].mxu0 }
 0x466   : > { %v12099_v7 = vadd.f32 %v12098_v2, %v12097_v63  ;;  %v12100_v9 = vpop.f32.mrb[90].mxu1  ;;  %v11989_v11 = vpop.f32.mrb[91].mxu0 }
 0x467   : > { %v12101_v13 = vpop.f32.mrb[91].mxu1  ;;  %14308 = vpow2.f32 %v4997_v3  ;;  %v4999_v15 = vmul.f32 1.442695, %v4956_v5  ;;  %v4674_v16 = vadd.f32 %v11987_v6, %v16116_v32  ;;  %v11990_v17 = vadd.f32 %v11989_v11, %v11988_v8 }
 0x468   : > { %v12102_v18 = vadd.f32 %v12101_v13, %v12100_v9 }
 0x469   : > { %v14305_v19 = vpop.eup %14304  ;;  %14310 = vpow2.f32 %v4999_v15  ;;  %v16176_v20 = vadd.f32 %v12099_v7, %v4674_v16  ;;  %v4677_v21 = vadd.f32 %v11990_v17, %v16116_v32 }
 0x46a   : > { %5089 = vrot.lane.b32.xlu0 %v14305_v19, %s15513_s8 }
 0x46b   : > { %v14307_v22 = vpop.eup %14306  ;;  %v4957_v57 = vmul.f32 0.5, %v16176_v20  ;;  %v16181_v58 = vadd.f32 %v12102_v18, %v4677_v21  ;;  %v11991_v24 = vpop.f32.mrb[92].mxu0 }
 0x46c   : > { %v12103_v25 = vpop.f32.mrb[92].mxu1  ;;  %v11992_v27 = vpop.f32.mrb[93].mxu0  ;;  %5091 = vrot.lane.b32.xlu1 %v14307_v22, %s15513_s8 }
 0x46d   : > { %19060 = vst [vmem:[#allocation27_spill] sm:$0xff] %v16181_v58  ;;  %v12104_v28 = vpop.f32.mrb[93].mxu1  ;;  %v5001_v59 = vmul.f32 1.442695, %v4957_v57  ;;  %v4958_v60 = vmul.f32 0.5, %v16181_v58  ;;  %v11993_v30 = vadd.f32 %v11992_v27, %v11991_v24  ;;  %v11994_v34 = vpop.f32.mrb[94].mxu0 }
 0x46e   : > { %v12105_v33 = vadd.f32 %v12104_v28, %v12103_v25  ;;  %v12106_v35 = vpop.f32.mrb[94].mxu1  ;;  %v11995_v36 = vpop.f32.mrb[95].mxu0 }
 0x46f   : > { %v12107_v37 = vpop.f32.mrb[95].mxu1  ;;  %14312 = vpow2.f32 %v5001_v59  ;;  %v5003_v38 = vmul.f32 1.442695, %v4958_v60  ;;  %v4682_v39 = vadd.f32 %v11993_v30, %v16116_v32  ;;  %v11996_v40 = vadd.f32 %v11995_v36, %v11994_v34 }
 0x470   : > { %v12108_v41 = vadd.f32 %v12107_v37, %v12106_v35 }
 0x471   : > { %v14309_v42 = vpop.eup %14308  ;;  %14314 = vpow2.f32 %v5003_v38  ;;  %v16186_v43 = vadd.f32 %v12105_v33, %v4682_v39  ;;  %v4685_v45 = vadd.f32 %v11996_v40, %v16116_v32 }
 0x472   : > { %5093 = vrot.lane.b32.xlu0 %v14309_v42, %s15513_s8 }
 0x473   : > { %v14311_v48 = vpop.eup %14310  ;;  %v4959_v49 = vmul.f32 0.5, %v16186_v43  ;;  %v16191_v50 = vadd.f32 %v12108_v41, %v4685_v45  ;;  %v11997_v61 = vpop.f32.mrb[96].mxu0  ;;  %v13968_v45 = vld [vmem:[#allocation10 + $0x8] ss:$28 sps:$4 sm:$0xff]  }
 0x474   : > { %v12109_v63 = vpop.f32.mrb[96].mxu1  ;;  %v11998_v0 = vpop.f32.mrb[97].mxu0  ;;  %5095 = vrot.lane.b32.xlu1 %v14311_v48, %s15513_s8  ;;  %v13970_v48 = vld [vmem:[#allocation10 + $0xc] ss:$28 sps:$4 sm:$0xff]  }
 0x475   : > { %19061 = vst [vmem:[#allocation28_spill] sm:$0xff] %v16191_v50  ;;  %v12110_v2 = vpop.f32.mrb[97].mxu1  ;;  %v5005_v3 = vmul.f32 1.442695, %v4959_v49  ;;  %v4960_v5 = vmul.f32 0.5, %v16191_v50  ;;  %v11999_v6 = vadd.f32 %v11998_v0, %v11997_v61  ;;  %v12000_v8 = vpop.f32.mrb[98].mxu0  ;;  %8121 = vmatprep.subr.bf16.mxu1 %v13970_v48 }
 0x476   : > { %v12111_v7 = vadd.f32 %v12110_v2, %v12109_v63  ;;  %v12112_v9 = vpop.f32.mrb[98].mxu1  ;;  %v12001_v11 = vpop.f32.mrb[99].mxu0  ;;  %8122 = vmatpush1.bf16.msra.mxu1 %v13968_v45  ;;  %v13979_v48 = vld [vmem:[#allocation10 + $0x3c] ss:$28 sps:$4 sm:$0xff]  }
 0x477   : > { %v12113_v13 = vpop.f32.mrb[99].mxu1  ;;  %14316 = vpow2.f32 %v5005_v3  ;;  %v5007_v15 = vmul.f32 1.442695, %v4960_v5  ;;  %v4690_v16 = vadd.f32 %v11999_v6, %v16116_v32  ;;  %v12002_v17 = vadd.f32 %v12001_v11, %v12000_v8  ;;  %v13971_v8 = vld [vmem:[#allocation10] ss:$28 sps:$4 sm:$0xff]  }
 0x478   : > { %v12114_v18 = vadd.f32 %v12113_v13, %v12112_v9  ;;  %v13973_v13 = vld [vmem:[#allocation10 + $0x4] ss:$28 sps:$4 sm:$0xff]  }
 0x479   : > { %v14313_v19 = vpop.eup %14312  ;;  %14318 = vpow2.f32 %v5007_v15  ;;  %v16196_v21 = vadd.f32 %v12111_v7, %v4690_v16  ;;  %v4693_v22 = vadd.f32 %v12002_v17, %v16116_v32  ;;  %7735 = vmatprep.subr.bf16.mxu0 %v13973_v13 }
 0x47a   : > { %5097 = vrot.lane.b32.xlu0 %v14313_v19, %s15513_s8  ;;  %7736 = vmatpush1.bf16.msra.mxu0 %v13971_v8 }
 0x47b   : > { %v14315_v57 = vpop.eup %14314  ;;  %v4961_v24 = vmul.f32 0.5, %v16196_v21  ;;  %v16201_v25 = vadd.f32 %v12114_v18, %v4693_v22  ;;  %v12003_v27 = vpop.f32.mrb[100].mxu0  ;;  %7737 = vmatprep.subr.bf16.mxu0 %v13979_v48 }
 0x47c   : > { %v12115_v28 = vpop.f32.mrb[100].mxu1  ;;  %v12004_v59 = vpop.f32.mrb[101].mxu0  ;;  %5099 = vrot.lane.b32.xlu1 %v14315_v57, %s15513_s8 }
 0x47d   : > { %19062 = vst [vmem:[#allocation29_spill] sm:$0xff] %v16201_v25  ;;  %v12116_v60 = vpop.f32.mrb[101].mxu1  ;;  %v5009_v30 = vmul.f32 1.442695, %v4961_v24  ;;  %v4962_v33 = vmul.f32 0.5, %v16201_v25  ;;  %v12005_v34 = vadd.f32 %v12004_v59, %v12003_v27  ;;  %v12006_v36 = vpop.f32.mrb[102].mxu0 }
 0x47e   : > { %v12117_v35 = vadd.f32 %v12116_v60, %v12115_v28  ;;  %v12118_v37 = vpop.f32.mrb[102].mxu1  ;;  %v12007_v38 = vpop.f32.mrb[103].mxu0  ;;  %v13974_v60 = vld [vmem:[#allocation10 + $0x40] ss:$28 sps:$4 sm:$0xff]  }
 0x47f   : > { %v12119_v39 = vpop.f32.mrb[103].mxu1  ;;  %14320 = vpow2.f32 %v5009_v30  ;;  %v5011_v40 = vmul.f32 1.442695, %v4962_v33  ;;  %v4698_v41 = vadd.f32 %v12005_v34, %v16116_v32  ;;  %v12008_v42 = vadd.f32 %v12007_v38, %v12006_v36  ;;  %v13976_v30 = vld [vmem:[#allocation10 + $0x44] ss:$28 sps:$4 sm:$0xff]  }
 0x480   : > { %v12120_v49 = vadd.f32 %v12119_v39, %v12118_v37  ;;  %8123 = vmatprep.subr.bf16.mxu1 %v13976_v30 }
 0x481   : > { %v14317_v61 = vpop.eup %14316  ;;  %v16206_v63 = vadd.f32 %v12117_v35, %v4698_v41  ;;  %v4701_v0 = vadd.f32 %v12008_v42, %v16116_v32  ;;  %14322 = vpow2.f32 %v5011_v40  ;;  %8124 = vmatpush1.bf16.msra.mxu1 %v13974_v60  ;;  %v13977_v41 = vld [vmem:[#allocation10 + $0x38] ss:$28 sps:$4 sm:$0xff]   ;;  %v13983_v60 = vld [vmem:[#allocation10 + $0x70] ss:$28 sps:$4 sm:$0xff]  }
 0x482   : > { %5101 = vrot.lane.b32.xlu0 %v14317_v61, %s15513_s8  ;;  %7738 = vmatpush1.bf16.msra.mxu0 %v13977_v41 }
 0x483   : > { %v14319_v2 = vpop.eup %14318  ;;  %v4963_v3 = vmul.f32 0.5, %v16206_v63  ;;  %v16211_v5 = vadd.f32 %v12120_v49, %v4701_v0  ;;  %v12009_v6 = vpop.f32.mrb[104].mxu0 }
 0x484   : > { %v12121_v7 = vpop.f32.mrb[104].mxu1  ;;  %v12010_v9 = vpop.f32.mrb[105].mxu0  ;;  %5103 = vrot.lane.b32.xlu1 %v14319_v2, %s15513_s8 }
 0x485   : > { %19063 = vst [vmem:[#allocation30_spill] sm:$0xff] %v16211_v5  ;;  %v12122_v11 = vpop.f32.mrb[105].mxu1  ;;  %v5013_v15 = vmul.f32 1.442695, %v4963_v3  ;;  %v4964_v16 = vmul.f32 0.5, %v16211_v5  ;;  %v12011_v17 = vadd.f32 %v12010_v9, %v12009_v6  ;;  %v12012_v19 = vpop.f32.mrb[106].mxu0 }
 0x486   : > { %v12123_v18 = vadd.f32 %v12122_v11, %v12121_v7  ;;  %v12124_v22 = vpop.f32.mrb[106].mxu1  ;;  %v12013_v57 = vpop.f32.mrb[107].mxu0 }
 0x487   : > { %v12125_v24 = vpop.f32.mrb[107].mxu1  ;;  %14324 = vpow2.f32 %v5013_v15  ;;  %v5015_v27 = vmul.f32 1.442695, %v4964_v16  ;;  %v4706_v28 = vadd.f32 %v12011_v17, %v16116_v32  ;;  %v12014_v59 = vadd.f32 %v12013_v57, %v12012_v19  ;;  %v13980_v16 = vld [vmem:[#allocation10 + $0x78] ss:$28 sps:$4 sm:$0xff]  }
 0x488   : > { %v12126_v33 = vadd.f32 %v12125_v24, %v12124_v22  ;;  %v13982_v17 = vld [vmem:[#allocation10 + $0x7c] ss:$28 sps:$4 sm:$0xff]  }
 0x489   : > { %v14321_v34 = vpop.eup %14320  ;;  %v16216_v35 = vadd.f32 %v12123_v18, %v4706_v28  ;;  %v4709_v36 = vadd.f32 %v12014_v59, %v16116_v32  ;;  %14326 = vpow2.f32 %v5015_v27  ;;  %8125 = vmatprep.subr.bf16.mxu1 %v13982_v17 }
 0x48a   : > { %5105 = vrot.lane.b32.xlu1 %v14321_v34, %s15513_s8  ;;  %8126 = vmatpush1.bf16.msra.mxu1 %v13980_v16  ;;  %v13985_v34 = vld [vmem:[#allocation10 + $0x74] ss:$28 sps:$4 sm:$0xff]  }
 0x48b   : > { %v4965_v37 = vmul.f32 0.5, %v16216_v35  ;;  %v16221_v38 = vadd.f32 %v12126_v33, %v4709_v36  ;;  %v12015_v39 = vpop.f32.mrb[108].mxu0  ;;  %v12127_v40 = vpop.f32.mrb[108].mxu1  ;;  %7739 = vmatprep.subr.bf16.mxu0 %v13985_v34 }
 0x48c   : > { %v12016_v42 = vpop.f32.mrb[109].mxu0  ;;  %v12128_v45 = vpop.f32.mrb[109].mxu1  ;;  %7740 = vmatpush1.bf16.msra.mxu0 %v13983_v60 }
 0x48d   : > { %19064 = vst [vmem:[#allocation31_spill] sm:$0xff] %v16221_v38  ;;  %v14323_v49 = vpop.eup %14322  ;;  %v5017_v61 = vmul.f32 1.442695, %v4965_v37  ;;  %v4966_v0 = vmul.f32 0.5, %v16221_v38  ;;  %v12017_v2 = vadd.f32 %v12016_v42, %v12015_v39  ;;  %v12129_v3 = vadd.f32 %v12128_v45, %v12127_v40  ;;  %v12018_v6 = vpop.f32.mrb[110].mxu0 }
 0x48e   : > { %v12130_v7 = vpop.f32.mrb[110].mxu1  ;;  %v12019_v8 = vpop.f32.mrb[111].mxu0  ;;  %5107 = vrot.lane.b32.xlu1 %v14323_v49, %s15513_s8 }
 0x48f   : > { %v12131_v9 = vpop.f32.mrb[111].mxu1  ;;  %14328 = vpow2.f32 %v5017_v61  ;;  %v5019_v11 = vmul.f32 1.442695, %v4966_v0  ;;  %v4714_v13 = vadd.f32 %v12017_v2, %v16116_v32  ;;  %v12020_v15 = vadd.f32 %v12019_v8, %v12018_v6  ;;  %v13988_v6 = vld [vmem:[#allocation10 + $0xb4] ss:$28 sps:$4 sm:$0xff]  }
 0x490   : > { %v12132_v18 = vadd.f32 %v12131_v9, %v12130_v7  ;;  %8127 = vmatprep.subr.bf16.mxu1 %v13988_v6 }
 0x491   : > { %v14325_v19 = vpop.eup %14324  ;;  %v16226_v22 = vadd.f32 %v12129_v3, %v4714_v13  ;;  %v4717_v57 = vadd.f32 %v12020_v15, %v16116_v32  ;;  %14330 = vpow2.f32 %v5019_v11  ;;  %v13986_v3 = vld [vmem:[#allocation10 + $0xb0] ss:$28 sps:$4 sm:$0xff]  }
 0x492   : > { %5109 = vrot.lane.b32.xlu1 %v14325_v19, %s15513_s8  ;;  %8128 = vmatpush1.bf16.msra.mxu1 %v13986_v3 }
 0x493   : > { %19065 = vst [vmem:[#allocation32_spill] sm:$0xff] %v16226_v22  ;;  %v4967_v24 = vmul.f32 0.5, %v16226_v22  ;;  %v16231_v27 = vadd.f32 %v12132_v18, %v4717_v57  ;;  %v12021_v28 = vpop.f32.mrb[112].mxu0  ;;  %v12133_v59 = vpop.f32.mrb[112].mxu1  ;;  %v13989_v18 = vld [vmem:[#allocation10 + $0xa8] ss:$28 sps:$4 sm:$0xff]  }
 0x494   : > { %v12022_v30 = vpop.f32.mrb[113].mxu0  ;;  %v12134_v33 = vpop.f32.mrb[113].mxu1 }
 0x495   : > { %19066 = vst [vmem:[#allocation33_spill] sm:$0xff] %v16231_v27  ;;  %v14327_v36 = vpop.eup %14326  ;;  %v5021_v37 = vmul.f32 1.442695, %v4967_v24  ;;  %v4968_v39 = vmul.f32 0.5, %v16231_v27  ;;  %v12023_v40 = vadd.f32 %v12022_v30, %v12021_v28  ;;  %v12135_v41 = vadd.f32 %v12134_v33, %v12133_v59  ;;  %v12024_v42 = vpop.f32.mrb[114].mxu0 }
 0x496   : > { %v12136_v45 = vpop.f32.mrb[114].mxu1  ;;  %v12025_v48 = vpop.f32.mrb[115].mxu0  ;;  %5111 = vrot.lane.b32.xlu1 %v14327_v36, %s15513_s8  ;;  %v13991_v24 = vld [vmem:[#allocation10 + $0xac] ss:$28 sps:$4 sm:$0xff]  }
 0x497   : > { %v12137_v49 = vpop.f32.mrb[115].mxu1  ;;  %14332 = vpow2.f32 %v5021_v37  ;;  %v5023_v61 = vmul.f32 1.442695, %v4968_v39  ;;  %v4722_v0 = vadd.f32 %v12023_v40, %v16116_v32  ;;  %v12026_v2 = vadd.f32 %v12025_v48, %v12024_v42  ;;  %7741 = vmatprep.subr.bf16.mxu0 %v13991_v24  ;;  %v13994_v48 = vld [vmem:[#allocation10 + $0xec] ss:$28 sps:$4 sm:$0xff]  }
 0x498   : > { %v12138_v7 = vadd.f32 %v12137_v49, %v12136_v45  ;;  %7742 = vmatpush1.bf16.msra.mxu0 %v13989_v18  ;;  %v13992_v45 = vld [vmem:[#allocation10 + $0xe8] ss:$28 sps:$4 sm:$0xff]   ;;  %8129 = vmatprep.subr.bf16.mxu1 %v13994_v48 }
 0x499   : > { %v14329_v8 = vpop.eup %14328  ;;  %v16236_v9 = vadd.f32 %v12135_v41, %v4722_v0  ;;  %v4725_v11 = vadd.f32 %v12026_v2, %v16116_v32  ;;  %14334 = vpow2.f32 %v5023_v61  ;;  %8130 = vmatpush1.bf16.msra.mxu1 %v13992_v45 }
 0x49a   : > { %5113 = vrot.lane.b32.xlu1 %v14329_v8, %s15513_s8 }
 0x49b   : > { %19067 = vst [vmem:[#allocation34_spill] sm:$0xff] %v16236_v9  ;;  %v4969_v13 = vmul.f32 0.5, %v16236_v9  ;;  %v16241_v15 = vadd.f32 %v12138_v7, %v4725_v11  ;;  %v12027_v16 = vpop.f32.mrb[116].mxu0  ;;  %v12139_v17 = vpop.f32.mrb[116].mxu1  ;;  %v13995_v11 = vld [vmem:[#allocation10 + $0xe0] ss:$28 sps:$4 sm:$0xff]  }
 0x49c   : > { %v12028_v19 = vpop.f32.mrb[117].mxu0  ;;  %v12140_v57 = vpop.f32.mrb[117].mxu1 }
 0x49d   : > { %19068 = vst [vmem:[#allocation35_spill] sm:$0xff] %v16241_v15  ;;  %v14331_v28 = vpop.eup %14330  ;;  %v5025_v59 = vmul.f32 1.442695, %v4969_v13  ;;  %v4970_v60 = vmul.f32 0.5, %v16241_v15  ;;  %v12029_v30 = vadd.f32 %v12028_v19, %v12027_v16  ;;  %v12141_v33 = vadd.f32 %v12140_v57, %v12139_v17  ;;  %v12030_v34 = vpop.f32.mrb[118].mxu0 }
 0x49e   : > { %v12142_v36 = vpop.f32.mrb[118].mxu1  ;;  %v12031_v37 = vpop.f32.mrb[119].mxu0  ;;  %5115 = vrot.lane.b32.xlu1 %v14331_v28, %s15513_s8  ;;  %v13997_v17 = vld [vmem:[#allocation10 + $0xe4] ss:$28 sps:$4 sm:$0xff]  }
 0x49f   : > { %v12143_v39 = vpop.f32.mrb[119].mxu1  ;;  %14336 = vpow2.f32 %v5025_v59  ;;  %v5027_v40 = vmul.f32 1.442695, %v4970_v60  ;;  %v4730_v41 = vadd.f32 %v12029_v30, %v16116_v32  ;;  %v12032_v42 = vadd.f32 %v12031_v37, %v12030_v34  ;;  %7743 = vmatprep.subr.bf16.mxu0 %v13997_v17  ;;  %v14009_v17 = vld [vmem:[#allocation10 + $0x15c] ss:$28 sps:$4 sm:$0xff]  }
 0x4a0   : > { %v12144_v49 = vadd.f32 %v12143_v39, %v12142_v36  ;;  %7744 = vmatpush1.bf16.msra.mxu0 %v13995_v11  ;;  %v13998_v39 = vld [vmem:[#allocation10 + $0x120] ss:$28 sps:$4 sm:$0xff]  }
 0x4a1   : > { %v14333_v61 = vpop.eup %14332  ;;  %v16246_v0 = vadd.f32 %v12141_v33, %v4730_v41  ;;  %v4733_v2 = vadd.f32 %v12032_v42, %v16116_v32  ;;  %14338 = vpow2.f32 %v5027_v40  ;;  %v14000_v40 = vld [vmem:[#allocation10 + $0x124] ss:$28 sps:$4 sm:$0xff]   ;;  %v14003_v42 = vld [vmem:[#allocation10 + $0x11c] ss:$28 sps:$4 sm:$0xff]  }
 0x4a2   : > { %5117 = vrot.lane.b32.xlu1 %v14333_v61, %s15513_s8  ;;  %8131 = vmatprep.subr.bf16.mxu1 %v14000_v40  ;;  %v14001_v61 = vld [vmem:[#allocation10 + $0x118] ss:$28 sps:$4 sm:$0xff]  }
 0x4a3   : > { %19069 = vst [vmem:[#allocation36_spill] sm:$0xff] %v16246_v0  ;;  %v4971_v3 = vmul.f32 0.5, %v16246_v0  ;;  %v16251_v6 = vadd.f32 %v12144_v49, %v4733_v2  ;;  %v12033_v7 = vpop.f32.mrb[120].mxu0  ;;  %v12145_v8 = vpop.f32.mrb[120].mxu1  ;;  %8132 = vmatpush1.bf16.msra.mxu1 %v13998_v39  ;;  %7745 = vmatprep.subr.bf16.mxu0 %v14003_v42  ;;  %v14012_v42 = vld [vmem:[#allocation10 + $0x18c] ss:$28 sps:$4 sm:$0xff]  }
 0x4a4   : > { %v12034_v13 = vpop.f32.mrb[121].mxu0  ;;  %v12146_v16 = vpop.f32.mrb[121].mxu1  ;;  %7746 = vmatpush1.bf16.msra.mxu0 %v14001_v61  ;;  %8133 = vmatprep.subr.bf16.mxu1 %v14009_v17  ;;  %v14016_v17 = vld [vmem:[#allocation10 + $0x1c0] ss:$28 sps:$4 sm:$0xff]  }
 0x4a5   : > { %19070 = vst [vmem:[#allocation37_spill] sm:$0xff] %v16251_v6  ;;  %v14335_v18 = vpop.eup %14334  ;;  %v5029_v19 = vmul.f32 1.442695, %v4971_v3  ;;  %v4972_v57 = vmul.f32 0.5, %v16251_v6  ;;  %v12035_v24 = vadd.f32 %v12034_v13, %v12033_v7  ;;  %v12147_v28 = vadd.f32 %v12146_v16, %v12145_v8  ;;  %v12036_v59 = vpop.f32.mrb[122].mxu0 }
 0x4a6   : > { %v12148_v60 = vpop.f32.mrb[122].mxu1  ;;  %v12037_v30 = vpop.f32.mrb[123].mxu0  ;;  %5119 = vrot.lane.b32.xlu1 %v14335_v18, %s15513_s8  ;;  %v14006_v16 = vld [vmem:[#allocation10 + $0x154] ss:$28 sps:$4 sm:$0xff]  }
 0x4a7   : > { %v12149_v33 = vpop.f32.mrb[123].mxu1  ;;  %14340 = vpow2.f32 %v5029_v19  ;;  %v5031_v34 = vmul.f32 1.442695, %v4972_v57  ;;  %v4738_v36 = vadd.f32 %v12035_v24, %v16116_v32  ;;  %v12038_v37 = vadd.f32 %v12037_v30, %v12036_v59  ;;  %7747 = vmatprep.subr.bf16.mxu0 %v14006_v16  ;;  %v14018_v16 = vld [vmem:[#allocation10 + $0x1c4] ss:$28 sps:$4 sm:$0xff]  }
 0x4a8   : > { %v12150_v41 = vadd.f32 %v12149_v33, %v12148_v60 }
 0x4a9   : > { %v14337_v45 = vpop.eup %14336  ;;  %v16257_v48 = vadd.f32 %v12147_v28, %v4738_v36  ;;  %v4741_v49 = vadd.f32 %v12038_v37, %v16116_v32  ;;  %14342 = vpow2.f32 %v5031_v34  ;;  %v14004_v34 = vld [vmem:[#allocation10 + $0x150] ss:$28 sps:$4 sm:$0xff]   ;;  %v14007_v36 = vld [vmem:[#allocation10 + $0x158] ss:$28 sps:$4 sm:$0xff]  }
 0x4aa   : > { %5121 = vrot.lane.b32.xlu1 %v14337_v45, %s15513_s8  ;;  %7748 = vmatpush1.bf16.msra.mxu0 %v14004_v34  ;;  %v14015_v45 = vld [vmem:[#allocation10 + $0x194] ss:$28 sps:$4 sm:$0xff]  }
 0x4ab   : > { %19071 = vst [vmem:[#allocation38_spill] sm:$0xff] %v16257_v48  ;;  %v4973_v2 = vmul.f32 0.5, %v16257_v48  ;;  %v16262_v3 = vadd.f32 %v12150_v41, %v4741_v49  ;;  %v12039_v7 = vpop.f32.mrb[124].mxu0  ;;  %v12151_v8 = vpop.f32.mrb[124].mxu1  ;;  %8134 = vmatpush1.bf16.msra.mxu1 %v14007_v36  ;;  %7749 = vmatprep.subr.bf16.mxu0 %v14012_v42  ;;  %v14030_v36 = vld [vmem:[#allocation10 + $0x234] ss:$28 sps:$4 sm:$0xff]  }
 0x4ac   : > { %v12040_v11 = vpop.f32.mrb[125].mxu0  ;;  %v12152_v13 = vpop.f32.mrb[125].mxu1  ;;  %8135 = vmatprep.subr.bf16.mxu1 %v14015_v45 }
 0x4ad   : > { %19072 = vst [vmem:[#allocation39_spill] sm:$0xff] %v16262_v3  ;;  %v14339_v18 = vpop.eup %14338  ;;  %v5033_v19 = vmul.f32 1.442695, %v4973_v2  ;;  %v4974_v57 = vmul.f32 0.5, %v16262_v3  ;;  %v12041_v24 = vadd.f32 %v12040_v11, %v12039_v7  ;;  %v12153_v28 = vadd.f32 %v12152_v13, %v12151_v8  ;;  %v12042_v59 = vpop.f32.mrb[126].mxu0 }
 0x4ae   : > { %v12154_v60 = vpop.f32.mrb[126].mxu1  ;;  %v12043_v30 = vpop.f32.mrb[127].mxu0  ;;  %5123 = vrot.lane.b32.xlu1 %v14339_v18, %s15513_s8  ;;  %v14010_v7 = vld [vmem:[#allocation10 + $0x188] ss:$28 sps:$4 sm:$0xff]   ;;  %v14013_v8 = vld [vmem:[#allocation10 + $0x190] ss:$28 sps:$4 sm:$0xff]  }
 0x4af   : > { %v12155_v33 = vpop.f32.mrb[127].mxu1  ;;  %14344 = vpow2.f32 %v5033_v19  ;;  %v5035_v37 = vmul.f32 1.442695, %v4974_v57  ;;  %v4746_v39 = vadd.f32 %v12041_v24, %v16116_v32  ;;  %v12044_v40 = vadd.f32 %v12043_v30, %v12042_v59  ;;  %7750 = vmatpush1.bf16.msra.mxu0 %v14010_v7  ;;  %8136 = vmatpush1.bf16.msra.mxu1 %v14013_v8  ;;  %v14019_v18 = vld [vmem:[#allocation10 + $0x1c8] ss:$28 sps:$4 sm:$0xff]  }
 0x4b0   : > { %v12156_v41 = vadd.f32 %v12155_v33, %v12154_v60  ;;  %v14021_v19 = vld [vmem:[#allocation10 + $0x1cc] ss:$28 sps:$4 sm:$0xff]   ;;  %7751 = vmatprep.subr.bf16.mxu0 %v14018_v16  ;;  %v14024_v24 = vld [vmem:[#allocation10 + $0x1fc] ss:$28 sps:$4 sm:$0xff]   ;;  %v14027_v60 = vld [vmem:[#allocation10 + $0x204] ss:$28 sps:$4 sm:$0xff]  }
 0x4b1   : > { %v14341_v49 = vpop.eup %14340  ;;  %v16279_v61 = vadd.f32 %v12153_v28, %v4746_v39  ;;  %v4749_v2 = vadd.f32 %v12044_v40, %v16116_v32  ;;  %14346 = vpow2.f32 %v5035_v37  ;;  %8137 = vmatprep.subr.bf16.mxu1 %v14021_v19  ;;  %v14022_v28 = vld [vmem:[#allocation10 + $0x1f8] ss:$28 sps:$4 sm:$0xff]   ;;  %v14025_v59 = vld [vmem:[#allocation10 + $0x200] ss:$28 sps:$4 sm:$0xff]   ;;  %v14028_v39 = vld [vmem:[#allocation10 + $0x230] ss:$28 sps:$4 sm:$0xff]  }
 0x4b2   : > { %5125 = vrot.lane.b32.xlu1 %v14341_v49, %s15513_s8  ;;  %v4913_v33 = vld [vmem:[%s16291_s15] sm:$0xff]  ;;  %v4914_v49 = vld [vmem:[%s16291_s15 + $0x8] sm:$0xff]  ;;  %v14039_v16 = vld [vmem:[#allocation10 + $0x274] ss:$28 sps:$4 sm:$0xff]  }
 0x4b3   : > { %19074 = vst [vmem:[#allocation40_spill] sm:$0xff] %v16279_v61  ;;  %v4975_v11 = vmul.f32 0.5, %v16279_v61  ;;  %v16284_v13 = vadd.f32 %v12156_v41, %v4749_v2  ;;  %v14343_v57 = vpop.eup %14342  ;;  %7752 = vmatpush1.bf16.msra.mxu0 %v14016_v17  ;;  %8138 = vmatpush1.bf16.msra.mxu1 %v14019_v18  ;;  %v14031_v40 = vld [vmem:[#allocation10 + $0x238] ss:$28 sps:$4 sm:$0xff]   ;;  %v14034_v18 = vld [vmem:[#allocation10 + $0x268] ss:$28 sps:$4 sm:$0xff]  }
 0x4b4   : > { %7753 = vmatprep.subr.bf16.mxu0 %v14024_v24  ;;  %8139 = vmatprep.subr.bf16.mxu1 %v14027_v60  ;;  %v14033_v41 = vld [vmem:[#allocation10 + $0x23c] ss:$28 sps:$4 sm:$0xff]   ;;  %v14037_v19 = vld [vmem:[#allocation10 + $0x270] ss:$28 sps:$4 sm:$0xff]  }
 0x4b5   : > { %19075 = vst [vmem:[#allocation41_spill] sm:$0xff] %v16284_v13  ;;  %v5037_v32 = vmul.f32 1.442695, %v4975_v11  ;;  %v4976_v34 = vmul.f32 0.5, %v16284_v13  ;;  %v14036_v11 = vld [vmem:[#allocation10 + $0x26c] ss:$28 sps:$4 sm:$0xff]  }
 0x4b6   : > { %5127 = vrot.lane.b32.xlu1 %v14343_v57, %s15513_s8  ;;  %v4915_v57 = vld [vmem:[%s16291_s15 + $0x10] sm:$0xff] }
 0x4b7   : > { %14348 = vpow2.f32 %v5037_v32  ;;  %7754 = vmatpush1.bf16.msra.mxu0 %v14022_v28  ;;  %8140 = vmatpush1.bf16.msra.mxu1 %v14025_v59  ;;  %v5039_v2 = vmul.f32 1.442695, %v4976_v34  ;;  %v14042_v28 = vld [vmem:[#allocation10 + $0x2a4] ss:$28 sps:$4 sm:$0xff]   ;;  %v14045_v59 = vld [vmem:[#allocation10 + $0x2ac] ss:$28 sps:$4 sm:$0xff]  }
 0x4b8   : > { %7755 = vmatprep.subr.bf16.mxu0 %v14030_v36  ;;  %8141 = vmatprep.subr.bf16.mxu1 %v14033_v41  ;;  %v14043_v34 = vld [vmem:[#allocation10 + $0x2a8] ss:$28 sps:$4 sm:$0xff]   ;;  %v4916_v36 = vld [vmem:[%s16291_s15 + $0x18] sm:$0xff] }
 0x4b9   : > { %v14345_v30 = vpop.eup %14344  ;;  %14350 = vpow2.f32 %v5039_v2  ;;  %v4917_v2 = vld [vmem:[%s16291_s15 + $0x20] sm:$0xff] }
 0x4ba   : > { %5129 = vrot.lane.b32.xlu1 %v14345_v30, %s15513_s8 }
 0x4bb   : > { %v14347_v42 = vpop.eup %14346  ;;  %7756 = vmatpush1.bf16.msra.mxu0 %v14028_v39  ;;  %8142 = vmatpush1.bf16.msra.mxu1 %v14031_v40  ;;  %v14046_v39 = vld [vmem:[#allocation10 + $0x2d8] ss:$28 sps:$4 sm:$0xff]  }
 0x4bc   : > { %v5074_v37 = vpop.permute.xlu0 %5073  ;;  %7757 = vmatprep.subr.bf16.mxu0 %v14036_v11  ;;  %8143 = vmatprep.subr.bf16.mxu1 %v14039_v16  ;;  %v14048_v40 = vld [vmem:[#allocation10 + $0x2dc] ss:$28 sps:$4 sm:$0xff]  }
 0x4bd   : > { %v5169_v45 = vmul.f32 %v5074_v37, %v4913_v33  ;;  %v14040_v33 = vld [vmem:[#allocation10 + $0x2a0] ss:$28 sps:$4 sm:$0xff]  }
 0x4be   : > { %5131 = vrot.lane.b32.xlu1 %v14347_v42, %s15513_s8  ;;  %v14049_v42 = vld [vmem:[#allocation10 + $0x2e0] ss:$28 sps:$4 sm:$0xff]  }
 0x4bf   : > { %v5201_v7 = vadd.f32 %v5169_v45, %v16119_v44  ;;  %7758 = vmatpush1.bf16.msra.mxu0 %v14034_v18  ;;  %8144 = vmatpush1.bf16.msra.mxu1 %v14037_v19  ;;  %v14051_v45 = vld [vmem:[#allocation10 + $0x2e4] ss:$28 sps:$4 sm:$0xff]   ;;  %v14057_v11 = vld [vmem:[#allocation10 + $0x31c] ss:$28 sps:$4 sm:$0xff]  }
 0x4c0   : > { %v5076_v8 = vpop.permute.xlu0 %5075  ;;  %7759 = vmatprep.subr.bf16.mxu0 %v14042_v28  ;;  %8145 = vmatprep.subr.bf16.mxu1 %v14045_v59  ;;  %v14055_v18 = vld [vmem:[#allocation10 + $0x318] ss:$28 sps:$4 sm:$0xff]   ;;  %v4918_v28 = vld [vmem:[%s16291_s15 + $0x28] sm:$0xff] }
 0x4c1   : > { %v5170_v17 = vmul.f32 %v5076_v8, %v4914_v49  ;;  %5236 = vperm.xlu0 %13391, %v5201_v7   ;;  %v14349_v60 = vpop.eup %14348  ;;  %v14054_v8 = vld [vmem:[#allocation10 + $0x314] ss:$28 sps:$4 sm:$0xff]  }
 0x4c2   : > { %5546 = vperm.xlu1 %13392, %v5201_v7  }
 0x4c3   : > { %v5202_v32 = vadd.f32 %v5170_v17, %v16123_v47  ;;  %7760 = vmatpush1.bf16.msra.mxu0 %v14040_v33  ;;  %8146 = vmatpush1.bf16.msra.mxu1 %v14043_v34  ;;  %v14351_v16 = vpop.eup %14350  ;;  %v14052_v17 = vld [vmem:[#allocation10 + $0x310] ss:$28 sps:$4 sm:$0xff]  }
 0x4c4   : > { %v5078_v24 = vpop.permute.xlu1 %5077  ;;  %7761 = vmatprep.subr.bf16.mxu0 %v14048_v40  ;;  %8147 = vmatprep.subr.bf16.mxu1 %v14051_v45 }
 0x4c5   : > { %v5171_v30 = vmul.f32 %v5078_v24, %v4915_v57  ;;  %13394 = vset.pattern.permute.xlu0 %v18917_v12  ;;  %v14063_v24 = vld [vmem:[#allocation10 + $0x354] ss:$28 sps:$4 sm:$0xff]  }
 0x4c6   : > { %5133 = vrot.lane.b32.xlu1 %v14349_v60, %s15513_s8  ;;  %5550 = vperm.xlu0 %13394, %v5202_v32   ;;  %v14058_v60 = vld [vmem:[#allocation10 + $0x348] ss:$28 sps:$4 sm:$0xff]  }
 0x4c7   : > { %13393 = vset.pattern.permute.xlu1 %v18919_v4  ;;  %v5203_v41 = vadd.f32 %v5171_v30, %v16127_v10  ;;  %7762 = vmatpush1.bf16.msra.mxu0 %v14046_v39  ;;  %v14061_v30 = vld [vmem:[#allocation10 + $0x350] ss:$28 sps:$4 sm:$0xff]  }
 0x4c8   : > { %v5080_v37 = vpop.permute.xlu1 %5079  ;;  %8148 = vmatpush1.bf16.msra.mxu1 %v14049_v42  ;;  %7763 = vmatprep.subr.bf16.mxu0 %v14054_v8 }
 0x4c9   : > { %v5172_v49 = vmul.f32 %v5080_v37, %v4916_v36  ;;  %8149 = vmatprep.subr.bf16.mxu1 %v14057_v11  ;;  %v4919_v36 = vld [vmem:[%s16291_s15 + $0x30] sm:$0xff] }
 0x4ca   : > { %13395 = vset.pattern.permute.xlu0 %v18919_v4  ;;  %5241 = vperm.xlu1 %13393, %v5202_v32   ;;  %v14060_v32 = vld [vmem:[#allocation10 + $0x34c] ss:$28 sps:$4 sm:$0xff]  }
 0x4cb   : > { %5246 = vperm.xlu0 %13395, %v5203_v41   ;;  %v5204_v19 = vadd.f32 %v5172_v49, %v16132_v14  ;;  %7764 = vmatpush1.bf16.msra.mxu0 %v14052_v17 }
 0x4cc   : > { %v5082_v7 = vpop.permute.xlu0 %5081  ;;  %8150 = vmatpush1.bf16.msra.mxu1 %v14055_v18  ;;  %7765 = vmatprep.subr.bf16.mxu0 %v14060_v32 }
 0x4cd   : > { %v5173_v57 = vmul.f32 %v5082_v7, %v4917_v2  ;;  %8151 = vmatprep.subr.bf16.mxu1 %v14063_v24  ;;  %v4921_v2 = vld [vmem:[%s16291_s15 + $0x40] sm:$0xff] }
 0x4ce   : > { %5135 = vrot.lane.b32.xlu1 %v14351_v16, %s15513_s8  ;;  %v5084_v59 = vpop.permute.xlu1 %5083  ;;  %v4922_v16 = vld [vmem:[%s16291_s15 + $0x48] sm:$0xff]  ;;  %s18854_s8 = scalar_lea.hbm %s18911_s7, %s13281_s18 }
 0x4cf   : > { %13398 = vset.pattern.permute.xlu0 %v18917_v12  ;;  %13396 = vset.pattern.permute.xlu1 %v18917_v12  ;;  %v5205_v33 = vadd.f32 %v5173_v57, %v16136_v29  ;;  %v5174_v34 = vmul.f32 %v5084_v59, %v4918_v28  ;;  %v4923_v57 = vld [vmem:[%s16291_s15 + $0x50] sm:$0xff]  ;;  %v4924_v59 = vld [vmem:[%s16291_s15 + $0x58] sm:$0xff] }
 0x4d0   : > { %5558 = vperm.xlu0 %13398, %v5204_v19   ;;  %7766 = vmatpush1.bf16.msra.mxu0 %v14058_v60 }
 0x4d1   : > { %8152 = vmatpush1.bf16.msra.mxu1 %v14061_v30  ;;  %v5206_v39 = vadd.f32 %v5174_v34, %v16141_v31  ;;  %v4925_v34 = vld [vmem:[%s16291_s15 + $0x60] sm:$0xff] }
 0x4d2   : > { %5554 = vperm.xlu1 %13396, %v5203_v41   ;;  %v4920_v41 = vld [vmem:[%s16291_s15 + $0x38] sm:$0xff] }
 0x4d4   : > { %13399 = vset.pattern.permute.xlu0 %v18919_v4  ;;  %v5086_v37 = vpop.permute.xlu0 %5085 }
 0x4d5   : > { %5256 = vperm.xlu0 %13399, %v5205_v33   ;;  %v5175_v40 = vmul.f32 %v5086_v37, %v4919_v36 }
 0x4d6   : > { %13397 = vset.pattern.permute.xlu1 %v18919_v4  ;;  %v5088_v42 = vpop.permute.xlu1 %5087 }
 0x4d7   : > { %5251 = vperm.xlu1 %13397, %v5204_v19   ;;  %v5207_v45 = vadd.f32 %v5175_v40, %v16146_v62  ;;  %v5176_v49 = vmul.f32 %v5088_v42, %v4920_v41  ;;  %v4926_v42 = vld [vmem:[%s16291_s15 + $0x68] sm:$0xff] }
 0x4d9   : > { %13402 = vset.pattern.permute.xlu0 %v18917_v12  ;;  %v5208_v8 = vadd.f32 %v5176_v49, %v16151_v1 }
 0x4da   : > { %5566 = vperm.xlu0 %13402, %v5206_v39  }
 0x4db   : > { %13400 = vset.pattern.permute.xlu1 %v18917_v12 }
 0x4dc   : > { %5562 = vperm.xlu1 %13400, %v5205_v33   ;;  %v5090_v7 = vpop.permute.xlu0 %5089 }
 0x4dd   : > { %v5177_v11 = vmul.f32 %v5090_v7, %v4921_v2  ;;  %v4927_v7 = vld [vmem:[%s16291_s15 + $0x70] sm:$0xff] }
 0x4de   : > { %13403 = vset.pattern.permute.xlu0 %v18919_v4  ;;  %v5092_v17 = vpop.permute.xlu1 %5091 }
 0x4df   : > { %5266 = vperm.xlu0 %13403, %v5207_v45   ;;  %v5209_v18 = vadd.f32 %v5177_v11, %v16156_v23  ;;  %v5178_v19 = vmul.f32 %v5092_v17, %v4922_v16 }
 0x4e0   : > { %13401 = vset.pattern.permute.xlu1 %v18919_v4 }
 0x4e1   : > { %5261 = vperm.xlu1 %13401, %v5206_v39   ;;  %v5210_v24 = vadd.f32 %v5178_v19, %v16161_v26 }
 0x4e3   : > { %13406 = vset.pattern.permute.xlu0 %v18917_v12 }
 0x4e4   : > { %5574 = vperm.xlu0 %13406, %v5208_v8   ;;  %v5094_v32 = vpop.permute.xlu0 %5093 }
 0x4e5   : > { %13404 = vset.pattern.permute.xlu1 %v18917_v12  ;;  %v5179_v28 = vmul.f32 %v5094_v32, %v4923_v57  ;;  %v14066_v57 = vld [vmem:[#allocation10 + $0x38c] ss:$28 sps:$4 sm:$0xff]  }
 0x4e6   : > { %5570 = vperm.xlu1 %13404, %v5207_v45   ;;  %v5096_v60 = vpop.permute.xlu1 %5095  ;;  %8314 = vmatprep.subr.bf16.mxu1 %v14066_v57 }
 0x4e7   : > { %v5211_v30 = vadd.f32 %v5179_v28, %v16166_v46  ;;  %v5180_v33 = vmul.f32 %v5096_v60, %v4924_v59  ;;  %v4929_v59 = vld [vmem:[%s16291_s15 + $0x80] sm:$0xff] }
 0x4e8   : > { %13407 = vset.pattern.permute.xlu0 %v18919_v4 }
 0x4e9   : > { %5276 = vperm.xlu0 %13407, %v5209_v18   ;;  %v5212_v39 = vadd.f32 %v5180_v33, %v16171_v54 }
 0x4ea   : > { %13405 = vset.pattern.permute.xlu1 %v18919_v4 }
 0x4eb   : > { %5271 = vperm.xlu1 %13405, %v5208_v8  }
 0x4ec   : > { %v5098_v36 = vpop.permute.xlu0 %5097 }
 0x4ed   : > { %13410 = vset.pattern.permute.xlu0 %v18917_v12  ;;  %v5181_v40 = vmul.f32 %v5098_v36, %v4925_v34  ;;  %v4930_v36 = vld [vmem:[%s16291_s15 + $0x88] sm:$0xff] }
 0x4ee   : > { %5582 = vperm.xlu0 %13410, %v5210_v24   ;;  %v5100_v37 = vpop.permute.xlu1 %5099 }
 0x4ef   : > { %13408 = vset.pattern.permute.xlu1 %v18917_v12  ;;  %v5213_v45 = vadd.f32 %v5181_v40, %v16176_v20  ;;  %v5182_v49 = vmul.f32 %v5100_v37, %v4926_v42 }
 0x4f0   : > { %5578 = vperm.xlu1 %13408, %v5209_v18   ;;  %v4928_v18 = vld [vmem:[%s16291_s15 + $0x78] sm:$0xff] }
 0x4f1   : > { %v5214_v11 = vadd.f32 %v5182_v49, %v16181_v58 }
 0x4f2   : > { %13411 = vset.pattern.permute.xlu0 %v18919_v4 }
 0x4f3   : > { %5286 = vperm.xlu0 %13411, %v5211_v30  }
 0x4f4   : > { %13409 = vset.pattern.permute.xlu1 %v18919_v4  ;;  %v5102_v8 = vpop.permute.xlu0 %5101 }
 0x4f5   : > { %5281 = vperm.xlu1 %13409, %v5210_v24   ;;  %v5183_v17 = vmul.f32 %v5102_v8, %v4927_v7  ;;  %v14069_v24 = vld [vmem:[#allocation10 + $0x384] ss:$28 sps:$4 sm:$0xff]  }
 0x4f6   : > { %v5104_v41 = vpop.permute.xlu1 %5103  ;;  %7928 = vmatprep.subr.bf16.mxu0 %v14069_v24  ;;  %v4935_v24 = vld [vmem:[%s16291_s15 + $0xb0] sm:$0xff] }
 0x4f7   : > { %13414 = vset.pattern.permute.xlu0 %v18917_v12  ;;  %v5215_v32 = vadd.f32 %v5183_v17, %v16186_v43  ;;  %v5184_v28 = vmul.f32 %v5104_v41, %v4928_v18  ;;  %v4931_v41 = vld [vmem:[%s16291_s15 + $0x90] sm:$0xff]  ;;  %v4932_v17 = vld [vmem:[%s16291_s15 + $0x98] sm:$0xff] }
 0x4f8   : > { %5590 = vperm.xlu0 %13414, %v5212_v39  }
 0x4f9   : > { %13412 = vset.pattern.permute.xlu1 %v18917_v12 }
 0x4fa   : > { %5586 = vperm.xlu1 %13412, %v5211_v30   ;;  %v5216_v30 = vadd.f32 %v5184_v28, %v16191_v50 }
 0x4fc   : > { %v5106_v2 = vpop.permute.xlu1 %5105  ;;  %13415 = vset.pattern.permute.xlu0 %v18919_v4 }
 0x4fd   : > { %5296 = vperm.xlu0 %13415, %v5213_v45   ;;  %v5185_v33 = vmul.f32 %v5106_v2, %v4929_v59  ;;  %v4933_v2 = vld [vmem:[%s16291_s15 + $0xa0] sm:$0xff] }
 0x4fe   : > { %13413 = vset.pattern.permute.xlu1 %v18919_v4 }
 0x4ff   : > { %5291 = vperm.xlu1 %13413, %v5212_v39   ;;  %v5217_v37 = vadd.f32 %v5185_v33, %v16196_v21 }
 0x500   : > { %v5108_v16 = vpop.permute.xlu1 %5107 }
 0x501   : > { %13418 = vset.pattern.permute.xlu0 %v18917_v12  ;;  %v5186_v39 = vmul.f32 %v5108_v16, %v4930_v36  ;;  %v4934_v16 = vld [vmem:[%s16291_s15 + $0xa8] sm:$0xff] }
 0x502   : > { %5598 = vperm.xlu0 %13418, %v5214_v11  }
 0x503   : > { %13416 = vset.pattern.permute.xlu1 %v18917_v12  ;;  %v5218_v42 = vadd.f32 %v5186_v39, %v16201_v25  ;;  %v4938_v39 = vld [vmem:[%s16291_s15 + $0xc8] sm:$0xff] }
 0x504   : > { %v5110_v19 = vpop.permute.xlu1 %5109  ;;  %5594 = vperm.xlu1 %13416, %v5213_v45  }
 0x505   : > { %v5187_v45 = vmul.f32 %v5110_v19, %v4931_v41 }
 0x506   : > { %13419 = vset.pattern.permute.xlu0 %v18919_v4 }
 0x507   : > { %5306 = vperm.xlu0 %13419, %v5215_v32   ;;  %v5219_v7 = vadd.f32 %v5187_v45, %v16206_v63  ;;  %v4939_v45 = vld [vmem:[%s16291_s15 + $0xd0] sm:$0xff] }
 0x508   : > { %v5112_v60 = vpop.permute.xlu1 %5111  ;;  %13417 = vset.pattern.permute.xlu1 %v18919_v4 }
 0x509   : > { %5301 = vperm.xlu1 %13417, %v5214_v11  }
 0x50b   : > { %13422 = vset.pattern.permute.xlu0 %v18917_v12 }
 0x50c   : > { %v5114_v34 = vpop.permute.xlu1 %5113  ;;  %5606 = vperm.xlu0 %13422, %v5216_v30  }
 0x50d   : > { %13420 = vset.pattern.permute.xlu1 %v18917_v12  ;;  %v5189_v11 = vmul.f32 %v5114_v34, %v4933_v2  ;;  %v4937_v34 = vld [vmem:[%s16291_s15 + $0xc0] sm:$0xff] }
 0x50e   : > { %5602 = vperm.xlu1 %13420, %v5215_v32   ;;  %v5188_v32 = vmul.f32 %v5112_v60, %v4932_v17 }
 0x50f   : > { %v5221_v19 = vadd.f32 %v5189_v11, %v16216_v35  ;;  %v4936_v11 = vld [vmem:[%s16291_s15 + $0xb8] sm:$0xff] }
 0x510   : > { %v5116_v40 = vpop.permute.xlu1 %5115  ;;  %13423 = vset.pattern.permute.xlu0 %v18919_v4  ;;  %v5220_v33 = vadd.f32 %v5188_v32, %v16211_v5 }
 0x511   : > { %5316 = vperm.xlu0 %13423, %v5217_v37   ;;  %v5190_v57 = vmul.f32 %v5116_v40, %v4934_v16  ;;  %v4941_v16 = vld [vmem:[%s16291_s15 + $0xe0] sm:$0xff] }
 0x512   : > { %13421 = vset.pattern.permute.xlu1 %v18919_v4 }
 0x513   : > { %5311 = vperm.xlu1 %13421, %v5216_v30   ;;  %v5222_v59 = vadd.f32 %v5190_v57, %v16221_v38 }
 0x514   : > { %v5118_v49 = vpop.permute.xlu1 %5117 }
 0x515   : > { %13426 = vset.pattern.permute.xlu0 %v18917_v12  ;;  %v5191_v30 = vmul.f32 %v5118_v49, %v4935_v24 }
 0x516   : > { %5614 = vperm.xlu0 %13426, %v5218_v42  }
 0x517   : > { %13424 = vset.pattern.permute.xlu1 %v18917_v12 }
 0x518   : > { %v5120_v8 = vpop.permute.xlu1 %5119  ;;  %5610 = vperm.xlu1 %13424, %v5217_v37   ;;  %v5223_v37 = vadd.f32 %v5191_v30, %v16226_v22 }
 0x51a   : > { %5618 = vperm.xlu0 %13426, %v5219_v7  }
 0x51c   : > { %v5122_v18 = vpop.permute.xlu1 %5121  ;;  %13425 = vset.pattern.permute.xlu1 %v18919_v4 }
 0x51d   : > { %5321 = vperm.xlu1 %13425, %v5218_v42   ;;  %v5193_v60 = vmul.f32 %v5122_v18, %v4937_v34  ;;  %v5192_v18 = vmul.f32 %v5120_v8, %v4936_v11  ;;  %v523_v11 = vld [vmem:[#allocation11 + $0x2] ss:$4 sm:$0xf] }
 0x51e   : > { %13428 = vset.pattern.permute.xlu0 %v18919_v4  ;;  %v16448_v51 = vrot.slane %v523_v11, %v15968_v53  ;;  %v16454_v58 = vrot.slane %v523_v11, %v15971_v55 }
 0x51f   : > { %5336 = vperm.xlu0 %13428, %v5221_v19   ;;  %v5225_v40 = vadd.f32 %v5193_v60, %v16236_v9  ;;  %v5224_v24 = vadd.f32 %v5192_v18, %v16231_v27  ;;  %v4940_v27 = vld [vmem:[%s16291_s15 + $0xd8] sm:$0xff] }
 0x520   : > { %v5124_v28 = vpop.permute.xlu1 %5123 }
 0x521   : > { %5326 = vperm.xlu1 %13425, %v5219_v7   ;;  %v5194_v42 = vmul.f32 %v5124_v28, %v4938_v39 }
 0x523   : > { %13430 = vset.pattern.permute.xlu0 %v18917_v12  ;;  %v16389_v49 = vadd.f32 %v5194_v42, %v16241_v15 }
 0x524   : > { %5630 = vperm.xlu0 %13430, %v5222_v59   ;;  %v5126_v36 = vpop.permute.xlu1 %5125 }
 0x525   : > { %5331 = vperm.xlu1 %13425, %v5220_v33   ;;  %v5195_v2 = vmul.f32 %v5126_v36, %v4939_v45 }
 0x527   : > { %v16397_v17 = vadd.f32 %v5195_v2, %v16246_v0 }
 0x528   : > { %5634 = vperm.xlu0 %13430, %v5223_v37   ;;  %v16384_v41 = vpop.permute.xlu1 %5127 }
 0x529   : > { %13427 = vset.pattern.permute.xlu1 %v18917_v12 }
 0x52a   : > { %5622 = vperm.xlu1 %13427, %v5220_v33   ;;  %v5233_v33 = vld [vmem:[#allocation8] ss:$2 sm:$0xf] }
 0x52b   : > { %v16408_v8 = vrot.slane %v5233_v33, %v15965_v52  ;;  %v16411_v34 = vrot.slane %v5233_v33, %v15968_v53  ;;  %v16425_v39 = vrot.slane %v5233_v33, %v15971_v55 }
 0x52c   : > { %13432 = vset.pattern.permute.xlu0 %v18919_v4  ;;  %v5130_v7 = vpop.permute.xlu1 %5129 }
 0x52d   : > { %5356 = vperm.xlu0 %13432, %v5225_v40   ;;  %v5197_v57 = vmul.f32 %v5130_v7, %v4941_v16 }
 0x52e   : > { %5626 = vperm.xlu1 %13427, %v5221_v19   ;;  %v4942_v19 = vld [vmem:[%s16291_s15 + $0xe8] sm:$0xff] }
 0x52f   : > { %v16403_v28 = vadd.f32 %v5197_v57, %v16257_v48 }
 0x530   : > { %v5132_v32 = vpop.permute.xlu1 %5131 }
 0x531   : > { %13434 = vset.pattern.permute.xlu0 %v18917_v12  ;;  %v5198_v30 = vmul.f32 %v5132_v32, %v4942_v19  ;;  %v16436_v19 = vrot.slane %v5233_v33, %v15974_v56 }
 0x532   : > { %13429 = vset.pattern.permute.xlu1 %v18919_v4  ;;  %5646 = vperm.xlu0 %13434, %v16389_v49  }
 0x533   : > { %5341 = vperm.xlu1 %13429, %v5222_v59   ;;  %v5544_v59 = vld [vmem:[#allocation8 + $0x1] ss:$2 sm:$0xf]  ;;  %v16414_v36 = vadd.f32 %v5198_v30, %v16262_v3 }
 0x534   : > { %v16420_v60 = vrot.slane %v5544_v59, %v15968_v53  ;;  %v16428_v42 = vrot.slane %v5544_v59, %v15971_v55 }
 0x536   : > { %5650 = vperm.xlu0 %13434, %v16397_v17  }
 0x537   : > { %5346 = vperm.xlu1 %13429, %v5223_v37   ;;  %v16417_v37 = vrot.slane %v5544_v59, %v15965_v52 }
 0x53a   : > { %13436 = vset.pattern.permute.xlu0 %v18919_v4  ;;  %v16445_v4 = vrot.slane %v523_v11, %v15965_v52  ;;  %v5196_v52 = vmul.f32 %v16384_v41, %v4940_v27 }
 0x53b   : > { %5351 = vperm.xlu1 %13429, %v5224_v24   ;;  %5376 = vperm.xlu0 %13436, %v16403_v28  }
 0x53c   : > { %v5228_v54 = vadd.f32 %v5196_v52, %v16251_v6 }
 0x53f   : > { %13431 = vset.pattern.permute.xlu1 %v18917_v12  ;;  %13438 = vset.pattern.permute.xlu0 %v18917_v12  ;;  %v4943_v12 = vld [vmem:[%s16291_s15 + $0xf0] sm:$0xff] }
 0x540   : > { %5638 = vperm.xlu1 %13431, %v5224_v24   ;;  %5662 = vperm.xlu0 %13438, %v16414_v36   ;;  %v5237_v45 = vpop.permute.xlu0 %5236  ;;  %v16440_v24 = vrot.slane %v5544_v59, %v15974_v56 }
 0x541   : > { %v5415_v2 = vmul.f32 %v16408_v8, %v5237_v45  ;;  %v5417_v7 = vmul.f32 %v16411_v34, %v5237_v45  ;;  %v5547_v16 = vpop.permute.xlu1 %5546  ;;  %v5416_v32 = vmul.f32 %v16425_v39, %v5237_v45  ;;  %v5418_v25 = vmul.f32 %v16436_v19, %v5237_v45 }
 0x542   : > { %v5694_v18 = vmul.f32 %v16417_v37, %v5547_v16  ;;  %v5696_v57 = vmul.f32 %v16420_v60, %v5547_v16  ;;  %v5695_v30 = vmul.f32 %v16428_v42, %v5547_v16  ;;  %v5697_v59 = vmul.f32 %v16440_v24, %v5547_v16 }
 0x544   : > { %v5822_v3 = vadd.f32 %v5694_v18, %v5415_v2  ;;  %v5824_v15 = vadd.f32 %v5696_v57, %v5417_v7  ;;  %5642 = vperm.xlu1 %13431, %v5225_v40   ;;  %v5823_v50 = vadd.f32 %v5695_v30, %v5416_v32  ;;  %v19076_v7 = vmov 0   ;;  %v4944_v30 = vld [vmem:[%s16291_s15 + $0xf8] sm:$0xff] }
 0x545   : > { %v5134_v33 = vpop.permute.xlu1 %5133  ;;  %v5551_v38 = vpop.permute.xlu0 %5550  ;;  %v5825_v32 = vadd.f32 %v5697_v59, %v5418_v25 }
 0x546   : > { %v5199_v5 = vmul.f32 %v5134_v33, %v4943_v12  ;;  %v5971_v53 = vadd.f32 %v16445_v4, %v5822_v3  ;;  %v5973_v2 = vadd.f32 %v16448_v51, %v5824_v15  ;;  %v5698_v12 = vmul.f32 %v16417_v37, %v5551_v38 }
 0x547   : > { %v5699_v45 = vmul.f32 %v16428_v42, %v5551_v38  ;;  %v5700_v16 = vmul.f32 %v16420_v60, %v5551_v38  ;;  %v5701_v18 = vmul.f32 %v16440_v24, %v5551_v38  ;;  %v5972_v33 = vadd.f32 %v16454_v58, %v5823_v50 }
 0x548   : > { %v16460_v40 = vadd.f32 %v5199_v5, %v16279_v61  ;;  %13433 = vset.pattern.permute.xlu1 %v19076_v7  ;;  %v16476_v38 = vrot.slane %v523_v11, %v15974_v56  ;;  %v6099_v0 = vmax.f32 %v5971_v53, 0.0  ;;  %v6101_v26 = vmax.f32 %v5973_v2, 0.0 }
 0x549   : > { %v5242_v57 = vpop.permute.xlu1 %5241  ;;  %5361 = vperm.xlu1 %13433, %v16389_v49   ;;  %v6100_v2 = vmax.f32 %v5972_v33, 0.0 }
 0x54a   : > { %v5419_v27 = vmul.f32 %v16408_v8, %v5242_v57  ;;  %v5420_v15 = vmul.f32 %v16425_v39, %v5242_v57  ;;  %v5421_v5 = vmul.f32 %v16411_v34, %v5242_v57  ;;  %v5422_v3 = vmul.f32 %v16436_v19, %v5242_v57  ;;  %5666 = vperm.xlu0 %13438, %v16460_v40   ;;  %v5247_v41 = vpop.permute.xlu0 %5246 }
 0x54b   : > { %v5423_v11 = vmul.f32 %v16408_v8, %v5247_v41  ;;  %v5424_v52 = vmul.f32 %v16425_v39, %v5247_v41 }
 0x54c   : > { %v5826_v55 = vadd.f32 %v5698_v12, %v5419_v27  ;;  %v5827_v49 = vadd.f32 %v5699_v45, %v5420_v15  ;;  %v5828_v61 = vadd.f32 %v5700_v16, %v5421_v5  ;;  %v5829_v48 = vadd.f32 %v5701_v18, %v5422_v3 }
 0x54d   : > { %v5136_v9 = vpop.permute.xlu1 %5135  ;;  %5366 = vperm.xlu1 %13433, %v16397_v17   ;;  %v5974_v12 = vadd.f32 %v16476_v38, %v5825_v32 }
 0x54e   : > { %v5975_v57 = vadd.f32 %v16445_v4, %v5826_v55  ;;  %v5977_v25 = vadd.f32 %v16448_v51, %v5828_v61  ;;  %v5200_v59 = vmul.f32 %v5136_v9, %v4944_v30  ;;  %10815 = vrot.lane.b32.xlu0 %v16119_v44, %s15514_s19  ;;  %v5976_v50 = vadd.f32 %v16454_v58, %v5827_v49 }
 0x54f   : > { %v5559_v53 = vpop.permute.xlu0 %5558  ;;  %v5425_v55 = vmul.f32 %v16411_v34, %v5247_v41  ;;  %v5978_v9 = vadd.f32 %v16476_v38, %v5829_v48  ;;  %v5426_v61 = vmul.f32 %v16436_v19, %v5247_v41 }
 0x550   : > { %v6103_v17 = vmax.f32 %v5975_v57, 0.0  ;;  %v6105_v45 = vmax.f32 %v5977_v25, 0.0  ;;  %v16492_v44 = vadd.f32 %v5200_v59, %v16284_v13  ;;  %v5706_v16 = vmul.f32 %v16417_v37, %v5559_v53 }
 0x551   : > { %v5555_v18 = vpop.permute.xlu1 %5554  ;;  %5371 = vperm.xlu1 %13433, %v5228_v54   ;;  %v6104_v27 = vmax.f32 %v5976_v50, 0.0  ;;  %v5707_v48 = vmul.f32 %v16428_v42, %v5559_v53  ;;  %v5708_v49 = vmul.f32 %v16420_v60, %v5559_v53  ;;  %v6106_v50 = vmax.f32 %v5978_v9, 0.0 }
 0x552   : > { %v5702_v15 = vmul.f32 %v16417_v37, %v5555_v18  ;;  %v5703_v5 = vmul.f32 %v16428_v42, %v5555_v18  ;;  %v5704_v3 = vmul.f32 %v16420_v60, %v5555_v18  ;;  %v5705_v32 = vmul.f32 %v16440_v24, %v5555_v18  ;;  %10819 = vrot.lane.b32.xlu0 %v16127_v10, %s15514_s19  ;;  %v14064_v10 = vld [vmem:[#allocation10 + $0x388] ss:$28 sps:$4 sm:$0xff]  }
 0x553   : > { %v16502_v41 = vpack.c.bf16 %v6104_v27, %v6100_v2  ;;  %v16504_v30 = vpack.c.bf16 %v6103_v17, %v6099_v0  ;;  %v16506_v33 = vpack.c.bf16 %v6105_v45, %v6101_v26  ;;  %v5709_v56 = vmul.f32 %v16440_v24, %v5559_v53  ;;  %v14067_v53 = vld [vmem:[#allocation10 + $0x380] ss:$28 sps:$4 sm:$0xff]  }
 0x554   : > { %v5830_v57 = vadd.f32 %v5702_v15, %v5423_v11  ;;  %v5831_v25 = vadd.f32 %v5703_v5, %v5424_v52  ;;  %v5257_v59 = vpop.permute.xlu0 %5256  ;;  %v16510_v18 = vadd.f32 %v5704_v3, %v5425_v55  ;;  %v5833_v13 = vadd.f32 %v5705_v32, %v5426_v61  ;;  %v14072_v27 = vld [vmem:[#allocation10 + $0x3c4] ss:$28 sps:$4 sm:$0xff]  }
 0x555   : > { %19077 = vst [vmem:[#allocation42_spill] sm:$0xff] %v16502_v41  ;;  %19078 = vst [vmem:[#allocation43_spill] sm:$0xff] %v16504_v30  ;;  %7767 = vmatprep.mubr.bf16.mxu0 %v16502_v41  ;;  %8153 = vmatprep.mubr.bf16.mxu1 %v16502_v41  ;;  %v5431_v0 = vmul.f32 %v16408_v8, %v5257_v59  ;;  %v5432_v26 = vmul.f32 %v16425_v39, %v5257_v59  ;;  %v19080_v2 = vmov 1   ;;  %v6102_v17 = vmax.f32 %v5974_v12, 0.0 }
 0x556   : > { %19079 = vst [vmem:[#allocation44_spill] sm:$0xff] %v16506_v33  ;;  %13435 = vset.pattern.permute.xlu1 %v19080_v2  ;;  %7768 = vmatmul.mubr.bf16.vlgmr.msra.gmra.mrb[128].mxu0 %v16504_v30  ;;  %v5252_v11 = vpop.permute.xlu1 %5251  ;;  %v16519_v52 = vadd.f32 %v16454_v58, %v5831_v25  ;;  %v5433_v15 = vmul.f32 %v16411_v34, %v5257_v59  ;;  %v14070_v33 = vld [vmem:[#allocation10 + $0x3c0] ss:$28 sps:$4 sm:$0xff]  }
 0x557   : > { %8154 = vmatmul.mubr.bf16.vlgmr.msra.gmra.mrb[128].mxu1 %v16504_v30  ;;  %v5427_v45 = vmul.f32 %v16408_v8, %v5252_v11  ;;  %v5428_v55 = vmul.f32 %v16425_v39, %v5252_v11  ;;  %v5429_v9 = vmul.f32 %v16411_v34, %v5252_v11  ;;  %v5430_v61 = vmul.f32 %v16436_v19, %v5252_v11  ;;  %v14075_v11 = vld [vmem:[#allocation10 + $0x3bc] ss:$28 sps:$4 sm:$0xff]  }
 0x558   : > { %5654 = vperm.xlu1 %13435, %v5228_v54   ;;  %10823 = vrot.lane.b32.xlu0 %v16136_v29, %s15514_s19  ;;  %v16530_v5 = vadd.f32 %v16445_v4, %v5830_v57  ;;  %v16532_v12 = vpack.c.bf16 %v6106_v50, %v6102_v17  ;;  %v5434_v6 = vmul.f32 %v16436_v19, %v5257_v59  ;;  %v6108_v1 = vmax.f32 %v16519_v52, 0.0  ;;  %v14073_v29 = vld [vmem:[#allocation10 + $0x3b8] ss:$28 sps:$4 sm:$0xff]  }
 0x559   : > { %v5834_v3 = vadd.f32 %v5706_v16, %v5427_v45  ;;  %v5835_v32 = vadd.f32 %v5707_v48, %v5428_v55  ;;  %v5836_v25 = vadd.f32 %v5708_v49, %v5429_v9  ;;  %v5837_v30 = vadd.f32 %v5709_v56, %v5430_v61  ;;  %v5567_v41 = vpop.permute.xlu0 %5566  ;;  %8315 = vmatpush1.bf16.msra.mxu1 %v14064_v10  ;;  %v14078_v57 = vld [vmem:[#allocation10 + $0x3fc] ss:$28 sps:$4 sm:$0xff]   ;;  %v14081_v59 = vld [vmem:[#allocation10 + $0x3f4] ss:$28 sps:$4 sm:$0xff]  }
 0x55a   : > { %19081 = vst [vmem:[#allocation45_spill] sm:$0xff] %v16532_v12  ;;  %v5714_v54 = vmul.f32 %v16417_v37, %v5567_v41  ;;  %7929 = vmatpush1.bf16.msra.mxu0 %v14067_v53  ;;  %v16538_v50 = vadd.f32 %v16476_v38, %v5833_v13  ;;  %v5715_v48 = vmul.f32 %v16428_v42, %v5567_v41  ;;  %v6107_v17 = vmax.f32 %v16530_v5, 0.0  ;;  %v14076_v12 = vld [vmem:[#allocation10 + $0x3f8] ss:$28 sps:$4 sm:$0xff]  }
 0x55b   : > { %v5983_v16 = vadd.f32 %v16445_v4, %v5834_v3  ;;  %v5984_v56 = vadd.f32 %v16454_v58, %v5835_v32  ;;  %v5716_v49 = vmul.f32 %v16420_v60, %v5567_v41  ;;  %v5563_v10 = vpop.permute.xlu1 %5562  ;;  %8316 = vmatprep.subr.bf16.mxu1 %v14072_v27  ;;  %v16552_v45 = vadd.f32 %v16448_v51, %v5836_v25 }
 0x55c   : > { %5658 = vperm.xlu1 %13435, %v16403_v28   ;;  %10827 = vrot.lane.b32.xlu0 %v16146_v62, %s15514_s19  ;;  %v5710_v52 = vmul.f32 %v16417_v37, %v5563_v10  ;;  %v5711_v13 = vmul.f32 %v16428_v42, %v5563_v10  ;;  %v5712_v53 = vmul.f32 %v16420_v60, %v5563_v10 }
 0x55d   : > { %v5717_v55 = vmul.f32 %v16440_v24, %v5567_v41  ;;  %v5713_v9 = vmul.f32 %v16440_v24, %v5563_v10  ;;  %v6112_v61 = vmax.f32 %v5984_v56, 0.0  ;;  %8317 = vmatpush1.bf16.msra.mxu1 %v14070_v33  ;;  %7930 = vmatprep.subr.bf16.mxu0 %v14075_v11  ;;  %v6111_v32 = vmax.f32 %v5983_v16, 0.0  ;;  %v14079_v33 = vld [vmem:[#allocation10 + $0x3f0] ss:$28 sps:$4 sm:$0xff]  }
 0x55e   : > { %v5838_v28 = vadd.f32 %v5710_v52, %v5431_v0  ;;  %v5839_v62 = vadd.f32 %v5711_v13, %v5432_v26  ;;  %v5840_v27 = vadd.f32 %v5712_v53, %v5433_v15  ;;  %v5267_v3 = vpop.permute.xlu0 %5266  ;;  %7931 = vmatpush1.bf16.msra.mxu0 %v14073_v29  ;;  %8318 = vmatprep.subr.bf16.mxu1 %v14078_v57  ;;  %v14084_v0 = vld [vmem:[#allocation10 + $0x434] ss:$28 sps:$4 sm:$0xff]   ;;  %v6110_v11 = vmax.f32 %v16538_v50, 0.0 }
 0x55f   : > { %v16557_v5 = vadd.f32 %v16476_v38, %v5837_v30  ;;  %v5841_v25 = vadd.f32 %v5713_v9, %v5434_v6  ;;  %v16560_v22 = vmul.f32 %v16408_v8, %v5267_v3  ;;  %v16563_v41 = vmul.f32 %v16425_v39, %v5267_v3  ;;  %7932 = vmatprep.subr.bf16.mxu0 %v14081_v59 }
 0x560   : > { %v16566_v26 = vadd.f32 %v16445_v4, %v5838_v28  ;;  %v16569_v15 = vadd.f32 %v16454_v58, %v5839_v62  ;;  %13437 = vset.pattern.permute.xlu1 %v19076_v7  ;;  %10831 = vrot.lane.b32.xlu0 %v16156_v23, %s15514_s19  ;;  %v5441_v6 = vmul.f32 %v16411_v34, %v5267_v3  ;;  %v5262_v30 = vpop.permute.xlu1 %5261 }
 0x561   : > { %v16577_v29 = vadd.f32 %v16448_v51, %v5840_v27  ;;  %v16580_v57 = vadd.f32 %v16476_v38, %v5841_v25  ;;  %5381 = vperm.xlu1 %13437, %v16414_v36   ;;  %v5435_v16 = vmul.f32 %v16408_v8, %v5262_v30  ;;  %v5436_v7 = vmul.f32 %v16425_v39, %v5262_v30  ;;  %v14082_v36 = vld [vmem:[#allocation10 + $0x430] ss:$28 sps:$4 sm:$0xff]  }
 0x562   : > { %v5437_v56 = vmul.f32 %v16411_v34, %v5262_v30  ;;  %v5438_v23 = vmul.f32 %v16436_v19, %v5262_v30  ;;  %v16587_v10 = vpack.c.bf16 %v6112_v61, %v6108_v1  ;;  %v16589_v59 = vpack.c.bf16 %v6111_v32, %v6107_v17  ;;  %8319 = vmatpush1.bf16.msra.mxu1 %v14076_v12  ;;  %v14087_v17 = vld [vmem:[#allocation10 + $0x42c] ss:$28 sps:$4 sm:$0xff]  }
 0x563   : > { %v5442_v50 = vmul.f32 %v16436_v19, %v5267_v3  ;;  %v5842_v52 = vadd.f32 %v5714_v54, %v5435_v16  ;;  %v5843_v13 = vadd.f32 %v5715_v48, %v5436_v7  ;;  %v5575_v53 = vpop.permute.xlu0 %5574  ;;  %7933 = vmatpush1.bf16.msra.mxu0 %v14079_v33  ;;  %8320 = vmatprep.subr.bf16.mxu1 %v14084_v0  ;;  %v6114_v9 = vmax.f32 %v16557_v5, 0.0  ;;  %v14090_v12 = vld [vmem:[#allocation10 + $0x46c] ss:$28 sps:$4 sm:$0xff]  }
 0x564   : > { %19082 = vst [vmem:[#allocation46_spill] sm:$0xff] %v16587_v10  ;;  %19083 = vst [vmem:[#allocation47_spill] sm:$0xff] %v16589_v59  ;;  %v5844_v28 = vadd.f32 %v5716_v49, %v5437_v56  ;;  %v5845_v62 = vadd.f32 %v5717_v55, %v5438_v23  ;;  %7777 = vmatprep.mubr.bf16.mxu0 %v16587_v10  ;;  %8163 = vmatprep.mubr.bf16.mxu1 %v16587_v10  ;;  %v6116_v27 = vmax.f32 %v16569_v15, 0.0  ;;  %v14085_v30 = vld [vmem:[#allocation10 + $0x428] ss:$28 sps:$4 sm:$0xff]  }
 0x565   : > { %v5722_v1 = vmul.f32 %v16417_v37, %v5575_v53  ;;  %v5991_v54 = vadd.f32 %v16445_v4, %v5842_v52  ;;  %v5992_v48 = vadd.f32 %v16454_v58, %v5843_v13  ;;  %10835 = vrot.lane.b32.xlu0 %v16166_v46, %s15514_s19  ;;  %7778 = vmatmul.mubr.bf16.gmra.mrb[132].mxu0 %v16589_v59  ;;  %v5571_v55 = vpop.permute.xlu1 %5570  ;;  %v6115_v46 = vmax.f32 %v16566_v26, 0.0 }
 0x566   : > { %v5723_v49 = vmul.f32 %v16428_v42, %v5575_v53  ;;  %v16605_v3 = vadd.f32 %v16448_v51, %v5844_v28  ;;  %v16608_v32 = vadd.f32 %v16476_v38, %v5845_v62  ;;  %8164 = vmatmul.mubr.bf16.gmra.mrb[132].mxu1 %v16589_v59  ;;  %5386 = vperm.xlu1 %13437, %v16460_v40   ;;  %v14088_v40 = vld [vmem:[#allocation10 + $0x468] ss:$28 sps:$4 sm:$0xff]  }
 0x567   : > { %v5724_v5 = vmul.f32 %v16420_v60, %v5575_v53  ;;  %v5725_v25 = vmul.f32 %v16440_v24, %v5575_v53  ;;  %v5718_v33 = vmul.f32 %v16417_v37, %v5571_v55  ;;  %v5719_v0 = vmul.f32 %v16428_v42, %v5571_v55  ;;  %8321 = vmatpush1.bf16.msra.mxu1 %v14082_v36  ;;  %v14093_v28 = vld [vmem:[#allocation10 + $0x464] ss:$28 sps:$4 sm:$0xff]  }
 0x568   : > { %v5720_v15 = vmul.f32 %v16420_v60, %v5571_v55  ;;  %v5721_v16 = vmul.f32 %v16440_v24, %v5571_v55  ;;  %v5277_v7 = vpop.permute.xlu0 %5276  ;;  %v6120_v56 = vmax.f32 %v5992_v48, 0.0  ;;  %v6119_v23 = vmax.f32 %v5991_v54, 0.0  ;;  %7934 = vmatprep.subr.bf16.mxu0 %v14087_v17  ;;  %8322 = vmatprep.subr.bf16.mxu1 %v14090_v12  ;;  %v14112_v59 = vld [vmem:[#allocation10 + $0x548] ss:$28 sps:$4 sm:$0xff]  }
 0x569   : > { %v16619_v52 = vpack.c.bf16 %v6114_v9, %v6110_v11  ;;  %v5846_v26 = vadd.f32 %v5718_v33, %v16560_v22  ;;  %v5847_v13 = vadd.f32 %v5719_v0, %v16563_v41  ;;  %10839 = vrot.lane.b32.xlu0 %v16176_v20, %s15514_s19  ;;  %v5447_v36 = vmul.f32 %v16408_v8, %v5277_v7 }
 0x56a   : > { %v5848_v53 = vadd.f32 %v5720_v15, %v5441_v6  ;;  %v5849_v62 = vadd.f32 %v5721_v16, %v5442_v50  ;;  %5391 = vperm.xlu1 %13437, %v16492_v44   ;;  %v5448_v17 = vmul.f32 %v16425_v39, %v5277_v7  ;;  %v5449_v12 = vmul.f32 %v16411_v34, %v5277_v7  ;;  %v5272_v9 = vpop.permute.xlu1 %5271 }
 0x56b   : > { %19084 = vst [vmem:[#allocation48_spill] sm:$0xff] %v16619_v52  ;;  %v5450_v11 = vmul.f32 %v16436_v19, %v5277_v7  ;;  %v16631_v22 = vadd.f32 %v16445_v4, %v5846_v26  ;;  %v16634_v41 = vadd.f32 %v16454_v58, %v5847_v13  ;;  %v5443_v6 = vmul.f32 %v16408_v8, %v5272_v9 }
 0x56c   : > { %v16637_v20 = vadd.f32 %v16448_v51, %v5848_v53  ;;  %7935 = vmatpush1.bf16.msra.mxu0 %v14085_v30  ;;  %v16641_v50 = vadd.f32 %v16476_v38, %v5849_v62  ;;  %v5444_v54 = vmul.f32 %v16425_v39, %v5272_v9  ;;  %v5445_v48 = vmul.f32 %v16411_v34, %v5272_v9 }
 0x56d   : > { %v5446_v55 = vmul.f32 %v16436_v19, %v5272_v9  ;;  %8323 = vmatpush1.bf16.msra.mxu1 %v14088_v40  ;;  %v5850_v33 = vadd.f32 %v5722_v1, %v5443_v6  ;;  %10843 = vrot.lane.b32.xlu0 %v16186_v43, %s15514_s19  ;;  %v16648_v0 = vpack.c.bf16 %v6120_v56, %v6116_v27  ;;  %v5583_v16 = vpop.permute.xlu0 %5582  ;;  %v6118_v30 = vmax.f32 %v16580_v57, 0.0  ;;  %v14091_v40 = vld [vmem:[#allocation10 + $0x460] ss:$28 sps:$4 sm:$0xff]  }
 0x56e   : > { %v16650_v15 = vpack.c.bf16 %v6119_v23, %v6115_v46  ;;  %7936 = vmatprep.subr.bf16.mxu0 %v14093_v28  ;;  %v5851_v7 = vadd.f32 %v5723_v49, %v5444_v54  ;;  %v5852_v26 = vadd.f32 %v5724_v5, %v5445_v48  ;;  %13439 = vset.pattern.permute.xlu1 %v19080_v2  ;;  %v14096_v1 = vld [vmem:[#allocation10 + $0x4a4] ss:$28 sps:$4 sm:$0xff]   ;;  %v6124_v49 = vmax.f32 %v16634_v41, 0.0 }
 0x56f   : > { %19085 = vst [vmem:[#allocation49_spill] sm:$0xff] %v16648_v0  ;;  %v5853_v13 = vadd.f32 %v5725_v25, %v5446_v55  ;;  %v5730_v53 = vmul.f32 %v16417_v37, %v5583_v16  ;;  %v5999_v62 = vadd.f32 %v16445_v4, %v5850_v33  ;;  %7787 = vmatprep.mubr.bf16.mxu0 %v16648_v0  ;;  %v5579_v46 = vpop.permute.xlu1 %5578  ;;  %v14094_v5 = vld [vmem:[#allocation10 + $0x4a0] ss:$28 sps:$4 sm:$0xff]   ;;  %v6123_v23 = vmax.f32 %v16631_v22, 0.0 }
 0x570   : > { %19086 = vst [vmem:[#allocation50_spill] sm:$0xff] %v16650_v15  ;;  %8173 = vmatprep.mubr.bf16.mxu1 %v16648_v0  ;;  %v5731_v43 = vmul.f32 %v16428_v42, %v5583_v16  ;;  %v5732_v27 = vmul.f32 %v16420_v60, %v5583_v16  ;;  %v6000_v2 = vadd.f32 %v16454_v58, %v5851_v7  ;;  %v14099_v33 = vld [vmem:[#allocation10 + $0x49c] ss:$28 sps:$4 sm:$0xff]  }
 0x571   : > { %v16663_v25 = vadd.f32 %v16448_v51, %v5852_v26  ;;  %v16666_v56 = vadd.f32 %v16476_v38, %v5853_v13  ;;  %5670 = vperm.xlu1 %13439, %v16492_v44   ;;  %7788 = vmatmul.mubr.bf16.gmra.mrb[136].mxu0 %v16650_v15  ;;  %v5733_v28 = vmul.f32 %v16440_v24, %v5583_v16  ;;  %v6127_v22 = vmax.f32 %v5999_v62, 0.0  ;;  %v14097_v26 = vld [vmem:[#allocation10 + $0x498] ss:$28 sps:$4 sm:$0xff]  }
 0x572   : > { %8174 = vmatmul.mubr.bf16.gmra.mrb[136].mxu1 %v16650_v15  ;;  %10847 = vrot.lane.b32.xlu0 %v16196_v21, %s15514_s19  ;;  %v5726_v9 = vmul.f32 %v16417_v37, %v5579_v46  ;;  %v5727_v41 = vmul.f32 %v16428_v42, %v5579_v46  ;;  %v5728_v54 = vmul.f32 %v16420_v60, %v5579_v46  ;;  %v5287_v48 = vpop.permute.xlu0 %5286  ;;  %v6128_v55 = vmax.f32 %v6000_v2, 0.0 }
 0x573   : > { %v5729_v44 = vmul.f32 %v16440_v24, %v5579_v46  ;;  %7937 = vmatpush1.bf16.msra.mxu0 %v14091_v40  ;;  %8324 = vmatprep.subr.bf16.mxu1 %v14096_v1  ;;  %v5455_v21 = vmul.f32 %v16408_v8, %v5287_v48  ;;  %v16683_v13 = vadd.f32 %v16448_v51, %v16510_v18 }
 0x574   : > { %v5854_v16 = vadd.f32 %v5726_v9, %v5447_v36  ;;  %v5855_v7 = vadd.f32 %v5727_v41, %v5448_v17  ;;  %8325 = vmatpush1.bf16.msra.mxu1 %v14094_v5  ;;  %v5856_v61 = vadd.f32 %v5728_v54, %v5449_v12  ;;  %v5456_v62 = vmul.f32 %v16425_v39, %v5287_v48  ;;  %v5282_v1 = vpop.permute.xlu1 %5281 }
 0x575   : > { %v5857_v6 = vadd.f32 %v5729_v44, %v5450_v11  ;;  %10817 = vrot.lane.b32.xlu1 %v16123_v47, %s15514_s19  ;;  %v5457_v40 = vmul.f32 %v16411_v34, %v5287_v48  ;;  %v5458_v17 = vmul.f32 %v16436_v19, %v5287_v48  ;;  %v5451_v18 = vmul.f32 %v16408_v8, %v5282_v1 }
 0x576   : > { %v16690_v36 = vadd.f32 %v16445_v4, %v5854_v16  ;;  %10851 = vrot.lane.b32.xlu0 %v16206_v63, %s15514_s19  ;;  %v5452_v12 = vmul.f32 %v16425_v39, %v5282_v1  ;;  %v16698_v11 = vadd.f32 %v16454_v58, %v5855_v7  ;;  %v16701_v47 = vadd.f32 %v16448_v51, %v5856_v61  ;;  %v14102_v7 = vld [vmem:[#allocation10 + $0x4dc] ss:$28 sps:$4 sm:$0xff]  }
 0x577   : > { %v5453_v46 = vmul.f32 %v16411_v34, %v5282_v1  ;;  %v5454_v5 = vmul.f32 %v16436_v19, %v5282_v1  ;;  %7938 = vmatprep.subr.bf16.mxu0 %v14099_v33  ;;  %v5858_v2 = vadd.f32 %v5730_v53, %v5451_v18  ;;  %v16705_v63 = vpack.c.bf16 %v6128_v55, %v6124_v49  ;;  %v5591_v54 = vpop.permute.xlu0 %5590 }
 0x578   : > { %v5859_v9 = vadd.f32 %v5731_v43, %v5452_v12  ;;  %v16707_v41 = vpack.c.bf16 %v6127_v22, %v6123_v23  ;;  %7939 = vmatpush1.bf16.msra.mxu0 %v14097_v26  ;;  %v16710_v44 = vadd.f32 %v16476_v38, %v5857_v6  ;;  %v5738_v61 = vmul.f32 %v16417_v37, %v5591_v54  ;;  %v14100_v6 = vld [vmem:[#allocation10 + $0x4d8] ss:$28 sps:$4 sm:$0xff]  }
 0x579   : > { %19087 = vst [vmem:[#allocation51_spill] sm:$0xff] %v16705_v63  ;;  %v5860_v48 = vadd.f32 %v5732_v27, %v5453_v46  ;;  %v5861_v16 = vadd.f32 %v5733_v28, %v5454_v5  ;;  %10821 = vrot.lane.b32.xlu1 %v16132_v14, %s15514_s19  ;;  %v6007_v53 = vadd.f32 %v16445_v4, %v5858_v2  ;;  %v5587_v23 = vpop.permute.xlu1 %5586  ;;  %v6132_v22 = vmax.f32 %v16698_v11, 0.0  ;;  %v14105_v12 = vld [vmem:[#allocation10 + $0x4d4] ss:$28 sps:$4 sm:$0xff]  }
 0x57a   : > { %19088 = vst [vmem:[#allocation52_spill] sm:$0xff] %v16707_v41  ;;  %v6008_v43 = vadd.f32 %v16454_v58, %v5859_v9  ;;  %7797 = vmatprep.mubr.bf16.mxu0 %v16705_v63  ;;  %8183 = vmatprep.mubr.bf16.mxu1 %v16705_v63  ;;  %v5739_v49 = vmul.f32 %v16428_v42, %v5591_v54  ;;  %v19089_v11 = vmax.f32 %v16608_v32, 0.0  ;;  %v19091_v63 = vld [vmem:[#allocation32_spill] sm:$0xff]  ;;  %v6131_v32 = vmax.f32 %v16690_v36, 0.0 }
 0x57b   : > { %v16722_v28 = vadd.f32 %v16448_v51, %v5860_v48  ;;  %v16725_v14 = vadd.f32 %v16476_v38, %v5861_v16  ;;  %10855 = vrot.lane.b32.xlu0 %v16216_v35, %s15514_s19  ;;  %7798 = vmatmul.mubr.bf16.gmra.mrb[140].mxu0 %v16707_v41  ;;  %v5740_v55 = vmul.f32 %v16420_v60, %v5591_v54  ;;  %v6135_v2 = vmax.f32 %v6007_v53, 0.0 }
 0x57c   : > { %8184 = vmatmul.mubr.bf16.gmra.mrb[140].mxu1 %v16707_v41  ;;  %v5734_v33 = vmul.f32 %v16417_v37, %v5587_v23  ;;  %v5735_v26 = vmul.f32 %v16428_v42, %v5587_v23  ;;  %v5736_v1 = vmul.f32 %v16420_v60, %v5587_v23  ;;  %v5737_v18 = vmul.f32 %v16440_v24, %v5587_v23  ;;  %v5297_v35 = vpop.permute.xlu0 %5296  ;;  %v14103_v41 = vld [vmem:[#allocation10 + $0x4d0] ss:$28 sps:$4 sm:$0xff]  }
 0x57d   : > { %v5741_v46 = vmul.f32 %v16440_v24, %v5591_v54  ;;  %10825 = vrot.lane.b32.xlu1 %v16141_v31, %s15514_s19  ;;  %v6136_v5 = vmax.f32 %v6008_v43, 0.0  ;;  %8326 = vmatprep.subr.bf16.mxu1 %v14102_v7  ;;  %v16744_v9 = vpack.c.bf16 %v19089_v11, %v6118_v30  ;;  %v14108_v54 = vld [vmem:[#allocation10 + $0x514] ss:$28 sps:$4 sm:$0xff]   ;;  %v5463_v31 = vmul.f32 %v16408_v8, %v5297_v35 }
 0x57e   : > { %v5862_v48 = vadd.f32 %v5734_v33, %v5455_v21  ;;  %v5863_v16 = vadd.f32 %v5735_v26, %v5456_v62  ;;  %v5864_v27 = vadd.f32 %v5736_v1, %v5457_v40  ;;  %v5865_v23 = vadd.f32 %v5737_v18, %v5458_v17  ;;  %8327 = vmatpush1.bf16.msra.mxu1 %v14100_v6  ;;  %v5292_v53 = vpop.permute.xlu1 %5291  ;;  %v19092_v17 = vld [vmem:[#allocation24_spill] sm:$0xff] }
 0x57f   : > { %19090 = vst [vmem:[#allocation53_spill] sm:$0xff] %v16744_v9  ;;  %10859 = vrot.lane.b32.xlu0 %v19091_v63, %s15514_s19  ;;  %v5464_v7 = vmul.f32 %v16425_v39, %v5297_v35  ;;  %v5465_v57 = vmul.f32 %v16411_v34, %v5297_v35  ;;  %v5466_v40 = vmul.f32 %v16436_v19, %v5297_v35 }
 0x580   : > { %v16753_v30 = vadd.f32 %v16445_v4, %v5862_v48  ;;  %v16756_v21 = vadd.f32 %v16454_v58, %v5863_v16  ;;  %v16759_v62 = vadd.f32 %v16448_v51, %v5864_v27  ;;  %7940 = vmatprep.subr.bf16.mxu0 %v14105_v12  ;;  %v5459_v63 = vmul.f32 %v16408_v8, %v5292_v53  ;;  %v19095_v16 = vld [vmem:[#allocation34_spill] sm:$0xff] }
 0x581   : > { %10829 = vrot.lane.b32.xlu1 %v19092_v17, %s15514_s19  ;;  %v5460_v43 = vmul.f32 %v16425_v39, %v5292_v53  ;;  %v5461_v36 = vmul.f32 %v16411_v34, %v5292_v53  ;;  %v5462_v6 = vmul.f32 %v16436_v19, %v5292_v53  ;;  %v16769_v33 = vadd.f32 %v16476_v38, %v5865_v23  ;;  %v5599_v1 = vpop.permute.xlu0 %5598  ;;  %v14106_v53 = vld [vmem:[#allocation10 + $0x510] ss:$28 sps:$4 sm:$0xff]  }
 0x582   : > { %v16771_v26 = vpack.c.bf16 %v6136_v5, %v6132_v22  ;;  %v16773_v27 = vpack.c.bf16 %v6135_v2, %v6131_v32  ;;  %v6140_v18 = vmax.f32 %v16756_v21, 0.0  ;;  %7941 = vmatpush1.bf16.msra.mxu0 %v14103_v41  ;;  %8328 = vmatprep.subr.bf16.mxu1 %v14108_v54  ;;  %v5866_v12 = vadd.f32 %v5738_v61, %v5459_v63  ;;  %v19096_v32 = vld [vmem:[#allocation25_spill] sm:$0xff]  ;;  %v14109_v63 = vld [vmem:[#allocation10 + $0x508] ss:$28 sps:$4 sm:$0xff]  }
 0x583   : > { %v5867_v35 = vadd.f32 %v5739_v49, %v5460_v43  ;;  %v5868_v11 = vadd.f32 %v5740_v55, %v5461_v36  ;;  %v5869_v48 = vadd.f32 %v5741_v46, %v5462_v6  ;;  %10863 = vrot.lane.b32.xlu0 %v19095_v16, %s15514_s19  ;;  %v5746_v22 = vmul.f32 %v16417_v37, %v5599_v1  ;;  %v5595_v41 = vpop.permute.xlu1 %5594  ;;  %v14111_v49 = vld [vmem:[#allocation10 + $0x50c] ss:$28 sps:$4 sm:$0xff]  }
 0x584   : > { %19093 = vst [vmem:[#allocation32_spill] sm:$0xff] %v16771_v26  ;;  %19094 = vst [vmem:[#allocation24_spill] sm:$0xff] %v16773_v27  ;;  %7807 = vmatprep.mubr.bf16.mxu0 %v16771_v26  ;;  %8193 = vmatprep.mubr.bf16.mxu1 %v16771_v26  ;;  %v5747_v5 = vmul.f32 %v16428_v42, %v5599_v1  ;;  %v5748_v2 = vmul.f32 %v16420_v60, %v5599_v1  ;;  %v6139_v61 = vmax.f32 %v16753_v30, 0.0  ;;  %v19097_v36 = vld [vmem:[#allocation36_spill] sm:$0xff] }
 0x585   : > { %v6015_v55 = vadd.f32 %v16445_v4, %v5866_v12  ;;  %v6016_v46 = vadd.f32 %v16454_v58, %v5867_v35  ;;  %v16787_v23 = vadd.f32 %v16448_v51, %v5868_v11  ;;  %v16790_v54 = vadd.f32 %v16476_v38, %v5869_v48  ;;  %10833 = vrot.lane.b32.xlu1 %v19096_v32, %s15514_s19  ;;  %v14114_v26 = vld [vmem:[#allocation10 + $0x54c] ss:$28 sps:$4 sm:$0xff]  }
 0x586   : > { %7808 = vmatmul.mubr.bf16.gmra.mrb[144].mxu0 %v16773_v27  ;;  %8194 = vmatmul.mubr.bf16.gmra.mrb[144].mxu1 %v16773_v27  ;;  %v5749_v30 = vmul.f32 %v16440_v24, %v5599_v1  ;;  %v5742_v21 = vmul.f32 %v16417_v37, %v5595_v41  ;;  %v5743_v17 = vmul.f32 %v16428_v42, %v5595_v41  ;;  %v5307_v35 = vpop.permute.xlu0 %5306 }
 0x587   : > { %10867 = vrot.lane.b32.xlu0 %v19097_v36, %s15514_s19  ;;  %v5744_v6 = vmul.f32 %v16420_v60, %v5595_v41  ;;  %v5745_v12 = vmul.f32 %v16440_v24, %v5595_v41  ;;  %v6144_v11 = vmax.f32 %v6016_v46, 0.0  ;;  %v6143_v48 = vmax.f32 %v6015_v55, 0.0  ;;  %8329 = vmatpush1.bf16.msra.mxu1 %v14106_v53  ;;  %v19098_v36 = vld [vmem:[#allocation26_spill] sm:$0xff] }
 0x588   : > { %v5870_v16 = vadd.f32 %v5742_v21, %v5463_v31  ;;  %v5871_v1 = vadd.f32 %v5743_v17, %v5464_v7  ;;  %v5471_v32 = vmul.f32 %v16408_v8, %v5307_v35  ;;  %v5472_v27 = vmul.f32 %v16425_v39, %v5307_v35  ;;  %7942 = vmatprep.subr.bf16.mxu0 %v14111_v49  ;;  %v5302_v46 = vpop.permute.xlu1 %5301  ;;  %v19100_v55 = vld [vmem:[#allocation38_spill] sm:$0xff] }
 0x589   : > { %v5872_v43 = vadd.f32 %v5744_v6, %v5465_v57  ;;  %v5873_v15 = vadd.f32 %v5745_v12, %v5466_v40  ;;  %10837 = vrot.lane.b32.xlu1 %v19098_v36, %s15514_s19  ;;  %v5473_v0 = vmul.f32 %v16411_v34, %v5307_v35  ;;  %v5474_v41 = vmul.f32 %v16436_v19, %v5307_v35 }
 0x58a   : > { %v16811_v53 = vadd.f32 %v16445_v4, %v5870_v16  ;;  %v16814_v31 = vadd.f32 %v16454_v58, %v5871_v1  ;;  %v5467_v7 = vmul.f32 %v16408_v8, %v5302_v46  ;;  %v5468_v49 = vmul.f32 %v16425_v39, %v5302_v46  ;;  %7943 = vmatpush1.bf16.msra.mxu0 %v14109_v63 }
 0x58b   : > { %v16819_v57 = vadd.f32 %v16448_v51, %v5872_v43  ;;  %v16822_v40 = vadd.f32 %v16476_v38, %v5873_v15  ;;  %10871 = vrot.lane.b32.xlu0 %v19100_v55, %s15514_s19  ;;  %v5469_v21 = vmul.f32 %v16411_v34, %v5302_v46  ;;  %v5470_v17 = vmul.f32 %v16436_v19, %v5302_v46  ;;  %v5607_v63 = vpop.permute.xlu0 %5606  ;;  %v19103_v15 = vld [vmem:[#allocation27_spill] sm:$0xff] }
 0x58c   : > { %v5874_v6 = vadd.f32 %v5746_v22, %v5467_v7  ;;  %v5875_v12 = vadd.f32 %v5747_v5, %v5468_v49  ;;  %v16828_v35 = vpack.c.bf16 %v6144_v11, %v6140_v18  ;;  %v16830_v16 = vpack.c.bf16 %v6143_v48, %v6139_v61  ;;  %8330 = vmatprep.subr.bf16.mxu1 %v14114_v26  ;;  %v14117_v5 = vld [vmem:[#allocation10 + $0x544] ss:$28 sps:$4 sm:$0xff]  }
 0x58d   : > { %19099 = vst [vmem:[#allocation34_spill] sm:$0xff] %v16819_v57  ;;  %v5876_v43 = vadd.f32 %v5748_v2, %v5469_v21  ;;  %v5877_v1 = vadd.f32 %v5749_v30, %v5470_v17  ;;  %10841 = vrot.lane.b32.xlu1 %v19103_v15, %s15514_s19  ;;  %v5754_v36 = vmul.f32 %v16417_v37, %v5607_v63  ;;  %v5603_v18 = vpop.permute.xlu1 %5602  ;;  %v6109_v2 = vmax.f32 %v16683_v13, 0.0  ;;  %v19105_v11 = vld [vmem:[#allocation40_spill] sm:$0xff]  ;;  %v14115_v49 = vld [vmem:[#allocation10 + $0x540] ss:$28 sps:$4 sm:$0xff]  }
 0x58e   : > { %19101 = vst [vmem:[#allocation25_spill] sm:$0xff] %v16828_v35  ;;  %19102 = vst [vmem:[#allocation36_spill] sm:$0xff] %v16830_v16  ;;  %v5755_v55 = vmul.f32 %v16428_v42, %v5607_v63  ;;  %v6023_v46 = vadd.f32 %v16445_v4, %v5874_v6  ;;  %v6024_v22 = vadd.f32 %v16454_v58, %v5875_v12  ;;  %7817 = vmatprep.mubr.bf16.mxu0 %v16828_v35  ;;  %v14120_v12 = vld [vmem:[#allocation10 + $0x584] ss:$28 sps:$4 sm:$0xff]   ;;  %v14123_v57 = vld [vmem:[#allocation10 + $0x57c] ss:$28 sps:$4 sm:$0xff]  }
 0x58f   : > { %8203 = vmatprep.mubr.bf16.mxu1 %v16828_v35  ;;  %v5756_v26 = vmul.f32 %v16420_v60, %v5607_v63  ;;  %v16843_v61 = vadd.f32 %v16448_v51, %v5876_v43  ;;  %v16846_v30 = vadd.f32 %v16476_v38, %v5877_v1  ;;  %10875 = vrot.lane.b32.xlu0 %v19105_v11, %s15514_s19  ;;  %v6148_v7 = vmax.f32 %v16814_v31, 0.0  ;;  %v19106_v43 = vld [vmem:[#allocation28_spill] sm:$0xff] }
 0x590   : > { %7818 = vmatmul.mubr.bf16.gmra.mrb[148].mxu0 %v16830_v16  ;;  %v5757_v48 = vmul.f32 %v16440_v24, %v5607_v63  ;;  %8204 = vmatmul.mubr.bf16.gmra.mrb[148].mxu1 %v16830_v16  ;;  %v5750_v13 = vmul.f32 %v16417_v37, %v5603_v18  ;;  %v5751_v21 = vmul.f32 %v16428_v42, %v5603_v18  ;;  %v5317_v1 = vpop.permute.xlu0 %5316  ;;  %v6152_v15 = vmax.f32 %v6024_v22, 0.0 }
 0x591   : > { %19104 = vst [vmem:[#allocation26_spill] sm:$0xff] %v16843_v61  ;;  %v5752_v17 = vmul.f32 %v16420_v60, %v5603_v18  ;;  %v5753_v6 = vmul.f32 %v16440_v24, %v5603_v18  ;;  %10845 = vrot.lane.b32.xlu1 %v19106_v43, %s15514_s19  ;;  %v6151_v63 = vmax.f32 %v6023_v46, 0.0  ;;  %8331 = vmatpush1.bf16.msra.mxu1 %v14112_v59  ;;  %v19107_v31 = vmax.f32 %v16552_v45, 0.0  ;;  %v14118_v43 = vld [vmem:[#allocation10 + $0x580] ss:$28 sps:$4 sm:$0xff]  }
 0x592   : > { %v19109_v16 = vmax.f32 %v16577_v29, 0.0  ;;  %v19110_v35 = vmax.f32 %v16605_v3, 0.0  ;;  %v5878_v9 = vadd.f32 %v5750_v13, %v5471_v32  ;;  %v5879_v18 = vadd.f32 %v5751_v21, %v5472_v27  ;;  %7944 = vmatprep.subr.bf16.mxu0 %v14117_v5  ;;  %v5312_v22 = vpop.permute.xlu1 %5311  ;;  %v14121_v3 = vld [vmem:[#allocation10 + $0x578] ss:$28 sps:$4 sm:$0xff]   ;;  %8332 = vmatprep.subr.bf16.mxu1 %v14120_v12 }
 0x593   : > { %v16862_v11 = vpack.c.bf16 %v19107_v31, %v6109_v2  ;;  %v5880_v52 = vadd.f32 %v5752_v17, %v5473_v0  ;;  %v5881_v61 = vadd.f32 %v5753_v6, %v5474_v41  ;;  %v5479_v46 = vmul.f32 %v16408_v8, %v5317_v1  ;;  %7945 = vmatpush1.bf16.msra.mxu0 %v14115_v49  ;;  %v19113_v41 = vld [vmem:[#allocation29_spill] sm:$0xff] }
 0x594   : > { %v16868_v10 = vpack.c.bf16 %v19110_v35, %v19109_v16  ;;  %v5480_v59 = vmul.f32 %v16425_v39, %v5317_v1  ;;  %v5481_v45 = vmul.f32 %v16411_v34, %v5317_v1  ;;  %v6147_v29 = vmax.f32 %v16811_v53, 0.0  ;;  %7946 = vmatprep.subr.bf16.mxu0 %v14123_v57  ;;  %v14124_v57 = vld [vmem:[#allocation10 + $0x5b8] ss:$28 sps:$4 sm:$0xff]  }
 0x595   : > { %19108 = vst [vmem:[#allocation38_spill] sm:$0xff] %v16862_v11  ;;  %v16875_v35 = vadd.f32 %v16445_v4, %v5878_v9  ;;  %v16878_v0 = vadd.f32 %v16454_v58, %v5879_v18  ;;  %v16881_v27 = vadd.f32 %v16448_v51, %v5880_v52  ;;  %v5482_v32 = vmul.f32 %v16436_v19, %v5317_v1  ;;  %v5615_v13 = vpop.permute.xlu0 %5614  ;;  %v14126_v1 = vld [vmem:[#allocation10 + $0x5bc] ss:$28 sps:$4 sm:$0xff]  }
 0x596   : > { %19111 = vst [vmem:[#allocation27_spill] sm:$0xff] %v16868_v10  ;;  %10849 = vrot.lane.b32.xlu1 %v19113_v41, %s15514_s19  ;;  %v5475_v16 = vmul.f32 %v16408_v8, %v5312_v22  ;;  %v5476_v53 = vmul.f32 %v16425_v39, %v5312_v22  ;;  %v5477_v5 = vmul.f32 %v16411_v34, %v5312_v22  ;;  %v14130_v41 = vld [vmem:[#allocation10 + $0x5f0] ss:$28 sps:$4 sm:$0xff]  }
 0x597   : > { %19112 = vst [vmem:[#allocation40_spill] sm:$0xff] %v16881_v27  ;;  %v5478_v9 = vmul.f32 %v16436_v19, %v5312_v22  ;;  %v16891_v2 = vadd.f32 %v16476_v38, %v5881_v61  ;;  %v16893_v49 = vpack.c.bf16 %v6152_v15, %v6148_v7  ;;  %v16895_v52 = vpack.c.bf16 %v6151_v63, %v6147_v29  ;;  %v5611_v15 = vpop.permute.xlu1 %5610  ;;  %v14150_v27 = vld [vmem:[#allocation10 + $0x69c] ss:$28 sps:$4 sm:$0xff]  }
 0x598   : > { %8333 = vmatpush1.bf16.msra.mxu1 %v14118_v43  ;;  %v5882_v21 = vadd.f32 %v5754_v36, %v5475_v16  ;;  %v5883_v17 = vadd.f32 %v5755_v55, %v5476_v53  ;;  %v5884_v6 = vadd.f32 %v5756_v26, %v5477_v5  ;;  %7947 = vmatpush1.bf16.msra.mxu0 %v14121_v3  ;;  %v6156_v63 = vmax.f32 %v16878_v0, 0.0  ;;  %v14129_v43 = vld [vmem:[#allocation10 + $0x5b4] ss:$28 sps:$4 sm:$0xff]  }
 0x599   : > { %19114 = vst [vmem:[#allocation28_spill] sm:$0xff] %v16891_v2  ;;  %19115 = vst [vmem:[#allocation29_spill] sm:$0xff] %v16893_v49  ;;  %v5885_v12 = vadd.f32 %v5757_v48, %v5478_v9  ;;  %7827 = vmatprep.mubr.bf16.mxu0 %v16893_v49  ;;  %8213 = vmatprep.mubr.bf16.mxu1 %v16893_v49  ;;  %v5762_v61 = vmul.f32 %v16417_v37, %v5615_v13  ;;  %v6155_v31 = vmax.f32 %v16875_v35, 0.0  ;;  %v19118_v48 = vld [vmem:[#allocation30_spill] sm:$0xff]  ;;  %v5619_v35 = vpop.permute.xlu0 %5618  ;;  %v14127_v0 = vld [vmem:[#allocation10 + $0x5b0] ss:$28 sps:$4 sm:$0xff]  }
 0x59a   : > { %19116 = vst [vmem:[#allocation54_spill] sm:$0xff] %v16895_v52  ;;  %v5763_v7 = vmul.f32 %v16428_v42, %v5615_v13  ;;  %v6031_v36 = vadd.f32 %v16445_v4, %v5882_v21  ;;  %v6032_v55 = vadd.f32 %v16454_v58, %v5883_v17  ;;  %v16906_v26 = vadd.f32 %v16448_v51, %v5884_v6  ;;  %v14132_v21 = vld [vmem:[#allocation10 + $0x5f4] ss:$28 sps:$4 sm:$0xff]   ;;  %v19120_v49 = vld [vmem:[#allocation31_spill] sm:$0xff] }
 0x59b   : > { %10853 = vrot.lane.b32.xlu1 %v19118_v48, %s15514_s19  ;;  %v5764_v18 = vmul.f32 %v16420_v60, %v5615_v13  ;;  %v16912_v22 = vadd.f32 %v16476_v38, %v5885_v12  ;;  %7828 = vmatmul.mubr.bf16.gmra.mrb[152].mxu0 %v16895_v52  ;;  %v5758_v29 = vmul.f32 %v16417_v37, %v5611_v15 }
 0x59c   : > { %19117 = vst [vmem:[#allocation55_spill] sm:$0xff] %v16906_v26  ;;  %8214 = vmatmul.mubr.bf16.gmra.mrb[152].mxu1 %v16895_v52  ;;  %v5759_v3 = vmul.f32 %v16428_v42, %v5611_v15  ;;  %v5765_v16 = vmul.f32 %v16440_v24, %v5615_v13  ;;  %v5760_v53 = vmul.f32 %v16420_v60, %v5611_v15  ;;  %v6160_v10 = vmax.f32 %v6032_v55, 0.0 }
 0x59d   : > { %19119 = vst [vmem:[#allocation30_spill] sm:$0xff] %v16912_v22  ;;  %v5761_v5 = vmul.f32 %v16440_v24, %v5611_v15  ;;  %v16923_v9 = vmul.f32 %v16417_v37, %v5619_v35  ;;  %8334 = vmatprep.subr.bf16.mxu1 %v14126_v1  ;;  %v5886_v17 = vadd.f32 %v5758_v29, %v5479_v46  ;;  %v5322_v15 = vpop.permute.xlu1 %5321  ;;  %v6159_v11 = vmax.f32 %v6031_v36, 0.0 }
 0x59e   : > { %v5887_v6 = vadd.f32 %v5759_v3, %v5480_v59  ;;  %v16926_v12 = vmul.f32 %v16428_v42, %v5619_v35  ;;  %v16929_v48 = vmul.f32 %v16420_v60, %v5619_v35  ;;  %8335 = vmatpush1.bf16.msra.mxu1 %v14124_v57  ;;  %v5888_v13 = vadd.f32 %v5760_v53, %v5481_v45  ;;  %v5337_v36 = vpop.permute.xlu0 %5336 }
 0x59f   : > { %v5889_v52 = vadd.f32 %v5761_v5, %v5482_v32  ;;  %10857 = vrot.lane.b32.xlu1 %v19120_v49, %s15514_s19  ;;  %7948 = vmatprep.subr.bf16.mxu0 %v14129_v43  ;;  %v16934_v46 = vadd.f32 %v16445_v4, %v5886_v17  ;;  %v5769_v59 = vmul.f32 %v16440_v24, %v5619_v35  ;;  %v19125_v5 = vld [vmem:[#allocation33_spill] sm:$0xff] }
 0x5a0   : > { %v5483_v1 = vmul.f32 %v16408_v8, %v5322_v15  ;;  %v5484_v29 = vmul.f32 %v16425_v39, %v5322_v15  ;;  %7949 = vmatpush1.bf16.msra.mxu0 %v14127_v0  ;;  %v16940_v45 = vadd.f32 %v16454_v58, %v5887_v6  ;;  %v16943_v32 = vadd.f32 %v16448_v51, %v5888_v13  ;;  %v14135_v0 = vld [vmem:[#allocation10 + $0x5ec] ss:$28 sps:$4 sm:$0xff]  }
 0x5a1   : > { %v5485_v49 = vmul.f32 %v16411_v34, %v5322_v15  ;;  %v5486_v57 = vmul.f32 %v16436_v19, %v5322_v15  ;;  %8336 = vmatprep.subr.bf16.mxu1 %v14132_v21  ;;  %v16947_v3 = vpack.c.bf16 %v6160_v10, %v6156_v63  ;;  %v16949_v35 = vpack.c.bf16 %v6159_v11, %v6155_v31  ;;  %v5327_v21 = vpop.permute.xlu1 %5326 }
 0x5a2   : > { %19121 = vst [vmem:[#allocation31_spill] sm:$0xff] %v16943_v32  ;;  %v5890_v55 = vadd.f32 %v5762_v61, %v5483_v1  ;;  %v5891_v43 = vadd.f32 %v5763_v7, %v5484_v29  ;;  %8337 = vmatpush1.bf16.msra.mxu1 %v14130_v41  ;;  %v16952_v53 = vadd.f32 %v16476_v38, %v5889_v52  ;;  %v14133_v52 = vld [vmem:[#allocation10 + $0x5e8] ss:$28 sps:$4 sm:$0xff]   ;;  %v6164_v41 = vmax.f32 %v16940_v45, 0.0 }
 0x5a3   : > { %19122 = vst [vmem:[#allocation56_spill] sm:$0xff] %v16947_v3  ;;  %19123 = vst [vmem:[#allocation57_spill] sm:$0xff] %v16949_v35  ;;  %10861 = vrot.lane.b32.xlu1 %v19125_v5, %s15514_s19  ;;  %v5892_v17 = vadd.f32 %v5764_v18, %v5485_v49  ;;  %v5893_v6 = vadd.f32 %v5765_v16, %v5486_v57  ;;  %v16957_v13 = vmul.f32 %v16408_v8, %v5337_v36  ;;  %v14138_v16 = vld [vmem:[#allocation10 + $0x62c] ss:$28 sps:$4 sm:$0xff]   ;;  %v5631_v57 = vpop.permute.xlu0 %5630  ;;  %v19128_v5 = vld [vmem:[#allocation35_spill] sm:$0xff] }
 0x5a4   : > { %19124 = vst [vmem:[#allocation58_spill] sm:$0xff] %v16952_v53  ;;  %v16960_v61 = vadd.f32 %v16445_v4, %v5890_v55  ;;  %v6040_v10 = vadd.f32 %v16454_v58, %v5891_v43  ;;  %7837 = vmatprep.mubr.bf16.mxu0 %v16947_v3  ;;  %8223 = vmatprep.mubr.bf16.mxu1 %v16947_v3  ;;  %v14136_v55 = vld [vmem:[#allocation10 + $0x628] ss:$28 sps:$4 sm:$0xff]   ;;  %v6163_v7 = vmax.f32 %v16934_v46, 0.0 }
 0x5a5   : > { %v16966_v11 = vmul.f32 %v16425_v39, %v5337_v36  ;;  %v16970_v63 = vadd.f32 %v16448_v51, %v5892_v17  ;;  %v16973_v31 = vadd.f32 %v16476_v38, %v5893_v6  ;;  %7838 = vmatmul.mubr.bf16.gmra.mrb[156].mxu0 %v16949_v35  ;;  %8224 = vmatmul.mubr.bf16.gmra.mrb[156].mxu1 %v16949_v35  ;;  %v5332_v6 = vpop.permute.xlu1 %5331  ;;  %v14141_v35 = vld [vmem:[#allocation10 + $0x624] ss:$28 sps:$4 sm:$0xff]  }
 0x5a6   : > { %v16978_v18 = vmul.f32 %v16411_v34, %v5337_v36  ;;  %v5487_v15 = vmul.f32 %v16408_v8, %v5327_v21  ;;  %v5488_v1 = vmul.f32 %v16425_v39, %v5327_v21  ;;  %v5489_v29 = vmul.f32 %v16411_v34, %v5327_v21  ;;  %7950 = vmatprep.subr.bf16.mxu0 %v14135_v0 }
 0x5a7   : > { %19126 = vst [vmem:[#allocation33_spill] sm:$0xff] %v16970_v63  ;;  %19127 = vst [vmem:[#allocation59_spill] sm:$0xff] %v16973_v31  ;;  %v5490_v49 = vmul.f32 %v16436_v19, %v5327_v21  ;;  %v16986_v43 = vmul.f32 %v16436_v19, %v5337_v36  ;;  %10865 = vrot.lane.b32.xlu1 %v19128_v5, %s15514_s19  ;;  %v16991_v45 = vmul.f32 %v16417_v37, %v5631_v57  ;;  %v14139_v63 = vld [vmem:[#allocation10 + $0x620] ss:$28 sps:$4 sm:$0xff]  }
 0x5a8   : > { %v16994_v17 = vmul.f32 %v16428_v42, %v5631_v57  ;;  %v5894_v21 = vadd.f32 %v16923_v9, %v5487_v15  ;;  %v5895_v0 = vadd.f32 %v16926_v12, %v5488_v1  ;;  %v5896_v36 = vadd.f32 %v16929_v48, %v5489_v29  ;;  %7951 = vmatpush1.bf16.msra.mxu0 %v14133_v52  ;;  %v14144_v5 = vld [vmem:[#allocation10 + $0x664] ss:$28 sps:$4 sm:$0xff]   ;;  %v14147_v9 = vld [vmem:[#allocation10 + $0x65c] ss:$28 sps:$4 sm:$0xff]   ;;  %v5635_v15 = vpop.permute.xlu0 %5634 }
 0x5a9   : > { %v5897_v3 = vadd.f32 %v5769_v59, %v5490_v49  ;;  %v17001_v32 = vmul.f32 %v16420_v60, %v5631_v57  ;;  %v17004_v31 = vmul.f32 %v16440_v24, %v5631_v57  ;;  %v5491_v53 = vmul.f32 %v16408_v8, %v5332_v6  ;;  %8338 = vmatprep.subr.bf16.mxu1 %v14138_v16  ;;  %v14142_v1 = vld [vmem:[#allocation10 + $0x660] ss:$28 sps:$4 sm:$0xff]   ;;  %v19131_v16 = vld [vmem:[#allocation37_spill] sm:$0xff] }
 0x5aa   : > { %v5492_v46 = vmul.f32 %v16425_v39, %v5332_v6  ;;  %v17009_v12 = vadd.f32 %v16445_v4, %v5894_v21  ;;  %v17012_v48 = vadd.f32 %v16454_v58, %v5895_v0  ;;  %v5493_v59 = vmul.f32 %v16411_v34, %v5332_v6  ;;  %8339 = vmatpush1.bf16.msra.mxu1 %v14136_v55 }
 0x5ab   : > { %v5494_v52 = vmul.f32 %v16436_v19, %v5332_v6  ;;  %v17017_v29 = vadd.f32 %v16448_v51, %v5896_v36  ;;  %v17020_v49 = vadd.f32 %v16476_v38, %v5897_v3  ;;  %10869 = vrot.lane.b32.xlu1 %v19131_v16, %s15514_s19  ;;  %v6168_v57 = vmax.f32 %v6040_v10, 0.0  ;;  %7952 = vmatprep.subr.bf16.mxu0 %v14141_v35  ;;  %v5623_v36 = vpop.permute.xlu1 %5622 }
 0x5ac   : > { %v17025_v21 = vmul.f32 %v16417_v37, %v5635_v15  ;;  %v17028_v0 = vmul.f32 %v16428_v42, %v5635_v15  ;;  %v17031_v55 = vmul.f32 %v16420_v60, %v5635_v15  ;;  %v17034_v6 = vmul.f32 %v16440_v24, %v5635_v15  ;;  %7953 = vmatpush1.bf16.msra.mxu0 %v14139_v63  ;;  %v14153_v15 = vld [vmem:[#allocation10 + $0x694] ss:$28 sps:$4 sm:$0xff]  }
 0x5ad   : > { %19129 = vst [vmem:[#allocation35_spill] sm:$0xff] %v17017_v29  ;;  %19130 = vst [vmem:[#allocation60_spill] sm:$0xff] %v17020_v49  ;;  %v6167_v3 = vmax.f32 %v16960_v61, 0.0  ;;  %8340 = vmatprep.subr.bf16.mxu1 %v14144_v5  ;;  %v17037_v16 = vpack.c.bf16 %v6168_v57, %v6164_v41  ;;  %v5770_v10 = vmul.f32 %v16417_v37, %v5623_v36  ;;  %7954 = vmatprep.subr.bf16.mxu0 %v14147_v9  ;;  %v14145_v61 = vld [vmem:[#allocation10 + $0x658] ss:$28 sps:$4 sm:$0xff]  }
 0x5ae   : > { %v5771_v35 = vmul.f32 %v16428_v42, %v5623_v36  ;;  %v5772_v29 = vmul.f32 %v16420_v60, %v5623_v36  ;;  %v5773_v26 = vmul.f32 %v16440_v24, %v5623_v36  ;;  %8341 = vmatpush1.bf16.msra.mxu1 %v14142_v1  ;;  %v19134_v63 = vmax.f32 %v16641_v50, 0.0  ;;  %v19137_v1 = vld [vmem:[#allocation39_spill] sm:$0xff] }
 0x5af   : > { %19132 = vst [vmem:[#allocation37_spill] sm:$0xff] %v17037_v16  ;;  %v17042_v49 = vpack.c.bf16 %v6167_v3, %v6163_v7  ;;  %v19135_v41 = vmax.f32 %v16666_v56, 0.0  ;;  %7847 = vmatprep.mubr.bf16.mxu0 %v17037_v16  ;;  %8233 = vmatprep.mubr.bf16.mxu1 %v17037_v16  ;;  %v5898_v57 = vadd.f32 %v5770_v10, %v5491_v53  ;;  %v5357_v3 = vpop.permute.xlu0 %5356  ;;  %v6171_v36 = vmax.f32 %v17009_v12, 0.0  ;;  %v14156_v10 = vld [vmem:[#allocation10 + $0x6d4] ss:$28 sps:$4 sm:$0xff]  }
 0x5b0   : > { %v5899_v9 = vadd.f32 %v5771_v35, %v5492_v46  ;;  %v5900_v7 = vadd.f32 %v5772_v29, %v5493_v59  ;;  %10873 = vrot.lane.b32.xlu1 %v19137_v1, %s15514_s19  ;;  %v5901_v50 = vadd.f32 %v5773_v26, %v5494_v52  ;;  %v17059_v56 = vmul.f32 %v16408_v8, %v5357_v3  ;;  %v19140_v16 = vld [vmem:[#allocation41_spill] sm:$0xff] }
 0x5b1   : > { %19133 = vst [vmem:[#allocation61_spill] sm:$0xff] %v17042_v49  ;;  %v17050_v5 = vpack.c.bf16 %v19135_v41, %v19134_v63  ;;  %7848 = vmatmul.mubr.bf16.gmra.mrb[160].mxu0 %v17042_v49  ;;  %v5627_v63 = vpop.permute.xlu1 %5626  ;;  %v14148_v41 = vld [vmem:[#allocation10 + $0x698] ss:$28 sps:$4 sm:$0xff]   ;;  %v6125_v53 = vmax.f32 %v16637_v20, 0.0  ;;  %v6129_v46 = vmax.f32 %v16663_v25, 0.0  ;;  %8234 = vmatmul.mubr.bf16.gmra.mrb[160].mxu1 %v17042_v49  ;;  %v6047_v12 = vadd.f32 %v16445_v4, %v5898_v57 }
 0x5b2   : > { %v6048_v59 = vadd.f32 %v16454_v58, %v5899_v9  ;;  %v17067_v29 = vmul.f32 %v16425_v39, %v5357_v3  ;;  %v17071_v52 = vadd.f32 %v16448_v51, %v5900_v7  ;;  %v17074_v35 = vmul.f32 %v16411_v34, %v5357_v3  ;;  %7955 = vmatpush1.bf16.msra.mxu0 %v14145_v61  ;;  %v14151_v57 = vld [vmem:[#allocation10 + $0x690] ss:$28 sps:$4 sm:$0xff]  }
 0x5b3   : > { %19136 = vst [vmem:[#allocation62_spill] sm:$0xff] %v17050_v5  ;;  %v5774_v20 = vmul.f32 %v16417_v37, %v5627_v63  ;;  %v5775_v25 = vmul.f32 %v16428_v42, %v5627_v63  ;;  %v17079_v9 = vadd.f32 %v16476_v38, %v5901_v50  ;;  %v5776_v1 = vmul.f32 %v16420_v60, %v5627_v63  ;;  %v14159_v7 = vld [vmem:[#allocation10 + $0x6cc] ss:$28 sps:$4 sm:$0xff]   ;;  %v5647_v61 = vpop.permute.xlu0 %5646 }
 0x5b4   : > { %19138 = vst [vmem:[#allocation39_spill] sm:$0xff] %v17071_v52  ;;  %v5777_v49 = vmul.f32 %v16440_v24, %v5627_v63  ;;  %v6176_v26 = vmax.f32 %v6048_v59, 0.0  ;;  %8342 = vmatprep.subr.bf16.mxu1 %v14150_v27  ;;  %7956 = vmatprep.subr.bf16.mxu0 %v14153_v15  ;;  %v6175_v22 = vmax.f32 %v6047_v12, 0.0  ;;  %v14154_v50 = vld [vmem:[#allocation10 + $0x6d0] ss:$28 sps:$4 sm:$0xff]   ;;  %v17090_v2 = vmul.f32 %v16436_v19, %v5357_v3 }
 0x5b5   : > { %19139 = vst [vmem:[#allocation63_spill] sm:$0xff] %v17079_v9  ;;  %10877 = vrot.lane.b32.xlu1 %v19140_v16, %s15514_s19  ;;  %v5902_v5 = vadd.f32 %v5774_v20, %v16957_v13  ;;  %v5903_v52 = vadd.f32 %v5775_v25, %v16966_v11  ;;  %8343 = vmatpush1.bf16.msra.mxu1 %v14148_v41  ;;  %v5342_v16 = vpop.permute.xlu1 %5341  ;;  %v14160_v13 = vld [vmem:[#allocation10 + $0x1d8] ss:$28 sps:$4 sm:$0xff]   ;;  %v19143_v59 = vmax.f32 %v17012_v48, 0.0  ;;  %v14157_v25 = vld [vmem:[#allocation10 + $0x6c8] ss:$28 sps:$4 sm:$0xff]  }
 0x5b6   : > { %v17087_v9 = vpack.c.bf16 %v6129_v46, %v6125_v53  ;;  %v5904_v27 = vadd.f32 %v5776_v1, %v16978_v18  ;;  %v5905_v15 = vadd.f32 %v5777_v49, %v16986_v43  ;;  %v17095_v63 = vmul.f32 %v16417_v37, %v5647_v61  ;;  %8344 = vmatprep.subr.bf16.mxu1 %v14156_v10  ;;  %v14164_v48 = vld [vmem:[#allocation10 + $0x14] ss:$28 sps:$4 sm:$0xff]  }
 0x5b7   : > { %v17098_v11 = vadd.f32 %v16445_v4, %v5902_v5  ;;  %v17101_v41 = vadd.f32 %v16454_v58, %v5903_v52  ;;  %v17104_v53 = vmul.f32 %v16428_v42, %v5647_v61  ;;  %v17107_v3 = vmul.f32 %v16420_v60, %v5647_v61  ;;  %7957 = vmatpush1.bf16.msra.mxu0 %v14151_v57  ;;  %v5651_v20 = vpop.permute.xlu0 %5650 }
 0x5b8   : > { %19141 = vst [vmem:[#allocation41_spill] sm:$0xff] %v17087_v9  ;;  %v17110_v18 = vadd.f32 %v16448_v51, %v5904_v27  ;;  %v17113_v43 = vmul.f32 %v16440_v24, %v5647_v61  ;;  %v5499_v49 = vmul.f32 %v16408_v8, %v5342_v16  ;;  %v5500_v5 = vmul.f32 %v16425_v39, %v5342_v16 }
 0x5b9   : > { %7958 = vmatprep.subr.bf16.mxu0 %v14159_v7  ;;  %v5501_v46 = vmul.f32 %v16411_v34, %v5342_v16  ;;  %v5502_v12 = vmul.f32 %v16436_v19, %v5342_v16  ;;  %v17121_v10 = vpack.c.bf16 %v6176_v26, %v19143_v59  ;;  %v17123_v52 = vpack.c.bf16 %v6175_v22, %v6171_v36  ;;  %v5347_v27 = vpop.permute.xlu1 %5346 }
 0x5ba   : > { %19142 = vst [vmem:[#allocation64_spill] sm:$0xff] %v17110_v18  ;;  %8345 = vmatpush1.bf16.msra.mxu1 %v14154_v50  ;;  %v17126_v57 = vadd.f32 %v16476_v38, %v5905_v15  ;;  %v5906_v1 = vadd.f32 %v16991_v45, %v5499_v49  ;;  %v5907_v7 = vadd.f32 %v16994_v17, %v5500_v5  ;;  %v6138_v45 = vmax.f32 %v16725_v14, 0.0 }
 0x5bb   : > { %19144 = vst [vmem:[#allocation65_spill] sm:$0xff] %v17121_v10  ;;  %19145 = vst [vmem:[#allocation66_spill] sm:$0xff] %v17123_v52  ;;  %v17131_v61 = vmul.f32 %v16417_v37, %v5651_v20  ;;  %12157 = vmatprep.subr.bf16.mxu1 %v14160_v13  ;;  %v5908_v26 = vadd.f32 %v17001_v32, %v5501_v46  ;;  %v5909_v22 = vadd.f32 %v17004_v31, %v5502_v12  ;;  %v5377_v59 = vpop.permute.xlu0 %5376 }
 0x5bc   : > { %7857 = vmatprep.mubr.bf16.mxu0 %v17121_v10  ;;  %8243 = vmatprep.mubr.bf16.mxu1 %v17121_v10  ;;  %v17138_v36 = vmul.f32 %v16428_v42, %v5651_v20  ;;  %v6055_v17 = vadd.f32 %v16445_v4, %v5906_v1  ;;  %v6056_v50 = vadd.f32 %v16454_v58, %v5907_v7  ;;  %v6180_v31 = vmax.f32 %v17101_v41, 0.0 }
 0x5bd   : > { %7858 = vmatmul.mubr.bf16.gmra.mrb[164].mxu0 %v17123_v52  ;;  %8244 = vmatmul.mubr.bf16.gmra.mrb[164].mxu1 %v17123_v52  ;;  %v17146_v32 = vmul.f32 %v16420_v60, %v5651_v20  ;;  %v17150_v15 = vmul.f32 %v16440_v24, %v5651_v20  ;;  %v5503_v16 = vmul.f32 %v16408_v8, %v5347_v27  ;;  %v6179_v13 = vmax.f32 %v17098_v11, 0.0  ;;  %v5352_v12 = vpop.permute.xlu1 %5351 }
 0x5be   : > { %v5504_v14 = vmul.f32 %v16425_v39, %v5347_v27  ;;  %7959 = vmatpush1.bf16.msra.mxu0 %v14157_v25  ;;  %v17156_v49 = vadd.f32 %v16448_v51, %v5908_v26  ;;  %v17159_v5 = vadd.f32 %v16476_v38, %v5909_v22  ;;  %v5505_v46 = vmul.f32 %v16411_v34, %v5347_v27 }
 0x5bf   : > { %v5506_v41 = vmul.f32 %v16436_v19, %v5347_v27  ;;  %8507 = vmatprep.subr.bf16.mxu0 %v14164_v48  ;;  %v5910_v20 = vadd.f32 %v17025_v21, %v5503_v16  ;;  %v6184_v7 = vmax.f32 %v6056_v50, 0.0  ;;  %v6183_v11 = vmax.f32 %v6055_v17, 0.0 }
 0x5c0   : > { %19146 = vst [vmem:[#allocation67_spill] sm:$0xff] %v17156_v49  ;;  %v5911_v1 = vadd.f32 %v17028_v0, %v5504_v14  ;;  %v5912_v25 = vadd.f32 %v17031_v55, %v5505_v46  ;;  %v5507_v22 = vmul.f32 %v16408_v8, %v5352_v12  ;;  %v5508_v52 = vmul.f32 %v16425_v39, %v5352_v12 }
 0x5c1   : > { %v5913_v26 = vadd.f32 %v17034_v6, %v5506_v41  ;;  %v6059_v10 = vadd.f32 %v16445_v4, %v5910_v20  ;;  %v5509_v48 = vmul.f32 %v16411_v34, %v5352_v12  ;;  %v5510_v21 = vmul.f32 %v16436_v19, %v5352_v12  ;;  %v5639_v41 = vpop.permute.xlu1 %5638  ;;  %v5663_v12 = vpop.permute.xlu0 %5662 }
 0x5c2   : > { %v6060_v27 = vadd.f32 %v16454_v58, %v5911_v1  ;;  %v17174_v0 = vadd.f32 %v16448_v51, %v5912_v25  ;;  %v17180_v55 = vmul.f32 %v16408_v8, %v5377_v59  ;;  %v17183_v6 = vmul.f32 %v16425_v39, %v5377_v59 }
 0x5c3   : > { %v17177_v17 = vadd.f32 %v16476_v38, %v5913_v26  ;;  %v17186_v50 = vmul.f32 %v16411_v34, %v5377_v59  ;;  %v17189_v16 = vmul.f32 %v16436_v19, %v5377_v59  ;;  %v17191_v14 = vpack.c.bf16 %v6184_v7, %v6180_v31 }
 0x5c4   : > { %19147 = vst [vmem:[#allocation68_spill] sm:$0xff] %v17174_v0  ;;  %v17193_v46 = vpack.c.bf16 %v6183_v11, %v6179_v13  ;;  %v5786_v20 = vmul.f32 %v16417_v37, %v5639_v41  ;;  %v5787_v1 = vmul.f32 %v16428_v42, %v5639_v41  ;;  %v5788_v25 = vmul.f32 %v16420_v60, %v5639_v41 }
 0x5c5   : > { %19148 = vst [vmem:[#allocation69_spill] sm:$0xff] %v17177_v17  ;;  %19149 = vst [vmem:[#allocation70_spill] sm:$0xff] %v17191_v14  ;;  %v5789_v26 = vmul.f32 %v16440_v24, %v5639_v41  ;;  %7867 = vmatprep.mubr.bf16.mxu0 %v17191_v14  ;;  %8253 = vmatprep.mubr.bf16.mxu1 %v17191_v14  ;;  %v17202_v59 = vmul.f32 %v16417_v37, %v5663_v12  ;;  %v6188_v13 = vmax.f32 %v6060_v27, 0.0  ;;  %v5643_v49 = vpop.permute.xlu1 %5642 }
 0x5c6   : > { %19150 = vst [vmem:[#allocation71_spill] sm:$0xff] %v17193_v46  ;;  %v17205_v31 = vmul.f32 %v16428_v42, %v5663_v12  ;;  %v6187_v7 = vmax.f32 %v6059_v10, 0.0  ;;  %7868 = vmatmul.mubr.bf16.gmra.mrb[168].mxu0 %v17193_v46  ;;  %8254 = vmatmul.mubr.bf16.gmra.mrb[168].mxu1 %v17193_v46  ;;  %v5914_v11 = vadd.f32 %v5786_v20, %v5507_v22  ;;  %v6137_v41 = vmax.f32 %v16722_v28, 0.0 }
 0x5c7   : > { %19151 = vst [vmem:[#allocation72_spill] sm:$0xff] %v17202_v59  ;;  %v5915_v9 = vadd.f32 %v5787_v1, %v5508_v52  ;;  %v5916_v0 = vadd.f32 %v5788_v25, %v5509_v48  ;;  %v5917_v17 = vadd.f32 %v5789_v26, %v5510_v21  ;;  %v17211_v14 = vmul.f32 %v16420_v60, %v5663_v12 }
 0x5c8   : > { %v19152_v18 = vmax.f32 %v16710_v44, 0.0  ;;  %v6133_v10 = vmax.f32 %v16701_v47, 0.0  ;;  %v6063_v27 = vadd.f32 %v16445_v4, %v5914_v11  ;;  %v17221_v52 = vmul.f32 %v16440_v24, %v5663_v12 }
 0x5c9   : > { %v6064_v46 = vadd.f32 %v16454_v58, %v5915_v9  ;;  %v5790_v28 = vmul.f32 %v16417_v37, %v5643_v49  ;;  %v5791_v22 = vmul.f32 %v16428_v42, %v5643_v49  ;;  %v5792_v48 = vmul.f32 %v16420_v60, %v5643_v49 }
 0x5ca   : > { %v17215_v59 = vpack.c.bf16 %v6138_v45, %v19152_v18  ;;  %v5793_v21 = vmul.f32 %v16440_v24, %v5643_v49  ;;  %v6142_v44 = vmax.f32 %v16769_v33, 0.0  ;;  %v6191_v45 = vmax.f32 %v6063_v27, 0.0  ;;  %v5362_v49 = vpop.permute.xlu1 %5361 }
 0x5cb   : > { %v5918_v18 = vadd.f32 %v5790_v28, %v17059_v56  ;;  %v6192_v47 = vmax.f32 %v6064_v46, 0.0  ;;  %v17229_v20 = vpack.c.bf16 %v6137_v41, %v6133_v10  ;;  %v17232_v9 = vadd.f32 %v16448_v51, %v5916_v0 }
 0x5cc   : > { %v5919_v12 = vadd.f32 %v5791_v22, %v17067_v29  ;;  %v5920_v1 = vadd.f32 %v5792_v48, %v17074_v35  ;;  %v5921_v25 = vadd.f32 %v5793_v21, %v17090_v2  ;;  %v17238_v26 = vadd.f32 %v16476_v38, %v5917_v17  ;;  %v5667_v2 = vpop.permute.xlu0 %5666 }
 0x5cd   : > { %19153 = vst [vmem:[#allocation73_spill] sm:$0xff] %v17229_v20  ;;  %v17240_v33 = vpack.c.bf16 %v6192_v47, %v6188_v13  ;;  %v17242_v56 = vpack.c.bf16 %v6191_v45, %v6187_v7  ;;  %v6146_v46 = vmax.f32 %v16790_v54, 0.0  ;;  %v6067_v11 = vadd.f32 %v16445_v4, %v5918_v18 }
 0x5ce   : > { %v6068_v0 = vadd.f32 %v16454_v58, %v5919_v12  ;;  %v17248_v29 = vadd.f32 %v16448_v51, %v5920_v1  ;;  %v5515_v35 = vmul.f32 %v16408_v8, %v5362_v49  ;;  %v17252_v17 = vadd.f32 %v16476_v38, %v5921_v25 }
 0x5cf   : > { %19154 = vst [vmem:[#allocation74_spill] sm:$0xff] %v17240_v33  ;;  %19155 = vst [vmem:[#allocation75_spill] sm:$0xff] %v17242_v56  ;;  %v5516_v13 = vmul.f32 %v16425_v39, %v5362_v49  ;;  %v5517_v7 = vmul.f32 %v16411_v34, %v5362_v49  ;;  %v5518_v41 = vmul.f32 %v16436_v19, %v5362_v49  ;;  %7877 = vmatprep.mubr.bf16.mxu0 %v17240_v33 }
 0x5d0   : > { %v5922_v54 = vadd.f32 %v17095_v63, %v5515_v35  ;;  %v17260_v10 = vmul.f32 %v16417_v37, %v5667_v2  ;;  %v17263_v27 = vmul.f32 %v16428_v42, %v5667_v2  ;;  %v17266_v28 = vmul.f32 %v16420_v60, %v5667_v2  ;;  %8263 = vmatprep.mubr.bf16.mxu1 %v17240_v33  ;;  %v5367_v63 = vpop.permute.xlu1 %5366 }
 0x5d1   : > { %v5923_v22 = vadd.f32 %v17104_v53, %v5516_v13  ;;  %v5924_v48 = vadd.f32 %v17107_v3, %v5517_v7  ;;  %v5925_v21 = vadd.f32 %v17113_v43, %v5518_v41  ;;  %7878 = vmatmul.mubr.bf16.gmra.mrb[172].mxu0 %v17242_v56  ;;  %8264 = vmatmul.mubr.bf16.gmra.mrb[172].mxu1 %v17242_v56  ;;  %v6141_v18 = vmax.f32 %v16759_v62, 0.0 }
 0x5d2   : > { %v6071_v47 = vadd.f32 %v16445_v4, %v5922_v54  ;;  %v5519_v45 = vmul.f32 %v16408_v8, %v5367_v63  ;;  %v5520_v12 = vmul.f32 %v16425_v39, %v5367_v63  ;;  %v5521_v1 = vmul.f32 %v16411_v34, %v5367_v63 }
 0x5d3   : > { %v6072_v53 = vadd.f32 %v16454_v58, %v5923_v22  ;;  %v17281_v3 = vmul.f32 %v16440_v24, %v5667_v2  ;;  %v5522_v43 = vmul.f32 %v16436_v19, %v5367_v63  ;;  %v6196_v25 = vmax.f32 %v6068_v0, 0.0 }
 0x5d4   : > { %v17285_v49 = vadd.f32 %v16448_v51, %v5924_v48  ;;  %v5926_v62 = vadd.f32 %v17131_v61, %v5519_v45  ;;  %v5927_v35 = vadd.f32 %v17138_v36, %v5520_v12  ;;  %v5928_v13 = vadd.f32 %v17146_v32, %v5521_v1  ;;  %v5372_v41 = vpop.permute.xlu1 %5371 }
 0x5d5   : > { %v5929_v7 = vadd.f32 %v17150_v15, %v5522_v43  ;;  %v6200_v54 = vmax.f32 %v6072_v53, 0.0  ;;  %v6199_v22 = vmax.f32 %v6071_v47, 0.0  ;;  %v17291_v56 = vpack.c.bf16 %v6146_v46, %v6142_v44  ;;  %v19159_v53 = vld [vmem:[#allocation34_spill] sm:$0xff] }
 0x5d6   : > { %v17294_v2 = vadd.f32 %v16476_v38, %v5925_v21  ;;  %v17297_v0 = vadd.f32 %v16445_v4, %v5926_v62  ;;  %v17300_v48 = vadd.f32 %v16454_v58, %v5927_v35  ;;  %v6195_v61 = vmax.f32 %v6067_v11, 0.0  ;;  %v19160_v62 = vld [vmem:[#allocation26_spill] sm:$0xff] }
 0x5d7   : > { %19156 = vst [vmem:[#allocation76_spill] sm:$0xff] %v17291_v56  ;;  %v17303_v36 = vadd.f32 %v16448_v51, %v5928_v13  ;;  %v17306_v32 = vadd.f32 %v16476_v38, %v5929_v7  ;;  %v5523_v15 = vmul.f32 %v16408_v8, %v5372_v41  ;;  %v5524_v44 = vmul.f32 %v16425_v39, %v5372_v41  ;;  %v19162_v7 = vld [vmem:[#allocation30_spill] sm:$0xff] }
 0x5d8   : > { %v5525_v46 = vmul.f32 %v16411_v34, %v5372_v41  ;;  %v5526_v21 = vmul.f32 %v16436_v19, %v5372_v41  ;;  %v17312_v63 = vpack.c.bf16 %v6200_v54, %v6196_v25  ;;  %v17314_v47 = vpack.c.bf16 %v6199_v22, %v6195_v61  ;;  %v19161_v25 = vld [vmem:[#allocation28_spill] sm:$0xff]  ;;  %v19166_v22 = vld [vmem:[#allocation55_spill] sm:$0xff]  ;;  %v5655_v61 = vpop.permute.xlu1 %5654 }
 0x5d9   : > { %v6204_v11 = vmax.f32 %v17300_v48, 0.0  ;;  %v6145_v45 = vmax.f32 %v16787_v23, 0.0  ;;  %v6150_v12 = vmax.f32 %v16822_v40, 0.0  ;;  %v6154_v1 = vmax.f32 %v16846_v30, 0.0  ;;  %v19165_v30 = vld [vmem:[#allocation40_spill] sm:$0xff] }
 0x5da   : > { %19157 = vst [vmem:[#allocation77_spill] sm:$0xff] %v17312_v63  ;;  %19158 = vst [vmem:[#allocation78_spill] sm:$0xff] %v17314_v47  ;;  %7887 = vmatprep.mubr.bf16.mxu0 %v17312_v63  ;;  %8273 = vmatprep.mubr.bf16.mxu1 %v17312_v63  ;;  %v6149_v43 = vmax.f32 %v19159_v53, 0.0  ;;  %v6153_v35 = vmax.f32 %v19160_v62, 0.0  ;;  %v6158_v13 = vmax.f32 %v19161_v25, 0.0  ;;  %v6162_v41 = vmax.f32 %v19162_v7, 0.0 }
 0x5db   : > { %7888 = vmatmul.mubr.bf16.gmra.mrb[176].mxu0 %v17314_v47  ;;  %8274 = vmatmul.mubr.bf16.gmra.mrb[176].mxu1 %v17314_v47  ;;  %v17328_v23 = vpack.c.bf16 %v6145_v45, %v6141_v18  ;;  %v17330_v40 = vpack.c.bf16 %v6154_v1, %v6150_v12  ;;  %v6157_v54 = vmax.f32 %v19165_v30, 0.0  ;;  %v6161_v48 = vmax.f32 %v19166_v22, 0.0  ;;  %v19169_v25 = vld [vmem:[#allocation58_spill] sm:$0xff]  ;;  %v19170_v7 = vld [vmem:[#allocation59_spill] sm:$0xff] }
 0x5dc   : > { %v17334_v53 = vpack.c.bf16 %v6153_v35, %v6149_v43  ;;  %v17336_v62 = vpack.c.bf16 %v6162_v41, %v6158_v13  ;;  %v6166_v63 = vmax.f32 %v19169_v25, 0.0  ;;  %v6170_v33 = vmax.f32 %v19170_v7, 0.0  ;;  %v19171_v43 = vld [vmem:[#allocation31_spill] sm:$0xff]  ;;  %v19172_v13 = vld [vmem:[#allocation33_spill] sm:$0xff] }
 0x5dd   : > { %19163 = vst [vmem:[#allocation34_spill] sm:$0xff] %v17328_v23  ;;  %19164 = vst [vmem:[#allocation26_spill] sm:$0xff] %v17330_v40  ;;  %v5802_v56 = vmul.f32 %v16417_v37, %v5655_v61  ;;  %v5803_v18 = vmul.f32 %v16428_v42, %v5655_v61  ;;  %v5804_v45 = vmul.f32 %v16420_v60, %v5655_v61  ;;  %v6165_v35 = vmax.f32 %v19171_v43, 0.0  ;;  %v19173_v23 = vld [vmem:[#allocation63_spill] sm:$0xff] }
 0x5de   : > { %19167 = vst [vmem:[#allocation28_spill] sm:$0xff] %v17334_v53  ;;  %19168 = vst [vmem:[#allocation30_spill] sm:$0xff] %v17336_v62  ;;  %v5805_v12 = vmul.f32 %v16440_v24, %v5655_v61  ;;  %v17344_v1 = vpack.c.bf16 %v6161_v48, %v6157_v54  ;;  %v17346_v30 = vpack.c.bf16 %v6170_v33, %v6166_v63  ;;  %v6169_v41 = vmax.f32 %v19172_v13, 0.0  ;;  %v5659_v62 = vpop.permute.xlu1 %5658  ;;  %v19174_v61 = vld [vmem:[#allocation39_spill] sm:$0xff]  ;;  %v19175_v48 = vld [vmem:[#allocation60_spill] sm:$0xff] }
 0x5df   : > { %v5930_v22 = vadd.f32 %v5802_v56, %v5523_v15  ;;  %v5931_v25 = vadd.f32 %v5803_v18, %v5524_v44  ;;  %v5932_v47 = vadd.f32 %v5804_v45, %v5525_v46  ;;  %v6203_v53 = vmax.f32 %v17297_v0, 0.0  ;;  %v19176_v13 = vld [vmem:[#allocation35_spill] sm:$0xff] }
 0x5e0   : > { %v5933_v7 = vadd.f32 %v5805_v12, %v5526_v21  ;;  %v17351_v40 = vpack.c.bf16 %v6169_v41, %v6165_v35  ;;  %v6178_v20 = vmax.f32 %v19173_v23, 0.0  ;;  %v6177_v54 = vmax.f32 %v19174_v61, 0.0 }
 0x5e1   : > { %v6079_v33 = vadd.f32 %v16445_v4, %v5930_v22  ;;  %v6080_v63 = vadd.f32 %v16454_v58, %v5931_v25  ;;  %v6174_v43 = vmax.f32 %v19175_v48, 0.0  ;;  %v6173_v56 = vmax.f32 %v19176_v13, 0.0 }
 0x5e2   : > { %v5806_v15 = vmul.f32 %v16417_v37, %v5659_v62  ;;  %v5807_v44 = vmul.f32 %v16428_v42, %v5659_v62  ;;  %v5808_v0 = vmul.f32 %v16420_v60, %v5659_v62  ;;  %v5809_v46 = vmul.f32 %v16440_v24, %v5659_v62  ;;  %v5382_v61 = vpop.permute.xlu1 %5381 }
 0x5e3   : > { %v6208_v21 = vmax.f32 %v6080_v63, 0.0  ;;  %v6207_v23 = vmax.f32 %v6079_v33, 0.0  ;;  %v17363_v18 = vpack.c.bf16 %v6178_v20, %v6174_v43  ;;  %v17365_v45 = vpack.c.bf16 %v6177_v54, %v6173_v56  ;;  %v19177_v63 = vld [vmem:[#allocation72_spill] sm:$0xff] }
 0x5e4   : > { %v5934_v12 = vadd.f32 %v5806_v15, %v17180_v55  ;;  %v5935_v35 = vadd.f32 %v5807_v44, %v17183_v6  ;;  %v5936_v41 = vadd.f32 %v5808_v0, %v17186_v50  ;;  %v5937_v22 = vadd.f32 %v5809_v46, %v17189_v16  ;;  %v19178_v46 = vld [vmem:[#allocation64_spill] sm:$0xff] }
 0x5e5   : > { %v17372_v25 = vadd.f32 %v16448_v51, %v5932_v47  ;;  %v17374_v48 = vpack.c.bf16 %v6208_v21, %v6204_v11  ;;  %v17376_v62 = vpack.c.bf16 %v6207_v23, %v6203_v53  ;;  %v6186_v20 = vmax.f32 %v17159_v5, 0.0  ;;  %v19179_v23 = vld [vmem:[#allocation67_spill] sm:$0xff] }
 0x5e6   : > { %v17380_v54 = vadd.f32 %v16476_v38, %v5933_v7  ;;  %v6083_v55 = vadd.f32 %v16445_v4, %v5934_v12  ;;  %v6084_v6 = vadd.f32 %v16454_v58, %v5935_v35  ;;  %v6182_v50 = vmax.f32 %v17126_v57, 0.0  ;;  %v5387_v44 = vpop.permute.xlu1 %5386 }
 0x5e7   : > { %v5531_v16 = vmul.f32 %v16408_v8, %v5382_v61  ;;  %v5532_v47 = vmul.f32 %v16425_v39, %v5382_v61  ;;  %v5533_v11 = vmul.f32 %v16411_v34, %v5382_v61  ;;  %v5534_v53 = vmul.f32 %v16436_v19, %v5382_v61  ;;  %7897 = vmatprep.mubr.bf16.mxu0 %v17374_v48  ;;  %v19180_v61 = vld [vmem:[#allocation69_spill] sm:$0xff] }
 0x5e8   : > { %v17391_v5 = vadd.f32 %v16448_v51, %v5936_v41  ;;  %v17394_v7 = vadd.f32 %v16476_v38, %v5937_v22  ;;  %8283 = vmatprep.mubr.bf16.mxu1 %v17374_v48  ;;  %7898 = vmatmul.mubr.bf16.gmra.mrb[180].mxu0 %v17376_v62  ;;  %v6212_v57 = vmax.f32 %v6084_v6, 0.0  ;;  %v17398_v33 = vpack.c.bf16 %v6186_v20, %v6182_v50  ;;  %v19181_v20 = vld [vmem:[#allocation68_spill] sm:$0xff] }
 0x5e9   : > { %v5938_v43 = vadd.f32 %v19177_v63, %v5531_v16  ;;  %v5939_v13 = vadd.f32 %v17205_v31, %v5532_v47  ;;  %v5940_v56 = vadd.f32 %v17211_v14, %v5533_v11  ;;  %v5941_v15 = vadd.f32 %v17221_v52, %v5534_v53  ;;  %8284 = vmatmul.mubr.bf16.gmra.mrb[180].mxu1 %v17376_v62 }
 0x5ea   : > { %v6211_v0 = vmax.f32 %v6083_v55, 0.0  ;;  %v6181_v21 = vmax.f32 %v19178_v46, 0.0  ;;  %v6185_v12 = vmax.f32 %v19179_v23, 0.0  ;;  %v6194_v35 = vmax.f32 %v17238_v26, 0.0  ;;  %v5392_v46 = vpop.permute.xlu1 %5391 }
 0x5eb   : > { %v6087_v41 = vadd.f32 %v16445_v4, %v5938_v43  ;;  %v6088_v22 = vadd.f32 %v16454_v58, %v5939_v13  ;;  %v6190_v31 = vmax.f32 %v19180_v61, 0.0  ;;  %v6189_v14 = vmax.f32 %v19181_v20, 0.0 }
 0x5ec   : > { %v5535_v52 = vmul.f32 %v16408_v8, %v5387_v44  ;;  %v5536_v6 = vmul.f32 %v16425_v39, %v5387_v44  ;;  %v5537_v55 = vmul.f32 %v16411_v34, %v5387_v44  ;;  %v5538_v50 = vmul.f32 %v16436_v19, %v5387_v44 }
 0x5ed   : > { %v6216_v16 = vmax.f32 %v6088_v22, 0.0  ;;  %v6215_v47 = vmax.f32 %v6087_v41, 0.0  ;;  %v17416_v11 = vpack.c.bf16 %v6185_v12, %v6181_v21  ;;  %v17418_v26 = vpack.c.bf16 %v6194_v35, %v6190_v31 }
 0x5ee   : > { %v5942_v53 = vadd.f32 %v17260_v10, %v5535_v52  ;;  %v5943_v63 = vadd.f32 %v17263_v27, %v5536_v6  ;;  %v5944_v43 = vadd.f32 %v17266_v28, %v5537_v55  ;;  %v5945_v13 = vadd.f32 %v17281_v3, %v5538_v50 }
 0x5ef   : > { %19182 = vst [vmem:[#allocation40_spill] sm:$0xff] %v17416_v11  ;;  %19183 = vst [vmem:[#allocation55_spill] sm:$0xff] %v17418_v26  ;;  %v6089_v23 = vadd.f32 %v16448_v51, %v5940_v56  ;;  %v6090_v61 = vadd.f32 %v16476_v38, %v5941_v15  ;;  %v5539_v44 = vmul.f32 %v16408_v8, %v5392_v46  ;;  %v6193_v56 = vmax.f32 %v17232_v9, 0.0 }
 0x5f0   : > { %v5540_v21 = vmul.f32 %v16425_v39, %v5392_v46  ;;  %v6091_v12 = vadd.f32 %v16445_v4, %v5942_v53  ;;  %v6092_v35 = vadd.f32 %v16454_v58, %v5943_v63  ;;  %v5541_v10 = vmul.f32 %v16411_v34, %v5392_v46 }
 0x5f1   : > { %v5542_v27 = vmul.f32 %v16436_v19, %v5392_v46  ;;  %v6093_v28 = vadd.f32 %v16448_v51, %v5944_v43  ;;  %v17433_v3 = vpack.c.bf16 %v6216_v16, %v6212_v57  ;;  %v17435_v41 = vpack.c.bf16 %v6215_v47, %v6211_v0 }
 0x5f2   : > { %v6094_v8 = vadd.f32 %v16476_v38, %v5945_v13  ;;  %v6198_v39 = vmax.f32 %v17252_v17, 0.0  ;;  %v6202_v15 = vmax.f32 %v17294_v2, 0.0  ;;  %v6197_v22 = vmax.f32 %v17248_v29, 0.0  ;;  %v5671_v17 = vpop.permute.xlu1 %5670 }
 0x5f3   : > { %7907 = vmatprep.mubr.bf16.mxu0 %v17433_v3  ;;  %8293 = vmatprep.mubr.bf16.mxu1 %v17433_v3  ;;  %v17444_v34 = vpack.c.bf16 %v6193_v56, %v6189_v14  ;;  %v6201_v19 = vmax.f32 %v17285_v49, 0.0  ;;  %v6206_v57 = vmax.f32 %v17306_v32, 0.0  ;;  %v6210_v9 = vmax.f32 %v17380_v54, 0.0  ;;  %v19194_v56 = vld [vmem:[#allocation44_spill] sm:$0xff] }
 0x5f4   : > { %7908 = vmatmul.mubr.bf16.gmra.mrb[184].mxu0 %v17435_v41  ;;  %8294 = vmatmul.mubr.bf16.gmra.mrb[184].mxu1 %v17435_v41  ;;  %v17451_v2 = vpack.c.bf16 %v6202_v15, %v6198_v39  ;;  %v6205_v29 = vmax.f32 %v17303_v36, 0.0  ;;  %v6209_v0 = vmax.f32 %v17372_v25, 0.0  ;;  %v6214_v31 = vmax.f32 %v17394_v7, 0.0  ;;  %v14165_v39 = vld [vmem:[#allocation10 + $0x48] ss:$28 sps:$4 sm:$0xff]  }
 0x5f5   : > { %19184 = vst [vmem:[#allocation58_spill] sm:$0xff] %v17444_v34  ;;  %v5818_v20 = vmul.f32 %v16417_v37, %v5671_v17  ;;  %v5819_v49 = vmul.f32 %v16428_v42, %v5671_v17  ;;  %v5820_v32 = vmul.f32 %v16420_v60, %v5671_v17  ;;  %v5821_v54 = vmul.f32 %v16440_v24, %v5671_v17  ;;  %v14169_v15 = vld [vmem:[#allocation10 + $0x50] ss:$28 sps:$4 sm:$0xff]   ;;  %v14175_v17 = vld [vmem:[#allocation10 + $0xbc] ss:$28 sps:$4 sm:$0xff]  }
 0x5f6   : > { %19185 = vst [vmem:[#allocation59_spill] sm:$0xff] %v17451_v2  ;;  %v17460_v14 = vpack.c.bf16 %v6201_v19, %v6197_v22  ;;  %v17462_v52 = vpack.c.bf16 %v6210_v9, %v6206_v57  ;;  %v17464_v6 = vpack.c.bf16 %v6209_v0, %v6205_v29  ;;  %v6218_v55 = vmax.f32 %v6090_v61, 0.0  ;;  %v14172_v22 = vld [vmem:[#allocation10 + $0x84] ss:$28 sps:$4 sm:$0xff]   ;;  %v19196_v0 = vld [vmem:[#allocation38_spill] sm:$0xff] }
 0x5f7   : > { %v5946_v36 = vadd.f32 %v5818_v20, %v5539_v44  ;;  %v5947_v50 = vadd.f32 %v5819_v49, %v5540_v21  ;;  %v5948_v25 = vadd.f32 %v5820_v32, %v5541_v10  ;;  %v5949_v16 = vadd.f32 %v5821_v54, %v5542_v27  ;;  %v14176_v19 = vld [vmem:[#allocation10 + $0x248] ss:$28 sps:$4 sm:$0xff]   ;;  %v14170_v57 = vld [vmem:[#allocation10 + $0x80] ss:$28 sps:$4 sm:$0xff]   ;;  %v14173_v20 = vld [vmem:[#allocation10 + $0xb8] ss:$28 sps:$4 sm:$0xff]  }
 0x5f8   : > { %19186 = vst [vmem:[#allocation31_spill] sm:$0xff] %v17460_v14  ;;  %19187 = vst [vmem:[#allocation33_spill] sm:$0xff] %v17462_v52  ;;  %v6220_v7 = vmax.f32 %v6092_v35, 0.0  ;;  %v17466_v47 = vpack.c.bf16 %v6218_v55, %v6214_v31  ;;  %v6213_v37 = vmax.f32 %v17391_v5, 0.0  ;;  %v6217_v42 = vmax.f32 %v6089_v23, 0.0  ;;  %v19197_v31 = vld [vmem:[#allocation53_spill] sm:$0xff] }
 0x5f9   : > { %19188 = vst [vmem:[#allocation63_spill] sm:$0xff] %v17464_v6  ;;  %v6095_v60 = vadd.f32 %v16445_v4, %v5946_v36  ;;  %v6096_v24 = vadd.f32 %v16454_v58, %v5947_v50  ;;  %v6097_v53 = vadd.f32 %v16448_v51, %v5948_v25  ;;  %v6098_v63 = vadd.f32 %v16476_v38, %v5949_v16  ;;  %v19193_v51 = vld [vmem:[#allocation45_spill] sm:$0xff]  ;;  %v14161_v38 = vld [vmem:[#allocation10 + $0x18] ss:$28 sps:$4 sm:$0xff]   ;;  %v14177_v9 = vld [vmem:[#allocation10 + $0x88] ss:$28 sps:$4 sm:$0xff]  }
 0x5fa   : > { %19189 = vst [vmem:[#allocation39_spill] sm:$0xff] %v17466_v47  ;;  %v6219_v43 = vmax.f32 %v6091_v12, 0.0  ;;  %v17473_v13 = vpack.c.bf16 %v6217_v42, %v6213_v37  ;;  %v6222_v46 = vmax.f32 %v6094_v8, 0.0  ;;  %v6221_v61 = vmax.f32 %v6093_v28, 0.0  ;;  %v14162_v23 = vld [vmem:[#allocation10 + $0x10] ss:$28 sps:$4 sm:$0xff]  }
 0x5fb   : > { %v6224_v44 = vmax.f32 %v6096_v24, 0.0  ;;  %v6223_v21 = vmax.f32 %v6095_v60, 0.0  ;;  %v6226_v35 = vmax.f32 %v6098_v63, 0.0  ;;  %v6225_v10 = vmax.f32 %v6097_v53, 0.0  ;;  %v14167_v12 = vld [vmem:[#allocation10 + $0x4c] ss:$28 sps:$4 sm:$0xff]  }
 0x5fc   : > { %19190 = vst [vmem:[#allocation60_spill] sm:$0xff] %v17473_v13  ;;  %v14168_v28 = vld [vmem:[#allocation10 + $0x210] ss:$28 sps:$4 sm:$0xff]   ;;  %v19195_v8 = vld [vmem:[#allocation48_spill] sm:$0xff]  ;;  %v14184_v29 = vld [vmem:[#allocation10 + $0x280] ss:$28 sps:$4 sm:$0xff]  }
 0x5fd   : > { %v17475_v27 = vpack.c.bf16 %v6224_v44, %v6220_v7  ;;  %v17477_v5 = vpack.c.bf16 %v6223_v21, %v6219_v43  ;;  %v17479_v4 = vpack.c.bf16 %v6226_v35, %v6222_v46  ;;  %v17481_v58 = vpack.c.bf16 %v6225_v10, %v6221_v61  ;;  %v14185_v49 = vld [vmem:[#allocation10 + $0xc0] ss:$28 sps:$4 sm:$0xff]   ;;  %v14180_v32 = vld [vmem:[#allocation10 + $0xf4] ss:$28 sps:$4 sm:$0xff]   ;;  %v14183_v50 = vld [vmem:[#allocation10 + $0x12c] ss:$28 sps:$4 sm:$0xff]  }
 0x5fe   : > { %v14192_v54 = vld [vmem:[#allocation10 + $0x2b8] ss:$28 sps:$4 sm:$0xff]   ;;  %v14178_v55 = vld [vmem:[#allocation10 + $0xf0] ss:$28 sps:$4 sm:$0xff]   ;;  %v19198_v16 = vld [vmem:[#allocation27_spill] sm:$0xff] }
 0x5ff   : > { %19191 = vst [vmem:[#allocation35_spill] sm:$0xff] %v17479_v4  ;;  %19192 = vst [vmem:[#allocation72_spill] sm:$0xff] %v17481_v58  ;;  %7917 = vmatprep.mubr.bf16.mxu0 %v17475_v27  ;;  %8303 = vmatprep.mubr.bf16.mxu1 %v17475_v27  ;;  %v14193_v36 = vld [vmem:[#allocation10 + $0xf8] ss:$28 sps:$4 sm:$0xff]   ;;  %v14200_v25 = vld [vmem:[#allocation10 + $0x2f0] ss:$28 sps:$4 sm:$0xff]  }
 0x600   : > { %7918 = vmatmul.mubr.bf16.gmra.mrb[188].mxu0 %v17477_v5  ;;  %8304 = vmatmul.mubr.bf16.gmra.mrb[188].mxu1 %v17477_v5  ;;  %v19199_v7 = vld [vmem:[#allocation62_spill] sm:$0xff]  ;;  %v14181_v37 = vld [vmem:[#allocation10 + $0x128] ss:$28 sps:$4 sm:$0xff]   ;;  %v14201_v42 = vld [vmem:[#allocation10 + $0x130] ss:$28 sps:$4 sm:$0xff]  }
 0x601   : > { %7960 = vmatprep.mubr.bf16.mxu0 %v19193_v51  ;;  %8346 = vmatprep.mubr.bf16.mxu1 %v19193_v51  ;;  %v14188_v60 = vld [vmem:[#allocation10 + $0x164] ss:$28 sps:$4 sm:$0xff]   ;;  %v14191_v43 = vld [vmem:[#allocation10 + $0x19c] ss:$28 sps:$4 sm:$0xff]   ;;  %v19200_v61 = vld [vmem:[#allocation41_spill] sm:$0xff] }
 0x602   : > { %v14208_v24 = vld [vmem:[#allocation10 + $0x328] ss:$28 sps:$4 sm:$0xff]   ;;  %v14186_v53 = vld [vmem:[#allocation10 + $0x160] ss:$28 sps:$4 sm:$0xff]   ;;  %v14189_v44 = vld [vmem:[#allocation10 + $0x198] ss:$28 sps:$4 sm:$0xff]  }
 0x603   : > { %v14209_v63 = vld [vmem:[#allocation10 + $0x168] ss:$28 sps:$4 sm:$0xff]   ;;  %v14216_v46 = vld [vmem:[#allocation10 + $0x360] ss:$28 sps:$4 sm:$0xff]   ;;  %v14196_v35 = vld [vmem:[#allocation10 + $0x1d4] ss:$28 sps:$4 sm:$0xff]  }
 0x604   : > { %v14217_v21 = vld [vmem:[#allocation10 + $0x1a0] ss:$28 sps:$4 sm:$0xff]   ;;  %v14224_v10 = vld [vmem:[#allocation10 + $0x558] ss:$28 sps:$4 sm:$0xff]  }
 0x608   : > { %7961 = vmatmul.mubr.bf16.vlgmr.msra.gmra.mrb[128].mxu0 %v19194_v56  ;;  %8347 = vmatmul.mubr.bf16.vlgmr.msra.gmra.mrb[128].mxu1 %v19194_v56 }
 0x609   : > { %7970 = vmatprep.mubr.bf16.mxu0 %v19195_v8  ;;  %8356 = vmatprep.mubr.bf16.mxu1 %v19195_v8 }
 0x60a   : > { %12158 = vmatpush3.bf16.msra.mxu1 %v14161_v38  ;;  %8508 = vmatpush1.bf16.msra.mxu0 %v14162_v23  ;;  %v14194_v38 = vld [vmem:[#allocation10 + $0x1d0] ss:$28 sps:$4 sm:$0xff]  }
 0x60b   : > { %8509 = vmatprep.subr.bf16.mxu0 %v14167_v12  ;;  %12159 = vmatprep.subr.bf16.mxu1 %v14168_v28  ;;  %v14199_v23 = vld [vmem:[#allocation10 + $0x20c] ss:$28 sps:$4 sm:$0xff]  }
 0x60c   : > { %v19201_v12 = vld [vmem:[#allocation73_spill] sm:$0xff]  ;;  %v19202_v28 = vld [vmem:[#allocation76_spill] sm:$0xff] }
 0x60e   : > { %8510 = vmatpush1.bf16.msra.mxu0 %v14165_v39  ;;  %12160 = vmatpush3.bf16.msra.mxu1 %v14169_v15  ;;  %v14197_v39 = vld [vmem:[#allocation10 + $0x208] ss:$28 sps:$4 sm:$0xff]  }
 0x60f   : > { %8511 = vmatprep.subr.bf16.mxu0 %v14172_v22  ;;  %12161 = vmatprep.subr.bf16.mxu1 %v14176_v19  ;;  %v14204_v15 = vld [vmem:[#allocation10 + $0x244] ss:$28 sps:$4 sm:$0xff]   ;;  %v14207_v19 = vld [vmem:[#allocation10 + $0x27c] ss:$28 sps:$4 sm:$0xff]  }
 0x610   : > { %7971 = vmatmul.mubr.bf16.gmra.mrb[132].mxu0 %v19196_v0  ;;  %8357 = vmatmul.mubr.bf16.gmra.mrb[132].mxu1 %v19196_v0  ;;  %v14202_v22 = vld [vmem:[#allocation10 + $0x240] ss:$28 sps:$4 sm:$0xff]  }
 0x611   : > { %7980 = vmatprep.mubr.bf16.mxu0 %v19197_v31  ;;  %8366 = vmatprep.mubr.bf16.mxu1 %v19197_v31 }
 0x612   : > { %8512 = vmatpush1.bf16.msra.mxu0 %v14170_v57  ;;  %12162 = vmatpush3.bf16.msra.mxu1 %v14177_v9  ;;  %v19203_v57 = vld [vmem:[#allocation34_spill] sm:$0xff] }
 0x613   : > { %8513 = vmatprep.subr.bf16.mxu0 %v14175_v17  ;;  %12163 = vmatprep.subr.bf16.mxu1 %v14184_v29  ;;  %v19204_v9 = vld [vmem:[#allocation26_spill] sm:$0xff] }
 0x614   : > { %v14205_v17 = vld [vmem:[#allocation10 + $0x278] ss:$28 sps:$4 sm:$0xff]  }
 0x615   : > { %v14212_v29 = vld [vmem:[#allocation10 + $0x2b4] ss:$28 sps:$4 sm:$0xff]  }
 0x616   : > { %8514 = vmatpush1.bf16.msra.mxu0 %v14173_v20  ;;  %12164 = vmatpush3.bf16.msra.mxu1 %v14185_v49  ;;  %v14210_v20 = vld [vmem:[#allocation10 + $0x2b0] ss:$28 sps:$4 sm:$0xff]  }
 0x617   : > { %8515 = vmatprep.subr.bf16.mxu0 %v14180_v32  ;;  %12165 = vmatprep.subr.bf16.mxu1 %v14192_v54  ;;  %v14215_v49 = vld [vmem:[#allocation10 + $0x2ec] ss:$28 sps:$4 sm:$0xff]   ;;  %v19206_v54 = vld [vmem:[#allocation30_spill] sm:$0xff] }
 0x618   : > { %7981 = vmatmul.mubr.bf16.gmra.mrb[136].mxu0 %v19198_v16  ;;  %8367 = vmatmul.mubr.bf16.gmra.mrb[136].mxu1 %v19198_v16  ;;  %v19205_v32 = vld [vmem:[#allocation28_spill] sm:$0xff] }
 0x619   : > { %7990 = vmatprep.mubr.bf16.mxu0 %v19199_v7  ;;  %8376 = vmatprep.mubr.bf16.mxu1 %v19199_v7 }
 0x61a   : > { %8516 = vmatpush1.bf16.msra.mxu0 %v14178_v55  ;;  %12166 = vmatpush3.bf16.msra.mxu1 %v14193_v36  ;;  %v14213_v55 = vld [vmem:[#allocation10 + $0x2e8] ss:$28 sps:$4 sm:$0xff]  }
 0x61b   : > { %8517 = vmatprep.subr.bf16.mxu0 %v14183_v50  ;;  %12167 = vmatprep.subr.bf16.mxu1 %v14200_v25  ;;  %v14220_v36 = vld [vmem:[#allocation10 + $0x324] ss:$28 sps:$4 sm:$0xff]   ;;  %v14223_v25 = vld [vmem:[#allocation10 + $0x35c] ss:$28 sps:$4 sm:$0xff]  }
 0x61c   : > { %v14218_v50 = vld [vmem:[#allocation10 + $0x320] ss:$28 sps:$4 sm:$0xff]  }
 0x61e   : > { %8518 = vmatpush1.bf16.msra.mxu0 %v14181_v37  ;;  %12168 = vmatpush3.bf16.msra.mxu1 %v14201_v42  ;;  %v14221_v37 = vld [vmem:[#allocation10 + $0x358] ss:$28 sps:$4 sm:$0xff]  }
 0x61f   : > { %8519 = vmatprep.subr.bf16.mxu0 %v14188_v60  ;;  %12169 = vmatprep.subr.bf16.mxu1 %v14208_v24  ;;  %v14228_v42 = vld [vmem:[#allocation10 + $0x394] ss:$28 sps:$4 sm:$0xff]  }
 0x620   : > { %7991 = vmatmul.mubr.bf16.gmra.mrb[140].mxu0 %v19200_v61  ;;  %8377 = vmatmul.mubr.bf16.gmra.mrb[140].mxu1 %v19200_v61  ;;  %v19207_v60 = vld [vmem:[#allocation42_spill] sm:$0xff] }
 0x621   : > { %8000 = vmatprep.mubr.bf16.mxu0 %v17215_v59  ;;  %8386 = vmatprep.mubr.bf16.mxu1 %v17215_v59  ;;  %v14225_v24 = vld [vmem:[#allocation10 + $0x398] ss:$28 sps:$4 sm:$0xff]  }
 0x622   : > { %8520 = vmatpush1.bf16.msra.mxu0 %v14186_v53  ;;  %12170 = vmatpush3.bf16.msra.mxu1 %v14209_v63  ;;  %v14226_v53 = vld [vmem:[#allocation10 + $0x390] ss:$28 sps:$4 sm:$0xff]  }
 0x623   : > { %8521 = vmatprep.subr.bf16.mxu0 %v14191_v43  ;;  %12171 = vmatprep.subr.bf16.mxu1 %v14216_v46  ;;  %v14231_v63 = vld [vmem:[#allocation10 + $0x3cc] ss:$28 sps:$4 sm:$0xff]   ;;  %v19208_v46 = vld [vmem:[#allocation43_spill] sm:$0xff] }
 0x624   : > { %v14232_v43 = vld [vmem:[#allocation10 + $0x590] ss:$28 sps:$4 sm:$0xff]  }
 0x626   : > { %8522 = vmatpush1.bf16.msra.mxu0 %v14189_v44  ;;  %12172 = vmatpush3.bf16.msra.mxu1 %v14217_v21  ;;  %v19209_v44 = vld [vmem:[#allocation46_spill] sm:$0xff]  ;;  %v14229_v21 = vld [vmem:[#allocation10 + $0x3c8] ss:$28 sps:$4 sm:$0xff]  }
 0x627   : > { %8523 = vmatprep.subr.bf16.mxu0 %v14196_v35  ;;  %12269 = vmatprep.subr.bf16.mxu1 %v14224_v10  ;;  %v14233_v35 = vld [vmem:[#allocation10 + $0x3d0] ss:$28 sps:$4 sm:$0xff]   ;;  %v14236_v10 = vld [vmem:[#allocation10 + $0x404] ss:$28 sps:$4 sm:$0xff]  }
 0x628   : > { %8001 = vmatmul.mubr.bf16.gmra.mrb[144].mxu0 %v19201_v12  ;;  %8387 = vmatmul.mubr.bf16.gmra.mrb[144].mxu1 %v19201_v12 }
 0x629   : > { %8010 = vmatprep.mubr.bf16.mxu0 %v19202_v28  ;;  %8396 = vmatprep.mubr.bf16.mxu1 %v19202_v28 }
 0x62a   : > { %8524 = vmatpush1.bf16.msra.mxu0 %v14194_v38  ;;  %v14240_v38 = vld [vmem:[#allocation10 + $0x5c8] ss:$28 sps:$4 sm:$0xff]  }
 0x62b   : > { %8525 = vmatprep.subr.bf16.mxu0 %v14199_v23  ;;  %v14234_v23 = vld [vmem:[#allocation10 + $0x400] ss:$28 sps:$4 sm:$0xff]  }
 0x62e   : > { %8526 = vmatpush1.bf16.msra.mxu0 %v14197_v39  ;;  %v14241_v39 = vld [vmem:[#allocation10 + $0x408] ss:$28 sps:$4 sm:$0xff]  }
 0x62f   : > { %8527 = vmatprep.subr.bf16.mxu0 %v14204_v15  ;;  %v14239_v15 = vld [vmem:[#allocation10 + $0x43c] ss:$28 sps:$4 sm:$0xff]  }
 0x630   : > { %8011 = vmatmul.mubr.bf16.gmra.mrb[148].mxu0 %v19203_v57  ;;  %8397 = vmatmul.mubr.bf16.gmra.mrb[148].mxu1 %v19203_v57 }
 0x631   : > { %8020 = vmatprep.mubr.bf16.mxu0 %v19204_v9  ;;  %8406 = vmatprep.mubr.bf16.mxu1 %v19204_v9 }
 0x632   : > { %8528 = vmatpush1.bf16.msra.mxu0 %v14202_v22  ;;  %v14248_v22 = vld [vmem:[#allocation10 + $0x600] ss:$28 sps:$4 sm:$0xff]  }
 0x633   : > { %8529 = vmatprep.subr.bf16.mxu0 %v14207_v19  ;;  %v19210_v19 = vld [vmem:[#allocation47_spill] sm:$0xff] }
 0x636   : > { %8530 = vmatpush1.bf16.msra.mxu0 %v14205_v17  ;;  %v19211_v17 = vld [vmem:[#allocation49_spill] sm:$0xff] }
 0x637   : > { %8531 = vmatprep.subr.bf16.mxu0 %v14212_v29  ;;  %v14237_v29 = vld [vmem:[#allocation10 + $0x438] ss:$28 sps:$4 sm:$0xff]  }
 0x638   : > { %8021 = vmatmul.mubr.bf16.gmra.mrb[152].mxu0 %v19205_v32  ;;  %8407 = vmatmul.mubr.bf16.gmra.mrb[152].mxu1 %v19205_v32 }
 0x639   : > { %8030 = vmatprep.mubr.bf16.mxu0 %v19206_v54  ;;  %8416 = vmatprep.mubr.bf16.mxu1 %v19206_v54 }
 0x63a   : > { %8532 = vmatpush1.bf16.msra.mxu0 %v14210_v20  ;;  %v14249_v20 = vld [vmem:[#allocation10 + $0x440] ss:$28 sps:$4 sm:$0xff]  }
 0x63b   : > { %8533 = vmatprep.subr.bf16.mxu0 %v14215_v49  ;;  %v14244_v49 = vld [vmem:[#allocation10 + $0x474] ss:$28 sps:$4 sm:$0xff]  }
 0x63e   : > { %8534 = vmatpush1.bf16.msra.mxu0 %v14213_v55  ;;  %v14256_v55 = vld [vmem:[#allocation10 + $0x638] ss:$28 sps:$4 sm:$0xff]  }
 0x63f   : > { %8535 = vmatprep.subr.bf16.mxu0 %v14220_v36  ;;  %v14242_v36 = vld [vmem:[#allocation10 + $0x470] ss:$28 sps:$4 sm:$0xff]  }
 0x640   : > { %8031 = vmatmul.mubr.bf16.gmra.mrb[156].mxu0 %v17344_v1  ;;  %8417 = vmatmul.mubr.bf16.gmra.mrb[156].mxu1 %v17344_v1 }
 0x641   : > { %8040 = vmatprep.mubr.bf16.mxu0 %v17346_v30  ;;  %8426 = vmatprep.mubr.bf16.mxu1 %v17346_v30 }
 0x642   : > { %8536 = vmatpush1.bf16.msra.mxu0 %v14218_v50  ;;  %v14257_v50 = vld [vmem:[#allocation10 + $0x478] ss:$28 sps:$4 sm:$0xff]  }
 0x643   : > { %8537 = vmatprep.subr.bf16.mxu0 %v14223_v25  ;;  %v14247_v25 = vld [vmem:[#allocation10 + $0x4ac] ss:$28 sps:$4 sm:$0xff]  }
 0x646   : > { %8538 = vmatpush1.bf16.msra.mxu0 %v14221_v37  ;;  %v14264_v37 = vld [vmem:[#allocation10 + $0x670] ss:$28 sps:$4 sm:$0xff]  }
 0x647   : > { %8700 = vmatprep.subr.bf16.mxu0 %v14228_v42  ;;  %v19212_v42 = vld [vmem:[#allocation50_spill] sm:$0xff] }
 0x648   : > { %8041 = vmatmul.mubr.bf16.gmra.mrb[160].mxu0 %v17351_v40  ;;  %8427 = vmatmul.mubr.bf16.gmra.mrb[160].mxu1 %v17351_v40 }
 0x649   : > { %8050 = vmatprep.mubr.bf16.mxu0 %v17363_v18  ;;  %8436 = vmatprep.mubr.bf16.mxu1 %v17363_v18 }
 0x650   : > { %8051 = vmatmul.mubr.bf16.gmra.mrb[164].mxu0 %v17365_v45  ;;  %8437 = vmatmul.mubr.bf16.gmra.mrb[164].mxu1 %v17365_v45 }
 0x651   : > { %8060 = vmatprep.mubr.bf16.mxu0 %v17398_v33  ;;  %8446 = vmatprep.mubr.bf16.mxu1 %v17398_v33 }
 0x658   : > { %8061 = vmatmul.mubr.bf16.gmra.mrb[168].mxu0 %v17416_v11  ;;  %8447 = vmatmul.mubr.bf16.gmra.mrb[168].mxu1 %v17416_v11 }
 0x659   : > { %8070 = vmatprep.mubr.bf16.mxu0 %v17418_v26  ;;  %8456 = vmatprep.mubr.bf16.mxu1 %v17418_v26 }
 0x660   : > { %8071 = vmatmul.mubr.bf16.gmra.mrb[172].mxu0 %v17444_v34  ;;  %8457 = vmatmul.mubr.bf16.gmra.mrb[172].mxu1 %v17444_v34 }
 0x661   : > { %8080 = vmatprep.mubr.bf16.mxu0 %v17451_v2  ;;  %8466 = vmatprep.mubr.bf16.mxu1 %v17451_v2 }
 0x668   : > { %8081 = vmatmul.mubr.bf16.gmra.mrb[176].mxu0 %v17460_v14  ;;  %8467 = vmatmul.mubr.bf16.gmra.mrb[176].mxu1 %v17460_v14 }
 0x669   : > { %8090 = vmatprep.mubr.bf16.mxu0 %v17462_v52  ;;  %8476 = vmatprep.mubr.bf16.mxu1 %v17462_v52 }
 0x670   : > { %8091 = vmatmul.mubr.bf16.gmra.mrb[180].mxu0 %v17464_v6  ;;  %8477 = vmatmul.mubr.bf16.gmra.mrb[180].mxu1 %v17464_v6 }
 0x671   : > { %8100 = vmatprep.mubr.bf16.mxu0 %v17466_v47  ;;  %8486 = vmatprep.mubr.bf16.mxu1 %v17466_v47 }
 0x678   : > { %8101 = vmatmul.mubr.bf16.gmra.mrb[184].mxu0 %v17473_v13  ;;  %8487 = vmatmul.mubr.bf16.gmra.mrb[184].mxu1 %v17473_v13 }
 0x679   : > { %8110 = vmatprep.mubr.bf16.mxu0 %v17479_v4  ;;  %8496 = vmatprep.mubr.bf16.mxu1 %v17479_v4 }
 0x680   : > { %8111 = vmatmul.mubr.bf16.gmra.mrb[188].mxu0 %v17481_v58  ;;  %8497 = vmatmul.mubr.bf16.gmra.mrb[188].mxu1 %v17481_v58 }
 0x681   : > { %8539 = vmatprep.mubr.bf16.mxu0 %v19207_v60  ;;  %8925 = vmatprep.mubr.bf16.mxu1 %v19207_v60  ;;  %v19213_v60 = vld [vmem:[#allocation51_spill] sm:$0xff] }
 0x688   : > { %8540 = vmatmul.mubr.bf16.vlgmr.msra.gmra.mrb[192].mxu0 %v19208_v46  ;;  %8926 = vmatmul.mubr.bf16.vlgmr.msra.gmra.mrb[192].mxu1 %v19208_v46  ;;  %v14250_v46 = vld [vmem:[#allocation10 + $0x4e0] ss:$28 sps:$4 sm:$0xff]  }
 0x689   : > { %8549 = vmatprep.mubr.bf16.mxu0 %v19209_v44  ;;  %8933 = vmatprep.mubr.bf16.mxu1 %v19209_v44  ;;  %v14273_v44 = vld [vmem:[#allocation10 + $0x4e8] ss:$28 sps:$4 sm:$0xff]  }
 0x68a   : > { %12270 = vmatpush3.bf16.msra.mxu1 %v14225_v24  ;;  %8701 = vmatpush1.bf16.msra.mxu0 %v14226_v53  ;;  %v14245_v24 = vld [vmem:[#allocation10 + $0x4a8] ss:$28 sps:$4 sm:$0xff]   ;;  %v14265_v53 = vld [vmem:[#allocation10 + $0x4b0] ss:$28 sps:$4 sm:$0xff]  }
 0x68b   : > { %8702 = vmatprep.subr.bf16.mxu0 %v14231_v63  ;;  %12271 = vmatprep.subr.bf16.mxu1 %v14232_v43  ;;  %v14252_v63 = vld [vmem:[#allocation10 + $0x4e4] ss:$28 sps:$4 sm:$0xff]  }
 0x68c   : > { %v14272_v43 = vld [vmem:[#allocation10 + $0x6a8] ss:$28 sps:$4 sm:$0xff]  }
 0x68e   : > { %8703 = vmatpush1.bf16.msra.mxu0 %v14229_v21  ;;  %12272 = vmatpush3.bf16.msra.mxu1 %v14233_v35  ;;  %v14255_v21 = vld [vmem:[#allocation10 + $0x51c] ss:$28 sps:$4 sm:$0xff]   ;;  %v19214_v35 = vld [vmem:[#allocation52_spill] sm:$0xff] }
 0x68f   : > { %8704 = vmatprep.subr.bf16.mxu0 %v14236_v10  ;;  %12273 = vmatprep.subr.bf16.mxu1 %v14240_v38  ;;  %v19215_v10 = vld [vmem:[#allocation32_spill] sm:$0xff]  ;;  %v14253_v38 = vld [vmem:[#allocation10 + $0x518] ss:$28 sps:$4 sm:$0xff]  }
 0x690   : > { %8550 = vmatmul.mubr.bf16.gmra.mrb[196].mxu0 %v19210_v19  ;;  %8934 = vmatmul.mubr.bf16.gmra.mrb[196].mxu1 %v19210_v19  ;;  %v19217_v19 = vld [vmem:[#allocation25_spill] sm:$0xff] }
 0x691   : > { %8559 = vmatprep.mubr.bf16.mxu0 %v19211_v17  ;;  %8941 = vmatprep.mubr.bf16.mxu1 %v19211_v17  ;;  %v14261_v17 = vld [vmem:[#allocation10 + $0x588] ss:$28 sps:$4 sm:$0xff]  }
 0x692   : > { %8705 = vmatpush1.bf16.msra.mxu0 %v14234_v23  ;;  %12274 = vmatpush3.bf16.msra.mxu1 %v14241_v39  ;;  %v14260_v23 = vld [vmem:[#allocation10 + $0x554] ss:$28 sps:$4 sm:$0xff]  }
 0x693   : > { %8706 = vmatprep.subr.bf16.mxu0 %v14239_v15  ;;  %12275 = vmatprep.subr.bf16.mxu1 %v14248_v22  ;;  %v14258_v39 = vld [vmem:[#allocation10 + $0x550] ss:$28 sps:$4 sm:$0xff]   ;;  %v19216_v22 = vld [vmem:[#allocation24_spill] sm:$0xff] }
 0x694   : > { %v14263_v15 = vld [vmem:[#allocation10 + $0x58c] ss:$28 sps:$4 sm:$0xff]  }
 0x696   : > { %8707 = vmatpush1.bf16.msra.mxu0 %v14237_v29  ;;  %12276 = vmatpush3.bf16.msra.mxu1 %v14249_v20  ;;  %v14268_v29 = vld [vmem:[#allocation10 + $0x5c4] ss:$28 sps:$4 sm:$0xff]  }
 0x697   : > { %8708 = vmatprep.subr.bf16.mxu0 %v14244_v49  ;;  %12277 = vmatprep.subr.bf16.mxu1 %v14256_v55  ;;  %v14266_v20 = vld [vmem:[#allocation10 + $0x5c0] ss:$28 sps:$4 sm:$0xff]   ;;  %v19218_v55 = vld [vmem:[#allocation36_spill] sm:$0xff] }
 0x698   : > { %8560 = vmatmul.mubr.bf16.gmra.mrb[200].mxu0 %v19212_v42  ;;  %8942 = vmatmul.mubr.bf16.gmra.mrb[200].mxu1 %v19212_v42  ;;  %v14271_v49 = vld [vmem:[#allocation10 + $0x5fc] ss:$28 sps:$4 sm:$0xff]   ;;  %v14276_v42 = vld [vmem:[#allocation10 + $0x634] ss:$28 sps:$4 sm:$0xff]  }
 0x699   : > { %8569 = vmatprep.mubr.bf16.mxu0 %v19213_v60  ;;  %8949 = vmatprep.mubr.bf16.mxu1 %v19213_v60  ;;  %v14274_v60 = vld [vmem:[#allocation10 + $0x630] ss:$28 sps:$4 sm:$0xff]  }
 0x69a   : > { %8709 = vmatpush1.bf16.msra.mxu0 %v14242_v36  ;;  %12278 = vmatpush3.bf16.msra.mxu1 %v14257_v50  ;;  %v19219_v36 = vld [vmem:[#allocation29_spill] sm:$0xff]  ;;  %v14280_v50 = vld [vmem:[#allocation10 + $0x6e0] ss:$28 sps:$4 sm:$0xff]  }
 0x69b   : > { %8710 = vmatprep.subr.bf16.mxu0 %v14247_v25  ;;  %12279 = vmatprep.subr.bf16.mxu1 %v14264_v37  ;;  %v14281_v25 = vld [vmem:[#allocation10 + $0x520] ss:$28 sps:$4 sm:$0xff]   ;;  %v14269_v37 = vld [vmem:[#allocation10 + $0x5f8] ss:$28 sps:$4 sm:$0xff]  }
 0x69e   : > { %8711 = vmatpush1.bf16.msra.mxu0 %v14245_v24  ;;  %12280 = vmatpush3.bf16.msra.mxu1 %v14265_v53  ;;  %v14279_v24 = vld [vmem:[#allocation10 + $0x66c] ss:$28 sps:$4 sm:$0xff]   ;;  %v19220_v53 = vld [vmem:[#allocation54_spill] sm:$0xff] }
 0x69f   : > { %8712 = vmatprep.subr.bf16.mxu0 %v14252_v63  ;;  %12281 = vmatprep.subr.bf16.mxu1 %v14272_v43  ;;  %v19221_v63 = vld [vmem:[#allocation56_spill] sm:$0xff] }
 0x6a0   : > { %8570 = vmatmul.mubr.bf16.gmra.mrb[204].mxu0 %v19214_v35  ;;  %8950 = vmatmul.mubr.bf16.gmra.mrb[204].mxu1 %v19214_v35  ;;  %v14277_v43 = vld [vmem:[#allocation10 + $0x668] ss:$28 sps:$4 sm:$0xff]   ;;  %v19223_v35 = vld [vmem:[#allocation37_spill] sm:$0xff] }
 0x6a1   : > { %8579 = vmatprep.mubr.bf16.mxu0 %v19215_v10  ;;  %8957 = vmatprep.mubr.bf16.mxu1 %v19215_v10  ;;  %v19224_v10 = vld [vmem:[#allocation61_spill] sm:$0xff] }
 0x6a2   : > { %8713 = vmatpush1.bf16.msra.mxu0 %v14250_v46  ;;  %12282 = vmatpush3.bf16.msra.mxu1 %v14273_v44  ;;  %v14284_v46 = vld [vmem:[#allocation10 + $0x6a4] ss:$28 sps:$4 sm:$0xff]  }
 0x6a3   : > { %8714 = vmatprep.subr.bf16.mxu0 %v14255_v21  ;;  %12283 = vmatprep.subr.bf16.mxu1 %v14280_v50  ;;  %v14282_v44 = vld [vmem:[#allocation10 + $0x6a0] ss:$28 sps:$4 sm:$0xff]   ;;  %v19222_v21 = vld [vmem:[#allocation57_spill] sm:$0xff]  ;;  %v19232_v50 = vld [vmem:[#allocation22_spill] sm:$0xff] }
 0x6a6   : > { %8715 = vmatpush1.bf16.msra.mxu0 %v14253_v38  ;;  %12284 = vmatpush3.bf16.msra.mxu1 %v14281_v25  ;;  %v14285_v38 = vld [vmem:[#allocation10 + $0x6d8] ss:$28 sps:$4 sm:$0xff]  }
 0x6a7   : > { %8716 = vmatprep.subr.bf16.mxu0 %v14260_v23  ;;  %v14287_v23 = vld [vmem:[#allocation10 + $0x6dc] ss:$28 sps:$4 sm:$0xff]  }
 0x6a8   : > { %8580 = vmatmul.mubr.bf16.gmra.mrb[208].mxu0 %v19216_v22  ;;  %8958 = vmatmul.mubr.bf16.gmra.mrb[208].mxu1 %v19216_v22  ;;  %v19227_v22 = vld [vmem:[#allocation70_spill] sm:$0xff] }
 0x6a9   : > { %8589 = vmatprep.mubr.bf16.mxu0 %v19217_v19  ;;  %8965 = vmatprep.mubr.bf16.mxu1 %v19217_v19  ;;  %v525_v19 = vld [vmem:[#allocation11 + $0x3] ss:$4 sm:$0xff] }
 0x6aa   : > { %8717 = vmatpush1.bf16.msra.mxu0 %v14258_v39  ;;  %v19225_v39 = vld [vmem:[#allocation65_spill] sm:$0xff]  ;;  %v17604_v25 = vrot.slane %v525_v19, %v19232_v50 }
 0x6ab   : > { %8718 = vmatprep.subr.bf16.mxu0 %v14263_v15  ;;  %v19226_v15 = vld [vmem:[#allocation66_spill] sm:$0xff] }
 0x6ae   : > { %8719 = vmatpush1.bf16.msra.mxu0 %v14261_v17  ;;  %v19228_v17 = vld [vmem:[#allocation71_spill] sm:$0xff] }
 0x6af   : > { %8720 = vmatprep.subr.bf16.mxu0 %v14268_v29  ;;  %v19229_v29 = vld [vmem:[#allocation20_spill] sm:$0xff] }
 0x6b0   : > { %8590 = vmatmul.mubr.bf16.gmra.mrb[212].mxu0 %v19218_v55  ;;  %8966 = vmatmul.mubr.bf16.gmra.mrb[212].mxu1 %v19218_v55 }
 0x6b1   : > { %8599 = vmatprep.mubr.bf16.mxu0 %v19219_v36  ;;  %8973 = vmatprep.mubr.bf16.mxu1 %v19219_v36  ;;  %v19231_v36 = vld [vmem:[#allocation74_spill] sm:$0xff] }
 0x6b2   : > { %8721 = vmatpush1.bf16.msra.mxu0 %v14266_v20  ;;  %v17596_v20 = vrot.slane %v525_v19, %v19229_v29 }
 0x6b3   : > { %8722 = vmatprep.subr.bf16.mxu0 %v14271_v49  ;;  %v19230_v49 = vld [vmem:[#allocation21_spill] sm:$0xff] }
 0x6b4   : > { %v17599_v55 = vrot.slane %v525_v19, %v19230_v49 }
 0x6b6   : > { %8723 = vmatpush1.bf16.msra.mxu0 %v14269_v37  ;;  %v19233_v37 = vld [vmem:[#allocation23_spill] sm:$0xff] }
 0x6b7   : > { %8724 = vmatprep.subr.bf16.mxu0 %v14276_v42  ;;  %v17607_v42 = vrot.slane %v525_v19, %v19233_v37  ;;  %v19234_v37 = vld [vmem:[#allocation75_spill] sm:$0xff] }
 0x6b8   : > { %8600 = vmatmul.mubr.bf16.gmra.mrb[216].mxu0 %v19220_v53  ;;  %8974 = vmatmul.mubr.bf16.gmra.mrb[216].mxu1 %v19220_v53 }
 0x6b9   : > { %8609 = vmatprep.mubr.bf16.mxu0 %v19221_v63  ;;  %8981 = vmatprep.mubr.bf16.mxu1 %v19221_v63 }
 0x6ba   : > { %8725 = vmatpush1.bf16.msra.mxu0 %v14274_v60 }
 0x6bb   : > { %8726 = vmatprep.subr.bf16.mxu0 %v14279_v24 }
 0x6be   : > { %8727 = vmatpush1.bf16.msra.mxu0 %v14277_v43 }
 0x6bf   : > { %8728 = vmatprep.subr.bf16.mxu0 %v14284_v46 }
 0x6c0   : > { %8610 = vmatmul.mubr.bf16.gmra.mrb[220].mxu0 %v19222_v21  ;;  %8982 = vmatmul.mubr.bf16.gmra.mrb[220].mxu1 %v19222_v21 }
 0x6c1   : > { %8619 = vmatprep.mubr.bf16.mxu0 %v19223_v35  ;;  %8989 = vmatprep.mubr.bf16.mxu1 %v19223_v35 }
 0x6c2   : > { %8729 = vmatpush1.bf16.msra.mxu0 %v14282_v44 }
 0x6c3   : > { %8730 = vmatprep.subr.bf16.mxu0 %v14287_v23 }
 0x6c6   : > { %8731 = vmatpush1.bf16.msra.mxu0 %v14285_v38 }
 0x6c8   : > { %8620 = vmatmul.mubr.bf16.gmra.mrb[224].mxu0 %v19224_v10  ;;  %8990 = vmatmul.mubr.bf16.gmra.mrb[224].mxu1 %v19224_v10 }
 0x6c9   : > { %8629 = vmatprep.mubr.bf16.mxu0 %v19225_v39  ;;  %8997 = vmatprep.mubr.bf16.mxu1 %v19225_v39 }
 0x6d0   : > { %8630 = vmatmul.mubr.bf16.gmra.mrb[228].mxu0 %v19226_v15  ;;  %8998 = vmatmul.mubr.bf16.gmra.mrb[228].mxu1 %v19226_v15 }
 0x6d1   : > { %8639 = vmatprep.mubr.bf16.mxu0 %v19227_v22  ;;  %9005 = vmatprep.mubr.bf16.mxu1 %v19227_v22 }
 0x6d8   : > { %8640 = vmatmul.mubr.bf16.gmra.mrb[232].mxu0 %v19228_v17  ;;  %9006 = vmatmul.mubr.bf16.gmra.mrb[232].mxu1 %v19228_v17 }
 0x6d9   : > { %8649 = vmatprep.mubr.bf16.mxu0 %v19231_v36  ;;  %9013 = vmatprep.mubr.bf16.mxu1 %v19231_v36 }
 0x6db   : > { %v7962_v60 = vpop.f32.mrb[128].mxu0  ;;  %v8348_v24 = vpop.f32.mrb[128].mxu1 }
 0x6dc   : > { %v12509_v53 = vadd.f32 %v7962_v60, %v17596_v20  ;;  %v12573_v63 = vadd.f32 %v8348_v24, %v17599_v55  ;;  %v7964_v43 = vpop.f32.mrb[129].mxu0  ;;  %v8350_v46 = vpop.f32.mrb[129].mxu1  ;;  %v19235_v24 = vld [vmem:[#allocation77_spill] sm:$0xff] }
 0x6dd   : > { %v12510_v44 = vadd.f32 %v7964_v43, %v17604_v25  ;;  %v12574_v21 = vadd.f32 %v8350_v46, %v17607_v42  ;;  %v7966_v35 = vpop.f32.mrb[130].mxu0  ;;  %v8352_v10 = vpop.f32.mrb[130].mxu1 }
 0x6de   : > { %v11704_v38 = vmul.f32 -1.442695, %v12509_v53  ;;  %v11706_v23 = vmul.f32 -1.442695, %v12573_v63  ;;  %v12511_v39 = vadd.f32 %v7966_v35, %v17596_v20  ;;  %v12575_v15 = vadd.f32 %v8352_v10, %v17599_v55  ;;  %v7968_v22 = vpop.f32.mrb[131].mxu0  ;;  %v8354_v19 = vpop.f32.mrb[131].mxu1 }
 0x6df   : > { %v11705_v17 = vmul.f32 -1.442695, %v12510_v44  ;;  %v11707_v29 = vmul.f32 -1.442695, %v12574_v21  ;;  %v12512_v49 = vadd.f32 %v7968_v22, %v17604_v25  ;;  %v12576_v36 = vadd.f32 %v8354_v19, %v17607_v42 }
 0x6e0   : > { %14352 = vpow2.f32 %v11704_v38  ;;  %v11711_v50 = vmul.f32 -1.442695, %v12511_v39  ;;  %8650 = vmatmul.mubr.bf16.gmra.mrb[236].mxu0 %v19234_v37  ;;  %9014 = vmatmul.mubr.bf16.gmra.mrb[236].mxu1 %v19234_v37  ;;  %v11713_v60 = vmul.f32 -1.442695, %v12575_v15 }
 0x6e1   : > { %14354 = vpow2.f32 %v11706_v23  ;;  %8659 = vmatprep.mubr.bf16.mxu0 %v19235_v24  ;;  %9021 = vmatprep.mubr.bf16.mxu1 %v19235_v24  ;;  %v11712_v53 = vmul.f32 -1.442695, %v12512_v49  ;;  %v11714_v63 = vmul.f32 -1.442695, %v12576_v36  ;;  %v19236_v24 = vld [vmem:[#allocation78_spill] sm:$0xff] }
 0x6e2   : > { %14356 = vpow2.f32 %v11705_v17 }
 0x6e3   : > { %14358 = vpow2.f32 %v11707_v29  ;;  %v7972_v43 = vpop.f32.mrb[132].mxu0  ;;  %v8358_v46 = vpop.f32.mrb[132].mxu1 }
 0x6e4   : > { %14360 = vpow2.f32 %v11711_v50  ;;  %v12513_v44 = vadd.f32 %v7972_v43, %v17596_v20  ;;  %v12577_v21 = vadd.f32 %v8358_v46, %v17599_v55  ;;  %v7974_v35 = vpop.f32.mrb[133].mxu0  ;;  %v8360_v10 = vpop.f32.mrb[133].mxu1 }
 0x6e5   : > { %14362 = vpow2.f32 %v11713_v60  ;;  %v12514_v38 = vadd.f32 %v7974_v35, %v17604_v25  ;;  %v12578_v23 = vadd.f32 %v8360_v10, %v17607_v42  ;;  %v7976_v39 = vpop.f32.mrb[134].mxu0  ;;  %v8362_v15 = vpop.f32.mrb[134].mxu1 }
 0x6e6   : > { %14364 = vpow2.f32 %v11712_v53  ;;  %v11718_v22 = vmul.f32 -1.442695, %v12513_v44  ;;  %v11720_v19 = vmul.f32 -1.442695, %v12577_v21  ;;  %v12515_v17 = vadd.f32 %v7976_v39, %v17596_v20  ;;  %v7978_v29 = vpop.f32.mrb[135].mxu0  ;;  %v8364_v49 = vpop.f32.mrb[135].mxu1 }
 0x6e7   : > { %14366 = vpow2.f32 %v11714_v63  ;;  %v11719_v36 = vmul.f32 -1.442695, %v12514_v38  ;;  %v11721_v50 = vmul.f32 -1.442695, %v12578_v23 }
 0x6e8   : > { %14368 = vpow2.f32 %v11718_v22  ;;  %v11725_v37 = vmul.f32 -1.442695, %v12515_v17  ;;  %8660 = vmatmul.mubr.bf16.gmra.mrb[240].mxu0 %v19236_v24  ;;  %9022 = vmatmul.mubr.bf16.gmra.mrb[240].mxu1 %v19236_v24 }
 0x6e9   : > { %14370 = vpow2.f32 %v11720_v19  ;;  %8669 = vmatprep.mubr.bf16.mxu0 %v17374_v48  ;;  %9029 = vmatprep.mubr.bf16.mxu1 %v17374_v48 }
 0x6ea   : > { %v14353_v60 = vpop.eup %14352  ;;  %14372 = vpow2.f32 %v11719_v36 }
 0x6eb   : > { %v14355_v53 = vpop.eup %14354  ;;  %v9887_v43 = vadd.f32 1.0, %v14353_v60  ;;  %14374 = vpow2.f32 %v11721_v50  ;;  %v7982_v46 = vpop.f32.mrb[136].mxu0 }
 0x6ec   : > { %v8368_v63 = vpop.f32.mrb[136].mxu1  ;;  %v14357_v44 = vpop.eup %14356  ;;  %v9889_v21 = vadd.f32 1.0, %v14355_v53  ;;  %14376 = vpow2.f32 %v11725_v37 }
 0x6ed   : > { %v7984_v35 = vpop.f32.mrb[137].mxu0  ;;  %v17630_v10 = vpop.f32.mrb[137].mxu1  ;;  %14378 = vrcp.f32 %v9887_v43  ;;  %v9888_v23 = vadd.f32 1.0, %v14357_v44 }
 0x6ee   : > { %v14359_v38 = vpop.eup %14358  ;;  %v17632_v39 = vpop.f32.mrb[138].mxu0  ;;  %14380 = vrcp.f32 %v9889_v21 }
 0x6ef   : > { %v17634_v48 = vpop.f32.mrb[138].mxu1  ;;  %v14361_v22 = vpop.eup %14360  ;;  %v9890_v19 = vadd.f32 1.0, %v14359_v38  ;;  %14382 = vrcp.f32 %v9888_v23  ;;  %v12579_v38 = vadd.f32 %v8362_v15, %v17599_v55  ;;  %v12517_v15 = vadd.f32 %v7982_v46, %v17596_v20 }
 0x6f0   : > { %v17636_v17 = vpop.f32.mrb[139].mxu0  ;;  %v14363_v36 = vpop.eup %14362  ;;  %v9894_v50 = vadd.f32 1.0, %v14361_v22  ;;  %8670 = vmatmul.mubr.bf16.gmra.mrb[244].mxu0 %v17376_v62  ;;  %9030 = vmatmul.mubr.bf16.gmra.mrb[244].mxu1 %v17376_v62  ;;  %v12518_v46 = vadd.f32 %v7984_v35, %v17604_v25 }
 0x6f1   : > { %v17638_v37 = vpop.f32.mrb[139].mxu1  ;;  %v14365_v24 = vpop.eup %14364  ;;  %14384 = vrcp.f32 %v9890_v19  ;;  %v9896_v60 = vadd.f32 1.0, %v14363_v36  ;;  %8679 = vmatprep.mubr.bf16.mxu0 %v17433_v3  ;;  %9037 = vmatprep.mubr.bf16.mxu1 %v17433_v3  ;;  %v12516_v19 = vadd.f32 %v7978_v29, %v17604_v25 }
 0x6f2   : > { %v14367_v53 = vpop.eup %14366  ;;  %14386 = vrcp.f32 %v9894_v50  ;;  %v9895_v43 = vadd.f32 1.0, %v14365_v24  ;;  %v12580_v24 = vadd.f32 %v8364_v49, %v17607_v42  ;;  %v12581_v49 = vadd.f32 %v8368_v63, %v17599_v55 }
 0x6f3   : > { %v14369_v44 = vpop.eup %14368  ;;  %14388 = vrcp.f32 %v9896_v60  ;;  %v9897_v21 = vadd.f32 1.0, %v14367_v53  ;;  %v17647_v36 = vpop.f32.mrb[140].mxu0 }
 0x6f4   : > { %v14371_v23 = vpop.eup %14370  ;;  %14390 = vrcp.f32 %v9895_v43  ;;  %v9901_v22 = vadd.f32 1.0, %v14369_v44  ;;  %v17650_v58 = vpop.f32.mrb[140].mxu1  ;;  %v11728_v63 = vmul.f32 -1.442695, %v12580_v24  ;;  %v12583_v24 = vadd.f32 %v17634_v48, %v17599_v55 }
 0x6f5   : > { %v14373_v62 = vpop.eup %14372  ;;  %14392 = vrcp.f32 %v9897_v21  ;;  %v9903_v50 = vadd.f32 1.0, %v14371_v23  ;;  %v17652_v3 = vpop.f32.mrb[141].mxu0  ;;  %v11727_v23 = vmul.f32 -1.442695, %v12579_v38  ;;  %v12582_v38 = vadd.f32 %v17630_v10, %v17607_v42 }
 0x6f6   : > { %v14375_v60 = vpop.eup %14374  ;;  %14394 = vrcp.f32 %v9901_v22  ;;  %v9902_v53 = vadd.f32 1.0, %v14373_v62  ;;  %v17655_v43 = vpop.f32.mrb[141].mxu1  ;;  %v11726_v62 = vmul.f32 -1.442695, %v12516_v19  ;;  %v11732_v19 = vmul.f32 -1.442695, %v12517_v15 }
 0x6f7   : > { %v17657_v29 = vpop.f32.mrb[142].mxu0  ;;  %v14377_v44 = vpop.eup %14376  ;;  %14396 = vrcp.f32 %v9903_v50  ;;  %v9904_v21 = vadd.f32 1.0, %v14375_v60  ;;  %v12519_v50 = vadd.f32 %v17632_v39, %v17596_v20  ;;  %v11734_v10 = vmul.f32 -1.442695, %v12581_v49 }
 0x6f8   : > { %v17660_v4 = vpop.f32.mrb[142].mxu1  ;;  %v17662_v13 = vpop.f32.mrb[143].mxu0  ;;  %14398 = vrcp.f32 %v9902_v53  ;;  %v9908_v22 = vadd.f32 1.0, %v14377_v44  ;;  %8680 = vmatmul.mubr.bf16.gmra.mrb[248].mxu0 %v17435_v41  ;;  %9038 = vmatmul.mubr.bf16.gmra.mrb[248].mxu1 %v17435_v41  ;;  %v12520_v39 = vadd.f32 %v17636_v17, %v17604_v25  ;;  %v11735_v15 = vmul.f32 -1.442695, %v12582_v38 }
 0x6f9   : > { %v14379_v47 = vpop.eup %14378  ;;  %v17665_v6 = vpop.f32.mrb[143].mxu1  ;;  %14400 = vrcp.f32 %v9904_v21  ;;  %8689 = vmatprep.mubr.bf16.mxu0 %v17475_v27  ;;  %9045 = vmatprep.mubr.bf16.mxu1 %v17475_v27  ;;  %v12584_v48 = vadd.f32 %v17638_v37, %v17607_v42  ;;  %v11739_v17 = vmul.f32 -1.442695, %v12519_v50  ;;  %v12521_v49 = vadd.f32 %v17647_v36, %v17596_v20 }
 0x6fa   : > { %v14381_v52 = vpop.eup %14380  ;;  %10559 = vst [vmem:[%s17669_s10] sm:$0xff] %v14379_v47  ;;  %14402 = vrcp.f32 %v9908_v22  ;;  %v11741_v37 = vmul.f32 -1.442695, %v12583_v24  ;;  %v11740_v36 = vmul.f32 -1.442695, %v12520_v39 }
 0x6fb   : > { %v14383_v35 = vpop.eup %14382  ;;  %10561 = vst [vmem:[%s17669_s10 + $0x10] sm:$0xff] %v14381_v52  ;;  %14404 = vpow2.f32 %v11727_v23  ;;  %v11733_v52 = vmul.f32 -1.442695, %v12518_v46  ;;  %v17687_v60 = vpop.f32.mrb[144].mxu0 }
 0x6fc   : > { %v14385_v47 = vpop.eup %14384  ;;  %10560 = vst [vmem:[%s17669_s10 + $0x8] sm:$0xff] %v14383_v35  ;;  %14406 = vpow2.f32 %v11726_v62  ;;  %v17689_v53 = vpop.f32.mrb[144].mxu1 }
 0x6fd   : > { %v14387_v41 = vpop.eup %14386  ;;  %10562 = vst [vmem:[%s17669_s10 + $0x18] sm:$0xff] %v14385_v47  ;;  %14408 = vpow2.f32 %v11728_v63  ;;  %v17694_v44 = vpop.f32.mrb[145].mxu0  ;;  %v12585_v63 = vadd.f32 %v17650_v58, %v17599_v55  ;;  %v11742_v47 = vmul.f32 -1.442695, %v12584_v48  ;;  %v11746_v58 = vmul.f32 -1.442695, %v12521_v49 }
 0x6fe   : > { %v14389_v27 = vpop.eup %14388  ;;  %10566 = vst [vmem:[%s17669_s10 + $0x38] sm:$0xff] %v14387_v41  ;;  %v17696_v21 = vpop.f32.mrb[145].mxu1  ;;  %14410 = vpow2.f32 %v11732_v19 }
 0x6ff   : > { %v14391_v23 = vpop.eup %14390  ;;  %10568 = vst [vmem:[%s17669_s10 + $0x48] sm:$0xff] %v14389_v27  ;;  %v17701_v22 = vpop.f32.mrb[146].mxu0  ;;  %14412 = vpow2.f32 %v11734_v10  ;;  %v11748_v41 = vmul.f32 -1.442695, %v12585_v63 }
 0x700   : > { %v17703_v62 = vpop.f32.mrb[146].mxu1  ;;  %v14393_v46 = vpop.eup %14392  ;;  %10567 = vst [vmem:[%s17669_s10 + $0x40] sm:$0xff] %v14391_v23  ;;  %14414 = vpow2.f32 %v11733_v52  ;;  %8690 = vmatmul.mubr.bf16.gmra.mrb[252].mxu0 %v17477_v5  ;;  %9046 = vmatmul.mubr.bf16.gmra.mrb[252].mxu1 %v17477_v5 }
 0x701   : > { %v17708_v38 = vpop.f32.mrb[147].mxu0  ;;  %v17710_v35 = vpop.f32.mrb[147].mxu1  ;;  %10569 = vst [vmem:[%s17669_s10 + $0x50] sm:$0xff] %v14393_v46  ;;  %14416 = vpow2.f32 %v11735_v15  ;;  %8732 = vmatprep.mubr.bf16.mxu0 %v19193_v51  ;;  %9086 = vmatprep.mubr.bf16.mxu1 %v19193_v51 }
 0x702   : > { %v14395_v19 = vpop.eup %14394  ;;  %14418 = vpow2.f32 %v11739_v17 }
 0x703   : > { %v14397_v50 = vpop.eup %14396  ;;  %10573 = vst [vmem:[%s17669_s10 + $0x70] sm:$0xff] %v14395_v19  ;;  %14420 = vpow2.f32 %v11741_v37  ;;  %v17721_v39 = vpop.f32.mrb[148].mxu0 }
 0x704   : > { %v14399_v10 = vpop.eup %14398  ;;  %10575 = vst [vmem:[%s17669_s10 + $0x80] sm:$0xff] %v14397_v50  ;;  %14422 = vpow2.f32 %v11740_v36  ;;  %v17723_v27 = vpop.f32.mrb[148].mxu1 }
 0x705   : > { %v14401_v24 = vpop.eup %14400  ;;  %10574 = vst [vmem:[%s17669_s10 + $0x78] sm:$0xff] %v14399_v10  ;;  %14424 = vpow2.f32 %v11742_v47  ;;  %v17726_v15 = vpop.f32.mrb[149].mxu0 }
 0x706   : > { %v14403_v52 = vpop.eup %14402  ;;  %10576 = vst [vmem:[%s17669_s10 + $0x88] sm:$0xff] %v14401_v24  ;;  %v17728_v48 = vpop.f32.mrb[149].mxu1  ;;  %14426 = vpow2.f32 %v11746_v58 }
 0x707   : > { %v14405_v5 = vpop.eup %14404  ;;  %10580 = vst [vmem:[%s17669_s10 + $0xa8] sm:$0xff] %v14403_v52  ;;  %v17730_v17 = vpop.f32.mrb[150].mxu0  ;;  %14428 = vpow2.f32 %v11748_v41 }
 0x708   : > { %v14407_v23 = vpop.eup %14406  ;;  %v9910_v51 = vadd.f32 1.0, %v14405_v5  ;;  %v17732_v49 = vpop.f32.mrb[150].mxu1  ;;  %8733 = vmatmul.mubr.bf16.vlgmr.msra.gmra.mrb[192].mxu0 %v19194_v56  ;;  %9087 = vmatmul.mubr.bf16.vlgmr.msra.gmra.mrb[0].mxu1 %v19194_v56  ;;  %v12522_v56 = vadd.f32 %v17652_v3, %v17604_v25  ;;  %v12523_v3 = vadd.f32 %v17657_v29, %v17596_v20  ;;  %v12524_v29 = vadd.f32 %v17662_v13, %v17604_v25 }
 0x709   : > { %v14409_v46 = vpop.eup %14408  ;;  %v9909_v37 = vadd.f32 1.0, %v14407_v23  ;;  %v17734_v63 = vpop.f32.mrb[151].mxu0  ;;  %8742 = vmatprep.mubr.bf16.mxu0 %v19195_v8  ;;  %9094 = vmatprep.mubr.bf16.mxu1 %v19195_v8 }
 0x70a   : > { %v14411_v19 = vpop.eup %14410  ;;  %14430 = vrcp.f32 %v9910_v51  ;;  %v9911_v36 = vadd.f32 1.0, %v14409_v46  ;;  %v17736_v50 = vpop.f32.mrb[151].mxu1  ;;  %v11753_v13 = vmul.f32 -1.442695, %v12523_v3  ;;  %v11754_v3 = vmul.f32 -1.442695, %v12524_v29 }
 0x70b   : > { %v14413_v47 = vpop.eup %14412  ;;  %14432 = vrcp.f32 %v9909_v37  ;;  %v9915_v10 = vadd.f32 1.0, %v14411_v19  ;;  %v17742_v51 = vpop.f32.mrb[152].mxu0 }
 0x70c   : > { %v14415_v58 = vpop.eup %14414  ;;  %14434 = vrcp.f32 %v9911_v36  ;;  %v9917_v24 = vadd.f32 1.0, %v14413_v47  ;;  %v17746_v19 = vpop.f32.mrb[152].mxu1 }
 0x70d   : > { %v14417_v41 = vpop.eup %14416  ;;  %14436 = vrcp.f32 %v9915_v10  ;;  %v9916_v52 = vadd.f32 1.0, %v14415_v58  ;;  %v17748_v36 = vpop.f32.mrb[153].mxu0  ;;  %v12586_v10 = vadd.f32 %v17655_v43, %v17607_v42  ;;  %v12587_v43 = vadd.f32 %v17660_v4, %v17599_v55 }
 0x70e   : > { %v14419_v5 = vpop.eup %14418  ;;  %14438 = vrcp.f32 %v9917_v24  ;;  %v9918_v23 = vadd.f32 1.0, %v14417_v41  ;;  %v17752_v58 = vpop.f32.mrb[153].mxu1  ;;  %v12588_v4 = vadd.f32 %v17665_v6, %v17607_v42  ;;  %v12589_v6 = vadd.f32 %v17689_v53, %v17599_v55 }
 0x70f   : > { %v14421_v46 = vpop.eup %14420  ;;  %14440 = vrcp.f32 %v9916_v52  ;;  %v9922_v37 = vadd.f32 1.0, %v14419_v5  ;;  %v17754_v24 = vpop.f32.mrb[154].mxu0  ;;  %v11749_v26 = vmul.f32 -1.442695, %v12586_v10 }
 0x710   : > { %v14423_v47 = vpop.eup %14422  ;;  %14442 = vrcp.f32 %v9918_v23  ;;  %v9924_v8 = vadd.f32 1.0, %v14421_v46  ;;  %v17758_v5 = vpop.f32.mrb[154].mxu1  ;;  %8743 = vmatmul.mubr.bf16.gmra.mrb[196].mxu0 %v19196_v0  ;;  %9095 = vmatmul.mubr.bf16.gmra.mrb[4].mxu1 %v19196_v0  ;;  %v11756_v53 = vmul.f32 -1.442695, %v12588_v4 }
 0x711   : > { %v14425_v41 = vpop.eup %14424  ;;  %14444 = vrcp.f32 %v9922_v37  ;;  %v9923_v52 = vadd.f32 1.0, %v14423_v47  ;;  %v17760_v14 = vpop.f32.mrb[155].mxu0  ;;  %v11747_v47 = vmul.f32 -1.442695, %v12522_v56  ;;  %8752 = vmatprep.mubr.bf16.mxu0 %v19197_v31  ;;  %9102 = vmatprep.mubr.bf16.mxu1 %v19197_v31  ;;  %v12525_v56 = vadd.f32 %v17687_v60, %v17596_v20 }
 0x712   : > { %v14427_v2 = vpop.eup %14426  ;;  %14446 = vrcp.f32 %v9924_v8  ;;  %v9925_v23 = vadd.f32 1.0, %v14425_v41  ;;  %v17764_v46 = vpop.f32.mrb[155].mxu1  ;;  %v12526_v60 = vadd.f32 %v17694_v44, %v17604_v25 }
 0x713   : > { %v14429_v34 = vpop.eup %14428  ;;  %14448 = vrcp.f32 %v9923_v52  ;;  %v9929_v37 = vadd.f32 1.0, %v14427_v2  ;;  %v17780_v10 = vpop.f32.mrb[156].mxu0  ;;  %v11760_v44 = vmul.f32 -1.442695, %v12525_v56 }
 0x714   : > { %v14431_v8 = vpop.eup %14430  ;;  %14450 = vrcp.f32 %v9925_v23  ;;  %v9931_v41 = vadd.f32 1.0, %v14429_v34  ;;  %v11755_v34 = vmul.f32 -1.442695, %v12587_v43  ;;  %v17782_v52 = vpop.f32.mrb[156].mxu1 }
 0x715   : > { %v14433_v2 = vpop.eup %14432  ;;  %10582 = vst [vmem:[%s17669_s10 + $0xb8] sm:$0xff] %v14431_v8  ;;  %14452 = vrcp.f32 %v9929_v37  ;;  %v17787_v23 = vpop.f32.mrb[157].mxu0  ;;  %v12590_v8 = vadd.f32 %v17696_v21, %v17607_v42  ;;  %v11762_v21 = vmul.f32 -1.442695, %v12589_v6 }
 0x716   : > { %v14435_v0 = vpop.eup %14434  ;;  %10581 = vst [vmem:[%s17669_s10 + $0xb0] sm:$0xff] %v14433_v2  ;;  %14454 = vrcp.f32 %v9931_v41  ;;  %v17789_v37 = vpop.f32.mrb[157].mxu1  ;;  %v12527_v2 = vadd.f32 %v17701_v22, %v17596_v20  ;;  %v12528_v22 = vadd.f32 %v17708_v38, %v17604_v25 }
 0x717   : > { %v14437_v31 = vpop.eup %14436  ;;  %10583 = vst [vmem:[%s17669_s10 + $0xc0] sm:$0xff] %v14435_v0  ;;  %14456 = vpow2.f32 %v11747_v47  ;;  %v17794_v41 = vpop.f32.mrb[158].mxu0 }
 0x718   : > { %v14439_v43 = vpop.eup %14438  ;;  %10587 = vst [vmem:[%s17669_s10 + $0xe0] sm:$0xff] %v14437_v31  ;;  %14458 = vpow2.f32 %v11749_v26  ;;  %v17796_v47 = vpop.f32.mrb[158].mxu1  ;;  %v12591_v31 = vadd.f32 %v17703_v62, %v17599_v55  ;;  %8753 = vmatmul.mubr.bf16.gmra.mrb[200].mxu0 %v19198_v16  ;;  %9103 = vmatmul.mubr.bf16.gmra.mrb[8].mxu1 %v19198_v16  ;;  %v11767_v6 = vmul.f32 -1.442695, %v12527_v2 }
 0x719   : > { %v14441_v29 = vpop.eup %14440  ;;  %10589 = vst [vmem:[%s17669_s10 + $0xf0] sm:$0xff] %v14439_v43  ;;  %14460 = vpow2.f32 %v11753_v13  ;;  %v17801_v0 = vpop.f32.mrb[159].mxu0  ;;  %v11761_v13 = vmul.f32 -1.442695, %v12526_v60  ;;  %8762 = vmatprep.mubr.bf16.mxu0 %v19199_v7  ;;  %9110 = vmatprep.mubr.bf16.mxu1 %v19199_v7  ;;  %v11768_v43 = vmul.f32 -1.442695, %v12528_v22 }
 0x71a   : > { %v17803_v26 = vpop.f32.mrb[159].mxu1  ;;  %v14443_v4 = vpop.eup %14442  ;;  %10588 = vst [vmem:[%s17669_s10 + $0xe8] sm:$0xff] %v14441_v29  ;;  %14462 = vpow2.f32 %v11755_v34  ;;  %v11763_v34 = vmul.f32 -1.442695, %v12590_v8  ;;  %v11769_v38 = vmul.f32 -1.442695, %v12591_v31 }
 0x71b   : > { %v14445_v11 = vpop.eup %14444  ;;  %10590 = vst [vmem:[%s17669_s10 + $0xf8] sm:$0xff] %v14443_v4  ;;  %14464 = vpow2.f32 %v11754_v3  ;;  %v17818_v16 = vpop.f32.mrb[160].mxu0 }
 0x71c   : > { %v14447_v56 = vpop.eup %14446  ;;  %10594 = vst [vmem:[%s17669_s10 + $0x118] sm:$0xff] %v14445_v11  ;;  %14466 = vpow2.f32 %v11756_v53  ;;  %v17820_v11 = vpop.f32.mrb[160].mxu1 }
 0x71d   : > { %v14449_v62 = vpop.eup %14448  ;;  %10596 = vst [vmem:[%s17669_s10 + $0x128] sm:$0xff] %v14447_v56  ;;  %14468 = vpow2.f32 %v11760_v44  ;;  %v17823_v53 = vpop.f32.mrb[161].mxu0 }
 0x71e   : > { %v14451_v3 = vpop.eup %14450  ;;  %10595 = vst [vmem:[%s17669_s10 + $0x120] sm:$0xff] %v14449_v62  ;;  %14470 = vpow2.f32 %v11762_v21  ;;  %v17825_v7 = vpop.f32.mrb[161].mxu1 }
 0x71f   : > { %v14453_v60 = vpop.eup %14452  ;;  %10597 = vst [vmem:[%s17669_s10 + $0x130] sm:$0xff] %v14451_v3  ;;  %14472 = vpow2.f32 %v11761_v13  ;;  %v17828_v29 = vpop.f32.mrb[162].mxu0 }
 0x720   : > { %v14455_v8 = vpop.eup %14454  ;;  %10601 = vst [vmem:[%s17669_s10 + $0x150] sm:$0xff] %v14453_v60  ;;  %14474 = vpow2.f32 %v11763_v34  ;;  %v17830_v44 = vpop.f32.mrb[162].mxu1  ;;  %8763 = vmatmul.mubr.bf16.gmra.mrb[204].mxu0 %v19200_v61  ;;  %9111 = vmatmul.mubr.bf16.gmra.mrb[12].mxu1 %v19200_v61 }
 0x721   : > { %v14457_v2 = vpop.eup %14456  ;;  %10603 = vst [vmem:[%s17669_s10 + $0x160] sm:$0xff] %v14455_v8  ;;  %14476 = vpow2.f32 %v11767_v6  ;;  %v17833_v4 = vpop.f32.mrb[163].mxu0  ;;  %8772 = vmatprep.mubr.bf16.mxu0 %v17215_v59  ;;  %9118 = vmatprep.mubr.bf16.mxu1 %v17215_v59 }
 0x722   : > { %v17835_v21 = vpop.f32.mrb[163].mxu1  ;;  %v14459_v31 = vpop.eup %14458  ;;  %v9930_v13 = vadd.f32 1.0, %v14457_v2  ;;  %14478 = vpow2.f32 %v11769_v38 }
 0x723   : > { %19237 = vst [vmem:[#allocation64_spill] sm:$0xff] %v17835_v21  ;;  %v14461_v22 = vpop.eup %14460  ;;  %v9932_v56 = vadd.f32 1.0, %v14459_v31  ;;  %14480 = vpow2.f32 %v11768_v43  ;;  %v17841_v8 = vpop.f32.mrb[164].mxu0 }
 0x724   : > { %v14463_v34 = vpop.eup %14462  ;;  %14482 = vrcp.f32 %v9930_v13  ;;  %v9936_v62 = vadd.f32 1.0, %v14461_v22  ;;  %v17843_v31 = vpop.f32.mrb[164].mxu1 }
 0x725   : > { %v14465_v6 = vpop.eup %14464  ;;  %14484 = vrcp.f32 %v9932_v56  ;;  %v9938_v3 = vadd.f32 1.0, %v14463_v34  ;;  %v17845_v61 = vpop.f32.mrb[165].mxu0 }
 0x726   : > { %v14467_v60 = vpop.eup %14466  ;;  %14486 = vrcp.f32 %v9936_v62  ;;  %v9937_v38 = vadd.f32 1.0, %v14465_v6  ;;  %19238 = vst [vmem:[#allocation67_spill] sm:$0xff] %v17845_v61  ;;  %v17847_v21 = vpop.f32.mrb[165].mxu1  ;;  %v12592_v62 = vadd.f32 %v17710_v35, %v17607_v42 }
 0x727   : > { %v14469_v43 = vpop.eup %14468  ;;  %14488 = vrcp.f32 %v9938_v3  ;;  %v9939_v2 = vadd.f32 1.0, %v14467_v60  ;;  %19239 = vst [vmem:[#allocation69_spill] sm:$0xff] %v17847_v21  ;;  %v17849_v59 = vpop.f32.mrb[166].mxu0 }
 0x728   : > { %v14471_v13 = vpop.eup %14470  ;;  %14490 = vrcp.f32 %v9937_v38  ;;  %v9943_v22 = vadd.f32 1.0, %v14469_v43  ;;  %19240 = vst [vmem:[#allocation68_spill] sm:$0xff] %v17849_v59  ;;  %v17853_v6 = vpop.f32.mrb[166].mxu1  ;;  %v12529_v38 = vadd.f32 %v17721_v39, %v17596_v20  ;;  %8773 = vmatmul.mubr.bf16.gmra.mrb[208].mxu0 %v19201_v12  ;;  %9119 = vmatmul.mubr.bf16.gmra.mrb[16].mxu1 %v19201_v12 }
 0x729   : > { %v14473_v56 = vpop.eup %14472  ;;  %14492 = vrcp.f32 %v9939_v2  ;;  %v9945_v34 = vadd.f32 1.0, %v14471_v13  ;;  %v17855_v3 = vpop.f32.mrb[167].mxu0  ;;  %v12593_v2 = vadd.f32 %v17723_v27, %v17599_v55  ;;  %8782 = vmatprep.mubr.bf16.mxu0 %v19202_v28  ;;  %9126 = vmatprep.mubr.bf16.mxu1 %v19202_v28  ;;  %v12594_v27 = vadd.f32 %v17728_v48, %v17607_v42 }
 0x72a   : > { %v14475_v60 = vpop.eup %14474  ;;  %14494 = vrcp.f32 %v9943_v22  ;;  %v9944_v61 = vadd.f32 1.0, %v14473_v56  ;;  %v17859_v43 = vpop.f32.mrb[167].mxu1  ;;  %v12530_v22 = vadd.f32 %v17726_v15, %v17604_v25 }
 0x72b   : > { %19241 = vst [vmem:[#allocation45_spill] sm:$0xff] %v17859_v43  ;;  %v14477_v21 = vpop.eup %14476  ;;  %14496 = vrcp.f32 %v9945_v34  ;;  %v9946_v59 = vadd.f32 1.0, %v14475_v60  ;;  %v11770_v34 = vmul.f32 -1.442695, %v12592_v62  ;;  %v12531_v60 = vadd.f32 %v17730_v17, %v17596_v20  ;;  %v17873_v15 = vpop.f32.mrb[168].mxu0 }
 0x72c   : > { %v14479_v35 = vpop.eup %14478  ;;  %14498 = vrcp.f32 %v9944_v61  ;;  %v9950_v13 = vadd.f32 1.0, %v14477_v21  ;;  %v11774_v21 = vmul.f32 -1.442695, %v12529_v38  ;;  %v11776_v28 = vmul.f32 -1.442695, %v12593_v2  ;;  %v17878_v62 = vpop.f32.mrb[168].mxu1 }
 0x72d   : > { %v14481_v39 = vpop.eup %14480  ;;  %14500 = vrcp.f32 %v9946_v59  ;;  %v9952_v56 = vadd.f32 1.0, %v14479_v35  ;;  %v12595_v59 = vadd.f32 %v17732_v49, %v17599_v55  ;;  %v17880_v48 = vpop.f32.mrb[169].mxu0  ;;  %v11775_v38 = vmul.f32 -1.442695, %v12530_v22 }
 0x72e   : > { %v14483_v12 = vpop.eup %14482  ;;  %14502 = vrcp.f32 %v9950_v13  ;;  %v9951_v61 = vadd.f32 1.0, %v14481_v39  ;;  %v12532_v17 = vadd.f32 %v17734_v63, %v17604_v25  ;;  %v17885_v13 = vpop.f32.mrb[169].mxu1  ;;  %v11777_v49 = vmul.f32 -1.442695, %v12594_v27 }
 0x72f   : > { %v14485_v43 = vpop.eup %14484  ;;  %10602 = vst [vmem:[%s17669_s10 + $0x158] sm:$0xff] %v14483_v12  ;;  %14504 = vrcp.f32 %v9952_v56  ;;  %v17887_v39 = vpop.f32.mrb[170].mxu0  ;;  %v12596_v56 = vadd.f32 %v17736_v50, %v17607_v42  ;;  %v11781_v63 = vmul.f32 -1.442695, %v12531_v60  ;;  %v11783_v27 = vmul.f32 -1.442695, %v12595_v59 }
 0x730   : > { %v14487_v35 = vpop.eup %14486  ;;  %10604 = vst [vmem:[%s17669_s10 + $0x168] sm:$0xff] %v14485_v43  ;;  %14506 = vrcp.f32 %v9951_v61  ;;  %19242 = vst [vmem:[#allocation44_spill] sm:$0xff] %v17887_v39  ;;  %v17892_v12 = vpop.f32.mrb[170].mxu1  ;;  %v12533_v61 = vadd.f32 %v17742_v51, %v17596_v20  ;;  %v12597_v50 = vadd.f32 %v17746_v19, %v17599_v55  ;;  %8783 = vmatmul.mubr.bf16.gmra.mrb[212].mxu0 %v19203_v57  ;;  %9127 = vmatmul.mubr.bf16.gmra.mrb[20].mxu1 %v19203_v57 }
 0x731   : > { %v14489_v2 = vpop.eup %14488  ;;  %10608 = vst [vmem:[%s17669_s10 + $0x188] sm:$0xff] %v14487_v35  ;;  %14508 = vpow2.f32 %v11770_v34  ;;  %v17894_v43 = vpop.f32.mrb[171].mxu0  ;;  %v11782_v60 = vmul.f32 -1.442695, %v12532_v17  ;;  %v12534_v51 = vadd.f32 %v17748_v36, %v17604_v25  ;;  %8792 = vmatprep.mubr.bf16.mxu0 %v19204_v9  ;;  %9134 = vmatprep.mubr.bf16.mxu1 %v19204_v9  ;;  %v11784_v19 = vmul.f32 -1.442695, %v12596_v56 }
 0x732   : > { %v14491_v22 = vpop.eup %14490  ;;  %10610 = vst [vmem:[%s17669_s10 + $0x198] sm:$0xff] %v14489_v2  ;;  %14510 = vpow2.f32 %v11774_v21  ;;  %v17899_v39 = vpop.f32.mrb[171].mxu1  ;;  %v12598_v57 = vadd.f32 %v17752_v58, %v17607_v42  ;;  %v11788_v35 = vmul.f32 -1.442695, %v12533_v61  ;;  %v11790_v9 = vmul.f32 -1.442695, %v12597_v50 }
 0x733   : > { %v14493_v34 = vpop.eup %14492  ;;  %10609 = vst [vmem:[%s17669_s10 + $0x190] sm:$0xff] %v14491_v22  ;;  %14512 = vpow2.f32 %v11776_v28  ;;  %v17917_v36 = vpop.f32.mrb[172].mxu1  ;;  %v11789_v58 = vmul.f32 -1.442695, %v12534_v51 }
 0x734   : > { %v14495_v21 = vpop.eup %14494  ;;  %10611 = vst [vmem:[%s17669_s10 + $0x1a0] sm:$0xff] %v14493_v34  ;;  %14514 = vpow2.f32 %v11775_v38  ;;  %v17915_v38 = vpop.f32.mrb[172].mxu0  ;;  %v11791_v34 = vmul.f32 -1.442695, %v12598_v57 }
 0x735   : > { %v14497_v28 = vpop.eup %14496  ;;  %10615 = vst [vmem:[%s17669_s10 + $0x1c0] sm:$0xff] %v14495_v21  ;;  %14516 = vpow2.f32 %v11777_v49  ;;  %v17920_v2 = vpop.f32.mrb[173].mxu0 }
 0x736   : > { %v14499_v59 = vpop.eup %14498  ;;  %10617 = vst [vmem:[%s17669_s10 + $0x1d0] sm:$0xff] %v14497_v28  ;;  %14518 = vpow2.f32 %v11781_v63  ;;  %v17922_v49 = vpop.f32.mrb[173].mxu1 }
 0x737   : > { %v14501_v17 = vpop.eup %14500  ;;  %10616 = vst [vmem:[%s17669_s10 + $0x1c8] sm:$0xff] %v14499_v59  ;;  %14520 = vpow2.f32 %v11783_v27  ;;  %v17925_v22 = vpop.f32.mrb[174].mxu0 }
 0x738   : > { %v14503_v56 = vpop.eup %14502  ;;  %10618 = vst [vmem:[%s17669_s10 + $0x1d8] sm:$0xff] %v14501_v17  ;;  %14522 = vpow2.f32 %v11782_v60  ;;  %v17927_v63 = vpop.f32.mrb[174].mxu1  ;;  %8793 = vmatmul.mubr.bf16.gmra.mrb[216].mxu0 %v19205_v32  ;;  %9135 = vmatmul.mubr.bf16.gmra.mrb[24].mxu1 %v19205_v32 }
 0x739   : > { %v14505_v61 = vpop.eup %14504  ;;  %10622 = vst [vmem:[%s17669_s10 + $0x1f8] sm:$0xff] %v14503_v56  ;;  %14524 = vpow2.f32 %v11784_v19  ;;  %v17930_v27 = vpop.f32.mrb[175].mxu0  ;;  %8802 = vmatprep.mubr.bf16.mxu0 %v19206_v54  ;;  %9142 = vmatprep.mubr.bf16.mxu1 %v19206_v54 }
 0x73a   : > { %v17932_v50 = vpop.f32.mrb[175].mxu1  ;;  %v14507_v21 = vpop.eup %14506  ;;  %10624 = vst [vmem:[%s17669_s10 + $0x208] sm:$0xff] %v14505_v61  ;;  %14526 = vpow2.f32 %v11788_v35 }
 0x73b   : > { %v14509_v28 = vpop.eup %14508  ;;  %10623 = vst [vmem:[%s17669_s10 + $0x200] sm:$0xff] %v14507_v21  ;;  %14528 = vpow2.f32 %v11790_v9  ;;  %v17940_v17 = vpop.f32.mrb[176].mxu0 }
 0x73c   : > { %v14511_v60 = vpop.eup %14510  ;;  %v9953_v51 = vadd.f32 1.0, %v14509_v28  ;;  %14530 = vpow2.f32 %v11789_v58  ;;  %v17942_v9 = vpop.f32.mrb[176].mxu1 }
 0x73d   : > { %v14513_v19 = vpop.eup %14512  ;;  %v9957_v57 = vadd.f32 1.0, %v14511_v60  ;;  %14532 = vpow2.f32 %v11791_v34  ;;  %19243 = vst [vmem:[#allocation48_spill] sm:$0xff] %v17942_v9  ;;  %v17944_v61 = vpop.f32.mrb[177].mxu0 }
 0x73e   : > { %v14515_v59 = vpop.eup %14514  ;;  %14534 = vrcp.f32 %v9953_v51  ;;  %v9959_v35 = vadd.f32 1.0, %v14513_v19  ;;  %19244 = vst [vmem:[#allocation38_spill] sm:$0xff] %v17944_v61  ;;  %v17946_v58 = vpop.f32.mrb[177].mxu1 }
 0x73f   : > { %v14517_v56 = vpop.eup %14516  ;;  %14536 = vrcp.f32 %v9957_v57  ;;  %v9958_v32 = vadd.f32 1.0, %v14515_v59  ;;  %19245 = vst [vmem:[#allocation53_spill] sm:$0xff] %v17946_v58  ;;  %v17948_v28 = vpop.f32.mrb[178].mxu0 }
 0x740   : > { %v14519_v21 = vpop.eup %14518  ;;  %14538 = vrcp.f32 %v9959_v35  ;;  %v9960_v54 = vadd.f32 1.0, %v14517_v56  ;;  %v17950_v34 = vpop.f32.mrb[178].mxu1  ;;  %v12535_v35 = vadd.f32 %v17754_v24, %v17596_v20  ;;  %8803 = vmatmul.mubr.bf16.gmra.mrb[220].mxu0 %v17344_v1  ;;  %9143 = vmatmul.mubr.bf16.gmra.mrb[28].mxu1 %v17344_v1  ;;  %v12536_v24 = vadd.f32 %v17760_v14, %v17604_v25 }
 0x741   : > { %v14521_v60 = vpop.eup %14520  ;;  %14540 = vrcp.f32 %v9958_v32  ;;  %v9964_v51 = vadd.f32 1.0, %v14519_v21  ;;  %v17952_v19 = vpop.f32.mrb[179].mxu0  ;;  %v12599_v21 = vadd.f32 %v17758_v5, %v17599_v55  ;;  %8812 = vmatprep.mubr.bf16.mxu0 %v17346_v30  ;;  %9150 = vmatprep.mubr.bf16.mxu1 %v17346_v30  ;;  %v12600_v1 = vadd.f32 %v17764_v46, %v17607_v42 }
 0x742   : > { %v14523_v9 = vpop.eup %14522  ;;  %14542 = vrcp.f32 %v9960_v54  ;;  %v9966_v57 = vadd.f32 1.0, %v14521_v60  ;;  %v17954_v59 = vpop.f32.mrb[179].mxu1  ;;  %v12537_v30 = vadd.f32 %v17780_v10, %v17596_v20  ;;  %v12601_v46 = vadd.f32 %v17782_v52, %v17599_v55 }
 0x743   : > { %19246 = vst [vmem:[#allocation27_spill] sm:$0xff] %v17954_v59  ;;  %v14525_v61 = vpop.eup %14524  ;;  %14544 = vrcp.f32 %v9964_v51  ;;  %v9965_v58 = vadd.f32 1.0, %v14523_v9  ;;  %v11795_v59 = vmul.f32 -1.442695, %v12535_v35  ;;  %v11796_v10 = vmul.f32 -1.442695, %v12536_v24 }
 0x744   : > { %v14527_v56 = vpop.eup %14526  ;;  %14546 = vrcp.f32 %v9966_v57  ;;  %v9967_v32 = vadd.f32 1.0, %v14525_v61  ;;  %v17968_v61 = vpop.f32.mrb[180].mxu0  ;;  %v11798_v52 = vmul.f32 -1.442695, %v12600_v1  ;;  %v11802_v24 = vmul.f32 -1.442695, %v12537_v30 }
 0x745   : > { %v14529_v54 = vpop.eup %14528  ;;  %14548 = vrcp.f32 %v9965_v58  ;;  %v9971_v9 = vadd.f32 1.0, %v14527_v56  ;;  %19247 = vst [vmem:[#allocation62_spill] sm:$0xff] %v17968_v61  ;;  %v17972_v58 = vpop.f32.mrb[180].mxu1  ;;  %v11804_v1 = vmul.f32 -1.442695, %v12601_v46  ;;  %v12540_v30 = vadd.f32 %v17801_v0, %v17604_v25 }
 0x746   : > { %v14531_v60 = vpop.eup %14530  ;;  %14550 = vrcp.f32 %v9967_v32  ;;  %v9973_v51 = vadd.f32 1.0, %v14529_v54  ;;  %v17974_v56 = vpop.f32.mrb[181].mxu0  ;;  %v11797_v54 = vmul.f32 -1.442695, %v12599_v21  ;;  %v12541_v0 = vadd.f32 %v17818_v16, %v17596_v20 }
 0x747   : > { %v14533_v5 = vpop.eup %14532  ;;  %14552 = vrcp.f32 %v9971_v9  ;;  %v9972_v57 = vadd.f32 1.0, %v14531_v60  ;;  %19248 = vst [vmem:[#allocation41_spill] sm:$0xff] %v17974_v56  ;;  %v17978_v61 = vpop.f32.mrb[181].mxu1  ;;  %v12538_v60 = vadd.f32 %v17787_v23, %v17604_v25  ;;  %v12539_v23 = vadd.f32 %v17794_v41, %v17596_v20 }
 0x748   : > { %v14535_v14 = vpop.eup %14534  ;;  %14554 = vrcp.f32 %v9973_v51  ;;  %v9974_v32 = vadd.f32 1.0, %v14533_v5  ;;  %v17980_v9 = vpop.f32.mrb[182].mxu0  ;;  %v12602_v5 = vadd.f32 %v17789_v37, %v17607_v42  ;;  %8813 = vmatmul.mubr.bf16.gmra.mrb[224].mxu0 %v17351_v40  ;;  %9151 = vmatmul.mubr.bf16.gmra.mrb[32].mxu1 %v17351_v40  ;;  %v12603_v37 = vadd.f32 %v17796_v47, %v17599_v55 }
 0x749   : > { %19249 = vst [vmem:[#allocation73_spill] sm:$0xff] %v17980_v9  ;;  %v14537_v35 = vpop.eup %14536  ;;  %10625 = vst [vmem:[%s17669_s10 + $0x210] sm:$0xff] %v14535_v14  ;;  %14556 = vrcp.f32 %v9972_v57  ;;  %v17985_v56 = vpop.f32.mrb[182].mxu1  ;;  %8822 = vmatprep.mubr.bf16.mxu0 %v17363_v18  ;;  %9158 = vmatprep.mubr.bf16.mxu1 %v17363_v18  ;;  %v11803_v41 = vmul.f32 -1.442695, %v12538_v60  ;;  %v12604_v47 = vadd.f32 %v17803_v26, %v17607_v42 }
 0x74a   : > { %v17987_v51 = vpop.f32.mrb[183].mxu0  ;;  %v14539_v21 = vpop.eup %14538  ;;  %10629 = vst [vmem:[%s17669_s10 + $0x230] sm:$0xff] %v14537_v35  ;;  %14558 = vrcp.f32 %v9974_v32  ;;  %v11805_v32 = vmul.f32 -1.442695, %v12602_v5  ;;  %v11809_v35 = vmul.f32 -1.442695, %v12539_v23 }
 0x74b   : > { %v17992_v9 = vpop.f32.mrb[183].mxu1  ;;  %v14541_v57 = vpop.eup %14540  ;;  %10631 = vst [vmem:[%s17669_s10 + $0x240] sm:$0xff] %v14539_v21  ;;  %14560 = vpow2.f32 %v11795_v59  ;;  %v11811_v26 = vmul.f32 -1.442695, %v12603_v37  ;;  %v11816_v37 = vmul.f32 -1.442695, %v12541_v0 }
 0x74c   : > { %v14543_v14 = vpop.eup %14542  ;;  %10630 = vst [vmem:[%s17669_s10 + $0x238] sm:$0xff] %v14541_v57  ;;  %14562 = vpow2.f32 %v11797_v54  ;;  %v18010_v54 = vpop.f32.mrb[184].mxu0 }
 0x74d   : > { %v14545_v59 = vpop.eup %14544  ;;  %10632 = vst [vmem:[%s17669_s10 + $0x248] sm:$0xff] %v14543_v14  ;;  %14564 = vpow2.f32 %v11796_v10  ;;  %v18012_v46 = vpop.f32.mrb[184].mxu1 }
 0x74e   : > { %v14547_v40 = vpop.eup %14546  ;;  %10636 = vst [vmem:[%s17669_s10 + $0x268] sm:$0xff] %v14545_v59  ;;  %14566 = vpow2.f32 %v11798_v52  ;;  %v18017_v10 = vpop.f32.mrb[185].mxu0  ;;  %v11812_v59 = vmul.f32 -1.442695, %v12604_v47 }
 0x74f   : > { %v14549_v18 = vpop.eup %14548  ;;  %10638 = vst [vmem:[%s17669_s10 + $0x278] sm:$0xff] %v14547_v40  ;;  %14568 = vpow2.f32 %v11802_v24  ;;  %v18019_v60 = vpop.f32.mrb[185].mxu1  ;;  %v11810_v24 = vmul.f32 -1.442695, %v12540_v30 }
 0x750   : > { %v14551_v21 = vpop.eup %14550  ;;  %10637 = vst [vmem:[%s17669_s10 + $0x270] sm:$0xff] %v14549_v18  ;;  %14570 = vpow2.f32 %v11804_v1  ;;  %v18022_v52 = vpop.f32.mrb[186].mxu0  ;;  %8823 = vmatmul.mubr.bf16.gmra.mrb[228].mxu0 %v17365_v45  ;;  %9159 = vmatmul.mubr.bf16.gmra.mrb[36].mxu1 %v17365_v45 }
 0x751   : > { %v18024_v5 = vpop.f32.mrb[186].mxu1  ;;  %v14553_v57 = vpop.eup %14552  ;;  %10639 = vst [vmem:[%s17669_s10 + $0x280] sm:$0xff] %v14551_v21  ;;  %14572 = vpow2.f32 %v11803_v41  ;;  %8832 = vmatprep.mubr.bf16.mxu0 %v17398_v33  ;;  %9166 = vmatprep.mubr.bf16.mxu1 %v17398_v33 }
 0x752   : > { %v18027_v16 = vpop.f32.mrb[187].mxu0  ;;  %v18029_v23 = vpop.f32.mrb[187].mxu1  ;;  %10643 = vst [vmem:[%s17669_s10 + $0x2a0] sm:$0xff] %v14553_v57  ;;  %14574 = vpow2.f32 %v11805_v32 }
 0x753   : > { %v14555_v14 = vpop.eup %14554  ;;  %14576 = vpow2.f32 %v11809_v35  ;;  %v18039_v47 = vpop.f32.mrb[188].mxu0 }
 0x754   : > { %v14557_v1 = vpop.eup %14556  ;;  %10645 = vst [vmem:[%s17669_s10 + $0x2b0] sm:$0xff] %v14555_v14  ;;  %14578 = vpow2.f32 %v11811_v26  ;;  %v18041_v18 = vpop.f32.mrb[188].mxu1 }
 0x755   : > { %v14559_v40 = vpop.eup %14558  ;;  %10644 = vst [vmem:[%s17669_s10 + $0x2a8] sm:$0xff] %v14557_v1  ;;  %14580 = vpow2.f32 %v11810_v24  ;;  %19250 = vst [vmem:[#allocation76_spill] sm:$0xff] %v18041_v18  ;;  %v18043_v45 = vpop.f32.mrb[189].mxu0 }
 0x756   : > { %v14561_v41 = vpop.eup %14560  ;;  %10646 = vst [vmem:[%s17669_s10 + $0x2b8] sm:$0xff] %v14559_v40  ;;  %14582 = vpow2.f32 %v11812_v59  ;;  %19251 = vst [vmem:[#allocation34_spill] sm:$0xff] %v18043_v45  ;;  %v18045_v21 = vpop.f32.mrb[189].mxu1 }
 0x757   : > { %v14563_v30 = vpop.eup %14562  ;;  %v9978_v32 = vadd.f32 1.0, %v14561_v41  ;;  %14584 = vpow2.f32 %v11816_v37  ;;  %19252 = vst [vmem:[#allocation26_spill] sm:$0xff] %v18045_v21  ;;  %v18047_v57 = vpop.f32.mrb[190].mxu0 }
 0x758   : > { %v14565_v35 = vpop.eup %14564  ;;  %v9980_v0 = vadd.f32 1.0, %v14563_v30  ;;  %19253 = vst [vmem:[#allocation28_spill] sm:$0xff] %v18047_v57  ;;  %v18049_v24 = vpop.f32.mrb[190].mxu1 }
 0x759   : > { %v14567_v26 = vpop.eup %14566  ;;  %14586 = vrcp.f32 %v9978_v32  ;;  %v9979_v33 = vadd.f32 1.0, %v14565_v35  ;;  %19254 = vst [vmem:[#allocation30_spill] sm:$0xff] %v18049_v24  ;;  %v18051_v1 = vpop.f32.mrb[191].mxu0  ;;  %v12605_v32 = vadd.f32 %v17820_v11, %v17599_v55  ;;  %v19257_v35 = vld [vmem:[#allocation40_spill] sm:$0xff] }
 0x75a   : > { %v14569_v14 = vpop.eup %14568  ;;  %14588 = vrcp.f32 %v9980_v0  ;;  %v9981_v59 = vadd.f32 1.0, %v14567_v26  ;;  %19255 = vst [vmem:[#allocation42_spill] sm:$0xff] %v18051_v1  ;;  %v18053_v37 = vpop.f32.mrb[191].mxu1  ;;  %8833 = vmatmul.mubr.bf16.gmra.mrb[232].mxu0 %v19257_v35  ;;  %9167 = vmatmul.mubr.bf16.gmra.mrb[40].mxu1 %v19257_v35  ;;  %v19258_v26 = vld [vmem:[#allocation55_spill] sm:$0xff] }
 0x75b   : > { %v14571_v40 = vpop.eup %14570  ;;  %14590 = vrcp.f32 %v9979_v33  ;;  %v9985_v41 = vadd.f32 1.0, %v14569_v14  ;;  %19256 = vst [vmem:[#allocation43_spill] sm:$0xff] %v18053_v37  ;;  %8842 = vmatprep.mubr.bf16.mxu0 %v19258_v26  ;;  %9174 = vmatprep.mubr.bf16.mxu1 %v19258_v26  ;;  %v12173_v37 = vpop.f32.mrb[192].mxu1  ;;  %v11818_v57 = vmul.f32 -1.442695, %v12605_v32  ;;  %v12607_v32 = vadd.f32 %v17830_v44, %v17599_v55 }
 0x75c   : > { %v14573_v30 = vpop.eup %14572  ;;  %14592 = vrcp.f32 %v9981_v59  ;;  %v9987_v21 = vadd.f32 1.0, %v14571_v40  ;;  %v12542_v59 = vadd.f32 %v17823_v53, %v17604_v25 }
 0x75d   : > { %v14575_v24 = vpop.eup %14574  ;;  %14594 = vrcp.f32 %v9985_v41  ;;  %v9986_v0 = vadd.f32 1.0, %v14573_v30  ;;  %v12606_v41 = vadd.f32 %v17825_v7, %v17607_v42  ;;  %v12174_v30 = vpop.f32.mrb[193].mxu1 }
 0x75e   : > { %v14577_v33 = vpop.eup %14576  ;;  %14596 = vrcp.f32 %v9987_v21  ;;  %v9988_v14 = vadd.f32 1.0, %v14575_v24  ;;  %v12543_v21 = vadd.f32 %v17828_v29, %v17596_v20  ;;  %v18067_v53 = vadd.f32 %v12174_v30, %v12173_v37  ;;  %v12176_v24 = vpop.f32.mrb[194].mxu1 }
 0x75f   : > { %v14579_v40 = vpop.eup %14578  ;;  %14598 = vrcp.f32 %v9986_v0  ;;  %v9992_v11 = vadd.f32 1.0, %v14577_v33  ;;  %v12177_v7 = vpop.f32.mrb[195].mxu1  ;;  %v11819_v37 = vmul.f32 -1.442695, %v12606_v41 }
 0x760   : > { %v14581_v1 = vpop.eup %14580  ;;  %14600 = vrcp.f32 %v9988_v14  ;;  %v9994_v35 = vadd.f32 1.0, %v14579_v40  ;;  %v11817_v14 = vmul.f32 -1.442695, %v12542_v59  ;;  %v18073_v18 = vadd.f32 %v12177_v7, %v12176_v24  ;;  %v19262_v7 = vld [vmem:[#allocation67_spill] sm:$0xff] }
 0x761   : > { %v14583_v45 = vpop.eup %14582  ;;  %14602 = vrcp.f32 %v9992_v11  ;;  %v9993_v26 = vadd.f32 1.0, %v14581_v1  ;;  %v12544_v1 = vadd.f32 %v17833_v4, %v17604_v25  ;;  %v11823_v30 = vmul.f32 -1.442695, %v12543_v21 }
 0x762   : > { %v14585_v0 = vpop.eup %14584  ;;  %14604 = vrcp.f32 %v9994_v35  ;;  %v9995_v33 = vadd.f32 1.0, %v14583_v45  ;;  %v19259_v45 = vld [vmem:[#allocation64_spill] sm:$0xff]  ;;  %v19260_v35 = vld [vmem:[#allocation58_spill] sm:$0xff]  ;;  %v12545_v4 = vadd.f32 %v17841_v8, %v17596_v20  ;;  %v11825_v24 = vmul.f32 -1.442695, %v12607_v32 }
 0x763   : > { %v14587_v40 = vpop.eup %14586  ;;  %14606 = vrcp.f32 %v9993_v26  ;;  %v9999_v11 = vadd.f32 1.0, %v14585_v0  ;;  %v12608_v59 = vadd.f32 %v19259_v45, %v17607_v42  ;;  %8843 = vmatmul.mubr.bf16.gmra.mrb[236].mxu0 %v19260_v35  ;;  %9175 = vmatmul.mubr.bf16.gmra.mrb[44].mxu1 %v19260_v35  ;;  %v19261_v26 = vld [vmem:[#allocation59_spill] sm:$0xff]  ;;  %v12609_v0 = vadd.f32 %v17843_v31, %v17599_v55  ;;  %v12179_v8 = vpop.f32.mrb[196].mxu1 }
 0x764   : > { %v14589_v29 = vpop.eup %14588  ;;  %10650 = vst [vmem:[%s17669_s10 + $0x2d8] sm:$0xff] %v14587_v40  ;;  %14608 = vrcp.f32 %v9995_v33  ;;  %8852 = vmatprep.mubr.bf16.mxu0 %v19261_v26  ;;  %9182 = vmatprep.mubr.bf16.mxu1 %v19261_v26  ;;  %v11824_v21 = vmul.f32 -1.442695, %v12544_v1  ;;  %v12546_v40 = vadd.f32 %v19262_v7, %v17604_v25  ;;  %v12180_v32 = vpop.f32.mrb[197].mxu1  ;;  %v11830_v31 = vmul.f32 -1.442695, %v12545_v4 }
 0x765   : > { %v14591_v44 = vpop.eup %14590  ;;  %10652 = vst [vmem:[%s17669_s10 + $0x2e8] sm:$0xff] %v14589_v29  ;;  %14610 = vrcp.f32 %v9999_v11  ;;  %v11826_v29 = vmul.f32 -1.442695, %v12608_v59  ;;  %v12182_v26 = vpop.f32.mrb[198].mxu1  ;;  %v12611_v59 = vadd.f32 %v17853_v6, %v17599_v55 }
 0x766   : > { %v14593_v41 = vpop.eup %14592  ;;  %10651 = vst [vmem:[%s17669_s10 + $0x2e0] sm:$0xff] %v14591_v44  ;;  %14612 = vpow2.f32 %v11818_v57  ;;  %v19263_v57 = vld [vmem:[#allocation69_spill] sm:$0xff]  ;;  %v18097_v44 = vadd.f32 %v12180_v32, %v12179_v8 }
 0x767   : > { %v14595_v33 = vpop.eup %14594  ;;  %10653 = vst [vmem:[%s17669_s10 + $0x2f0] sm:$0xff] %v14593_v41  ;;  %14614 = vpow2.f32 %v11817_v14  ;;  %v12610_v45 = vadd.f32 %v19263_v57, %v17607_v42  ;;  %v19264_v14 = vld [vmem:[#allocation68_spill] sm:$0xff]  ;;  %v19265_v57 = vld [vmem:[#allocation31_spill] sm:$0xff] }
 0x768   : > { %v14597_v11 = vpop.eup %14596  ;;  %10657 = vst [vmem:[%s17669_s10 + $0x310] sm:$0xff] %v14595_v33  ;;  %14616 = vpow2.f32 %v11819_v37  ;;  %v12547_v1 = vadd.f32 %v19264_v14, %v17596_v20  ;;  %v11832_v37 = vmul.f32 -1.442695, %v12609_v0  ;;  %v12183_v33 = vpop.f32.mrb[199].mxu1  ;;  %v19266_v0 = vld [vmem:[#allocation33_spill] sm:$0xff] }
 0x769   : > { %v14599_v35 = vpop.eup %14598  ;;  %10659 = vst [vmem:[%s17669_s10 + $0x320] sm:$0xff] %v14597_v11  ;;  %14618 = vpow2.f32 %v11823_v30  ;;  %v11831_v30 = vmul.f32 -1.442695, %v12546_v40  ;;  %v18103_v4 = vadd.f32 %v12183_v33, %v12182_v26  ;;  %v11833_v8 = vmul.f32 -1.442695, %v12610_v45 }
 0x76a   : > { %v14601_v41 = vpop.eup %14600  ;;  %10658 = vst [vmem:[%s17669_s10 + $0x318] sm:$0xff] %v14599_v35  ;;  %14620 = vpow2.f32 %v11825_v24  ;;  %v11837_v6 = vmul.f32 -1.442695, %v12547_v1  ;;  %v11839_v40 = vmul.f32 -1.442695, %v12611_v59 }
 0x76b   : > { %v14603_v7 = vpop.eup %14602  ;;  %10660 = vst [vmem:[%s17669_s10 + $0x328] sm:$0xff] %v14601_v41  ;;  %14622 = vpow2.f32 %v11824_v21  ;;  %8853 = vmatmul.mubr.bf16.gmra.mrb[240].mxu0 %v19265_v57  ;;  %9183 = vmatmul.mubr.bf16.gmra.mrb[48].mxu1 %v19265_v57 }
 0x76c   : > { %v14605_v11 = vpop.eup %14604  ;;  %10664 = vst [vmem:[%s17669_s10 + $0x348] sm:$0xff] %v14603_v7  ;;  %14624 = vpow2.f32 %v11826_v29  ;;  %8862 = vmatprep.mubr.bf16.mxu0 %v19266_v0  ;;  %9190 = vmatprep.mubr.bf16.mxu1 %v19266_v0  ;;  %v12185_v29 = vpop.f32.mrb[200].mxu1  ;;  %v19268_v0 = vld [vmem:[#allocation39_spill] sm:$0xff] }
 0x76d   : > { %v14607_v24 = vpop.eup %14606  ;;  %10666 = vst [vmem:[%s17669_s10 + $0x358] sm:$0xff] %v14605_v11  ;;  %14626 = vpow2.f32 %v11830_v31  ;;  %v12186_v35 = vpop.f32.mrb[201].mxu1 }
 0x76e   : > { %v14609_v21 = vpop.eup %14608  ;;  %10665 = vst [vmem:[%s17669_s10 + $0x350] sm:$0xff] %v14607_v24  ;;  %14628 = vpow2.f32 %v11832_v37  ;;  %v18114_v31 = vadd.f32 %v12186_v35, %v12185_v29  ;;  %v12188_v1 = vpop.f32.mrb[202].mxu1 }
 0x76f   : > { %v14611_v32 = vpop.eup %14610  ;;  %10667 = vst [vmem:[%s17669_s10 + $0x360] sm:$0xff] %v14609_v21  ;;  %14630 = vpow2.f32 %v11831_v30  ;;  %v12189_v7 = vpop.f32.mrb[203].mxu1 }
 0x770   : > { %v14613_v45 = vpop.eup %14612  ;;  %10671 = vst [vmem:[%s17669_s10 + $0x380] sm:$0xff] %v14611_v32  ;;  %14632 = vpow2.f32 %v11833_v8  ;;  %v18116_v11 = vadd.f32 %v12189_v7, %v12188_v1  ;;  %v19267_v8 = vld [vmem:[#allocation63_spill] sm:$0xff]  ;;  %v19269_v7 = vld [vmem:[#allocation45_spill] sm:$0xff] }
 0x771   : > { %v14615_v14 = vpop.eup %14614  ;;  %v10001_v26 = vadd.f32 1.0, %v14613_v45  ;;  %14634 = vpow2.f32 %v11837_v6 }
 0x772   : > { %v14617_v41 = vpop.eup %14616  ;;  %v10000_v33 = vadd.f32 1.0, %v14615_v14  ;;  %14636 = vpow2.f32 %v11839_v40 }
 0x773   : > { %v14619_v37 = vpop.eup %14618  ;;  %14638 = vrcp.f32 %v10001_v26  ;;  %v10002_v59 = vadd.f32 1.0, %v14617_v41  ;;  %8863 = vmatmul.mubr.bf16.gmra.mrb[244].mxu0 %v19267_v8  ;;  %9191 = vmatmul.mubr.bf16.gmra.mrb[52].mxu1 %v19267_v8  ;;  %v12191_v45 = vpop.f32.mrb[204].mxu1  ;;  %v12548_v26 = vadd.f32 %v17855_v3, %v17604_v25 }
 0x774   : > { %v14621_v30 = vpop.eup %14620  ;;  %14640 = vrcp.f32 %v10000_v33  ;;  %v10006_v57 = vadd.f32 1.0, %v14619_v37  ;;  %8872 = vmatprep.mubr.bf16.mxu0 %v19268_v0  ;;  %9198 = vmatprep.mubr.bf16.mxu1 %v19268_v0  ;;  %v12192_v1 = vpop.f32.mrb[205].mxu1  ;;  %v12612_v37 = vadd.f32 %v19269_v7, %v17607_v42  ;;  %v19272_v7 = vld [vmem:[#allocation44_spill] sm:$0xff] }
 0x775   : > { %v14623_v24 = vpop.eup %14622  ;;  %14642 = vrcp.f32 %v10002_v59  ;;  %v10008_v6 = vadd.f32 1.0, %v14621_v30  ;;  %v18126_v59 = vadd.f32 %v12192_v1, %v12191_v45  ;;  %v12194_v30 = vpop.f32.mrb[206].mxu1  ;;  %v11838_v45 = vmul.f32 -1.442695, %v12548_v26 }
 0x776   : > { %v14625_v21 = vpop.eup %14624  ;;  %14644 = vrcp.f32 %v10006_v57  ;;  %v10007_v40 = vadd.f32 1.0, %v14623_v24  ;;  %v12549_v24 = vadd.f32 %v17873_v15, %v17596_v20 }
 0x777   : > { %v14627_v32 = vpop.eup %14626  ;;  %14646 = vrcp.f32 %v10008_v6  ;;  %v10009_v29 = vadd.f32 1.0, %v14625_v21  ;;  %v12195_v6 = vpop.f32.mrb[207].mxu1  ;;  %v12613_v21 = vadd.f32 %v17878_v62, %v17599_v55  ;;  %v12614_v62 = vadd.f32 %v17885_v13, %v17607_v42 }
 0x778   : > { %v14629_v35 = vpop.eup %14628  ;;  %14648 = vrcp.f32 %v10007_v40  ;;  %v10013_v14 = vadd.f32 1.0, %v14627_v32  ;;  %v18132_v40 = vadd.f32 %v12195_v6, %v12194_v30  ;;  %v12551_v30 = vadd.f32 %v19272_v7, %v17596_v20 }
 0x779   : > { %v14631_v41 = vpop.eup %14630  ;;  %14650 = vrcp.f32 %v10009_v29  ;;  %v10015_v33 = vadd.f32 1.0, %v14629_v35  ;;  %v12550_v35 = vadd.f32 %v17880_v48, %v17604_v25  ;;  %v11844_v48 = vmul.f32 -1.442695, %v12549_v24 }
 0x77a   : > { %v14633_v57 = vpop.eup %14632  ;;  %14652 = vrcp.f32 %v10013_v14  ;;  %v10014_v8 = vadd.f32 1.0, %v14631_v41  ;;  %v19270_v14 = vld [vmem:[#allocation60_spill] sm:$0xff]  ;;  %v11840_v41 = vmul.f32 -1.442695, %v12612_v37  ;;  %v11846_v37 = vmul.f32 -1.442695, %v12613_v21 }
 0x77b   : > { %v14635_v0 = vpop.eup %14634  ;;  %14654 = vrcp.f32 %v10015_v33  ;;  %v10016_v3 = vadd.f32 1.0, %v14633_v57  ;;  %8873 = vmatmul.mubr.bf16.gmra.mrb[248].mxu0 %v19270_v14  ;;  %9199 = vmatmul.mubr.bf16.gmra.mrb[56].mxu1 %v19270_v14  ;;  %v19271_v33 = vld [vmem:[#allocation35_spill] sm:$0xff]  ;;  %v12197_v13 = vpop.f32.mrb[208].mxu1  ;;  %v12616_v21 = vadd.f32 %v17899_v39, %v17607_v42  ;;  %v12617_v39 = vadd.f32 %v17917_v36, %v17599_v55 }
 0x77c   : > { %v14637_v32 = vpop.eup %14636  ;;  %14656 = vrcp.f32 %v10014_v8  ;;  %v10020_v29 = vadd.f32 1.0, %v14635_v0  ;;  %8882 = vmatprep.mubr.bf16.mxu0 %v19271_v33  ;;  %9206 = vmatprep.mubr.bf16.mxu1 %v19271_v33  ;;  %v12615_v8 = vadd.f32 %v17892_v12, %v17599_v55  ;;  %v11845_v0 = vmul.f32 -1.442695, %v12550_v35  ;;  %v12198_v24 = vpop.f32.mrb[209].mxu1 }
 0x77d   : > { %v14639_v15 = vpop.eup %14638  ;;  %14658 = vrcp.f32 %v10016_v3  ;;  %v10022_v1 = vadd.f32 1.0, %v14637_v32  ;;  %v12552_v3 = vadd.f32 %v17894_v43, %v17604_v25  ;;  %v18154_v12 = vadd.f32 %v12198_v24, %v12197_v13  ;;  %v12200_v14 = vpop.f32.mrb[210].mxu1 }
 0x77e   : > { %v14641_v26 = vpop.eup %14640  ;;  %10673 = vst [vmem:[%s17669_s10 + $0x390] sm:$0xff] %v14639_v15  ;;  %14660 = vrcp.f32 %v10020_v29  ;;  %v11847_v29 = vmul.f32 -1.442695, %v12614_v62  ;;  %v12553_v43 = vadd.f32 %v17915_v38, %v17596_v20  ;;  %v12201_v35 = vpop.f32.mrb[211].mxu1  ;;  %v12554_v38 = vadd.f32 %v17920_v2, %v17604_v25 }
 0x77f   : > { %v14643_v57 = vpop.eup %14642  ;;  %10672 = vst [vmem:[%s17669_s10 + $0x388] sm:$0xff] %v14641_v26  ;;  %14662 = vrcp.f32 %v10022_v1  ;;  %v18162_v62 = vadd.f32 %v12201_v35, %v12200_v14  ;;  %v11852_v26 = vmul.f32 -1.442695, %v12552_v3 }
 0x780   : > { %v14645_v6 = vpop.eup %14644  ;;  %10674 = vst [vmem:[%s17669_s10 + $0x398] sm:$0xff] %v14643_v57  ;;  %14664 = vpow2.f32 %v11838_v45  ;;  %v11851_v45 = vmul.f32 -1.442695, %v12551_v30  ;;  %v11854_v30 = vmul.f32 -1.442695, %v12616_v21 }
 0x781   : > { %v14647_v32 = vpop.eup %14646  ;;  %10678 = vst [vmem:[%s17669_s10 + $0x3b8] sm:$0xff] %v14645_v6  ;;  %14666 = vpow2.f32 %v11840_v41  ;;  %v11853_v41 = vmul.f32 -1.442695, %v12615_v8  ;;  %v11858_v57 = vmul.f32 -1.442695, %v12553_v43 }
 0x782   : > { %v14649_v15 = vpop.eup %14648  ;;  %10680 = vst [vmem:[%s17669_s10 + $0x3c8] sm:$0xff] %v14647_v32  ;;  %14668 = vpow2.f32 %v11844_v48  ;;  %v19273_v48 = vld [vmem:[#allocation72_spill] sm:$0xff]  ;;  %v11860_v8 = vmul.f32 -1.442695, %v12617_v39  ;;  %v11859_v6 = vmul.f32 -1.442695, %v12554_v38 }
 0x783   : > { %v14651_v1 = vpop.eup %14650  ;;  %10679 = vst [vmem:[%s17669_s10 + $0x3c0] sm:$0xff] %v14649_v15  ;;  %14670 = vpow2.f32 %v11846_v37  ;;  %8883 = vmatmul.mubr.bf16.gmra.mrb[252].mxu0 %v19273_v48  ;;  %9207 = vmatmul.mubr.bf16.gmra.mrb[60].mxu1 %v19273_v48  ;;  %v12203_v2 = vpop.f32.mrb[212].mxu1 }
 0x784   : > { %v14653_v33 = vpop.eup %14652  ;;  %10681 = vst [vmem:[%s17669_s10 + $0x3d0] sm:$0xff] %v14651_v1  ;;  %14672 = vpow2.f32 %v11845_v0  ;;  %v12204_v0 = vpop.f32.mrb[213].mxu1 }
 0x785   : > { %v14655_v7 = vpop.eup %14654  ;;  %10685 = vst [vmem:[%s17669_s10 + $0x3f0] sm:$0xff] %v14653_v33  ;;  %14674 = vpow2.f32 %v11847_v29  ;;  %v18174_v24 = vadd.f32 %v12204_v0, %v12203_v2  ;;  %v12206_v32 = vpop.f32.mrb[214].mxu1  ;;  %v12618_v0 = vadd.f32 %v17922_v49, %v17607_v42  ;;  %v12556_v49 = vadd.f32 %v17930_v27, %v17604_v25 }
 0x786   : > { %v14657_v36 = vpop.eup %14656  ;;  %10687 = vst [vmem:[%s17669_s10 + $0x400] sm:$0xff] %v14655_v7  ;;  %14676 = vpow2.f32 %v11851_v45  ;;  %v12207_v21 = vpop.f32.mrb[215].mxu1 }
 0x787   : > { %v14659_v37 = vpop.eup %14658  ;;  %10686 = vst [vmem:[%s17669_s10 + $0x3f8] sm:$0xff] %v14657_v36  ;;  %14678 = vpow2.f32 %v11853_v41  ;;  %v18177_v45 = vadd.f32 %v12207_v21, %v12206_v32  ;;  %v12555_v21 = vadd.f32 %v17925_v22, %v17596_v20  ;;  %v11861_v22 = vmul.f32 -1.442695, %v12618_v0 }
 0x788   : > { %v14661_v13 = vpop.eup %14660  ;;  %10688 = vst [vmem:[%s17669_s10 + $0x408] sm:$0xff] %v14659_v37  ;;  %14680 = vpow2.f32 %v11852_v26 }
 0x789   : > { %v14663_v3 = vpop.eup %14662  ;;  %10692 = vst [vmem:[%s17669_s10 + $0x428] sm:$0xff] %v14661_v13  ;;  %14682 = vpow2.f32 %v11854_v30 }
 0x78a   : > { %v14665_v29 = vpop.eup %14664  ;;  %10694 = vst [vmem:[%s17669_s10 + $0x438] sm:$0xff] %v14663_v3  ;;  %14684 = vpow2.f32 %v11858_v57 }
 0x78b   : > { %v14667_v14 = vpop.eup %14666  ;;  %v10021_v15 = vadd.f32 1.0, %v14665_v29  ;;  %14686 = vpow2.f32 %v11860_v8  ;;  %v12209_v48 = vpop.f32.mrb[216].mxu1 }
 0x78c   : > { %v14669_v43 = vpop.eup %14668  ;;  %v10023_v35 = vadd.f32 1.0, %v14667_v14  ;;  %14688 = vpow2.f32 %v11859_v6  ;;  %v12210_v36 = vpop.f32.mrb[217].mxu1 }
 0x78d   : > { %v14671_v1 = vpop.eup %14670  ;;  %14690 = vrcp.f32 %v10021_v15  ;;  %v10027_v41 = vadd.f32 1.0, %v14669_v43  ;;  %v18179_v8 = vadd.f32 %v12210_v36, %v12209_v48  ;;  %v12212_v2 = vpop.f32.mrb[218].mxu1 }
 0x78e   : > { %v14673_v39 = vpop.eup %14672  ;;  %14692 = vrcp.f32 %v10023_v35  ;;  %v10029_v33 = vadd.f32 1.0, %v14671_v1  ;;  %v12213_v3 = vpop.f32.mrb[219].mxu1  ;;  %v12619_v35 = vadd.f32 %v17927_v63, %v17599_v55  ;;  %v12557_v63 = vadd.f32 %v17940_v17, %v17596_v20 }
 0x78f   : > { %v14675_v26 = vpop.eup %14674  ;;  %14694 = vrcp.f32 %v10027_v41  ;;  %v10028_v38 = vadd.f32 1.0, %v14673_v39  ;;  %v18185_v14 = vadd.f32 %v12213_v3, %v12212_v2 }
 0x790   : > { %v14677_v7 = vpop.eup %14676  ;;  %14696 = vrcp.f32 %v10029_v33  ;;  %v10030_v30 = vadd.f32 1.0, %v14675_v26  ;;  %v12620_v26 = vadd.f32 %v17932_v50, %v17607_v42  ;;  %v11867_v27 = vmul.f32 -1.442695, %v12619_v35 }
 0x791   : > { %v14679_v57 = vpop.eup %14678  ;;  %14698 = vrcp.f32 %v10028_v38  ;;  %v10034_v37 = vadd.f32 1.0, %v14677_v7  ;;  %v11865_v7 = vmul.f32 -1.442695, %v12555_v21  ;;  %v11866_v50 = vmul.f32 -1.442695, %v12556_v49  ;;  %v19276_v21 = vld [vmem:[#allocation53_spill] sm:$0xff] }
 0x792   : > { %v14681_v13 = vpop.eup %14680  ;;  %14700 = vrcp.f32 %v10030_v30  ;;  %v10036_v6 = vadd.f32 1.0, %v14679_v57  ;;  %v19274_v57 = vld [vmem:[#allocation48_spill] sm:$0xff] }
 0x793   : > { %v14683_v32 = vpop.eup %14682  ;;  %14702 = vrcp.f32 %v10034_v37  ;;  %v10035_v29 = vadd.f32 1.0, %v14681_v13  ;;  %v12215_v30 = vpop.f32.mrb[220].mxu1  ;;  %v12621_v37 = vadd.f32 %v19274_v57, %v17599_v55 }
 0x794   : > { %v14685_v15 = vpop.eup %14684  ;;  %14704 = vrcp.f32 %v10036_v6  ;;  %v10037_v43 = vadd.f32 1.0, %v14683_v32  ;;  %v12216_v2 = vpop.f32.mrb[221].mxu1  ;;  %v19275_v6 = vld [vmem:[#allocation38_spill] sm:$0xff] }
 0x795   : > { %v14687_v1 = vpop.eup %14686  ;;  %14706 = vrcp.f32 %v10035_v29  ;;  %v10041_v41 = vadd.f32 1.0, %v14685_v15  ;;  %v12558_v0 = vadd.f32 %v19275_v6, %v17604_v25  ;;  %v18201_v17 = vadd.f32 %v12216_v2, %v12215_v30  ;;  %v12218_v3 = vpop.f32.mrb[222].mxu1 }
 0x796   : > { %v14689_v39 = vpop.eup %14688  ;;  %14708 = vrcp.f32 %v10037_v43  ;;  %v10043_v33 = vadd.f32 1.0, %v14687_v1  ;;  %v11868_v29 = vmul.f32 -1.442695, %v12620_v26  ;;  %v12622_v15 = vadd.f32 %v19276_v21, %v17607_v42  ;;  %v12219_v43 = vpop.f32.mrb[223].mxu1 }
 0x797   : > { %v14691_v38 = vpop.eup %14690  ;;  %14710 = vrcp.f32 %v10041_v41  ;;  %v10042_v48 = vadd.f32 1.0, %v14689_v39  ;;  %v11872_v1 = vmul.f32 -1.442695, %v12557_v63  ;;  %v12559_v41 = vadd.f32 %v17948_v28, %v17596_v20  ;;  %v19277_v63 = vld [vmem:[#allocation27_spill] sm:$0xff] }
 0x798   : > { %v14693_v36 = vpop.eup %14692  ;;  %10693 = vst [vmem:[%s17669_s10 + $0x430] sm:$0xff] %v14691_v38  ;;  %14712 = vrcp.f32 %v10043_v33  ;;  %v18209_v49 = vadd.f32 %v12219_v43, %v12218_v3  ;;  %v11874_v33 = vmul.f32 -1.442695, %v12621_v37  ;;  %v11873_v38 = vmul.f32 -1.442695, %v12558_v0 }
 0x799   : > { %v14695_v13 = vpop.eup %14694  ;;  %10695 = vst [vmem:[%s17669_s10 + $0x440] sm:$0xff] %v14693_v36  ;;  %14714 = vrcp.f32 %v10042_v48  ;;  %v12560_v48 = vadd.f32 %v17952_v19, %v17604_v25  ;;  %v11875_v28 = vmul.f32 -1.442695, %v12622_v15  ;;  %v12624_v30 = vadd.f32 %v19277_v63, %v17607_v42 }
 0x79a   : > { %v14697_v32 = vpop.eup %14696  ;;  %10699 = vst [vmem:[%s17669_s10 + $0x460] sm:$0xff] %v14695_v13  ;;  %14716 = vpow2.f32 %v11861_v22  ;;  %v12623_v22 = vadd.f32 %v17950_v34, %v17599_v55  ;;  %v11879_v34 = vmul.f32 -1.442695, %v12559_v41 }
 0x79b   : > { %v14699_v35 = vpop.eup %14698  ;;  %10701 = vst [vmem:[%s17669_s10 + $0x470] sm:$0xff] %v14697_v32  ;;  %14718 = vpow2.f32 %v11865_v7  ;;  %v11880_v13 = vmul.f32 -1.442695, %v12560_v48  ;;  %v11882_v3 = vmul.f32 -1.442695, %v12624_v30 }
 0x79c   : > { %v14701_v39 = vpop.eup %14700  ;;  %10700 = vst [vmem:[%s17669_s10 + $0x468] sm:$0xff] %v14699_v35  ;;  %14720 = vpow2.f32 %v11867_v27  ;;  %v12221_v27 = vpop.f32.mrb[224].mxu1  ;;  %v11881_v37 = vmul.f32 -1.442695, %v12623_v22 }
 0x79d   : > { %v14703_v26 = vpop.eup %14702  ;;  %10702 = vst [vmem:[%s17669_s10 + $0x478] sm:$0xff] %v14701_v39  ;;  %14722 = vpow2.f32 %v11866_v50  ;;  %v12222_v19 = vpop.f32.mrb[225].mxu1 }
 0x79e   : > { %v14705_v7 = vpop.eup %14704  ;;  %10706 = vst [vmem:[%s17669_s10 + $0x498] sm:$0xff] %v14703_v26  ;;  %14724 = vpow2.f32 %v11868_v29  ;;  %v18223_v50 = vadd.f32 %v12222_v19, %v12221_v27  ;;  %v12224_v6 = vpop.f32.mrb[226].mxu1  ;;  %v19278_v19 = vld [vmem:[#allocation62_spill] sm:$0xff] }
 0x79f   : > { %v14707_v36 = vpop.eup %14706  ;;  %10708 = vst [vmem:[%s17669_s10 + $0x4a8] sm:$0xff] %v14705_v7  ;;  %14726 = vpow2.f32 %v11872_v1  ;;  %v12225_v32 = vpop.f32.mrb[227].mxu1 }
 0x7a0   : > { %v14709_v57 = vpop.eup %14708  ;;  %10707 = vst [vmem:[%s17669_s10 + $0x4a0] sm:$0xff] %v14707_v36  ;;  %14728 = vpow2.f32 %v11874_v33  ;;  %v18227_v21 = vadd.f32 %v12225_v32, %v12224_v6 }
 0x7a1   : > { %v14711_v2 = vpop.eup %14710  ;;  %10709 = vst [vmem:[%s17669_s10 + $0x4b0] sm:$0xff] %v14709_v57  ;;  %14730 = vpow2.f32 %v11873_v38 }
 0x7a2   : > { %v14713_v0 = vpop.eup %14712  ;;  %10713 = vst [vmem:[%s17669_s10 + $0x4d0] sm:$0xff] %v14711_v2  ;;  %14732 = vpow2.f32 %v11875_v28  ;;  %v12561_v2 = vadd.f32 %v19278_v19, %v17596_v20 }
 0x7a3   : > { %v14715_v29 = vpop.eup %14714  ;;  %10715 = vst [vmem:[%s17669_s10 + $0x4e0] sm:$0xff] %v14713_v0  ;;  %14734 = vpow2.f32 %v11879_v34  ;;  %v12227_v22 = vpop.f32.mrb[228].mxu1 }
 0x7a4   : > { %v14717_v15 = vpop.eup %14716  ;;  %10714 = vst [vmem:[%s17669_s10 + $0x4d8] sm:$0xff] %v14715_v29  ;;  %14736 = vpow2.f32 %v11881_v37  ;;  %v12228_v48 = vpop.f32.mrb[229].mxu1 }
 0x7a5   : > { %v14719_v43 = vpop.eup %14718  ;;  %v10044_v35 = vadd.f32 1.0, %v14717_v15  ;;  %14738 = vpow2.f32 %v11880_v13  ;;  %v18230_v63 = vadd.f32 %v12228_v48, %v12227_v22  ;;  %v12230_v30 = vpop.f32.mrb[230].mxu1  ;;  %v12626_v22 = vadd.f32 %v17978_v61, %v17607_v42 }
 0x7a6   : > { %v14721_v1 = vpop.eup %14720  ;;  %v10048_v41 = vadd.f32 1.0, %v14719_v43  ;;  %14740 = vpow2.f32 %v11882_v3  ;;  %v12231_v27 = vpop.f32.mrb[231].mxu1  ;;  %v12625_v3 = vadd.f32 %v17972_v58, %v17599_v55 }
 0x7a7   : > { %v14723_v39 = vpop.eup %14722  ;;  %14742 = vrcp.f32 %v10044_v35  ;;  %v10050_v33 = vadd.f32 1.0, %v14721_v1  ;;  %v18234_v13 = vadd.f32 %v12231_v27, %v12230_v30  ;;  %v19279_v35 = vld [vmem:[#allocation41_spill] sm:$0xff]  ;;  %v12627_v27 = vadd.f32 %v17985_v56, %v17599_v55 }
 0x7a8   : > { %v14725_v26 = vpop.eup %14724  ;;  %14744 = vrcp.f32 %v10048_v41  ;;  %v10049_v38 = vadd.f32 1.0, %v14723_v39  ;;  %v12562_v1 = vadd.f32 %v19279_v35, %v17604_v25  ;;  %v11888_v48 = vmul.f32 -1.442695, %v12625_v3 }
 0x7a9   : > { %v14727_v7 = vpop.eup %14726  ;;  %14746 = vrcp.f32 %v10050_v33  ;;  %v10051_v28 = vadd.f32 1.0, %v14725_v26  ;;  %v11886_v33 = vmul.f32 -1.442695, %v12561_v2  ;;  %v12564_v2 = vadd.f32 %v17987_v51, %v17604_v25 }
 0x7aa   : > { %v14729_v36 = vpop.eup %14728  ;;  %14748 = vrcp.f32 %v10049_v38  ;;  %v10055_v34 = vadd.f32 1.0, %v14727_v7  ;;  %v19280_v7 = vld [vmem:[#allocation73_spill] sm:$0xff]  ;;  %v11887_v19 = vmul.f32 -1.442695, %v12562_v1  ;;  %v11889_v3 = vmul.f32 -1.442695, %v12626_v22 }
 0x7ab   : > { %v14731_v57 = vpop.eup %14730  ;;  %14750 = vrcp.f32 %v10051_v28  ;;  %v10057_v37 = vadd.f32 1.0, %v14729_v36  ;;  %v12233_v26 = vpop.f32.mrb[232].mxu1  ;;  %v12563_v28 = vadd.f32 %v19280_v7, %v17596_v20  ;;  %v12628_v56 = vadd.f32 %v17992_v9, %v17607_v42 }
 0x7ac   : > { %v14733_v6 = vpop.eup %14732  ;;  %14752 = vrcp.f32 %v10055_v34  ;;  %v10056_v0 = vadd.f32 1.0, %v14731_v57  ;;  %v12234_v30 = vpop.f32.mrb[233].mxu1  ;;  %v11895_v35 = vmul.f32 -1.442695, %v12627_v27  ;;  %v12629_v1 = vadd.f32 %v18012_v46, %v17599_v55 }
 0x7ad   : > { %v14735_v32 = vpop.eup %14734  ;;  %14754 = vrcp.f32 %v10057_v37  ;;  %v10058_v29 = vadd.f32 1.0, %v14733_v6  ;;  %v18246_v57 = vadd.f32 %v12234_v30, %v12233_v26  ;;  %v12236_v61 = vpop.f32.mrb[234].mxu1  ;;  %v11894_v9 = vmul.f32 -1.442695, %v12564_v2 }
 0x7ae   : > { %v14737_v15 = vpop.eup %14736  ;;  %14756 = vrcp.f32 %v10056_v0  ;;  %v10062_v43 = vadd.f32 1.0, %v14735_v32  ;;  %v12237_v6 = vpop.f32.mrb[235].mxu1  ;;  %v12630_v22 = vadd.f32 %v18019_v60, %v17607_v42 }
 0x7af   : > { %v14739_v41 = vpop.eup %14738  ;;  %14758 = vrcp.f32 %v10058_v29  ;;  %v10064_v39 = vadd.f32 1.0, %v14737_v15  ;;  %v18254_v32 = vadd.f32 %v12237_v6, %v12236_v61  ;;  %v11893_v15 = vmul.f32 -1.442695, %v12563_v28 }
 0x7b0   : > { %v14741_v38 = vpop.eup %14740  ;;  %14760 = vrcp.f32 %v10062_v43  ;;  %v10063_v58 = vadd.f32 1.0, %v14739_v41  ;;  %v12565_v43 = vadd.f32 %v18010_v54, %v17596_v20  ;;  %v11896_v54 = vmul.f32 -1.442695, %v12628_v56 }
 0x7b1   : > { %v14743_v36 = vpop.eup %14742  ;;  %14762 = vrcp.f32 %v10064_v39  ;;  %v10065_v34 = vadd.f32 1.0, %v14741_v38  ;;  %v12566_v39 = vadd.f32 %v18017_v10, %v17604_v25  ;;  %v11902_v10 = vmul.f32 -1.442695, %v12629_v1 }
 0x7b2   : > { %v14745_v37 = vpop.eup %14744  ;;  %10716 = vst [vmem:[%s17669_s10 + $0x4e8] sm:$0xff] %v14743_v36  ;;  %14764 = vrcp.f32 %v10063_v58  ;;  %v11900_v46 = vmul.f32 -1.442695, %v12565_v43  ;;  %v12567_v58 = vadd.f32 %v18022_v52, %v17596_v20  ;;  %v11903_v52 = vmul.f32 -1.442695, %v12630_v22 }
 0x7b3   : > { %v14747_v0 = vpop.eup %14746  ;;  %10720 = vst [vmem:[%s17669_s10 + $0x508] sm:$0xff] %v14745_v37  ;;  %14766 = vrcp.f32 %v10065_v34  ;;  %v12239_v26 = vpop.f32.mrb[236].mxu1  ;;  %v11901_v36 = vmul.f32 -1.442695, %v12566_v39 }
 0x7b4   : > { %v14749_v29 = vpop.eup %14748  ;;  %10722 = vst [vmem:[%s17669_s10 + $0x518] sm:$0xff] %v14747_v0  ;;  %14768 = vpow2.f32 %v11886_v33 }
 0x7b5   : > { %v14751_v51 = vpop.eup %14750  ;;  %10721 = vst [vmem:[%s17669_s10 + $0x510] sm:$0xff] %v14749_v29  ;;  %14770 = vpow2.f32 %v11888_v48  ;;  %v12240_v48 = vpop.f32.mrb[237].mxu1 }
 0x7b6   : > { %v14753_v41 = vpop.eup %14752  ;;  %10723 = vst [vmem:[%s17669_s10 + $0x520] sm:$0xff] %v14751_v51  ;;  %14772 = vpow2.f32 %v11887_v19  ;;  %v18272_v28 = vadd.f32 %v12240_v48, %v12239_v26  ;;  %v12242_v30 = vpop.f32.mrb[238].mxu1  ;;  %v11907_v19 = vmul.f32 -1.442695, %v12567_v58  ;;  %v12631_v58 = vadd.f32 %v18024_v5, %v17599_v55 }
 0x7b7   : > { %v14755_v33 = vpop.eup %14754  ;;  %10727 = vst [vmem:[%s17669_s10 + $0x540] sm:$0xff] %v14753_v41  ;;  %14774 = vpow2.f32 %v11889_v3  ;;  %v12243_v34 = vpop.f32.mrb[239].mxu1  ;;  %v12632_v5 = vadd.f32 %v18029_v23, %v17607_v42 }
 0x7b8   : > { %v14757_v38 = vpop.eup %14756  ;;  %10729 = vst [vmem:[%s17669_s10 + $0x550] sm:$0xff] %v14755_v33  ;;  %14776 = vpow2.f32 %v11893_v15  ;;  %v18276_v61 = vadd.f32 %v12243_v34, %v12242_v30 }
 0x7b9   : > { %v14759_v7 = vpop.eup %14758  ;;  %10728 = vst [vmem:[%s17669_s10 + $0x548] sm:$0xff] %v14757_v38  ;;  %14778 = vpow2.f32 %v11895_v35 }
 0x7ba   : > { %v14761_v60 = vpop.eup %14760  ;;  %10730 = vst [vmem:[%s17669_s10 + $0x558] sm:$0xff] %v14759_v7  ;;  %14780 = vpow2.f32 %v11894_v9 }
 0x7bb   : > { %v14763_v27 = vpop.eup %14762  ;;  %10734 = vst [vmem:[%s17669_s10 + $0x578] sm:$0xff] %v14761_v60  ;;  %14782 = vpow2.f32 %v11896_v54  ;;  %v12245_v56 = vpop.f32.mrb[240].mxu1  ;;  %v12568_v60 = vadd.f32 %v18027_v16, %v17604_v25 }
 0x7bc   : > { %v14765_v37 = vpop.eup %14764  ;;  %10736 = vst [vmem:[%s17669_s10 + $0x588] sm:$0xff] %v14763_v27  ;;  %14784 = vpow2.f32 %v11900_v46  ;;  %v12246_v43 = vpop.f32.mrb[241].mxu1 }
 0x7bd   : > { %v14767_v2 = vpop.eup %14766  ;;  %10735 = vst [vmem:[%s17669_s10 + $0x580] sm:$0xff] %v14765_v37  ;;  %14786 = vpow2.f32 %v11902_v10  ;;  %v18281_v1 = vadd.f32 %v12246_v43, %v12245_v56  ;;  %v12248_v41 = vpop.f32.mrb[242].mxu1  ;;  %v11908_v43 = vmul.f32 -1.442695, %v12568_v60 }
 0x7be   : > { %v14769_v6 = vpop.eup %14768  ;;  %10737 = vst [vmem:[%s17669_s10 + $0x590] sm:$0xff] %v14767_v2  ;;  %14788 = vpow2.f32 %v11901_v36  ;;  %v12249_v33 = vpop.f32.mrb[243].mxu1 }
 0x7bf   : > { %v14771_v0 = vpop.eup %14770  ;;  %v10069_v3 = vadd.f32 1.0, %v14769_v6  ;;  %14790 = vpow2.f32 %v11903_v52  ;;  %v18283_v26 = vadd.f32 %v12249_v33, %v12248_v41 }
 0x7c0   : > { %v14773_v29 = vpop.eup %14772  ;;  %v10071_v15 = vadd.f32 1.0, %v14771_v0  ;;  %14792 = vpow2.f32 %v11907_v19  ;;  %v11909_v19 = vmul.f32 -1.442695, %v12631_v58 }
 0x7c1   : > { %v14775_v51 = vpop.eup %14774  ;;  %14794 = vrcp.f32 %v10069_v3  ;;  %v10070_v35 = vadd.f32 1.0, %v14773_v29  ;;  %v12569_v3 = vadd.f32 %v18039_v47, %v17596_v20 }
 0x7c2   : > { %v14777_v9 = vpop.eup %14776  ;;  %14796 = vrcp.f32 %v10071_v15  ;;  %v10072_v39 = vadd.f32 1.0, %v14775_v51  ;;  %v19281_v51 = vld [vmem:[#allocation76_spill] sm:$0xff] }
 0x7c3   : > { %v14779_v54 = vpop.eup %14778  ;;  %14798 = vrcp.f32 %v10070_v35  ;;  %v10076_v22 = vadd.f32 1.0, %v14777_v9  ;;  %v12251_v27 = vpop.f32.mrb[244].mxu1  ;;  %v12633_v35 = vadd.f32 %v19281_v51, %v17599_v55 }
 0x7c4   : > { %v14781_v38 = vpop.eup %14780  ;;  %14800 = vrcp.f32 %v10072_v39  ;;  %v10078_v46 = vadd.f32 1.0, %v14779_v54  ;;  %v12252_v2 = vpop.f32.mrb[245].mxu1  ;;  %v19282_v39 = vld [vmem:[#allocation34_spill] sm:$0xff] }
 0x7c5   : > { %v14783_v48 = vpop.eup %14782  ;;  %14802 = vrcp.f32 %v10076_v22  ;;  %v10077_v7 = vadd.f32 1.0, %v14781_v38  ;;  %v18293_v16 = vadd.f32 %v12252_v2, %v12251_v27  ;;  %v12254_v56 = vpop.f32.mrb[246].mxu1  ;;  %v12570_v33 = vadd.f32 %v19282_v39, %v17604_v25  ;;  %v19283_v38 = vld [vmem:[#allocation26_spill] sm:$0xff] }
 0x7c6   : > { %v14785_v10 = vpop.eup %14784  ;;  %14804 = vrcp.f32 %v10078_v46  ;;  %v10079_v30 = vadd.f32 1.0, %v14783_v48  ;;  %v12255_v23 = vpop.f32.mrb[247].mxu1  ;;  %v11910_v22 = vmul.f32 -1.442695, %v12632_v5  ;;  %v12634_v46 = vadd.f32 %v19283_v38, %v17607_v42 }
 0x7c7   : > { %v14787_v36 = vpop.eup %14786  ;;  %14806 = vrcp.f32 %v10077_v7  ;;  %v10083_v34 = vadd.f32 1.0, %v14785_v10  ;;  %v18299_v47 = vadd.f32 %v12255_v23, %v12254_v56  ;;  %v11914_v48 = vmul.f32 -1.442695, %v12569_v3  ;;  %v19284_v7 = vld [vmem:[#allocation28_spill] sm:$0xff] }
 0x7c8   : > { %v14789_v52 = vpop.eup %14788  ;;  %14808 = vrcp.f32 %v10079_v30  ;;  %v10085_v37 = vadd.f32 1.0, %v14787_v36  ;;  %v12571_v10 = vadd.f32 %v19284_v7, %v17596_v20  ;;  %v11916_v60 = vmul.f32 -1.442695, %v12633_v35  ;;  %v19285_v36 = vld [vmem:[#allocation30_spill] sm:$0xff] }
 0x7c9   : > { %v14791_v6 = vpop.eup %14790  ;;  %14810 = vrcp.f32 %v10083_v34  ;;  %v10084_v0 = vadd.f32 1.0, %v14789_v52  ;;  %v12635_v34 = vadd.f32 %v19285_v36, %v17599_v55  ;;  %v11915_v52 = vmul.f32 -1.442695, %v12570_v33 }
 0x7ca   : > { %v14793_v29 = vpop.eup %14792  ;;  %14812 = vrcp.f32 %v10085_v37  ;;  %v10086_v15 = vadd.f32 1.0, %v14791_v6  ;;  %v19286_v37 = vld [vmem:[#allocation42_spill] sm:$0xff]  ;;  %v11917_v20 = vmul.f32 -1.442695, %v12634_v46  ;;  %v11921_v55 = vmul.f32 -1.442695, %v12571_v10 }
 0x7cb   : > { %v14795_v41 = vpop.eup %14794  ;;  %14814 = vrcp.f32 %v10084_v0  ;;  %v10090_v9 = vadd.f32 1.0, %v14793_v29  ;;  %v12572_v5 = vadd.f32 %v19286_v37, %v17604_v25  ;;  %v12257_v2 = vpop.f32.mrb[248].mxu1  ;;  %v19288_v46 = vld [vmem:[#allocation19_spill] sm:$0xff] }
 0x7cc   : > { %v14797_v54 = vpop.eup %14796  ;;  %10741 = vst [vmem:[%s17669_s10 + $0x5b0] sm:$0xff] %v14795_v41  ;;  %14816 = vrcp.f32 %v10086_v15  ;;  %v12258_v3 = vpop.f32.mrb[249].mxu1 }
 0x7cd   : > { %v14799_v58 = vpop.eup %14798  ;;  %10743 = vst [vmem:[%s17669_s10 + $0x5c0] sm:$0xff] %v14797_v54  ;;  %14818 = vrcp.f32 %v10090_v9  ;;  %v18317_v29 = vadd.f32 %v12258_v3, %v12257_v2  ;;  %v12260_v15 = vpop.f32.mrb[250].mxu1 }
 0x7ce   : > { %v14801_v30 = vpop.eup %14800  ;;  %10742 = vst [vmem:[%s17669_s10 + $0x5b8] sm:$0xff] %v14799_v58  ;;  %14820 = vpow2.f32 %v11909_v19  ;;  %v19287_v19 = vld [vmem:[#allocation43_spill] sm:$0xff]  ;;  %v12261_v51 = vpop.f32.mrb[251].mxu1  ;;  %v6566_v58 = vsub.s32 4, %v19288_v46 }
 0x7cf   : > { %v14803_v27 = vpop.eup %14802  ;;  %10744 = vst [vmem:[%s17669_s10 + $0x5c8] sm:$0xff] %v14801_v30  ;;  %14822 = vpow2.f32 %v11908_v43  ;;  %v12636_v0 = vadd.f32 %v19287_v19, %v17607_v42  ;;  %v11923_v43 = vmul.f32 -1.442695, %v12635_v34  ;;  %v11922_v42 = vmul.f32 -1.442695, %v12572_v5 }
 0x7d0   : > { %v14805_v6 = vpop.eup %14804  ;;  %10748 = vst [vmem:[%s17669_s10 + $0x5e8] sm:$0xff] %v14803_v27  ;;  %14824 = vpow2.f32 %v11910_v22  ;;  %v18321_v23 = vadd.f32 %v12261_v51, %v12260_v15  ;;  %v6570_v30 = vsub.s32 5, %v19288_v46 }
 0x7d1   : > { %v14807_v56 = vpop.eup %14806  ;;  %10750 = vst [vmem:[%s17669_s10 + $0x5f8] sm:$0xff] %v14805_v6  ;;  %14826 = vpow2.f32 %v11914_v48  ;;  %v11924_v9 = vmul.f32 -1.442695, %v12636_v0  ;;  %v6574_v48 = vsub.s32 6, %v19288_v46  ;;  %v15248_v0 = vld [vmem:[#allocation11 + $0x3] ss:$4 sm:$0xff] }
 0x7d2   : > { %v14809_v25 = vpop.eup %14808  ;;  %10749 = vst [vmem:[%s17669_s10 + $0x5f0] sm:$0xff] %v14807_v56  ;;  %14828 = vpow2.f32 %v11916_v60  ;;  %v18337_v56 = vrot.slane %v15248_v0, %v6566_v58 }
 0x7d3   : > { %v14811_v35 = vpop.eup %14810  ;;  %10751 = vst [vmem:[%s17669_s10 + $0x600] sm:$0xff] %v14809_v25  ;;  %14830 = vpow2.f32 %v11915_v52  ;;  %v12263_v22 = vpop.f32.mrb[252].mxu1  ;;  %v18335_v3 = vrot.slane %v15248_v0, %v6574_v48  ;;  %v18339_v25 = vrot.slane %v15248_v0, %v6570_v30 }
 0x7d4   : > { %v14813_v41 = vpop.eup %14812  ;;  %10755 = vst [vmem:[%s17669_s10 + $0x620] sm:$0xff] %v14811_v35  ;;  %14832 = vpow2.f32 %v11917_v20  ;;  %v12264_v7 = vpop.f32.mrb[253].mxu1 }
 0x7d5   : > { %v14815_v39 = vpop.eup %14814  ;;  %10757 = vst [vmem:[%s17669_s10 + $0x630] sm:$0xff] %v14813_v41  ;;  %14834 = vpow2.f32 %v11921_v55  ;;  %v18331_v36 = vadd.f32 %v12264_v7, %v12263_v22  ;;  %v12266_v34 = vpop.f32.mrb[254].mxu1  ;;  %v8931_v0 = vadd.f32 %v18073_v18, %v18335_v3 }
 0x7d6   : > { %v14817_v33 = vpop.eup %14816  ;;  %10756 = vst [vmem:[%s17669_s10 + $0x628] sm:$0xff] %v14815_v39  ;;  %14836 = vpow2.f32 %v11923_v43  ;;  %v12267_v37 = vpop.f32.mrb[255].mxu1 }
 0x7d7   : > { %v14819_v54 = vpop.eup %14818  ;;  %10758 = vst [vmem:[%s17669_s10 + $0x638] sm:$0xff] %v14817_v33  ;;  %14838 = vpow2.f32 %v11922_v42  ;;  %v18333_v6 = vadd.f32 %v12267_v37, %v12266_v34 }
 0x7d8   : > { %v14821_v38 = vpop.eup %14820  ;;  %10762 = vst [vmem:[%s17669_s10 + $0x658] sm:$0xff] %v14819_v54  ;;  %14840 = vpow2.f32 %v11924_v9  ;;  %v8928_v54 = vadd.f32 %v18067_v53, %v18335_v3 }
 0x7d9   : > { %v14823_v10 = vpop.eup %14822  ;;  %v10092_v60 = vadd.f32 1.0, %v14821_v38 }
 0x7da   : > { %v14825_v27 = vpop.eup %14824  ;;  %v10091_v52 = vadd.f32 1.0, %v14823_v10 }
 0x7db   : > { %v14827_v5 = vpop.eup %14826  ;;  %14842 = vrcp.f32 %v10092_v60  ;;  %v10093_v2 = vadd.f32 1.0, %v14825_v27  ;;  %v8734_v41 = vpop.f32.mrb[192].mxu0 }
 0x7dc   : > { %v14829_v20 = vpop.eup %14828  ;;  %14844 = vrcp.f32 %v10091_v52  ;;  %v10097_v19 = vadd.f32 1.0, %v14827_v5  ;;  %v12285_v9 = vpop.f32.mrb[0].mxu1  ;;  %v12637_v22 = vadd.f32 %v8734_v41, %v18337_v56 }
 0x7dd   : > { %v14831_v55 = vpop.eup %14830  ;;  %14846 = vrcp.f32 %v10093_v2  ;;  %v10099_v15 = vadd.f32 1.0, %v14829_v20  ;;  %v8736_v38 = vpop.f32.mrb[193].mxu0 }
 0x7de   : > { %v14833_v43 = vpop.eup %14832  ;;  %14848 = vrcp.f32 %v10097_v19  ;;  %v10098_v51 = vadd.f32 1.0, %v14831_v55  ;;  %v12286_v46 = vpop.f32.mrb[1].mxu1  ;;  %v12638_v7 = vadd.f32 %v8736_v38, %v18339_v25  ;;  %v11708_v52 = vmul.f32 -1.442695, %v12637_v22 }
 0x7df   : > { %v14835_v35 = vpop.eup %14834  ;;  %14850 = vrcp.f32 %v10099_v15  ;;  %v10100_v42 = vadd.f32 1.0, %v14833_v43  ;;  %v12287_v10 = vadd.f32 %v12286_v46, %v12285_v9  ;;  %v8738_v30 = vpop.f32.mrb[194].mxu0 }
 0x7e0   : > { %v14837_v39 = vpop.eup %14836  ;;  %14852 = vrcp.f32 %v10098_v51  ;;  %v10104_v33 = vadd.f32 1.0, %v14835_v35  ;;  %v12288_v60 = vpop.f32.mrb[2].mxu1  ;;  %v12639_v37 = vadd.f32 %v8738_v30, %v18337_v56  ;;  %v11709_v20 = vmul.f32 -1.442695, %v12638_v7 }
 0x7e1   : > { %v14839_v58 = vpop.eup %14838  ;;  %14854 = vrcp.f32 %v10100_v42  ;;  %v10106_v48 = vadd.f32 1.0, %v14837_v39  ;;  %v8740_v53 = vpop.f32.mrb[195].mxu0  ;;  %v9089_v19 = vadd.f32 %v12287_v10, %v8928_v54  ;;  %v8936_v7 = vadd.f32 %v18097_v44, %v18335_v3 }
 0x7e2   : > { %v14841_v34 = vpop.eup %14840  ;;  %14856 = vrcp.f32 %v10104_v33  ;;  %v10105_v27 = vadd.f32 1.0, %v14839_v58  ;;  %v12289_v5 = vpop.f32.mrb[3].mxu1  ;;  %v12640_v55 = vadd.f32 %v8740_v53, %v18339_v25  ;;  %v11715_v35 = vmul.f32 -1.442695, %v12639_v37 }
 0x7e3   : > { %14858 = vrcp.f32 %v10106_v48  ;;  %v10107_v2 = vadd.f32 1.0, %v14841_v34  ;;  %v12290_v15 = vadd.f32 %v12289_v5, %v12288_v60  ;;  %v11710_v51 = vmul.f32 -1.442695, %v9089_v19  ;;  %v8744_v33 = vpop.f32.mrb[196].mxu0  ;;  %v12291_v54 = vpop.f32.mrb[4].mxu1 }
 0x7e4   : > { %14860 = vrcp.f32 %v10105_v27  ;;  %v11716_v41 = vmul.f32 -1.442695, %v12640_v55  ;;  %v12641_v38 = vadd.f32 %v8744_v33, %v18337_v56  ;;  %v8746_v46 = vpop.f32.mrb[197].mxu0  ;;  %v12292_v58 = vpop.f32.mrb[5].mxu1  ;;  %v8939_v55 = vadd.f32 %v18103_v4, %v18335_v3 }
 0x7e5   : > { %v14843_v43 = vpop.eup %14842  ;;  %14862 = vrcp.f32 %v10107_v2  ;;  %v9092_v9 = vadd.f32 %v12290_v15, %v8931_v0  ;;  %v12642_v10 = vadd.f32 %v8746_v46, %v18339_v25  ;;  %v12293_v30 = vadd.f32 %v12292_v58, %v12291_v54  ;;  %v8748_v60 = vpop.f32.mrb[198].mxu0 }
 0x7e6   : > { %v14845_v42 = vpop.eup %14844  ;;  %10764 = vst [vmem:[%s17669_s10 + $0x668] sm:$0xff] %v14843_v43  ;;  %14864 = vpow2.f32 %v11708_v52  ;;  %v12294_v34 = vpop.f32.mrb[6].mxu1  ;;  %v11722_v52 = vmul.f32 -1.442695, %v12641_v38  ;;  %v12643_v37 = vadd.f32 %v8748_v60, %v18337_v56  ;;  %v8944_v58 = vadd.f32 %v18114_v31, %v18335_v3 }
 0x7e7   : > { %v14847_v39 = vpop.eup %14846  ;;  %10763 = vst [vmem:[%s17669_s10 + $0x660] sm:$0xff] %v14845_v42  ;;  %14866 = vpow2.f32 %v11709_v20  ;;  %v11717_v22 = vmul.f32 -1.442695, %v9092_v9  ;;  %v8750_v53 = vpop.f32.mrb[199].mxu0  ;;  %v11723_v44 = vmul.f32 -1.442695, %v12642_v10  ;;  %v9097_v20 = vadd.f32 %v12293_v30, %v8936_v7 }
 0x7e8   : > { %v14849_v18 = vpop.eup %14848  ;;  %10765 = vst [vmem:[%s17669_s10 + $0x670] sm:$0xff] %v14847_v39  ;;  %14868 = vpow2.f32 %v11710_v51  ;;  %v12295_v5 = vpop.f32.mrb[7].mxu1  ;;  %v12644_v19 = vadd.f32 %v8750_v53, %v18339_v25  ;;  %v11729_v15 = vmul.f32 -1.442695, %v12643_v37 }
 0x7e9   : > { %v14851_v48 = vpop.eup %14850  ;;  %10769 = vst [vmem:[%s17669_s10 + $0x690] sm:$0xff] %v14849_v18  ;;  %14870 = vpow2.f32 %v11715_v35  ;;  %v12296_v43 = vadd.f32 %v12295_v5, %v12294_v34  ;;  %v11724_v35 = vmul.f32 -1.442695, %v9097_v20 }
 0x7ea   : > { %v14853_v27 = vpop.eup %14852  ;;  %10771 = vst [vmem:[%s17669_s10 + $0x6a0] sm:$0xff] %v14851_v48  ;;  %14872 = vpow2.f32 %v11716_v41  ;;  %v11730_v42 = vmul.f32 -1.442695, %v12644_v19 }
 0x7eb   : > { %v14855_v2 = vpop.eup %14854  ;;  %10770 = vst [vmem:[%s17669_s10 + $0x698] sm:$0xff] %v14853_v27  ;;  %14874 = vpow2.f32 %v11717_v22  ;;  %v9100_v9 = vadd.f32 %v12296_v43, %v8939_v55  ;;  %v8754_v33 = vpop.f32.mrb[200].mxu0 }
 0x7ec   : > { %v14857_v0 = vpop.eup %14856  ;;  %10772 = vst [vmem:[%s17669_s10 + $0x6a8] sm:$0xff] %v14855_v2  ;;  %14876 = vpow2.f32 %v11722_v52  ;;  %v12297_v54 = vpop.f32.mrb[8].mxu1 }
 0x7ed   : > { %v14859_v51 = vpop.eup %14858  ;;  %10776 = vst [vmem:[%s17669_s10 + $0x6c8] sm:$0xff] %v14857_v0  ;;  %14878 = vpow2.f32 %v11723_v44  ;;  %v11731_v4 = vmul.f32 -1.442695, %v9100_v9  ;;  %v8756_v22 = vpop.f32.mrb[201].mxu0  ;;  %v8947_v44 = vadd.f32 %v18116_v11, %v18335_v3  ;;  %v12645_v0 = vadd.f32 %v8754_v33, %v18337_v56 }
 0x7ee   : > { %v14861_v41 = vpop.eup %14860  ;;  %10778 = vst [vmem:[%s17669_s10 + $0x6d8] sm:$0xff] %v14859_v51  ;;  %14880 = vpow2.f32 %v11729_v15  ;;  %v12298_v38 = vpop.f32.mrb[9].mxu1  ;;  %v8952_v11 = vadd.f32 %v18126_v59, %v18335_v3 }
 0x7ef   : > { %v14863_v39 = vpop.eup %14862  ;;  %10777 = vst [vmem:[%s17669_s10 + $0x6d0] sm:$0xff] %v14861_v41  ;;  %14882 = vpow2.f32 %v11724_v35  ;;  %v12299_v7 = vadd.f32 %v12298_v38, %v12297_v54  ;;  %v8758_v10 = vpop.f32.mrb[202].mxu0 }
 0x7f0   : > { %v14865_v18 = vpop.eup %14864  ;;  %10779 = vst [vmem:[%s17669_s10 + $0x6e0] sm:$0xff] %v14863_v39  ;;  %14884 = vpow2.f32 %v11730_v42  ;;  %v12300_v30 = vpop.f32.mrb[10].mxu1  ;;  %v12647_v59 = vadd.f32 %v8758_v10, %v18337_v56 }
 0x7f1   : > { %v14867_v46 = vpop.eup %14866  ;;  %v9891_v48 = vadd.f32 1.0, %v14865_v18  ;;  %14886 = vpow2.f32 %v11731_v4  ;;  %v8760_v27 = vpop.f32.mrb[203].mxu0  ;;  %v9105_v5 = vadd.f32 %v12299_v7, %v8944_v58  ;;  %v12646_v18 = vadd.f32 %v8756_v22, %v18339_v25 }
 0x7f2   : > { %v14869_v60 = vpop.eup %14868  ;;  %v9892_v34 = vadd.f32 1.0, %v14867_v46  ;;  %v12301_v52 = vpop.f32.mrb[11].mxu1  ;;  %v8955_v46 = vadd.f32 %v18132_v40, %v18335_v3 }
 0x7f3   : > { %v14871_v37 = vpop.eup %14870  ;;  %14888 = vrcp.f32 %v9891_v48  ;;  %v9893_v53 = vadd.f32 1.0, %v14869_v60  ;;  %v12302_v55 = vadd.f32 %v12301_v52, %v12300_v30  ;;  %v8764_v41 = vpop.f32.mrb[204].mxu0  ;;  %v11736_v48 = vmul.f32 -1.442695, %v12645_v0 }
 0x7f4   : > { %v14873_v2 = vpop.eup %14872  ;;  %14890 = vrcp.f32 %v9892_v34  ;;  %v9898_v20 = vadd.f32 1.0, %v14871_v37  ;;  %v12303_v9 = vpop.f32.mrb[12].mxu1  ;;  %v12649_v10 = vadd.f32 %v8764_v41, %v18337_v56  ;;  %v8960_v41 = vadd.f32 %v18154_v12, %v18335_v3 }
 0x7f5   : > { %v14875_v31 = vpop.eup %14874  ;;  %14892 = vrcp.f32 %v9893_v53  ;;  %v9899_v19 = vadd.f32 1.0, %v14873_v2  ;;  %v9108_v42 = vadd.f32 %v12302_v55, %v8947_v44  ;;  %v8766_v4 = vpop.f32.mrb[205].mxu0  ;;  %v12648_v2 = vadd.f32 %v8760_v27, %v18339_v25 }
 0x7f6   : > { %v14877_v15 = vpop.eup %14876  ;;  %14894 = vrcp.f32 %v9898_v20  ;;  %v9900_v43 = vadd.f32 1.0, %v14875_v31  ;;  %v12304_v33 = vpop.f32.mrb[13].mxu1  ;;  %v11737_v44 = vmul.f32 -1.442695, %v12646_v18  ;;  %v11738_v55 = vmul.f32 -1.442695, %v9105_v5 }
 0x7f7   : > { %v14879_v51 = vpop.eup %14878  ;;  %14896 = vrcp.f32 %v9899_v19  ;;  %v9905_v35 = vadd.f32 1.0, %v14877_v15  ;;  %v8768_v7 = vpop.f32.mrb[206].mxu0  ;;  %v12305_v52 = vadd.f32 %v12304_v33, %v12303_v9  ;;  %v12650_v27 = vadd.f32 %v8766_v4, %v18339_v25 }
 0x7f8   : > { %v14881_v39 = vpop.eup %14880  ;;  %14898 = vrcp.f32 %v9900_v43  ;;  %v9906_v54 = vadd.f32 1.0, %v14879_v51  ;;  %v12306_v30 = vpop.f32.mrb[14].mxu1  ;;  %v11745_v33 = vmul.f32 -1.442695, %v9108_v42 }
 0x7f9   : > { %v14883_v38 = vpop.eup %14882  ;;  %14900 = vrcp.f32 %v9905_v35  ;;  %v9912_v58 = vadd.f32 1.0, %v14881_v39  ;;  %v8770_v37 = vpop.f32.mrb[207].mxu0  ;;  %v9113_v20 = vadd.f32 %v12305_v52, %v8952_v11  ;;  %v11743_v35 = vmul.f32 -1.442695, %v12647_v59 }
 0x7fa   : > { %v14885_v60 = vpop.eup %14884  ;;  %14902 = vrcp.f32 %v9906_v54  ;;  %v9907_v34 = vadd.f32 1.0, %v14883_v38  ;;  %v12307_v53 = vpop.f32.mrb[15].mxu1  ;;  %v11744_v11 = vmul.f32 -1.442695, %v12648_v2  ;;  %v12651_v38 = vadd.f32 %v8768_v7, %v18337_v56 }
 0x7fb   : > { %14904 = vrcp.f32 %v9912_v58  ;;  %v9913_v22 = vadd.f32 1.0, %v14885_v60  ;;  %v14887_v40 = vpop.eup %14886  ;;  %v12308_v31 = vadd.f32 %v12307_v53, %v12306_v30  ;;  %v10816_v43 = vpop.permute.xlu0 %10815  ;;  %v12652_v30 = vadd.f32 %v8770_v37, %v18339_v25 }
 0x7fc   : > { %14906 = vrcp.f32 %v9907_v34  ;;  %v9914_v0 = vadd.f32 1.0, %v14887_v40  ;;  %v10818_v51 = vpop.permute.xlu1 %10817  ;;  %v8774_v54 = vpop.f32.mrb[208].mxu0  ;;  %v11751_v7 = vmul.f32 -1.442695, %v12650_v27  ;;  %v11752_v37 = vmul.f32 -1.442695, %v9113_v20 }
 0x7fd   : > { %v14889_v19 = vpop.eup %14888  ;;  %14908 = vrcp.f32 %v9913_v22  ;;  %v9116_v9 = vadd.f32 %v12308_v31, %v8955_v46  ;;  %v12309_v5 = vpop.f32.mrb[16].mxu1  ;;  %v8963_v22 = vadd.f32 %v18162_v62, %v18335_v3  ;;  %v12653_v31 = vadd.f32 %v8774_v54, %v18337_v56 }
 0x7fe   : > { %v14891_v15 = vpop.eup %14890  ;;  %10563 = vst [vmem:[%s17669_s10 + $0x20] sm:$0xff] %v14889_v19  ;;  %14910 = vpow2.f32 %v11736_v48  ;;  %v18388_v4 = vpop.f32.mrb[209].mxu0  ;;  %v11750_v48 = vmul.f32 -1.442695, %v12649_v10  ;;  %v11758_v62 = vmul.f32 -1.442695, %v12652_v30 }
 0x7ff   : > { %v14893_v39 = vpop.eup %14892  ;;  %10564 = vst [vmem:[%s17669_s10 + $0x28] sm:$0xff] %v14891_v15  ;;  %14912 = vrcp.f32 %v9914_v0  ;;  %v12310_v46 = vpop.f32.mrb[17].mxu1  ;;  %v11759_v15 = vmul.f32 -1.442695, %v9116_v9 }
 0x800   : > { %v14895_v18 = vpop.eup %14894  ;;  %10565 = vst [vmem:[%s17669_s10 + $0x30] sm:$0xff] %v14893_v39  ;;  %14914 = vpow2.f32 %v11737_v44  ;;  %v12311_v60 = vadd.f32 %v12310_v46, %v12309_v5  ;;  %v18394_v12 = vpop.f32.mrb[210].mxu0  ;;  %v11757_v44 = vmul.f32 -1.442695, %v12651_v38 }
 0x801   : > { %v14897_v58 = vpop.eup %14896  ;;  %10912 = vst.msk [vmem:[%s17669_s10 + $0x30] sm:$0xff] %vm10911_vm0, %v10816_v43  ;;  %10570 = vst [vmem:[%s17669_s10 + $0x58] sm:$0xff] %v14895_v18  ;;  %14916 = vpow2.f32 %v11738_v55  ;;  %v12312_v42 = vpop.f32.mrb[18].mxu1  ;;  %v8968_v18 = vadd.f32 %v18174_v24, %v18335_v3 }
 0x802   : > { %v14899_v34 = vpop.eup %14898  ;;  %10571 = vst [vmem:[%s17669_s10 + $0x60] sm:$0xff] %v14897_v58  ;;  %14918 = vpow2.f32 %v11743_v35  ;;  %v18397_v59 = vpop.f32.mrb[211].mxu0  ;;  %v18402_v2 = vadd.f32 %v12311_v60, %v8960_v41 }
 0x803   : > { %v12313_v52 = vpop.f32.mrb[19].mxu1  ;;  %v14901_v53 = vpop.eup %14900  ;;  %10572 = vst [vmem:[%s17669_s10 + $0x68] sm:$0xff] %v14899_v34  ;;  %14920 = vpow2.f32 %v11744_v11  ;;  %v11764_v11 = vmul.f32 -1.442695, %v12653_v31 }
 0x804   : > { %v14903_v40 = vpop.eup %14902  ;;  %10913 = vst.msk [vmem:[%s17669_s10 + $0x68] sm:$0xff] %vm10911_vm0, %v10818_v51  ;;  %10577 = vst [vmem:[%s17669_s10 + $0x90] sm:$0xff] %v14901_v53  ;;  %14922 = vpow2.f32 %v11745_v33  ;;  %v12314_v19 = vadd.f32 %v12313_v52, %v12312_v42  ;;  %v10820_v55 = vpop.permute.xlu0 %10819  ;;  %v8971_v53 = vadd.f32 %v18177_v45, %v18335_v3 }
 0x805   : > { %v14905_v0 = vpop.eup %14904  ;;  %10578 = vst [vmem:[%s17669_s10 + $0x98] sm:$0xff] %v14903_v40  ;;  %14924 = vpow2.f32 %v11750_v48  ;;  %v10822_v10 = vpop.permute.xlu1 %10821 }
 0x806   : > { %v14907_v20 = vpop.eup %14906  ;;  %10584 = vst [vmem:[%s17669_s10 + $0xc8] sm:$0xff] %v14905_v0  ;;  %14926 = vpow2.f32 %v11751_v7  ;;  %v18410_v43 = vadd.f32 %v12314_v19, %v8963_v22  ;;  %v18413_v35 = vpop.f32.mrb[212].mxu0  ;;  %v12654_v0 = vadd.f32 %v18388_v4, %v18339_v25 }
 0x807   : > { %v14909_v51 = vpop.eup %14908  ;;  %10579 = vst [vmem:[%s17669_s10 + $0xa0] sm:$0xff] %v14907_v20  ;;  %14928 = vpow2.f32 %v11752_v37  ;;  %v12315_v27 = vpop.f32.mrb[20].mxu1 }
 0x808   : > { %v14911_v39 = vpop.eup %14910  ;;  %10914 = vst.msk [vmem:[%s17669_s10 + $0xa0] sm:$0xff] %vm10911_vm0, %v10820_v55  ;;  %10585 = vst [vmem:[%s17669_s10 + $0xd0] sm:$0xff] %v14909_v51  ;;  %14930 = vpow2.f32 %v11757_v44  ;;  %v18418_v54 = vpop.f32.mrb[213].mxu0 }
 0x809   : > { %v12316_v5 = vpop.f32.mrb[21].mxu1  ;;  %v14913_v9 = vpop.eup %14912  ;;  %v9919_v41 = vadd.f32 1.0, %v14911_v39  ;;  %14932 = vpow2.f32 %v11758_v62  ;;  %v8976_v39 = vadd.f32 %v18179_v8, %v18335_v3  ;;  %v11765_v8 = vmul.f32 -1.442695, %v12654_v0 }
 0x80a   : > { %v12317_v33 = vadd.f32 %v12316_v5, %v12315_v27  ;;  %v18422_v38 = vpop.f32.mrb[214].mxu0  ;;  %v12318_v46 = vpop.f32.mrb[22].mxu1  ;;  %10586 = vst [vmem:[%s17669_s10 + $0xd8] sm:$0xff] %v14913_v9  ;;  %14934 = vpow2.f32 %v11759_v15 }
 0x80b   : > { %v14915_v58 = vpop.eup %14914  ;;  %v18425_v48 = vpop.f32.mrb[215].mxu0  ;;  %10915 = vst.msk [vmem:[%s17669_s10 + $0xd8] sm:$0xff] %vm10911_vm0, %v10822_v10  ;;  %14936 = vrcp.f32 %v9919_v41  ;;  %v12655_v41 = vadd.f32 %v18394_v12, %v18337_v56  ;;  %v8979_v12 = vadd.f32 %v18185_v14, %v18335_v3  ;;  %v12658_v14 = vadd.f32 %v18418_v54, %v18339_v25 }
 0x80c   : > { %v12319_v30 = vpop.f32.mrb[23].mxu1  ;;  %v14917_v60 = vpop.eup %14916  ;;  %v9920_v42 = vadd.f32 1.0, %v14915_v58  ;;  %v18429_v34 = vadd.f32 %v12317_v33, %v8968_v18  ;;  %14938 = vpow2.f32 %v11764_v11  ;;  %v11773_v54 = vmul.f32 -1.442695, %v18410_v43 }
 0x80d   : > { %v14919_v24 = vpop.eup %14918  ;;  %v9921_v7 = vadd.f32 1.0, %v14917_v60  ;;  %v12320_v37 = vadd.f32 %v12319_v30, %v12318_v46  ;;  %v18437_v20 = vpop.f32.mrb[216].mxu0  ;;  %v11771_v0 = vmul.f32 -1.442695, %v12655_v41 }
 0x80e   : > { %v14921_v52 = vpop.eup %14920  ;;  %14940 = vrcp.f32 %v9920_v42  ;;  %v9926_v22 = vadd.f32 1.0, %v14919_v24  ;;  %v12321_v55 = vpop.f32.mrb[24].mxu1 }
 0x80f   : > { %v14923_v40 = vpop.eup %14922  ;;  %14942 = vrcp.f32 %v9921_v7  ;;  %v9927_v44 = vadd.f32 1.0, %v14921_v52  ;;  %v18435_v62 = vadd.f32 %v12320_v37, %v8971_v53  ;;  %v18439_v15 = vpop.f32.mrb[217].mxu0  ;;  %v12656_v7 = vadd.f32 %v18397_v59, %v18339_v25 }
 0x810   : > { %v14925_v31 = vpop.eup %14924  ;;  %14944 = vrcp.f32 %v9926_v22  ;;  %v9928_v19 = vadd.f32 1.0, %v14923_v40  ;;  %v12322_v51 = vpop.f32.mrb[25].mxu1  ;;  %v12657_v59 = vadd.f32 %v18413_v35, %v18337_v56 }
 0x811   : > { %v14927_v10 = vpop.eup %14926  ;;  %14946 = vrcp.f32 %v9927_v44  ;;  %v9933_v45 = vadd.f32 1.0, %v14925_v31  ;;  %v18443_v5 = vpop.f32.mrb[218].mxu0  ;;  %v12323_v33 = vadd.f32 %v12322_v51, %v12321_v55  ;;  %v11772_v35 = vmul.f32 -1.442695, %v12656_v7 }
 0x812   : > { %v14929_v27 = vpop.eup %14928  ;;  %14948 = vrcp.f32 %v9928_v19  ;;  %v9934_v11 = vadd.f32 1.0, %v14927_v10  ;;  %v12324_v4 = vpop.f32.mrb[26].mxu1  ;;  %v11766_v19 = vmul.f32 -1.442695, %v18402_v2  ;;  %v8984_v2 = vadd.f32 %v18201_v17, %v18335_v3 }
 0x813   : > { %v14931_v9 = vpop.eup %14930  ;;  %14950 = vrcp.f32 %v9933_v45  ;;  %v9935_v18 = vadd.f32 1.0, %v14929_v27  ;;  %v18447_v46 = vpop.f32.mrb[219].mxu0  ;;  %v18451_v52 = vadd.f32 %v12323_v33, %v8976_v39 }
 0x814   : > { %v12325_v58 = vpop.f32.mrb[27].mxu1  ;;  %v14933_v30 = vpop.eup %14932  ;;  %14952 = vrcp.f32 %v9934_v11  ;;  %v9940_v60 = vadd.f32 1.0, %v14931_v9 }
 0x815   : > { %v14935_v42 = vpop.eup %14934  ;;  %14954 = vrcp.f32 %v9935_v18  ;;  %v9941_v24 = vadd.f32 1.0, %v14933_v30  ;;  %v12326_v37 = vadd.f32 %v12325_v58, %v12324_v4  ;;  %v10824_v44 = vpop.permute.xlu0 %10823  ;;  %v12659_v18 = vadd.f32 %v18422_v38, %v18337_v56 }
 0x816   : > { %v14937_v53 = vpop.eup %14936  ;;  %14956 = vrcp.f32 %v9940_v60  ;;  %v9942_v22 = vadd.f32 1.0, %v14935_v42  ;;  %v10826_v31 = vpop.permute.xlu1 %10825  ;;  %v11778_v30 = vmul.f32 -1.442695, %v12657_v59  ;;  %v12660_v60 = vadd.f32 %v18425_v48, %v18339_v25 }
 0x817   : > { %v14939_v40 = vpop.eup %14938  ;;  %10591 = vst [vmem:[%s17669_s10 + $0x100] sm:$0xff] %v14937_v53  ;;  %14958 = vrcp.f32 %v9941_v24  ;;  %v18461_v45 = vadd.f32 %v12326_v37, %v8979_v12  ;;  %v18463_v51 = vpop.f32.mrb[220].mxu0  ;;  %v8987_v42 = vadd.f32 %v18209_v49, %v18335_v3  ;;  %v11779_v24 = vmul.f32 -1.442695, %v12658_v14 }
 0x818   : > { %v14941_v55 = vpop.eup %14940  ;;  %14960 = vrcp.f32 %v9942_v22  ;;  %v9947_v10 = vadd.f32 1.0, %v14939_v40  ;;  %v12327_v27 = vpop.f32.mrb[28].mxu1  ;;  %v11780_v48 = vmul.f32 -1.442695, %v18429_v34  ;;  %v12661_v12 = vadd.f32 %v18437_v20, %v18337_v56 }
 0x819   : > { %v14943_v39 = vpop.eup %14942  ;;  %10592 = vst [vmem:[%s17669_s10 + $0x108] sm:$0xff] %v14941_v55  ;;  %14962 = vpow2.f32 %v11765_v8  ;;  %v18468_v11 = vpop.f32.mrb[221].mxu0  ;;  %v11785_v49 = vmul.f32 -1.442695, %v12659_v18  ;;  %v12662_v34 = vadd.f32 %v18439_v15, %v18339_v25 }
 0x81a   : > { %v12328_v4 = vpop.f32.mrb[29].mxu1  ;;  %v14945_v9 = vpop.eup %14944  ;;  %10593 = vst [vmem:[%s17669_s10 + $0x110] sm:$0xff] %v14943_v39  ;;  %14964 = vrcp.f32 %v9947_v10 }
 0x81b   : > { %v12329_v41 = vadd.f32 %v12328_v4, %v12327_v27  ;;  %v18474_v33 = vpop.f32.mrb[222].mxu0  ;;  %v12330_v17 = vpop.f32.mrb[30].mxu1  ;;  %10916 = vst.msk [vmem:[%s17669_s10 + $0x110] sm:$0xff] %vm10911_vm0, %v10824_v44  ;;  %10598 = vst [vmem:[%s17669_s10 + $0x138] sm:$0xff] %v14945_v9  ;;  %14966 = vpow2.f32 %v11766_v19  ;;  %v11792_v27 = vmul.f32 -1.442695, %v12661_v12 }
 0x81c   : > { %v14947_v58 = vpop.eup %14946  ;;  %v18481_v8 = vpop.f32.mrb[223].mxu0  ;;  %14968 = vpow2.f32 %v11771_v0  ;;  %v11786_v0 = vmul.f32 -1.442695, %v12660_v60  ;;  %v11793_v18 = vmul.f32 -1.442695, %v12662_v34 }
 0x81d   : > { %v12331_v43 = vpop.f32.mrb[31].mxu1  ;;  %v14949_v38 = vpop.eup %14948  ;;  %10599 = vst [vmem:[%s17669_s10 + $0x140] sm:$0xff] %v14947_v58  ;;  %v18486_v7 = vadd.f32 %v12329_v41, %v8984_v2  ;;  %14970 = vpow2.f32 %v11772_v35  ;;  %v8992_v35 = vadd.f32 %v18223_v50, %v18335_v3 }
 0x81e   : > { %v14951_v53 = vpop.eup %14950  ;;  %10600 = vst [vmem:[%s17669_s10 + $0x148] sm:$0xff] %v14949_v38  ;;  %v12332_v22 = vadd.f32 %v12331_v43, %v12330_v17  ;;  %14972 = vpow2.f32 %v11773_v54  ;;  %v10828_v44 = vpop.permute.xlu0 %10827  ;;  %v8995_v43 = vadd.f32 %v18227_v21, %v18335_v3 }
 0x81f   : > { %v14953_v37 = vpop.eup %14952  ;;  %10917 = vst.msk [vmem:[%s17669_s10 + $0x148] sm:$0xff] %vm10911_vm0, %v10826_v31  ;;  %10605 = vst [vmem:[%s17669_s10 + $0x170] sm:$0xff] %v14951_v53  ;;  %v10830_v19 = vpop.permute.xlu1 %10829  ;;  %14974 = vpow2.f32 %v11778_v30  ;;  %v11787_v31 = vmul.f32 -1.442695, %v18435_v62 }
 0x820   : > { %v14955_v40 = vpop.eup %14954  ;;  %10606 = vst [vmem:[%s17669_s10 + $0x178] sm:$0xff] %v14953_v37  ;;  %v18498_v20 = vadd.f32 %v12332_v22, %v8987_v42  ;;  %14976 = vpow2.f32 %v11779_v24  ;;  %v18502_v55 = vpop.f32.mrb[224].mxu0 }
 0x821   : > { %v14957_v59 = vpop.eup %14956  ;;  %10607 = vst [vmem:[%s17669_s10 + $0x180] sm:$0xff] %v14955_v40  ;;  %v12333_v10 = vpop.f32.mrb[32].mxu1  ;;  %14978 = vpow2.f32 %v11780_v48 }
 0x822   : > { %v14959_v14 = vpop.eup %14958  ;;  %10918 = vst.msk [vmem:[%s17669_s10 + $0x180] sm:$0xff] %vm10911_vm0, %v10828_v44  ;;  %10612 = vst [vmem:[%s17669_s10 + $0x1a8] sm:$0xff] %v14957_v59  ;;  %v18507_v39 = vpop.f32.mrb[225].mxu0  ;;  %14980 = vpow2.f32 %v11785_v49  ;;  %v9000_v59 = vadd.f32 %v18230_v63, %v18335_v3  ;;  %v9003_v63 = vadd.f32 %v18234_v13, %v18335_v3 }
 0x823   : > { %v12334_v15 = vpop.f32.mrb[33].mxu1  ;;  %v14961_v2 = vpop.eup %14960  ;;  %10613 = vst [vmem:[%s17669_s10 + $0x1b0] sm:$0xff] %v14959_v14  ;;  %14982 = vpow2.f32 %v11786_v0 }
 0x824   : > { %v12335_v62 = vadd.f32 %v12334_v15, %v12333_v10  ;;  %v18512_v4 = vpop.f32.mrb[226].mxu0  ;;  %v12336_v9 = vpop.f32.mrb[34].mxu1  ;;  %10614 = vst [vmem:[%s17669_s10 + $0x1b8] sm:$0xff] %v14961_v2  ;;  %14984 = vpow2.f32 %v11787_v31 }
 0x825   : > { %v14963_v54 = vpop.eup %14962  ;;  %v18515_v41 = vpop.f32.mrb[227].mxu0  ;;  %10919 = vst.msk [vmem:[%s17669_s10 + $0x1b8] sm:$0xff] %vm10911_vm0, %v10830_v19  ;;  %14986 = vpow2.f32 %v11792_v27 }
 0x826   : > { %v12337_v17 = vpop.f32.mrb[35].mxu1  ;;  %v14965_v58 = vpop.eup %14964  ;;  %v9948_v30 = vadd.f32 1.0, %v14963_v54  ;;  %v18519_v50 = vadd.f32 %v12335_v62, %v8992_v35 }
 0x827   : > { %v14967_v60 = vpop.eup %14966  ;;  %10619 = vst [vmem:[%s17669_s10 + $0x1e0] sm:$0xff] %v14965_v58  ;;  %v12338_v38 = vadd.f32 %v12337_v17, %v12336_v9  ;;  %v18526_v49 = vpop.f32.mrb[228].mxu0 }
 0x828   : > { %v14969_v42 = vpop.eup %14968  ;;  %14988 = vrcp.f32 %v9948_v30  ;;  %v9949_v24 = vadd.f32 1.0, %v14967_v60  ;;  %v12339_v40 = vpop.f32.mrb[36].mxu1  ;;  %v12663_v30 = vadd.f32 %v18443_v5, %v18337_v56  ;;  %v12665_v5 = vadd.f32 %v18463_v51, %v18337_v56 }
 0x829   : > { %v14971_v53 = vpop.eup %14970  ;;  %v9954_v48 = vadd.f32 1.0, %v14969_v42  ;;  %14990 = vpow2.f32 %v11793_v18  ;;  %v18524_v12 = vadd.f32 %v12338_v38, %v8995_v43  ;;  %v18528_v19 = vpop.f32.mrb[229].mxu0  ;;  %v12664_v38 = vadd.f32 %v18447_v46, %v18339_v25 }
 0x82a   : > { %v14973_v22 = vpop.eup %14972  ;;  %14992 = vrcp.f32 %v9949_v24  ;;  %v9955_v37 = vadd.f32 1.0, %v14971_v53  ;;  %v12340_v0 = vpop.f32.mrb[37].mxu1 }
 0x82b   : > { %v14975_v44 = vpop.eup %14974  ;;  %14994 = vrcp.f32 %v9954_v48  ;;  %v9956_v21 = vadd.f32 1.0, %v14973_v22  ;;  %v12341_v10 = vadd.f32 %v12340_v0, %v12339_v40  ;;  %v18532_v14 = vpop.f32.mrb[230].mxu0  ;;  %v11794_v22 = vmul.f32 -1.442695, %v18451_v52 }
 0x82c   : > { %v14977_v34 = vpop.eup %14976  ;;  %14996 = vrcp.f32 %v9955_v37  ;;  %v9961_v31 = vadd.f32 1.0, %v14975_v44  ;;  %v12342_v27 = vpop.f32.mrb[38].mxu1  ;;  %v9008_v0 = vadd.f32 %v18246_v57, %v18335_v3  ;;  %v12666_v52 = vadd.f32 %v18468_v11, %v18339_v25 }
 0x82d   : > { %v14979_v15 = vpop.eup %14978  ;;  %14998 = vrcp.f32 %v9956_v21  ;;  %v9962_v2 = vadd.f32 1.0, %v14977_v34  ;;  %v18534_v35 = vpop.f32.mrb[231].mxu0  ;;  %v18536_v18 = vadd.f32 %v12341_v10, %v9000_v59  ;;  %v11799_v34 = vmul.f32 -1.442695, %v12663_v30 }
 0x82e   : > { %v12343_v62 = vpop.f32.mrb[39].mxu1  ;;  %v14981_v9 = vpop.eup %14980  ;;  %15000 = vrcp.f32 %v9961_v31  ;;  %v9963_v54 = vadd.f32 1.0, %v14979_v15  ;;  %v9011_v10 = vadd.f32 %v18254_v32, %v18335_v3  ;;  %v11800_v15 = vmul.f32 -1.442695, %v12664_v38 }
 0x82f   : > { %v14983_v17 = vpop.eup %14982  ;;  %15002 = vrcp.f32 %v9962_v2  ;;  %v9968_v58 = vadd.f32 1.0, %v14981_v9  ;;  %v12344_v42 = vadd.f32 %v12343_v62, %v12342_v27  ;;  %v10832_v53 = vpop.permute.xlu0 %10831  ;;  %v11801_v11 = vmul.f32 -1.442695, %v18461_v45 }
 0x830   : > { %v14985_v60 = vpop.eup %14984  ;;  %15004 = vrcp.f32 %v9963_v54  ;;  %v9969_v43 = vadd.f32 1.0, %v14983_v17  ;;  %v18549_v44 = vpop.f32.mrb[232].mxu0  ;;  %v12667_v9 = vadd.f32 %v18474_v33, %v18337_v56  ;;  %v12668_v30 = vadd.f32 %v18481_v8, %v18339_v25 }
 0x831   : > { %v14987_v24 = vpop.eup %14986  ;;  %15006 = vrcp.f32 %v9968_v58  ;;  %v9970_v48 = vadd.f32 1.0, %v14985_v60  ;;  %v18547_v40 = vadd.f32 %v12344_v42, %v9003_v63  ;;  %v12345_v21 = vpop.f32.mrb[40].mxu1  ;;  %v11806_v58 = vmul.f32 -1.442695, %v12665_v5 }
 0x832   : > { %v14989_v13 = vpop.eup %14988  ;;  %15008 = vrcp.f32 %v9969_v43  ;;  %v9975_v37 = vadd.f32 1.0, %v14987_v24  ;;  %v18556_v59 = vpop.f32.mrb[233].mxu0  ;;  %v11807_v33 = vmul.f32 -1.442695, %v12666_v52  ;;  %v11808_v24 = vmul.f32 -1.442695, %v18486_v7 }
 0x833   : > { %v14991_v46 = vpop.eup %14990  ;;  %10620 = vst [vmem:[%s17669_s10 + $0x1e8] sm:$0xff] %v14989_v13  ;;  %15010 = vrcp.f32 %v9970_v48  ;;  %v12346_v31 = vpop.f32.mrb[41].mxu1  ;;  %v11813_v13 = vmul.f32 -1.442695, %v12667_v9  ;;  %v11814_v7 = vmul.f32 -1.442695, %v12668_v30 }
 0x834   : > { %v14993_v51 = vpop.eup %14992  ;;  %15012 = vrcp.f32 %v9975_v37  ;;  %v9976_v27 = vadd.f32 1.0, %v14991_v46  ;;  %v18560_v2 = vpop.f32.mrb[234].mxu0  ;;  %v12347_v54 = vadd.f32 %v12346_v31, %v12345_v21  ;;  %v12670_v37 = vadd.f32 %v18507_v39, %v18339_v25 }
 0x835   : > { %v12348_v57 = vpop.f32.mrb[42].mxu1  ;;  %v14995_v62 = vpop.eup %14994  ;;  %10621 = vst [vmem:[%s17669_s10 + $0x1f0] sm:$0xff] %v14993_v51  ;;  %15014 = vpow2.f32 %v11794_v22  ;;  %v9016_v39 = vadd.f32 %v18272_v28, %v18335_v3 }
 0x836   : > { %v18566_v17 = vpop.f32.mrb[235].mxu0  ;;  %v12349_v32 = vpop.f32.mrb[43].mxu1  ;;  %10920 = vst.msk [vmem:[%s17669_s10 + $0x1f0] sm:$0xff] %vm10911_vm0, %v10832_v53  ;;  %10626 = vst [vmem:[%s17669_s10 + $0x218] sm:$0xff] %v14995_v62  ;;  %15016 = vrcp.f32 %v9976_v27  ;;  %v18574_v43 = vadd.f32 %v12347_v54, %v9008_v0  ;;  %v12669_v53 = vadd.f32 %v18502_v55, %v18337_v56  ;;  %v11815_v0 = vmul.f32 -1.442695, %v18498_v20 }
 0x837   : > { %v14997_v63 = vpop.eup %14996  ;;  %v12350_v60 = vadd.f32 %v12349_v32, %v12348_v57  ;;  %15018 = vpow2.f32 %v11799_v34  ;;  %v10834_v42 = vpop.permute.xlu1 %10833  ;;  %v11821_v57 = vmul.f32 -1.442695, %v12670_v37 }
 0x838   : > { %v14999_v45 = vpop.eup %14998  ;;  %10627 = vst [vmem:[%s17669_s10 + $0x220] sm:$0xff] %v14997_v63  ;;  %15020 = vpow2.f32 %v11800_v15  ;;  %v10836_v22 = vpop.permute.xlu0 %10835  ;;  %v11820_v51 = vmul.f32 -1.442695, %v12669_v53  ;;  %v9019_v63 = vadd.f32 %v18276_v61, %v18335_v3 }
 0x839   : > { %v15001_v38 = vpop.eup %15000  ;;  %10628 = vst [vmem:[%s17669_s10 + $0x228] sm:$0xff] %v14999_v45  ;;  %v18580_v8 = vadd.f32 %v12350_v60, %v9011_v10  ;;  %15022 = vpow2.f32 %v11801_v11  ;;  %v18588_v55 = vpop.f32.mrb[236].mxu0 }
 0x83a   : > { %v15003_v48 = vpop.eup %15002  ;;  %10921 = vst.msk [vmem:[%s17669_s10 + $0x228] sm:$0xff] %vm10911_vm0, %v10834_v42  ;;  %10633 = vst [vmem:[%s17669_s10 + $0x250] sm:$0xff] %v15001_v38  ;;  %15024 = vpow2.f32 %v11806_v58  ;;  %v12351_v21 = vpop.f32.mrb[44].mxu1  ;;  %v11822_v58 = vmul.f32 -1.442695, %v18519_v50 }
 0x83b   : > { %v15005_v5 = vpop.eup %15004  ;;  %10634 = vst [vmem:[%s17669_s10 + $0x258] sm:$0xff] %v15003_v48  ;;  %15026 = vpow2.f32 %v11807_v33  ;;  %v18592_v34 = vpop.f32.mrb[237].mxu0 }
 0x83c   : > { %v15007_v46 = vpop.eup %15006  ;;  %10635 = vst [vmem:[%s17669_s10 + $0x260] sm:$0xff] %v15005_v5  ;;  %v12352_v52 = vpop.f32.mrb[45].mxu1  ;;  %15028 = vpow2.f32 %v11808_v24  ;;  %v9024_v5 = vadd.f32 %v18281_v1, %v18335_v3 }
 0x83d   : > { %v15009_v31 = vpop.eup %15008  ;;  %10922 = vst.msk [vmem:[%s17669_s10 + $0x260] sm:$0xff] %vm10911_vm0, %v10836_v22  ;;  %10640 = vst [vmem:[%s17669_s10 + $0x288] sm:$0xff] %v15007_v46  ;;  %v12353_v10 = vadd.f32 %v12352_v52, %v12351_v21  ;;  %v18599_v27 = vpop.f32.mrb[238].mxu0  ;;  %15030 = vpow2.f32 %v11813_v13 }
 0x83e   : > { %v12354_v15 = vpop.f32.mrb[46].mxu1  ;;  %v15011_v20 = vpop.eup %15010  ;;  %10641 = vst [vmem:[%s17669_s10 + $0x290] sm:$0xff] %v15009_v31  ;;  %15032 = vpow2.f32 %v11814_v7 }
 0x83f   : > { %v18602_v62 = vpop.f32.mrb[239].mxu0  ;;  %v12355_v11 = vpop.f32.mrb[47].mxu1  ;;  %10642 = vst [vmem:[%s17669_s10 + $0x298] sm:$0xff] %v15011_v20  ;;  %v18605_v54 = vadd.f32 %v12353_v10, %v9016_v39  ;;  %15034 = vpow2.f32 %v11815_v0 }
 0x840   : > { %v15013_v28 = vpop.eup %15012  ;;  %v10838_v9 = vpop.permute.xlu1 %10837  ;;  %v12356_v30 = vadd.f32 %v12355_v11, %v12354_v15  ;;  %15036 = vpow2.f32 %v11820_v51  ;;  %v12671_v11 = vadd.f32 %v18512_v4, %v18337_v56  ;;  %v12673_v4 = vadd.f32 %v18526_v49, %v18337_v56 }
 0x841   : > { %v15015_v32 = vpop.eup %15014  ;;  %10923 = vst.msk [vmem:[%s17669_s10 + $0x298] sm:$0xff] %vm10911_vm0, %v10838_v9  ;;  %10647 = vst [vmem:[%s17669_s10 + $0x2c0] sm:$0xff] %v15013_v28  ;;  %15038 = vpow2.f32 %v11821_v57  ;;  %v18616_v53 = vpop.f32.mrb[240].mxu0  ;;  %v9027_v9 = vadd.f32 %v18283_v26, %v18335_v3  ;;  %v9035_v49 = vadd.f32 %v18299_v47, %v18335_v3 }
 0x842   : > { %v15017_v60 = vpop.eup %15016  ;;  %v9977_v45 = vadd.f32 1.0, %v15015_v32  ;;  %v18614_v38 = vadd.f32 %v12356_v30, %v9019_v63  ;;  %v12357_v61 = vpop.f32.mrb[48].mxu1 }
 0x843   : > { %v15019_v33 = vpop.eup %15018  ;;  %10648 = vst [vmem:[%s17669_s10 + $0x2c8] sm:$0xff] %v15017_v60  ;;  %v18618_v13 = vpop.f32.mrb[241].mxu0 }
 0x844   : > { %v15021_v42 = vpop.eup %15020  ;;  %15040 = vrcp.f32 %v9977_v45  ;;  %v9982_v24 = vadd.f32 1.0, %v15019_v33  ;;  %v12358_v50 = vpop.f32.mrb[49].mxu1  ;;  %v12672_v45 = vadd.f32 %v18515_v41, %v18339_v25 }
 0x845   : > { %v15023_v48 = vpop.eup %15022  ;;  %v9983_v22 = vadd.f32 1.0, %v15021_v42  ;;  %15042 = vpow2.f32 %v11822_v58  ;;  %v12359_v21 = vadd.f32 %v12358_v50, %v12357_v61  ;;  %v18622_v46 = vpop.f32.mrb[242].mxu0 }
 0x846   : > { %v15025_v37 = vpop.eup %15024  ;;  %15044 = vrcp.f32 %v9982_v24  ;;  %v9984_v7 = vadd.f32 1.0, %v15023_v48  ;;  %v12360_v0 = vpop.f32.mrb[50].mxu1 }
 0x847   : > { %v15027_v52 = vpop.eup %15026  ;;  %15046 = vrcp.f32 %v9983_v22  ;;  %v9989_v31 = vadd.f32 1.0, %v15025_v37  ;;  %v18624_v39 = vpop.f32.mrb[243].mxu0  ;;  %v18626_v20 = vadd.f32 %v12359_v21, %v9024_v5  ;;  %v9032_v22 = vadd.f32 %v18293_v16, %v18335_v3 }
 0x848   : > { %v12361_v51 = vpop.f32.mrb[51].mxu1  ;;  %v15029_v10 = vpop.eup %15028  ;;  %15048 = vrcp.f32 %v9984_v7  ;;  %v9990_v15 = vadd.f32 1.0, %v15027_v52  ;;  %v11827_v37 = vmul.f32 -1.442695, %v12671_v11  ;;  %v11834_v11 = vmul.f32 -1.442695, %v12673_v4 }
 0x849   : > { %v15031_v57 = vpop.eup %15030  ;;  %15050 = vrcp.f32 %v9989_v31  ;;  %v9991_v1 = vadd.f32 1.0, %v15029_v10  ;;  %v12362_v63 = vadd.f32 %v12361_v51, %v12360_v0  ;;  %v10840_v30 = vpop.permute.xlu0 %10839  ;;  %v12674_v0 = vadd.f32 %v18528_v19, %v18339_v25 }
 0x84a   : > { %v15033_v28 = vpop.eup %15032  ;;  %15052 = vrcp.f32 %v9990_v15  ;;  %v9996_v32 = vadd.f32 1.0, %v15031_v57  ;;  %v18638_v61 = vpop.f32.mrb[244].mxu0  ;;  %v11828_v51 = vmul.f32 -1.442695, %v12672_v45  ;;  %v11829_v10 = vmul.f32 -1.442695, %v18524_v12 }
 0x84b   : > { %v15035_v58 = vpop.eup %15034  ;;  %15054 = vrcp.f32 %v9991_v1  ;;  %v9997_v60 = vadd.f32 1.0, %v15033_v28  ;;  %v18636_v24 = vadd.f32 %v12362_v63, %v9027_v9  ;;  %v12363_v26 = vpop.f32.mrb[52].mxu1  ;;  %v12675_v28 = vadd.f32 %v18532_v14, %v18337_v56 }
 0x84c   : > { %v15037_v33 = vpop.eup %15036  ;;  %15056 = vrcp.f32 %v9996_v32  ;;  %v9998_v42 = vadd.f32 1.0, %v15035_v58  ;;  %v18642_v41 = vpop.f32.mrb[245].mxu0  ;;  %v12676_v12 = vadd.f32 %v18534_v35, %v18339_v25  ;;  %v11836_v14 = vmul.f32 -1.442695, %v18536_v18 }
 0x84d   : > { %v15039_v48 = vpop.eup %15038  ;;  %15058 = vrcp.f32 %v9997_v60  ;;  %v10003_v50 = vadd.f32 1.0, %v15037_v33  ;;  %v12364_v5 = vpop.f32.mrb[53].mxu1  ;;  %v12677_v35 = vadd.f32 %v18549_v44, %v18337_v56 }
 0x84e   : > { %v15041_v7 = vpop.eup %15040  ;;  %15060 = vrcp.f32 %v9998_v42  ;;  %v10004_v21 = vadd.f32 1.0, %v15039_v48  ;;  %v18648_v52 = vpop.f32.mrb[246].mxu0  ;;  %v12365_v15 = vadd.f32 %v12364_v5, %v12363_v26  ;;  %v11841_v26 = vmul.f32 -1.442695, %v12675_v28 }
 0x84f   : > { %v12366_v31 = vpop.f32.mrb[54].mxu1  ;;  %v15043_v16 = vpop.eup %15042  ;;  %10649 = vst [vmem:[%s17669_s10 + $0x2d0] sm:$0xff] %v15041_v7  ;;  %15062 = vrcp.f32 %v10003_v50  ;;  %v12678_v48 = vadd.f32 %v18556_v59, %v18339_v25  ;;  %v11842_v44 = vmul.f32 -1.442695, %v12676_v12  ;;  %v11843_v59 = vmul.f32 -1.442695, %v18547_v40 }
 0x850   : > { %v18652_v57 = vpop.f32.mrb[247].mxu0  ;;  %v12367_v47 = vpop.f32.mrb[55].mxu1  ;;  %10924 = vst.msk [vmem:[%s17669_s10 + $0x2d0] sm:$0xff] %vm10911_vm0, %v10840_v30  ;;  %15064 = vrcp.f32 %v10004_v21  ;;  %v10005_v19 = vadd.f32 1.0, %v15043_v16  ;;  %v18661_v32 = vadd.f32 %v12365_v15, %v9032_v22  ;;  %v11835_v30 = vmul.f32 -1.442695, %v12674_v0 }
 0x851   : > { %v15045_v1 = vpop.eup %15044  ;;  %15066 = vpow2.f32 %v11827_v37  ;;  %v12368_v63 = vadd.f32 %v12367_v47, %v12366_v31  ;;  %v10844_v45 = vpop.permute.xlu0 %10843  ;;  %v11849_v47 = vmul.f32 -1.442695, %v12678_v48  ;;  %v9043_v28 = vadd.f32 %v18321_v23, %v18335_v3 }
 0x852   : > { %v15047_v9 = vpop.eup %15046  ;;  %10654 = vst [vmem:[%s17669_s10 + $0x2f8] sm:$0xff] %v15045_v1  ;;  %15068 = vrcp.f32 %v10005_v19  ;;  %v10842_v33 = vpop.permute.xlu1 %10841  ;;  %v9048_v48 = vadd.f32 %v18331_v36, %v18335_v3 }
 0x853   : > { %v15049_v58 = vpop.eup %15048  ;;  %10655 = vst [vmem:[%s17669_s10 + $0x300] sm:$0xff] %v15047_v9  ;;  %15070 = vpow2.f32 %v11828_v51  ;;  %v18668_v42 = vadd.f32 %v12368_v63, %v9035_v49  ;;  %v18675_v22 = vpop.f32.mrb[248].mxu0  ;;  %v9040_v49 = vadd.f32 %v18317_v29, %v18335_v3  ;;  %v11848_v51 = vmul.f32 -1.442695, %v12677_v35 }
 0x854   : > { %v15051_v60 = vpop.eup %15050  ;;  %10656 = vst [vmem:[%s17669_s10 + $0x308] sm:$0xff] %v15049_v58  ;;  %15072 = vpow2.f32 %v11829_v10  ;;  %v12369_v50 = vpop.f32.mrb[56].mxu1  ;;  %v12679_v10 = vadd.f32 %v18560_v2, %v18337_v56  ;;  %v11850_v2 = vmul.f32 -1.442695, %v18574_v43 }
 0x855   : > { %v15053_v4 = vpop.eup %15052  ;;  %10925 = vst.msk [vmem:[%s17669_s10 + $0x308] sm:$0xff] %vm10911_vm0, %v10842_v33  ;;  %10661 = vst [vmem:[%s17669_s10 + $0x330] sm:$0xff] %v15051_v60  ;;  %15074 = vpow2.f32 %v11834_v11  ;;  %v18678_v37 = vpop.f32.mrb[249].mxu0 }
 0x856   : > { %v15055_v18 = vpop.eup %15054  ;;  %10662 = vst [vmem:[%s17669_s10 + $0x338] sm:$0xff] %v15053_v4  ;;  %v12370_v5 = vpop.f32.mrb[57].mxu1  ;;  %15076 = vpow2.f32 %v11835_v30  ;;  %v11855_v30 = vmul.f32 -1.442695, %v12679_v10 }
 0x857   : > { %v15057_v7 = vpop.eup %15056  ;;  %10663 = vst [vmem:[%s17669_s10 + $0x340] sm:$0xff] %v15055_v18  ;;  %v12371_v21 = vadd.f32 %v12370_v5, %v12369_v50  ;;  %v18684_v0 = vpop.f32.mrb[250].mxu0  ;;  %15078 = vpow2.f32 %v11836_v14 }
 0x858   : > { %v12372_v31 = vpop.f32.mrb[58].mxu1  ;;  %v15059_v16 = vpop.eup %15058  ;;  %10926 = vst.msk [vmem:[%s17669_s10 + $0x340] sm:$0xff] %vm10911_vm0, %v10844_v45  ;;  %10668 = vst [vmem:[%s17669_s10 + $0x368] sm:$0xff] %v15057_v7  ;;  %15080 = vpow2.f32 %v11841_v26 }
 0x859   : > { %v18691_v29 = vpop.f32.mrb[251].mxu0  ;;  %v12373_v15 = vpop.f32.mrb[59].mxu1  ;;  %10669 = vst [vmem:[%s17669_s10 + $0x370] sm:$0xff] %v15059_v16  ;;  %v18694_v1 = vadd.f32 %v12371_v21, %v9040_v49  ;;  %15082 = vpow2.f32 %v11842_v44 }
 0x85a   : > { %v15061_v40 = vpop.eup %15060  ;;  %v10846_v11 = vpop.permute.xlu1 %10845  ;;  %v12374_v9 = vadd.f32 %v12373_v15, %v12372_v31  ;;  %15084 = vpow2.f32 %v11843_v59 }
 0x85b   : > { %v15063_v19 = vpop.eup %15062  ;;  %10670 = vst [vmem:[%s17669_s10 + $0x378] sm:$0xff] %v15061_v40  ;;  %v10848_v58 = vpop.permute.xlu0 %10847  ;;  %15086 = vpow2.f32 %v11848_v51  ;;  %v9051_v40 = vadd.f32 %v18333_v6, %v18335_v3  ;;  %v12681_v3 = vadd.f32 %v18588_v55, %v18337_v56  ;;  %v12683_v55 = vadd.f32 %v18599_v27, %v18337_v56 }
 0x85c   : > { %v15065_v12 = vpop.eup %15064  ;;  %10927 = vst.msk [vmem:[%s17669_s10 + $0x378] sm:$0xff] %vm10911_vm0, %v10846_v11  ;;  %10675 = vst [vmem:[%s17669_s10 + $0x3a0] sm:$0xff] %v15063_v19  ;;  %v18704_v60 = vadd.f32 %v12374_v9, %v9043_v28  ;;  %15088 = vpow2.f32 %v11849_v47  ;;  %v18706_v33 = vpop.f32.mrb[252].mxu0  ;;  %v12685_v27 = vadd.f32 %v18616_v53, %v18337_v56  ;;  %v11871_v53 = vmul.f32 -1.442695, %v18614_v38 }
 0x85d   : > { %v15067_v63 = vpop.eup %15066  ;;  %10676 = vst [vmem:[%s17669_s10 + $0x3a8] sm:$0xff] %v15065_v12  ;;  %v12375_v43 = vpop.f32.mrb[60].mxu1  ;;  %15090 = vpow2.f32 %v11850_v2  ;;  %v12680_v2 = vadd.f32 %v18566_v17, %v18339_v25  ;;  %v12682_v17 = vadd.f32 %v18592_v34, %v18339_v25  ;;  %v12684_v34 = vadd.f32 %v18602_v62, %v18339_v25 }
 0x85e   : > { %v15069_v23 = vpop.eup %15068  ;;  %v10010_v45 = vadd.f32 1.0, %v15067_v63  ;;  %v18709_v35 = vpop.f32.mrb[253].mxu0  ;;  %v11869_v62 = vmul.f32 -1.442695, %v12683_v55 }
 0x85f   : > { %v15071_v14 = vpop.eup %15070  ;;  %10677 = vst [vmem:[%s17669_s10 + $0x3b0] sm:$0xff] %v15069_v23  ;;  %v12376_v4 = vpop.f32.mrb[61].mxu1 }
 0x860   : > { %v15073_v26 = vpop.eup %15072  ;;  %10928 = vst.msk [vmem:[%s17669_s10 + $0x3b0] sm:$0xff] %vm10911_vm0, %v10848_v58  ;;  %15092 = vrcp.f32 %v10010_v45  ;;  %v10011_v50 = vadd.f32 1.0, %v15071_v14  ;;  %v12377_v18 = vadd.f32 %v12376_v4, %v12375_v43  ;;  %v18715_v44 = vpop.f32.mrb[254].mxu0  ;;  %v11856_v14 = vmul.f32 -1.442695, %v12680_v2 }
 0x861   : > { %v12378_v5 = vpop.f32.mrb[62].mxu1  ;;  %v15075_v7 = vpop.eup %15074  ;;  %v10012_v49 = vadd.f32 1.0, %v15073_v26  ;;  %15094 = vpow2.f32 %v11855_v30 }
 0x862   : > { %v18717_v59 = vpop.f32.mrb[255].mxu0  ;;  %v12379_v21 = vpop.f32.mrb[63].mxu1  ;;  %15096 = vrcp.f32 %v10011_v50  ;;  %v10017_v16 = vadd.f32 1.0, %v15075_v7  ;;  %v18719_v51 = vadd.f32 %v12377_v18, %v9048_v48  ;;  %v11857_v50 = vmul.f32 -1.442695, %v18580_v8 }
 0x863   : > { %v15077_v31 = vpop.eup %15076  ;;  %15098 = vrcp.f32 %v10012_v49  ;;  %v12380_v19 = vadd.f32 %v12379_v21, %v12378_v5  ;;  %v11862_v7 = vmul.f32 -1.442695, %v12681_v3  ;;  %v11863_v21 = vmul.f32 -1.442695, %v12682_v17 }
 0x864   : > { %v15079_v36 = vpop.eup %15078  ;;  %v10018_v10 = vadd.f32 1.0, %v15077_v31  ;;  %15100 = vrcp.f32 %v10017_v16  ;;  %v10850_v16 = vpop.permute.xlu1 %10849  ;;  %v11864_v8 = vmul.f32 -1.442695, %v18605_v54 }
 0x865   : > { %v15081_v15 = vpop.eup %15080  ;;  %v10019_v47 = vadd.f32 1.0, %v15079_v36  ;;  %v18725_v63 = vadd.f32 %v12380_v19, %v9051_v40  ;;  %v11870_v40 = vmul.f32 -1.442695, %v12684_v34  ;;  %v12687_v19 = vadd.f32 %v18622_v46, %v18337_v56 }
 0x866   : > { %v15083_v11 = vpop.eup %15082  ;;  %15102 = vrcp.f32 %v10018_v10  ;;  %v10024_v28 = vadd.f32 1.0, %v15081_v15  ;;  %v12686_v10 = vadd.f32 %v18618_v13, %v18339_v25  ;;  %v11876_v13 = vmul.f32 -1.442695, %v12685_v27 }
 0x867   : > { %v15085_v9 = vpop.eup %15084  ;;  %15104 = vrcp.f32 %v10019_v47  ;;  %v10025_v12 = vadd.f32 1.0, %v15083_v11  ;;  %v10852_v47 = vpop.permute.xlu0 %10851  ;;  %v11878_v46 = vmul.f32 -1.442695, %v18626_v20  ;;  %v12689_v27 = vadd.f32 %v18638_v61, %v18337_v56 }
 0x868   : > { %v15087_v58 = vpop.eup %15086  ;;  %15106 = vrcp.f32 %v10024_v28  ;;  %v10026_v30 = vadd.f32 1.0, %v15085_v9  ;;  %v11877_v2 = vmul.f32 -1.442695, %v12686_v10  ;;  %v12688_v9 = vadd.f32 %v18624_v39, %v18339_v25 }
 0x869   : > { %v15089_v23 = vpop.eup %15088  ;;  %15108 = vrcp.f32 %v10025_v12  ;;  %v10031_v6 = vadd.f32 1.0, %v15087_v58  ;;  %v10854_v12 = vpop.permute.xlu1 %10853  ;;  %v12690_v10 = vadd.f32 %v18642_v41, %v18339_v25  ;;  %v11890_v61 = vmul.f32 -1.442695, %v12689_v27 }
 0x86a   : > { %v15091_v45 = vpop.eup %15090  ;;  %15110 = vrcp.f32 %v10026_v30  ;;  %v10032_v43 = vadd.f32 1.0, %v15089_v23  ;;  %v11883_v30 = vmul.f32 -1.442695, %v12687_v19  ;;  %v11884_v3 = vmul.f32 -1.442695, %v12688_v9 }
 0x86b   : > { %v15093_v4 = vpop.eup %15092  ;;  %15112 = vrcp.f32 %v10031_v6  ;;  %v10033_v26 = vadd.f32 1.0, %v15091_v45  ;;  %v10856_v39 = vpop.permute.xlu0 %10855  ;;  %v12691_v19 = vadd.f32 %v18648_v52, %v18337_v56  ;;  %v12692_v41 = vadd.f32 %v18652_v57, %v18339_v25 }
 0x86c   : > { %v15095_v48 = vpop.eup %15094  ;;  %10682 = vst [vmem:[%s17669_s10 + $0x3d8] sm:$0xff] %v15093_v4  ;;  %15114 = vrcp.f32 %v10032_v43  ;;  %v11892_v52 = vmul.f32 -1.442695, %v18661_v32 }
 0x86d   : > { %v15097_v18 = vpop.eup %15096  ;;  %15116 = vrcp.f32 %v10033_v26  ;;  %v10038_v5 = vadd.f32 1.0, %v15095_v48  ;;  %v10858_v9 = vpop.permute.xlu1 %10857  ;;  %v11897_v57 = vmul.f32 -1.442695, %v12691_v19  ;;  %v12698_v19 = vadd.f32 %v18709_v35, %v18339_v25 }
 0x86e   : > { %v15099_v49 = vpop.eup %15098  ;;  %10683 = vst [vmem:[%s17669_s10 + $0x3e0] sm:$0xff] %v15097_v18  ;;  %15118 = vpow2.f32 %v11856_v14 }
 0x86f   : > { %v15101_v31 = vpop.eup %15100  ;;  %10684 = vst [vmem:[%s17669_s10 + $0x3e8] sm:$0xff] %v15099_v49  ;;  %15120 = vrcp.f32 %v10038_v5 }
 0x870   : > { %v15103_v36 = vpop.eup %15102  ;;  %10929 = vst.msk [vmem:[%s17669_s10 + $0x3e8] sm:$0xff] %vm10911_vm0, %v10850_v16  ;;  %10689 = vst [vmem:[%s17669_s10 + $0x410] sm:$0xff] %v15101_v31  ;;  %15122 = vpow2.f32 %v11857_v50 }
 0x871   : > { %v15105_v15 = vpop.eup %15104  ;;  %10690 = vst [vmem:[%s17669_s10 + $0x418] sm:$0xff] %v15103_v36  ;;  %15124 = vpow2.f32 %v11862_v7 }
 0x872   : > { %v15107_v54 = vpop.eup %15106  ;;  %10691 = vst [vmem:[%s17669_s10 + $0x420] sm:$0xff] %v15105_v15  ;;  %15126 = vpow2.f32 %v11863_v21 }
 0x873   : > { %v15109_v11 = vpop.eup %15108  ;;  %10930 = vst.msk [vmem:[%s17669_s10 + $0x420] sm:$0xff] %vm10911_vm0, %v10852_v47  ;;  %10696 = vst [vmem:[%s17669_s10 + $0x448] sm:$0xff] %v15107_v54  ;;  %15128 = vpow2.f32 %v11864_v8  ;;  %v11885_v54 = vmul.f32 -1.442695, %v18636_v24 }
 0x874   : > { %v15111_v28 = vpop.eup %15110  ;;  %10697 = vst [vmem:[%s17669_s10 + $0x450] sm:$0xff] %v15109_v11  ;;  %15130 = vpow2.f32 %v11869_v62 }
 0x875   : > { %v15113_v38 = vpop.eup %15112  ;;  %10698 = vst [vmem:[%s17669_s10 + $0x458] sm:$0xff] %v15111_v28  ;;  %15132 = vpow2.f32 %v11870_v40  ;;  %v11891_v28 = vmul.f32 -1.442695, %v12690_v10 }
 0x876   : > { %v15115_v58 = vpop.eup %15114  ;;  %10931 = vst.msk [vmem:[%s17669_s10 + $0x458] sm:$0xff] %vm10911_vm0, %v10854_v12  ;;  %10703 = vst [vmem:[%s17669_s10 + $0x480] sm:$0xff] %v15113_v38  ;;  %15134 = vpow2.f32 %v11871_v53  ;;  %v12693_v38 = vadd.f32 %v18675_v22, %v18337_v56  ;;  %v11899_v22 = vmul.f32 -1.442695, %v18668_v42 }
 0x877   : > { %v15117_v23 = vpop.eup %15116  ;;  %10704 = vst [vmem:[%s17669_s10 + $0x488] sm:$0xff] %v15115_v58  ;;  %15136 = vpow2.f32 %v11876_v13 }
 0x878   : > { %v15119_v6 = vpop.eup %15118  ;;  %10705 = vst [vmem:[%s17669_s10 + $0x490] sm:$0xff] %v15117_v23  ;;  %15138 = vpow2.f32 %v11877_v2  ;;  %v10860_v23 = vpop.permute.xlu0 %10859 }
 0x879   : > { %v15121_v45 = vpop.eup %15120  ;;  %10932 = vst.msk [vmem:[%s17669_s10 + $0x490] sm:$0xff] %vm10911_vm0, %v10856_v39  ;;  %v10039_v43 = vadd.f32 1.0, %v15119_v6  ;;  %15140 = vpow2.f32 %v11878_v46  ;;  %v12694_v46 = vadd.f32 %v18678_v37, %v18339_v25  ;;  %v12695_v6 = vadd.f32 %v18684_v0, %v18337_v56 }
 0x87a   : > { %v15123_v20 = vpop.eup %15122  ;;  %10710 = vst [vmem:[%s17669_s10 + $0x4b8] sm:$0xff] %v15121_v45  ;;  %15142 = vpow2.f32 %v11883_v30  ;;  %v11898_v30 = vmul.f32 -1.442695, %v12692_v41  ;;  %v11904_v37 = vmul.f32 -1.442695, %v12693_v38 }
 0x87b   : > { %v15125_v14 = vpop.eup %15124  ;;  %15144 = vrcp.f32 %v10039_v43  ;;  %v10040_v17 = vadd.f32 1.0, %v15123_v20  ;;  %v11905_v43 = vmul.f32 -1.442695, %v12694_v46  ;;  %v10862_v20 = vpop.permute.xlu1 %10861  ;;  %v11906_v0 = vmul.f32 -1.442695, %v18694_v1 }
 0x87c   : > { %v15127_v4 = vpop.eup %15126  ;;  %v10045_v26 = vadd.f32 1.0, %v15125_v14  ;;  %15146 = vpow2.f32 %v11884_v3  ;;  %v12696_v3 = vadd.f32 %v18691_v29, %v18339_v25  ;;  %v11911_v29 = vmul.f32 -1.442695, %v12695_v6 }
 0x87d   : > { %v15129_v48 = vpop.eup %15128  ;;  %15148 = vrcp.f32 %v10040_v17  ;;  %v10046_v50 = vadd.f32 1.0, %v15127_v4  ;;  %v11913_v1 = vmul.f32 -1.442695, %v18704_v60  ;;  %v11919_v38 = vmul.f32 -1.442695, %v12698_v19 }
 0x87e   : > { %v15131_v55 = vpop.eup %15130  ;;  %15150 = vrcp.f32 %v10045_v26  ;;  %v10047_v18 = vadd.f32 1.0, %v15129_v48  ;;  %v11912_v4 = vmul.f32 -1.442695, %v12696_v3  ;;  %v10864_v48 = vpop.permute.xlu0 %10863 }
 0x87f   : > { %v15133_v5 = vpop.eup %15132  ;;  %15152 = vrcp.f32 %v10046_v50  ;;  %v10052_v7 = vadd.f32 1.0, %v15131_v55 }
 0x880   : > { %v15135_v34 = vpop.eup %15134  ;;  %15154 = vrcp.f32 %v10047_v18  ;;  %v10053_v49 = vadd.f32 1.0, %v15133_v5 }
 0x881   : > { %v15137_v21 = vpop.eup %15136  ;;  %15156 = vrcp.f32 %v10052_v7  ;;  %v10054_v31 = vadd.f32 1.0, %v15135_v34 }
 0x882   : > { %v15139_v16 = vpop.eup %15138  ;;  %15158 = vrcp.f32 %v10053_v49  ;;  %v10059_v8 = vadd.f32 1.0, %v15137_v21 }
 0x883   : > { %v15141_v36 = vpop.eup %15140  ;;  %15160 = vrcp.f32 %v10054_v31  ;;  %v10060_v62 = vadd.f32 1.0, %v15139_v16 }
 0x884   : > { %v15143_v15 = vpop.eup %15142  ;;  %15162 = vrcp.f32 %v10059_v8  ;;  %v10061_v40 = vadd.f32 1.0, %v15141_v36 }
 0x885   : > { %v15145_v47 = vpop.eup %15144  ;;  %15164 = vrcp.f32 %v10060_v62  ;;  %v10066_v53 = vadd.f32 1.0, %v15143_v15  ;;  %v12697_v15 = vadd.f32 %v18706_v33, %v18337_v56  ;;  %v12699_v33 = vadd.f32 %v18715_v44, %v18337_v56 }
 0x886   : > { %v15147_v11 = vpop.eup %15146  ;;  %10711 = vst [vmem:[%s17669_s10 + $0x4c0] sm:$0xff] %v15145_v47  ;;  %15166 = vrcp.f32 %v10061_v40  ;;  %v11920_v56 = vmul.f32 -1.442695, %v18719_v51 }
 0x887   : > { %v15149_v13 = vpop.eup %15148  ;;  %15168 = vrcp.f32 %v10066_v53  ;;  %v10067_v24 = vadd.f32 1.0, %v15147_v11 }
 0x888   : > { %v15151_v2 = vpop.eup %15150  ;;  %10712 = vst [vmem:[%s17669_s10 + $0x4c8] sm:$0xff] %v15149_v13  ;;  %15170 = vpow2.f32 %v11885_v54 }
 0x889   : > { %v15153_v12 = vpop.eup %15152  ;;  %10933 = vst.msk [vmem:[%s17669_s10 + $0x4c8] sm:$0xff] %vm10911_vm0, %v10858_v9  ;;  %10717 = vst [vmem:[%s17669_s10 + $0x4f0] sm:$0xff] %v15151_v2  ;;  %15172 = vrcp.f32 %v10067_v24  ;;  %v11918_v24 = vmul.f32 -1.442695, %v12697_v15  ;;  %v12700_v9 = vadd.f32 %v18717_v59, %v18339_v25  ;;  %v11925_v25 = vmul.f32 -1.442695, %v12699_v33 }
 0x88a   : > { %v15155_v58 = vpop.eup %15154  ;;  %10718 = vst [vmem:[%s17669_s10 + $0x4f8] sm:$0xff] %v15153_v12  ;;  %15174 = vpow2.f32 %v11890_v61 }
 0x88b   : > { %v15157_v32 = vpop.eup %15156  ;;  %10719 = vst [vmem:[%s17669_s10 + $0x500] sm:$0xff] %v15155_v58  ;;  %15176 = vpow2.f32 %v11891_v28  ;;  %v11926_v46 = vmul.f32 -1.442695, %v12700_v9 }
 0x88c   : > { %v15159_v39 = vpop.eup %15158  ;;  %10934 = vst.msk [vmem:[%s17669_s10 + $0x500] sm:$0xff] %vm10911_vm0, %v10860_v23  ;;  %10724 = vst [vmem:[%s17669_s10 + $0x528] sm:$0xff] %v15157_v32  ;;  %15178 = vpow2.f32 %v11892_v52  ;;  %v10866_v52 = vpop.permute.xlu1 %10865  ;;  %v11927_v32 = vmul.f32 -1.442695, %v18725_v63 }
 0x88d   : > { %v15161_v45 = vpop.eup %15160  ;;  %10725 = vst [vmem:[%s17669_s10 + $0x530] sm:$0xff] %v15159_v39  ;;  %15180 = vpow2.f32 %v11897_v57 }
 0x88e   : > { %v15163_v42 = vpop.eup %15162  ;;  %10726 = vst [vmem:[%s17669_s10 + $0x538] sm:$0xff] %v15161_v45  ;;  %15182 = vpow2.f32 %v11898_v30  ;;  %v10868_v30 = vpop.permute.xlu0 %10867 }
 0x88f   : > { %v15165_v14 = vpop.eup %15164  ;;  %10935 = vst.msk [vmem:[%s17669_s10 + $0x538] sm:$0xff] %vm10911_vm0, %v10862_v20  ;;  %10731 = vst [vmem:[%s17669_s10 + $0x560] sm:$0xff] %v15163_v42  ;;  %15184 = vpow2.f32 %v11899_v22 }
 0x890   : > { %v15167_v17 = vpop.eup %15166  ;;  %10732 = vst [vmem:[%s17669_s10 + $0x568] sm:$0xff] %v15165_v14  ;;  %15186 = vpow2.f32 %v11904_v37  ;;  %v10870_v6 = vpop.permute.xlu1 %10869 }
 0x891   : > { %v15169_v26 = vpop.eup %15168  ;;  %10733 = vst [vmem:[%s17669_s10 + $0x570] sm:$0xff] %v15167_v17  ;;  %15188 = vpow2.f32 %v11905_v43 }
 0x892   : > { %v15171_v50 = vpop.eup %15170  ;;  %10936 = vst.msk [vmem:[%s17669_s10 + $0x570] sm:$0xff] %vm10911_vm0, %v10864_v48  ;;  %10738 = vst [vmem:[%s17669_s10 + $0x598] sm:$0xff] %v15169_v26  ;;  %15190 = vpow2.f32 %v11906_v0  ;;  %v10872_v3 = vpop.permute.xlu0 %10871 }
 0x893   : > { %v15173_v55 = vpop.eup %15172  ;;  %v10068_v18 = vadd.f32 1.0, %v15171_v50  ;;  %15192 = vpow2.f32 %v11911_v29 }
 0x894   : > { %v15175_v5 = vpop.eup %15174  ;;  %10739 = vst [vmem:[%s17669_s10 + $0x5a0] sm:$0xff] %v15173_v55  ;;  %15194 = vpow2.f32 %v11912_v4  ;;  %v10874_v14 = vpop.permute.xlu1 %10873 }
 0x895   : > { %v15177_v7 = vpop.eup %15176  ;;  %15196 = vrcp.f32 %v10068_v18  ;;  %v10073_v34 = vadd.f32 1.0, %v15175_v5 }
 0x896   : > { %v15179_v49 = vpop.eup %15178  ;;  %v10074_v21 = vadd.f32 1.0, %v15177_v7  ;;  %15198 = vpow2.f32 %v11913_v1 }
 0x897   : > { %v15181_v31 = vpop.eup %15180  ;;  %15200 = vrcp.f32 %v10073_v34  ;;  %v10075_v16 = vadd.f32 1.0, %v15179_v49 }
 0x898   : > { %v15183_v8 = vpop.eup %15182  ;;  %15202 = vrcp.f32 %v10074_v21  ;;  %v10080_v27 = vadd.f32 1.0, %v15181_v31  ;;  %v10876_v21 = vpop.permute.xlu0 %10875 }
 0x899   : > { %v15185_v36 = vpop.eup %15184  ;;  %15204 = vrcp.f32 %v10075_v16  ;;  %v10081_v60 = vadd.f32 1.0, %v15183_v8  ;;  %v10878_v8 = vpop.permute.xlu1 %10877 }
 0x89a   : > { %v15187_v62 = vpop.eup %15186  ;;  %15206 = vrcp.f32 %v10080_v27  ;;  %v10082_v10 = vadd.f32 1.0, %v15185_v36 }
 0x89b   : > { %v15189_v40 = vpop.eup %15188  ;;  %15208 = vrcp.f32 %v10081_v60  ;;  %v10087_v54 = vadd.f32 1.0, %v15187_v62 }
 0x89c   : > { %v15191_v47 = vpop.eup %15190  ;;  %15210 = vrcp.f32 %v10082_v10  ;;  %v10088_v53 = vadd.f32 1.0, %v15189_v40 }
 0x89d   : > { %v15193_v11 = vpop.eup %15192  ;;  %15212 = vrcp.f32 %v10087_v54  ;;  %v10089_v61 = vadd.f32 1.0, %v15191_v47 }
 0x89e   : > { %v15195_v41 = vpop.eup %15194  ;;  %15214 = vrcp.f32 %v10088_v53  ;;  %v10094_v13 = vadd.f32 1.0, %v15193_v11 }
 0x89f   : > { %v15197_v28 = vpop.eup %15196  ;;  %15216 = vrcp.f32 %v10089_v61  ;;  %v10095_v2 = vadd.f32 1.0, %v15195_v41 }
 0x8a0   : > { %v15199_v35 = vpop.eup %15198  ;;  %10740 = vst [vmem:[%s17669_s10 + $0x5a8] sm:$0xff] %v15197_v28  ;;  %15218 = vrcp.f32 %v10094_v13 }
 0x8a1   : > { %v15201_v12 = vpop.eup %15200  ;;  %10937 = vst.msk [vmem:[%s17669_s10 + $0x5a8] sm:$0xff] %vm10911_vm0, %v10866_v52  ;;  %15220 = vrcp.f32 %v10095_v2  ;;  %v10096_v57 = vadd.f32 1.0, %v15199_v35 }
 0x8a2   : > { %v15203_v44 = vpop.eup %15202  ;;  %10745 = vst [vmem:[%s17669_s10 + $0x5d0] sm:$0xff] %v15201_v12  ;;  %15222 = vpow2.f32 %v11918_v24 }
 0x8a3   : > { %v15205_v59 = vpop.eup %15204  ;;  %10746 = vst [vmem:[%s17669_s10 + $0x5d8] sm:$0xff] %v15203_v44  ;;  %15224 = vrcp.f32 %v10096_v57 }
 0x8a4   : > { %v15207_v58 = vpop.eup %15206  ;;  %10747 = vst [vmem:[%s17669_s10 + $0x5e0] sm:$0xff] %v15205_v59  ;;  %15226 = vpow2.f32 %v11919_v38 }
 0x8a5   : > { %v15209_v51 = vpop.eup %15208  ;;  %10938 = vst.msk [vmem:[%s17669_s10 + $0x5e0] sm:$0xff] %vm10911_vm0, %v10868_v30  ;;  %10752 = vst [vmem:[%s17669_s10 + $0x608] sm:$0xff] %v15207_v58  ;;  %15228 = vpow2.f32 %v11920_v56 }
 0x8a6   : > { %v15211_v23 = vpop.eup %15210  ;;  %10753 = vst [vmem:[%s17669_s10 + $0x610] sm:$0xff] %v15209_v51  ;;  %15230 = vpow2.f32 %v11925_v25 }
 0x8a7   : > { %v15213_v22 = vpop.eup %15212  ;;  %10754 = vst [vmem:[%s17669_s10 + $0x618] sm:$0xff] %v15211_v23  ;;  %15232 = vpow2.f32 %v11926_v46 }
 0x8a8   : > { %v15215_v39 = vpop.eup %15214  ;;  %10939 = vst.msk [vmem:[%s17669_s10 + $0x618] sm:$0xff] %vm10911_vm0, %v10870_v6  ;;  %10759 = vst [vmem:[%s17669_s10 + $0x640] sm:$0xff] %v15213_v22  ;;  %15234 = vpow2.f32 %v11927_v32 }
 0x8a9   : > { %v15217_v63 = vpop.eup %15216  ;;  %10760 = vst [vmem:[%s17669_s10 + $0x648] sm:$0xff] %v15215_v39 }
 0x8aa   : > { %v15219_v37 = vpop.eup %15218  ;;  %10761 = vst [vmem:[%s17669_s10 + $0x650] sm:$0xff] %v15217_v63 }
 0x8ab   : > { %v15221_v45 = vpop.eup %15220  ;;  %10940 = vst.msk [vmem:[%s17669_s10 + $0x650] sm:$0xff] %vm10911_vm0, %v10872_v3  ;;  %10766 = vst [vmem:[%s17669_s10 + $0x678] sm:$0xff] %v15219_v37 }
 0x8ac   : > { %v15223_v43 = vpop.eup %15222  ;;  %10767 = vst [vmem:[%s17669_s10 + $0x680] sm:$0xff] %v15221_v45 }
 0x8ad   : > { %v15225_v42 = vpop.eup %15224  ;;  %v10101_v20 = vadd.f32 1.0, %v15223_v43 }
 0x8ae   : > { %v15227_v0 = vpop.eup %15226  ;;  %10768 = vst [vmem:[%s17669_s10 + $0x688] sm:$0xff] %v15225_v42 }
 0x8af   : > { %v15229_v29 = vpop.eup %15228  ;;  %10941 = vst.msk [vmem:[%s17669_s10 + $0x688] sm:$0xff] %vm10911_vm0, %v10874_v14  ;;  %15236 = vrcp.f32 %v10101_v20  ;;  %v10102_v17 = vadd.f32 1.0, %v15227_v0 }
 0x8b0   : > { %v15231_v4 = vpop.eup %15230  ;;  %v10103_v26 = vadd.f32 1.0, %v15229_v29 }
 0x8b1   : > { %v15233_v48 = vpop.eup %15232  ;;  %15238 = vrcp.f32 %v10102_v17  ;;  %v10108_v50 = vadd.f32 1.0, %v15231_v4 }
 0x8b2   : > { %v15235_v1 = vpop.eup %15234  ;;  %15240 = vrcp.f32 %v10103_v26  ;;  %v10109_v55 = vadd.f32 1.0, %v15233_v48 }
 0x8b3   : > { %15242 = vrcp.f32 %v10108_v50  ;;  %v10110_v18 = vadd.f32 1.0, %v15235_v1 }
 0x8b4   : > { %15244 = vrcp.f32 %v10109_v55 }
 0x8b5   : > { %15246 = vrcp.f32 %v10110_v18 }
 0x8b9   : > { %v15237_v5 = vpop.eup %15236 }
 0x8ba   : > { %10773 = vst [vmem:[%s17669_s10 + $0x6b0] sm:$0xff] %v15237_v5 }
 0x8bb   : > { %v15239_v7 = vpop.eup %15238 }
 0x8bc   : > { %v15241_v34 = vpop.eup %15240  ;;  %10774 = vst [vmem:[%s17669_s10 + $0x6b8] sm:$0xff] %v15239_v7 }
 0x8bd   : > { %v15243_v49 = vpop.eup %15242  ;;  %10775 = vst [vmem:[%s17669_s10 + $0x6c0] sm:$0xff] %v15241_v34 }
 0x8be   : > { %v15245_v31 = vpop.eup %15244  ;;  %10942 = vst.msk [vmem:[%s17669_s10 + $0x6c0] sm:$0xff] %vm10911_vm0, %v10876_v21  ;;  %10780 = vst [vmem:[%s17669_s10 + $0x6e8] sm:$0xff] %v15243_v49 }
 0x8bf   : > { %v15247_v16 = vpop.eup %15246  ;;  %10781 = vst [vmem:[%s17669_s10 + $0x6f0] sm:$0xff] %v15245_v31 }
 0x8c0   : > { %10782 = vst [vmem:[%s17669_s10 + $0x6f8] sm:$0xff] %v15247_v16 }
 0x8c1   : > { %10943 = vst.msk [vmem:[%s17669_s10 + $0x6f8] sm:$0xff] %vm10911_vm0, %v10878_v8 }
 0x8c2   : > { %15432 = shalt.err (!%p15429_p6)
}
 0x8c3   : > { %s15433_s29 = scalar_lea.hbm %s18854_s8, 28672  ;;  %s15437_s2 = scalar_lea.hbm %s18911_s7, 57344 }
 0x8c4   : > { %p15434_p10 = scmp.ne.s32.totalorder %s18854_s8, %s15433_s29  ;;  %p15438_p5 = scmp.lt.u32.totalorder %s18854_s8, %s18911_s7 }
 0x8c5   : > { %p15439_p9 = scmp.lt.u32.totalorder %s15437_s2, %s15433_s29  ;;  %p15441_p4 = scmp.lt.u32.totalorder %s15433_s29, %s18854_s8 }
 0x8c6   : > { %p15435_p11 = pnand %p15434_p10, %p19289_p12 }
 0x8c7   : > { %p15440_p7 = por %p15439_p9, %p15438_p5 }
 0x8c8   : > { %p15436_p3 = pneg %p15435_p11 }
 0x8c9   : > { %p15442_p1 = por %p15441_p4, %p15440_p7 }
 0x8cb   : > { %p15443_p13 = pnand %p15442_p1, %p15436_p3 }
 0x8cd   : > { %15446 = shalt.err (!%p15443_p13)
}
 0x8ce   : > { %s15516_s13 = smov 896   ;;  %s15517_s12 = smov 56  }
 0x8cf   : > { %13304 = dma.vmem_to_hbm [thread:$0]  (%p19289_p12), %s18857_s23, 28672, %s18854_s8, %s10945_s30, %s15516_s13, %s15516_s13, %s15517_s12  }
 0x8d0 PF: > { %s10974_s9 = sand.u32 1, %s15485_s24   ;;  %p19290_p0 = scmp.ne.s32.totalorder %s19041_s14, 0 }
 0x8d1   : > { %p19291_p2 = scmp.ge.s32.totalorder %s15497_s27, 2  ;;  %s10975_s16 = scalar_lea.sflag [#allocation4], %s10974_s9 }
 0x8d3   : > { %p13327_p8 = pnand %p19291_p2, %p19290_p0 }
 0x8d5   : > { %15480 = dma.done.wait (!%p13327_p8), %s10975_s16, 28672  }
 0x8d6   : > { %15482 = vsyncadd (!%p13327_p8), %s10975_s16, 4294938624  ;;  %p23_p6 = scmp.ge.s32.totalorder %s15719_s11, 4   ;;  %s19292_s24 = smov %s15489_s25 }
 0x8d7   : > { %s19293_s25 = smov %s15493_s26  ;;  %s19294_s26 = smov %s15731_s28 }
 0x8d8   : > { %s19295_s27 = smov %s15719_s11  ;;  %25 = sbr.rel (!%p23_p6) target bundleno = 10 (0xa), region = 119 }
 0x8df   :  { %10980 = vsyncpa [#allocation3], 1 }
 0x8e0   :  { %10982 = vsyncpa [#allocation3 + $0x1], 1 }
 0x8e1   :  { %10983 = vsyncpa [#allocation6], 1 }
 0x8e2   :  { %10984 = vsyncpa [#allocation9], 1 }
 0x8e3   :  { %10985 = vsyncpa [#allocation12], 1 }
 0x8e4   :  { %10986 = vsyncpa [#allocation4], 1 }
 0x8e5   :  { %10988 = vsyncpa [#allocation4 + $0x1], 1 }

</bundles_post_ra>
